<compile_context>
chip_gen: v7x
topology: tpu7x:2x2x1
jax: 0.10.0
libtpu: 0.0.40
codegen_flags: <defaults>
</compile_context>

<pallas_src>
import numpy as np
import jax
import jax.numpy as jnp
from jax.experimental import pallas as pl
from jax.experimental.pallas import tpu as pltpu


# ----------------------------------------------------------------------------
# Host-side (trace-time) constant 0/1 spatial-operator matrices.
# ----------------------------------------------------------------------------
def _gather_mats(H, W):
    """(9, M, M); (a @ G[t])[:, j] = a[:, j + dh*W + dw] when (h+dh, w+dw) is
    inside the image, else 0 (zero padding).  Tap order t = (dh+1)*3+(dw+1)."""
    M = H * W
    g = np.zeros((9, M, M), np.float32)
    for dh in (-1, 0, 1):
        for dw in (-1, 0, 1):
            t = (dh + 1) * 3 + (dw + 1)
            for c in range(M):
                h, w = divmod(c, W)
                hh, ww = h + dh, w + dw
                if 0 <= hh < H and 0 <= ww < W:
                    g[t, hh * W + ww, c] = 1.0
    return jnp.asarray(g)


def _pool_mats(H, W):
    """(4, M, M/4); `a @ P[k]` selects corner k of every 2x2 window."""
    M = H * W
    Ho, Wo = H // 2, W // 2
    p = np.zeros((4, M, Ho * Wo), np.float32)
    for kh in (0, 1):
        for kw in (0, 1):
            k = kh * 2 + kw
            for o in range(Ho * Wo):
                oh, ow = divmod(o, Wo)
                p[k, (2 * oh + kh) * W + (2 * ow + kw), o] = 1.0
    return jnp.asarray(p)


def _scatter_mats(Hi, Wi):
    """(4, Mi, 4*Mi); `y @ S[k]` places input pixel (hi, wi) at output pixel
    (2*hi+kh, 2*wi+kw) of the 2x-upsampled grid.  Tap order k = kh*2+kw."""
    Mi = Hi * Wi
    Wo = 2 * Wi
    s = np.zeros((4, Mi, 4 * Mi), np.float32)
    for kh in (0, 1):
        for kw in (0, 1):
            k = kh * 2 + kw
            for r in range(Mi):
                hi, wi = divmod(r, Wi)
                s[k, r, (2 * hi + kh) * Wo + (2 * wi + kw)] = 1.0
    return jnp.asarray(s)


# ----------------------------------------------------------------------------
# The fused forward kernel (one image per grid step; activations are (C, H*W)).
# ----------------------------------------------------------------------------
def _ae_fused_kernel(cols1_ref, w1_ref, b1_ref, w2_ref, b2_ref,
                     wt1_ref, bt1_ref, wt2_ref, bt2_ref, wt3_ref, bt3_ref,
                     w4_ref, b4_ref,
                     g8_ref, g16_ref, p16_ref, p8_ref, s4_ref, s8_ref,
                     out_ref):
    f32 = jnp.float32

    def dot(a, b):
        return jnp.dot(a, b, preferred_element_type=f32)

    def conv3x3_relu(a, w_ref, b_ref, g_ref, contract_first):
        # out[co, j] = relu(b[co] + sum_{t,ci} w[t,co,ci] * a[ci, j+s_t] * valid_t(j))
        acc = None
        for t in range(9):
            if contract_first:            # cheaper when Cout < Cin
                c = dot(dot(w_ref[t], a), g_ref[t])
            else:                         # cheaper when Cin < Cout
                c = dot(w_ref[t], dot(a, g_ref[t]))
            acc = c if acc is None else acc + c
        return jnp.maximum(acc + b_ref[...], 0.0)

    def maxpool2x2(a, p_ref):
        out = None
        for k in range(4):
            g = dot(a, p_ref[k])
            out = g if out is None else jnp.maximum(out, g)
        return out

    def deconv2x2_relu(a, w_ref, b_ref, s_ref):
        # ConvT(k=2, s=2): per-tap channel contraction, then scatter to 2x grid.
        acc = None
        for k in range(4):
            c = dot(dot(w_ref[k], a), s_ref[k])
            acc = c if acc is None else acc + c
        return jnp.maximum(acc + b_ref[...], 0.0)

    # ---------------- encoder ----------------
    cols1 = cols1_ref[0]                                           # (16, 256) im2col of input
    y1 = jnp.maximum(dot(w1_ref[...], cols1) + b1_ref[...], 0.0)   # Conv(1->64)+ReLU     (64, 256)
    p1 = maxpool2x2(y1, p16_ref)                                   # MaxPool (+ReLU noop) (64, 64)
    y2 = conv3x3_relu(p1, w2_ref, b2_ref, g8_ref, False)           # Conv(64->128)+ReLU   (128, 64)
    p2 = maxpool2x2(y2, p8_ref)                                    # MaxPool              (128, 16)

    # ---------------- decoder ----------------
    d1 = deconv2x2_relu(p2, wt1_ref, bt1_ref, s4_ref)              # ConvT(128->128,2,2)+ReLU (128, 64)
    d2 = conv3x3_relu(d1, wt2_ref, bt2_ref, g8_ref, True)          # ConvT(128->64,3,1,1)+ReLU (64, 64)
    d3 = deconv2x2_relu(d2, wt3_ref, bt3_ref, s8_ref)              # ConvT(64->64,2,2)+ReLU   (64, 256)

    # ConvT(64->1,3,1,1)+Tanh: contract channels first (Cout=1), then shift the
    # 9 per-tap rows with the 16x16 gather matrices and sum.
    t9 = dot(w4_ref[...], d3)                                      # (9, 256)
    acc = None
    for t in range(9):
        row = dot(t9, g16_ref[t])[t:t + 1, :]                      # (1, 256)
        acc = row if acc is None else acc + row
    out_ref[0] = jnp.tanh(acc + b4_ref[...])                       # (1, 256)


# ----------------------------------------------------------------------------
# Wrapper: tiny weight rearrangements + first-layer im2col + pallas_call.
# ----------------------------------------------------------------------------
def _im2col_conv1(x_nchw):
    """(N,1,16,16) -> (N,16,256): 9 shifted copies of the zero-padded input,
    plus 7 zero rows so the contraction dim is a multiple of 8."""
    N = x_nchw.shape[0]
    xi = x_nchw[:, 0, :, :]
    xp = jnp.pad(xi, ((0, 0), (1, 1), (1, 1)))
    rows = [xp[:, kh:kh + 16, kw:kw + 16].reshape(N, 1, 256)
            for kh in range(3) for kw in range(3)]
    cols = jnp.concatenate(rows, axis=1)                           # (N, 9, 256)
    return jnp.pad(cols, ((0, 0), (0, 7), (0, 0)))                 # (N, 16, 256)


def _prep_conv1_w(w):        # Conv2d (64,1,3,3) -> (64,16), tap-major, zero-padded K
    return jnp.pad(w.reshape(64, 9), ((0, 0), (0, 7)))


def _taps_conv3(w):          # Conv2d (Cout,Cin,3,3) -> (9,Cout,Cin), t = kh*3+kw
    co, ci = w.shape[0], w.shape[1]
    return jnp.transpose(w.reshape(co, ci, 9), (2, 0, 1))


def _taps_convT3(w):         # ConvT 3x3 (Cin,Cout,3,3) -> (9,Cout,Cin), spatially flipped
    ci, co = w.shape[0], w.shape[1]
    wf = w[:, :, ::-1, ::-1]
    return jnp.transpose(wf.reshape(ci, co, 9), (2, 1, 0))


def _taps_convT3_row(w):     # ConvT 3x3, Cout=1 (Cin,1,3,3) -> (9,Cin), flipped
    ci = w.shape[0]
    wf = w[:, 0, ::-1, ::-1]
    return jnp.transpose(wf.reshape(ci, 9), (1, 0))


def _taps_convT2(w):         # ConvT 2x2 (Cin,Cout,2,2) -> (4,Cout,Cin), t = kh*2+kw
    ci, co = w.shape[0], w.shape[1]
    return jnp.transpose(w.reshape(ci, co, 4), (2, 1, 0))


def _full_spec(shape):
    zeros = (0,) * len(shape)
    return pl.BlockSpec(shape, lambda n, _z=zeros: _z)


def net_forward(params, x_nchw):
    x = x_nchw.astype(jnp.float32)
    N = x.shape[0]
    assert x.shape[1:] == (1, 16, 16), x.shape

    cols1 = _im2col_conv1(x)

    w1 = _prep_conv1_w(params["enc_conv1_w"]);   b1 = params["enc_conv1_b"].reshape(64, 1)
    w2 = _taps_conv3(params["enc_conv2_w"]);     b2 = params["enc_conv2_b"].reshape(128, 1)
    wt1 = _taps_convT2(params["dec_ct1_w"]);     bt1 = params["dec_ct1_b"].reshape(128, 1)
    wt2 = _taps_convT3(params["dec_ct2_w"]);     bt2 = params["dec_ct2_b"].reshape(64, 1)
    wt3 = _taps_convT2(params["dec_ct3_w"]);     bt3 = params["dec_ct3_b"].reshape(64, 1)
    w4 = _taps_convT3_row(params["dec_ct4_w"]);  b4 = params["dec_ct4_b"].reshape(1, 1)

    g8, g16 = _gather_mats(8, 8), _gather_mats(16, 16)
    p16, p8 = _pool_mats(16, 16), _pool_mats(8, 8)
    s4, s8 = _scatter_mats(4, 4), _scatter_mats(8, 8)

    out = pl.pallas_call(
        _ae_fused_kernel,
        out_shape=jax.ShapeDtypeStruct((N, 1, 256), jnp.float32),
        grid=(N,),
        in_specs=[
            pl.BlockSpec((1, 16, 256), lambda n: (n, 0, 0)),      # per-image im2col of input
            _full_spec((64, 16)),       _full_spec((64, 1)),      # enc conv1
            _full_spec((9, 128, 64)),   _full_spec((128, 1)),     # enc conv2
            _full_spec((4, 128, 128)),  _full_spec((128, 1)),     # dec ct1 (2x2, s2)
            _full_spec((9, 64, 128)),   _full_spec((64, 1)),      # dec ct2 (3x3, p1)
            _full_spec((4, 64, 64)),    _full_spec((64, 1)),      # dec ct3 (2x2, s2)
            _full_spec((9, 64)),        _full_spec((1, 1)),       # dec ct4 (3x3, p1)
            _full_spec((9, 64, 64)),                              # gather mats 8x8
            _full_spec((9, 256, 256)),                            # gather mats 16x16
            _full_spec((4, 256, 64)),                             # pool mats 16x16
            _full_spec((4, 64, 16)),                              # pool mats 8x8
            _full_spec((4, 16, 64)),                              # scatter mats 4x4 -> 8x8
            _full_spec((4, 64, 256)),                             # scatter mats 8x8 -> 16x16
        ],
        out_specs=pl.BlockSpec((1, 1, 256), lambda n: (n, 0, 0)),
        compiler_params=pltpu.CompilerParams(
            dimension_semantics=("parallel",)),
    )(cols1, w1, b1, w2, b2, wt1, bt1, wt2, bt2, wt3, bt3, w4, b4,
      g8, g16, p16, p8, s4, s8)

    return out.reshape(N, 1, 16, 16)


# ----------------------------------------------------------------------------
# Pure-JAX reference (PyTorch semantics) for correctness checking.
# ----------------------------------------------------------------------------
def net_reference(params, x):
    relu = lambda t: jnp.maximum(t, 0.0)

    def conv(t, w, b, pad):
        y = jax.lax.conv_general_dilated(
            t, w, (1, 1), ((pad, pad), (pad, pad)),
            dimension_numbers=("NCHW", "OIHW", "NCHW"))
        return y + b.reshape(1, -1, 1, 1)

    def convT(t, w, b, k, s, p):
        wf = jnp.transpose(w[:, :, ::-1, ::-1], (1, 0, 2, 3))     # (Cout,Cin,kh,kw) flipped
        pad = k - 1 - p
        y = jax.lax.conv_general_dilated(
            t, wf, (1, 1), ((pad, pad), (pad, pad)), lhs_dilation=(s, s),
            dimension_numbers=("NCHW", "OIHW", "NCHW"))
        return y + b.reshape(1, -1, 1, 1)

    def pool(t):
        return jax.lax.reduce_window(t, -jnp.inf, jax.lax.max,
                                     (1, 1, 2, 2), (1, 1, 2, 2), "VALID")

    h = relu(conv(x, params["enc_conv1_w"], params["enc_conv1_b"], 1))
    h = relu(pool(h))
    h = relu(conv(h, params["enc_conv2_w"], params["enc_conv2_b"], 1))
    h = pool(h)
    h = relu(convT(h, params["dec_ct1_w"], params["dec_ct1_b"], 2, 2, 0))
    h = relu(convT(h, params["dec_ct2_w"], params["dec_ct2_b"], 3, 1, 1))
    h = relu(convT(h, params["dec_ct3_w"], params["dec_ct3_b"], 2, 2, 0))
    h = jnp.tanh(convT(h, params["dec_ct4_w"], params["dec_ct4_b"], 3, 1, 1))
    return h


# ----------------------------------------------------------------------------
# Deterministic PyTorch-like parameter init.
# ----------------------------------------------------------------------------
def _uniform(key, shape, fan_in):
    bound = 1.0 / float(fan_in) ** 0.5
    return jax.random.uniform(key, shape, jnp.float32, -bound, bound)


def init_params(key):
    ks = jax.random.split(key, 12)
    p = {}
    # encoder: Conv2d weights are (Cout, Cin, kH, kW)
    p["enc_conv1_w"] = _uniform(ks[0], (64, 1, 3, 3), 1 * 9)
    p["enc_conv1_b"] = _uniform(ks[1], (64,), 1 * 9)
    p["enc_conv2_w"] = _uniform(ks[2], (128, 64, 3, 3), 64 * 9)
    p["enc_conv2_b"] = _uniform(ks[3], (128,), 64 * 9)
    # decoder: ConvTranspose2d weights are (Cin, Cout, kH, kW)
    p["dec_ct1_w"] = _uniform(ks[4], (128, 128, 2, 2), 128 * 4)
    p["dec_ct1_b"] = _uniform(ks[5], (128,), 128 * 4)
    p["dec_ct2_w"] = _uniform(ks[6], (128, 64, 3, 3), 128 * 9)
    p["dec_ct2_b"] = _uniform(ks[7], (64,), 128 * 9)
    p["dec_ct3_w"] = _uniform(ks[8], (64, 64, 2, 2), 64 * 4)
    p["dec_ct3_b"] = _uniform(ks[9], (64,), 64 * 4)
    p["dec_ct4_w"] = _uniform(ks[10], (64, 1, 3, 3), 64 * 9)
    p["dec_ct4_b"] = _uniform(ks[11], (1,), 64 * 9)
    return p


if __name__ == "__main__":
    key = jax.random.PRNGKey(0)
    pkey, xkey = jax.random.split(key)
    params = init_params(pkey)
    x = jax.random.normal(xkey, (2, 1, 16, 16), jnp.float32)     # NCHW, 1 channel

    y = jax.jit(net_forward)(params, x)
    y = jax.block_until_ready(y)
    assert y.shape == (2, 1, 16, 16), y.shape
    assert bool(jnp.all(jnp.isfinite(y)))

    y_ref = jax.block_until_ready(net_reference(params, x))
    max_err = float(jnp.max(jnp.abs(y - y_ref)))
    assert max_err < 5e-2, f"max |kernel - reference| = {max_err}"

    print("KERNEL_OK")
</pallas_src>

<mosaic_0001>
module attributes {stable_mosaic.version = 11 : i64} {
  func.func @_ae_fused_kernel(%arg0: i32, %arg1: memref<1x16x256xf32, #tpu.memory_space<vmem>>, %arg2: memref<64x16xf32, #tpu.memory_space<vmem>>, %arg3: memref<64x1xf32, #tpu.memory_space<vmem>>, %arg4: memref<9x128x64xf32, #tpu.memory_space<vmem>>, %arg5: memref<128x1xf32, #tpu.memory_space<vmem>>, %arg6: memref<4x128x128xf32, #tpu.memory_space<vmem>>, %arg7: memref<128x1xf32, #tpu.memory_space<vmem>>, %arg8: memref<9x64x128xf32, #tpu.memory_space<vmem>>, %arg9: memref<64x1xf32, #tpu.memory_space<vmem>>, %arg10: memref<4x64x64xf32, #tpu.memory_space<vmem>>, %arg11: memref<64x1xf32, #tpu.memory_space<vmem>>, %arg12: memref<9x64xf32, #tpu.memory_space<vmem>>, %arg13: memref<1x1xf32, #tpu.memory_space<vmem>>, %arg14: memref<9x64x64xf32, #tpu.memory_space<vmem>>, %arg15: memref<9x256x256xf32, #tpu.memory_space<vmem>>, %arg16: memref<4x256x64xf32, #tpu.memory_space<vmem>>, %arg17: memref<4x64x16xf32, #tpu.memory_space<vmem>>, %arg18: memref<4x16x64xf32, #tpu.memory_space<vmem>>, %arg19: memref<4x64x256xf32, #tpu.memory_space<vmem>>, %arg20: memref<1x1x256xf32, #tpu.memory_space<vmem>>) attributes {dimension_semantics = [#tpu.dimension_semantics<parallel>], iteration_bounds = array<i64: 2>, scalar_prefetch = 0 : i64, scratch_operands = 0 : i64, tpu.core_type = #tpu.core_type<tc>, window_params = [{transform_indices = @transform_0, window_bounds = array<i64: 1, 16, 256>}, {pipeline_mode = #tpu.pipeline_mode<synchronous>, transform_indices = @transform_1, window_bounds = array<i64: 64, 16>}, {pipeline_mode = #tpu.pipeline_mode<synchronous>, transform_indices = @transform_2, window_bounds = array<i64: 64, 1>}, {pipeline_mode = #tpu.pipeline_mode<synchronous>, transform_indices = @transform_3, window_bounds = array<i64: 9, 128, 64>}, {pipeline_mode = #tpu.pipeline_mode<synchronous>, transform_indices = @transform_4, window_bounds = array<i64: 128, 1>}, {pipeline_mode = #tpu.pipeline_mode<synchronous>, transform_indices = @transform_5, window_bounds = array<i64: 4, 128, 128>}, {pipeline_mode = #tpu.pipeline_mode<synchronous>, transform_indices = @transform_6, window_bounds = array<i64: 128, 1>}, {pipeline_mode = #tpu.pipeline_mode<synchronous>, transform_indices = @transform_7, window_bounds = array<i64: 9, 64, 128>}, {pipeline_mode = #tpu.pipeline_mode<synchronous>, transform_indices = @transform_8, window_bounds = array<i64: 64, 1>}, {pipeline_mode = #tpu.pipeline_mode<synchronous>, transform_indices = @transform_9, window_bounds = array<i64: 4, 64, 64>}, {pipeline_mode = #tpu.pipeline_mode<synchronous>, transform_indices = @transform_10, window_bounds = array<i64: 64, 1>}, {pipeline_mode = #tpu.pipeline_mode<synchronous>, transform_indices = @transform_11, window_bounds = array<i64: 9, 64>}, {pipeline_mode = #tpu.pipeline_mode<synchronous>, transform_indices = @transform_12, window_bounds = array<i64: 1, 1>}, {pipeline_mode = #tpu.pipeline_mode<synchronous>, transform_indices = @transform_13, window_bounds = array<i64: 9, 64, 64>}, {pipeline_mode = #tpu.pipeline_mode<synchronous>, transform_indices = @transform_14, window_bounds = array<i64: 9, 256, 256>}, {pipeline_mode = #tpu.pipeline_mode<synchronous>, transform_indices = @transform_15, window_bounds = array<i64: 4, 256, 64>}, {pipeline_mode = #tpu.pipeline_mode<synchronous>, transform_indices = @transform_16, window_bounds = array<i64: 4, 64, 16>}, {pipeline_mode = #tpu.pipeline_mode<synchronous>, transform_indices = @transform_17, window_bounds = array<i64: 4, 16, 64>}, {pipeline_mode = #tpu.pipeline_mode<synchronous>, transform_indices = @transform_18, window_bounds = array<i64: 4, 64, 256>}, {transform_indices = @transform_19, window_bounds = array<i64: 1, 1, 256>}]} {
    %c0 = arith.constant 0 : index
    %c0_0 = arith.constant 0 : index
    %c0_1 = arith.constant 0 : index
    %0 = vector.load %arg1[%c0, %c0_0, %c0_1] : memref<1x16x256xf32, #tpu.memory_space<vmem>>, vector<1x16x256xf32>
    %1 = vector.shape_cast %0 : vector<1x16x256xf32> to vector<16x256xf32>
    %c0_2 = arith.constant 0 : index
    %c0_3 = arith.constant 0 : index
    %2 = vector.load %arg2[%c0_2, %c0_3] : memref<64x16xf32, #tpu.memory_space<vmem>>, vector<64x16xf32>
    %cst = arith.constant dense<0.000000e+00> : vector<64x256xf32>
    %3 = tpu.matmul %2, %1, %cst {dimension_numbers = #tpu.dot_dimension_numbers<[1], [0], [0], [1], [0, 0, 1, 1], [], []>} : vector<64x16xf32>, vector<16x256xf32>, vector<64x256xf32> -> vector<64x256xf32>
    %c0_4 = arith.constant 0 : index
    %c0_5 = arith.constant 0 : index
    %4 = vector.load %arg3[%c0_4, %c0_5] : memref<64x1xf32, #tpu.memory_space<vmem>>, vector<64x1xf32>
    %5 = vector.broadcast %4 : vector<64x1xf32> to vector<64x256xf32>
    %6 = arith.addf %3, %5 : vector<64x256xf32>
    %cst_6 = arith.constant 0.000000e+00 : f32
    %7 = vector.broadcast %cst_6 : f32 to vector<64x256xf32>
    %8 = arith.maximumf %6, %7 : vector<64x256xf32>
    %c0_7 = arith.constant 0 : index
    %c0_8 = arith.constant 0 : index
    %c0_9 = arith.constant 0 : index
    %9 = vector.load %arg16[%c0_7, %c0_8, %c0_9] : memref<4x256x64xf32, #tpu.memory_space<vmem>>, vector<1x256x64xf32>
    %10 = vector.shape_cast %9 : vector<1x256x64xf32> to vector<256x64xf32>
    %cst_10 = arith.constant dense<0.000000e+00> : vector<64x64xf32>
    %11 = tpu.matmul %8, %10, %cst_10 {dimension_numbers = #tpu.dot_dimension_numbers<[1], [0], [0], [1], [0, 0, 1, 1], [], []>} : vector<64x256xf32>, vector<256x64xf32>, vector<64x64xf32> -> vector<64x64xf32>
    %c1 = arith.constant 1 : index
    %c0_11 = arith.constant 0 : index
    %c0_12 = arith.constant 0 : index
    %12 = vector.load %arg16[%c1, %c0_11, %c0_12] : memref<4x256x64xf32, #tpu.memory_space<vmem>>, vector<1x256x64xf32>
    %13 = vector.shape_cast %12 : vector<1x256x64xf32> to vector<256x64xf32>
    %cst_13 = arith.constant dense<0.000000e+00> : vector<64x64xf32>
    %14 = tpu.matmul %8, %13, %cst_13 {dimension_numbers = #tpu.dot_dimension_numbers<[1], [0], [0], [1], [0, 0, 1, 1], [], []>} : vector<64x256xf32>, vector<256x64xf32>, vector<64x64xf32> -> vector<64x64xf32>
    %15 = arith.maximumf %11, %14 : vector<64x64xf32>
    %c2 = arith.constant 2 : index
    %c0_14 = arith.constant 0 : index
    %c0_15 = arith.constant 0 : index
    %16 = vector.load %arg16[%c2, %c0_14, %c0_15] : memref<4x256x64xf32, #tpu.memory_space<vmem>>, vector<1x256x64xf32>
    %17 = vector.shape_cast %16 : vector<1x256x64xf32> to vector<256x64xf32>
    %cst_16 = arith.constant dense<0.000000e+00> : vector<64x64xf32>
    %18 = tpu.matmul %8, %17, %cst_16 {dimension_numbers = #tpu.dot_dimension_numbers<[1], [0], [0], [1], [0, 0, 1, 1], [], []>} : vector<64x256xf32>, vector<256x64xf32>, vector<64x64xf32> -> vector<64x64xf32>
    %19 = arith.maximumf %15, %18 : vector<64x64xf32>
    %c3 = arith.constant 3 : index
    %c0_17 = arith.constant 0 : index
    %c0_18 = arith.constant 0 : index
    %20 = vector.load %arg16[%c3, %c0_17, %c0_18] : memref<4x256x64xf32, #tpu.memory_space<vmem>>, vector<1x256x64xf32>
    %21 = vector.shape_cast %20 : vector<1x256x64xf32> to vector<256x64xf32>
    %cst_19 = arith.constant dense<0.000000e+00> : vector<64x64xf32>
    %22 = tpu.matmul %8, %21, %cst_19 {dimension_numbers = #tpu.dot_dimension_numbers<[1], [0], [0], [1], [0, 0, 1, 1], [], []>} : vector<64x256xf32>, vector<256x64xf32>, vector<64x64xf32> -> vector<64x64xf32>
    %23 = arith.maximumf %19, %22 : vector<64x64xf32>
    %c0_20 = arith.constant 0 : index
    %c0_21 = arith.constant 0 : index
    %c0_22 = arith.constant 0 : index
    %24 = vector.load %arg4[%c0_20, %c0_21, %c0_22] : memref<9x128x64xf32, #tpu.memory_space<vmem>>, vector<1x128x64xf32>
    %25 = vector.shape_cast %24 : vector<1x128x64xf32> to vector<128x64xf32>
    %c0_23 = arith.constant 0 : index
    %c0_24 = arith.constant 0 : index
    %c0_25 = arith.constant 0 : index
    %26 = vector.load %arg14[%c0_23, %c0_24, %c0_25] : memref<9x64x64xf32, #tpu.memory_space<vmem>>, vector<1x64x64xf32>
    %27 = vector.shape_cast %26 : vector<1x64x64xf32> to vector<64x64xf32>
    %cst_26 = arith.constant dense<0.000000e+00> : vector<64x64xf32>
    %28 = tpu.matmul %23, %27, %cst_26 {dimension_numbers = #tpu.dot_dimension_numbers<[1], [0], [0], [1], [0, 0, 1, 1], [], []>} : vector<64x64xf32>, vector<64x64xf32>, vector<64x64xf32> -> vector<64x64xf32>
    %cst_27 = arith.constant dense<0.000000e+00> : vector<128x64xf32>
    %29 = tpu.matmul %25, %28, %cst_27 {dimension_numbers = #tpu.dot_dimension_numbers<[1], [0], [0], [1], [0, 0, 1, 1], [], []>} : vector<128x64xf32>, vector<64x64xf32>, vector<128x64xf32> -> vector<128x64xf32>
    %c1_28 = arith.constant 1 : index
    %c0_29 = arith.constant 0 : index
    %c0_30 = arith.constant 0 : index
    %30 = vector.load %arg4[%c1_28, %c0_29, %c0_30] : memref<9x128x64xf32, #tpu.memory_space<vmem>>, vector<1x128x64xf32>
    %31 = vector.shape_cast %30 : vector<1x128x64xf32> to vector<128x64xf32>
    %c1_31 = arith.constant 1 : index
    %c0_32 = arith.constant 0 : index
    %c0_33 = arith.constant 0 : index
    %32 = vector.load %arg14[%c1_31, %c0_32, %c0_33] : memref<9x64x64xf32, #tpu.memory_space<vmem>>, vector<1x64x64xf32>
    %33 = vector.shape_cast %32 : vector<1x64x64xf32> to vector<64x64xf32>
    %cst_34 = arith.constant dense<0.000000e+00> : vector<64x64xf32>
    %34 = tpu.matmul %23, %33, %cst_34 {dimension_numbers = #tpu.dot_dimension_numbers<[1], [0], [0], [1], [0, 0, 1, 1], [], []>} : vector<64x64xf32>, vector<64x64xf32>, vector<64x64xf32> -> vector<64x64xf32>
    %cst_35 = arith.constant dense<0.000000e+00> : vector<128x64xf32>
    %35 = tpu.matmul %31, %34, %cst_35 {dimension_numbers = #tpu.dot_dimension_numbers<[1], [0], [0], [1], [0, 0, 1, 1], [], []>} : vector<128x64xf32>, vector<64x64xf32>, vector<128x64xf32> -> vector<128x64xf32>
    %36 = arith.addf %29, %35 : vector<128x64xf32>
    %c2_36 = arith.constant 2 : index
    %c0_37 = arith.constant 0 : index
    %c0_38 = arith.constant 0 : index
    %37 = vector.load %arg4[%c2_36, %c0_37, %c0_38] : memref<9x128x64xf32, #tpu.memory_space<vmem>>, vector<1x128x64xf32>
    %38 = vector.shape_cast %37 : vector<1x128x64xf32> to vector<128x64xf32>
    %c2_39 = arith.constant 2 : index
    %c0_40 = arith.constant 0 : index
    %c0_41 = arith.constant 0 : index
    %39 = vector.load %arg14[%c2_39, %c0_40, %c0_41] : memref<9x64x64xf32, #tpu.memory_space<vmem>>, vector<1x64x64xf32>
    %40 = vector.shape_cast %39 : vector<1x64x64xf32> to vector<64x64xf32>
    %cst_42 = arith.constant dense<0.000000e+00> : vector<64x64xf32>
    %41 = tpu.matmul %23, %40, %cst_42 {dimension_numbers = #tpu.dot_dimension_numbers<[1], [0], [0], [1], [0, 0, 1, 1], [], []>} : vector<64x64xf32>, vector<64x64xf32>, vector<64x64xf32> -> vector<64x64xf32>
    %cst_43 = arith.constant dense<0.000000e+00> : vector<128x64xf32>
    %42 = tpu.matmul %38, %41, %cst_43 {dimension_numbers = #tpu.dot_dimension_numbers<[1], [0], [0], [1], [0, 0, 1, 1], [], []>} : vector<128x64xf32>, vector<64x64xf32>, vector<128x64xf32> -> vector<128x64xf32>
    %43 = arith.addf %36, %42 : vector<128x64xf32>
    %c3_44 = arith.constant 3 : index
    %c0_45 = arith.constant 0 : index
    %c0_46 = arith.constant 0 : index
    %44 = vector.load %arg4[%c3_44, %c0_45, %c0_46] : memref<9x128x64xf32, #tpu.memory_space<vmem>>, vector<1x128x64xf32>
    %45 = vector.shape_cast %44 : vector<1x128x64xf32> to vector<128x64xf32>
    %c3_47 = arith.constant 3 : index
    %c0_48 = arith.constant 0 : index
    %c0_49 = arith.constant 0 : index
    %46 = vector.load %arg14[%c3_47, %c0_48, %c0_49] : memref<9x64x64xf32, #tpu.memory_space<vmem>>, vector<1x64x64xf32>
    %47 = vector.shape_cast %46 : vector<1x64x64xf32> to vector<64x64xf32>
    %cst_50 = arith.constant dense<0.000000e+00> : vector<64x64xf32>
    %48 = tpu.matmul %23, %47, %cst_50 {dimension_numbers = #tpu.dot_dimension_numbers<[1], [0], [0], [1], [0, 0, 1, 1], [], []>} : vector<64x64xf32>, vector<64x64xf32>, vector<64x64xf32> -> vector<64x64xf32>
    %cst_51 = arith.constant dense<0.000000e+00> : vector<128x64xf32>
    %49 = tpu.matmul %45, %48, %cst_51 {dimension_numbers = #tpu.dot_dimension_numbers<[1], [0], [0], [1], [0, 0, 1, 1], [], []>} : vector<128x64xf32>, vector<64x64xf32>, vector<128x64xf32> -> vector<128x64xf32>
    %50 = arith.addf %43, %49 : vector<128x64xf32>
    %c4 = arith.constant 4 : index
    %c0_52 = arith.constant 0 : index
    %c0_53 = arith.constant 0 : index
    %51 = vector.load %arg4[%c4, %c0_52, %c0_53] : memref<9x128x64xf32, #tpu.memory_space<vmem>>, vector<1x128x64xf32>
    %52 = vector.shape_cast %51 : vector<1x128x64xf32> to vector<128x64xf32>
    %c4_54 = arith.constant 4 : index
    %c0_55 = arith.constant 0 : index
    %c0_56 = arith.constant 0 : index
    %53 = vector.load %arg14[%c4_54, %c0_55, %c0_56] : memref<9x64x64xf32, #tpu.memory_space<vmem>>, vector<1x64x64xf32>
    %54 = vector.shape_cast %53 : vector<1x64x64xf32> to vector<64x64xf32>
    %cst_57 = arith.constant dense<0.000000e+00> : vector<64x64xf32>
    %55 = tpu.matmul %23, %54, %cst_57 {dimension_numbers = #tpu.dot_dimension_numbers<[1], [0], [0], [1], [0, 0, 1, 1], [], []>} : vector<64x64xf32>, vector<64x64xf32>, vector<64x64xf32> -> vector<64x64xf32>
    %cst_58 = arith.constant dense<0.000000e+00> : vector<128x64xf32>
    %56 = tpu.matmul %52, %55, %cst_58 {dimension_numbers = #tpu.dot_dimension_numbers<[1], [0], [0], [1], [0, 0, 1, 1], [], []>} : vector<128x64xf32>, vector<64x64xf32>, vector<128x64xf32> -> vector<128x64xf32>
    %57 = arith.addf %50, %56 : vector<128x64xf32>
    %c5 = arith.constant 5 : index
    %c0_59 = arith.constant 0 : index
    %c0_60 = arith.constant 0 : index
    %58 = vector.load %arg4[%c5, %c0_59, %c0_60] : memref<9x128x64xf32, #tpu.memory_space<vmem>>, vector<1x128x64xf32>
    %59 = vector.shape_cast %58 : vector<1x128x64xf32> to vector<128x64xf32>
    %c5_61 = arith.constant 5 : index
    %c0_62 = arith.constant 0 : index
    %c0_63 = arith.constant 0 : index
    %60 = vector.load %arg14[%c5_61, %c0_62, %c0_63] : memref<9x64x64xf32, #tpu.memory_space<vmem>>, vector<1x64x64xf32>
    %61 = vector.shape_cast %60 : vector<1x64x64xf32> to vector<64x64xf32>
    %cst_64 = arith.constant dense<0.000000e+00> : vector<64x64xf32>
    %62 = tpu.matmul %23, %61, %cst_64 {dimension_numbers = #tpu.dot_dimension_numbers<[1], [0], [0], [1], [0, 0, 1, 1], [], []>} : vector<64x64xf32>, vector<64x64xf32>, vector<64x64xf32> -> vector<64x64xf32>
    %cst_65 = arith.constant dense<0.000000e+00> : vector<128x64xf32>
    %63 = tpu.matmul %59, %62, %cst_65 {dimension_numbers = #tpu.dot_dimension_numbers<[1], [0], [0], [1], [0, 0, 1, 1], [], []>} : vector<128x64xf32>, vector<64x64xf32>, vector<128x64xf32> -> vector<128x64xf32>
    %64 = arith.addf %57, %63 : vector<128x64xf32>
    %c6 = arith.constant 6 : index
    %c0_66 = arith.constant 0 : index
    %c0_67 = arith.constant 0 : index
    %65 = vector.load %arg4[%c6, %c0_66, %c0_67] : memref<9x128x64xf32, #tpu.memory_space<vmem>>, vector<1x128x64xf32>
    %66 = vector.shape_cast %65 : vector<1x128x64xf32> to vector<128x64xf32>
    %c6_68 = arith.constant 6 : index
    %c0_69 = arith.constant 0 : index
    %c0_70 = arith.constant 0 : index
    %67 = vector.load %arg14[%c6_68, %c0_69, %c0_70] : memref<9x64x64xf32, #tpu.memory_space<vmem>>, vector<1x64x64xf32>
    %68 = vector.shape_cast %67 : vector<1x64x64xf32> to vector<64x64xf32>
    %cst_71 = arith.constant dense<0.000000e+00> : vector<64x64xf32>
    %69 = tpu.matmul %23, %68, %cst_71 {dimension_numbers = #tpu.dot_dimension_numbers<[1], [0], [0], [1], [0, 0, 1, 1], [], []>} : vector<64x64xf32>, vector<64x64xf32>, vector<64x64xf32> -> vector<64x64xf32>
    %cst_72 = arith.constant dense<0.000000e+00> : vector<128x64xf32>
    %70 = tpu.matmul %66, %69, %cst_72 {dimension_numbers = #tpu.dot_dimension_numbers<[1], [0], [0], [1], [0, 0, 1, 1], [], []>} : vector<128x64xf32>, vector<64x64xf32>, vector<128x64xf32> -> vector<128x64xf32>
    %71 = arith.addf %64, %70 : vector<128x64xf32>
    %c7 = arith.constant 7 : index
    %c0_73 = arith.constant 0 : index
    %c0_74 = arith.constant 0 : index
    %72 = vector.load %arg4[%c7, %c0_73, %c0_74] : memref<9x128x64xf32, #tpu.memory_space<vmem>>, vector<1x128x64xf32>
    %73 = vector.shape_cast %72 : vector<1x128x64xf32> to vector<128x64xf32>
    %c7_75 = arith.constant 7 : index
    %c0_76 = arith.constant 0 : index
    %c0_77 = arith.constant 0 : index
    %74 = vector.load %arg14[%c7_75, %c0_76, %c0_77] : memref<9x64x64xf32, #tpu.memory_space<vmem>>, vector<1x64x64xf32>
    %75 = vector.shape_cast %74 : vector<1x64x64xf32> to vector<64x64xf32>
    %cst_78 = arith.constant dense<0.000000e+00> : vector<64x64xf32>
    %76 = tpu.matmul %23, %75, %cst_78 {dimension_numbers = #tpu.dot_dimension_numbers<[1], [0], [0], [1], [0, 0, 1, 1], [], []>} : vector<64x64xf32>, vector<64x64xf32>, vector<64x64xf32> -> vector<64x64xf32>
    %cst_79 = arith.constant dense<0.000000e+00> : vector<128x64xf32>
    %77 = tpu.matmul %73, %76, %cst_79 {dimension_numbers = #tpu.dot_dimension_numbers<[1], [0], [0], [1], [0, 0, 1, 1], [], []>} : vector<128x64xf32>, vector<64x64xf32>, vector<128x64xf32> -> vector<128x64xf32>
    %78 = arith.addf %71, %77 : vector<128x64xf32>
    %c8 = arith.constant 8 : index
    %c0_80 = arith.constant 0 : index
    %c0_81 = arith.constant 0 : index
    %79 = vector.load %arg4[%c8, %c0_80, %c0_81] : memref<9x128x64xf32, #tpu.memory_space<vmem>>, vector<1x128x64xf32>
    %80 = vector.shape_cast %79 : vector<1x128x64xf32> to vector<128x64xf32>
    %c8_82 = arith.constant 8 : index
    %c0_83 = arith.constant 0 : index
    %c0_84 = arith.constant 0 : index
    %81 = vector.load %arg14[%c8_82, %c0_83, %c0_84] : memref<9x64x64xf32, #tpu.memory_space<vmem>>, vector<1x64x64xf32>
    %82 = vector.shape_cast %81 : vector<1x64x64xf32> to vector<64x64xf32>
    %cst_85 = arith.constant dense<0.000000e+00> : vector<64x64xf32>
    %83 = tpu.matmul %23, %82, %cst_85 {dimension_numbers = #tpu.dot_dimension_numbers<[1], [0], [0], [1], [0, 0, 1, 1], [], []>} : vector<64x64xf32>, vector<64x64xf32>, vector<64x64xf32> -> vector<64x64xf32>
    %cst_86 = arith.constant dense<0.000000e+00> : vector<128x64xf32>
    %84 = tpu.matmul %80, %83, %cst_86 {dimension_numbers = #tpu.dot_dimension_numbers<[1], [0], [0], [1], [0, 0, 1, 1], [], []>} : vector<128x64xf32>, vector<64x64xf32>, vector<128x64xf32> -> vector<128x64xf32>
    %85 = arith.addf %78, %84 : vector<128x64xf32>
    %c0_87 = arith.constant 0 : index
    %c0_88 = arith.constant 0 : index
    %86 = vector.load %arg5[%c0_87, %c0_88] : memref<128x1xf32, #tpu.memory_space<vmem>>, vector<128x1xf32>
    %87 = vector.broadcast %86 : vector<128x1xf32> to vector<128x64xf32>
    %88 = arith.addf %85, %87 : vector<128x64xf32>
    %cst_89 = arith.constant 0.000000e+00 : f32
    %89 = vector.broadcast %cst_89 : f32 to vector<128x64xf32>
    %90 = arith.maximumf %88, %89 : vector<128x64xf32>
    %c0_90 = arith.constant 0 : index
    %c0_91 = arith.constant 0 : index
    %c0_92 = arith.constant 0 : index
    %91 = vector.load %arg17[%c0_90, %c0_91, %c0_92] : memref<4x64x16xf32, #tpu.memory_space<vmem>>, vector<1x64x16xf32>
    %92 = vector.shape_cast %91 : vector<1x64x16xf32> to vector<64x16xf32>
    %cst_93 = arith.constant dense<0.000000e+00> : vector<128x16xf32>
    %93 = tpu.matmul %90, %92, %cst_93 {dimension_numbers = #tpu.dot_dimension_numbers<[1], [0], [0], [1], [0, 0, 1, 1], [], []>} : vector<128x64xf32>, vector<64x16xf32>, vector<128x16xf32> -> vector<128x16xf32>
    %c1_94 = arith.constant 1 : index
    %c0_95 = arith.constant 0 : index
    %c0_96 = arith.constant 0 : index
    %94 = vector.load %arg17[%c1_94, %c0_95, %c0_96] : memref<4x64x16xf32, #tpu.memory_space<vmem>>, vector<1x64x16xf32>
    %95 = vector.shape_cast %94 : vector<1x64x16xf32> to vector<64x16xf32>
    %cst_97 = arith.constant dense<0.000000e+00> : vector<128x16xf32>
    %96 = tpu.matmul %90, %95, %cst_97 {dimension_numbers = #tpu.dot_dimension_numbers<[1], [0], [0], [1], [0, 0, 1, 1], [], []>} : vector<128x64xf32>, vector<64x16xf32>, vector<128x16xf32> -> vector<128x16xf32>
    %97 = arith.maximumf %93, %96 : vector<128x16xf32>
    %c2_98 = arith.constant 2 : index
    %c0_99 = arith.constant 0 : index
    %c0_100 = arith.constant 0 : index
    %98 = vector.load %arg17[%c2_98, %c0_99, %c0_100] : memref<4x64x16xf32, #tpu.memory_space<vmem>>, vector<1x64x16xf32>
    %99 = vector.shape_cast %98 : vector<1x64x16xf32> to vector<64x16xf32>
    %cst_101 = arith.constant dense<0.000000e+00> : vector<128x16xf32>
    %100 = tpu.matmul %90, %99, %cst_101 {dimension_numbers = #tpu.dot_dimension_numbers<[1], [0], [0], [1], [0, 0, 1, 1], [], []>} : vector<128x64xf32>, vector<64x16xf32>, vector<128x16xf32> -> vector<128x16xf32>
    %101 = arith.maximumf %97, %100 : vector<128x16xf32>
    %c3_102 = arith.constant 3 : index
    %c0_103 = arith.constant 0 : index
    %c0_104 = arith.constant 0 : index
    %102 = vector.load %arg17[%c3_102, %c0_103, %c0_104] : memref<4x64x16xf32, #tpu.memory_space<vmem>>, vector<1x64x16xf32>
    %103 = vector.shape_cast %102 : vector<1x64x16xf32> to vector<64x16xf32>
    %cst_105 = arith.constant dense<0.000000e+00> : vector<128x16xf32>
    %104 = tpu.matmul %90, %103, %cst_105 {dimension_numbers = #tpu.dot_dimension_numbers<[1], [0], [0], [1], [0, 0, 1, 1], [], []>} : vector<128x64xf32>, vector<64x16xf32>, vector<128x16xf32> -> vector<128x16xf32>
    %105 = arith.maximumf %101, %104 : vector<128x16xf32>
    %c0_106 = arith.constant 0 : index
    %c0_107 = arith.constant 0 : index
    %c0_108 = arith.constant 0 : index
    %106 = vector.load %arg6[%c0_106, %c0_107, %c0_108] : memref<4x128x128xf32, #tpu.memory_space<vmem>>, vector<1x128x128xf32>
    %107 = vector.shape_cast %106 : vector<1x128x128xf32> to vector<128x128xf32>
    %cst_109 = arith.constant dense<0.000000e+00> : vector<128x16xf32>
    %108 = tpu.matmul %107, %105, %cst_109 {dimension_numbers = #tpu.dot_dimension_numbers<[1], [0], [0], [1], [0, 0, 1, 1], [], []>} : vector<128x128xf32>, vector<128x16xf32>, vector<128x16xf32> -> vector<128x16xf32>
    %c0_110 = arith.constant 0 : index
    %c0_111 = arith.constant 0 : index
    %c0_112 = arith.constant 0 : index
    %109 = vector.load %arg18[%c0_110, %c0_111, %c0_112] : memref<4x16x64xf32, #tpu.memory_space<vmem>>, vector<1x16x64xf32>
    %110 = vector.shape_cast %109 : vector<1x16x64xf32> to vector<16x64xf32>
    %cst_113 = arith.constant dense<0.000000e+00> : vector<128x64xf32>
    %111 = tpu.matmul %108, %110, %cst_113 {dimension_numbers = #tpu.dot_dimension_numbers<[1], [0], [0], [1], [0, 0, 1, 1], [], []>} : vector<128x16xf32>, vector<16x64xf32>, vector<128x64xf32> -> vector<128x64xf32>
    %c1_114 = arith.constant 1 : index
    %c0_115 = arith.constant 0 : index
    %c0_116 = arith.constant 0 : index
    %112 = vector.load %arg6[%c1_114, %c0_115, %c0_116] : memref<4x128x128xf32, #tpu.memory_space<vmem>>, vector<1x128x128xf32>
    %113 = vector.shape_cast %112 : vector<1x128x128xf32> to vector<128x128xf32>
    %cst_117 = arith.constant dense<0.000000e+00> : vector<128x16xf32>
    %114 = tpu.matmul %113, %105, %cst_117 {dimension_numbers = #tpu.dot_dimension_numbers<[1], [0], [0], [1], [0, 0, 1, 1], [], []>} : vector<128x128xf32>, vector<128x16xf32>, vector<128x16xf32> -> vector<128x16xf32>
    %c1_118 = arith.constant 1 : index
    %c0_119 = arith.constant 0 : index
    %c0_120 = arith.constant 0 : index
    %115 = vector.load %arg18[%c1_118, %c0_119, %c0_120] : memref<4x16x64xf32, #tpu.memory_space<vmem>>, vector<1x16x64xf32>
    %116 = vector.shape_cast %115 : vector<1x16x64xf32> to vector<16x64xf32>
    %cst_121 = arith.constant dense<0.000000e+00> : vector<128x64xf32>
    %117 = tpu.matmul %114, %116, %cst_121 {dimension_numbers = #tpu.dot_dimension_numbers<[1], [0], [0], [1], [0, 0, 1, 1], [], []>} : vector<128x16xf32>, vector<16x64xf32>, vector<128x64xf32> -> vector<128x64xf32>
    %118 = arith.addf %111, %117 : vector<128x64xf32>
    %c2_122 = arith.constant 2 : index
    %c0_123 = arith.constant 0 : index
    %c0_124 = arith.constant 0 : index
    %119 = vector.load %arg6[%c2_122, %c0_123, %c0_124] : memref<4x128x128xf32, #tpu.memory_space<vmem>>, vector<1x128x128xf32>
    %120 = vector.shape_cast %119 : vector<1x128x128xf32> to vector<128x128xf32>
    %cst_125 = arith.constant dense<0.000000e+00> : vector<128x16xf32>
    %121 = tpu.matmul %120, %105, %cst_125 {dimension_numbers = #tpu.dot_dimension_numbers<[1], [0], [0], [1], [0, 0, 1, 1], [], []>} : vector<128x128xf32>, vector<128x16xf32>, vector<128x16xf32> -> vector<128x16xf32>
    %c2_126 = arith.constant 2 : index
    %c0_127 = arith.constant 0 : index
    %c0_128 = arith.constant 0 : index
    %122 = vector.load %arg18[%c2_126, %c0_127, %c0_128] : memref<4x16x64xf32, #tpu.memory_space<vmem>>, vector<1x16x64xf32>
    %123 = vector.shape_cast %122 : vector<1x16x64xf32> to vector<16x64xf32>
    %cst_129 = arith.constant dense<0.000000e+00> : vector<128x64xf32>
    %124 = tpu.matmul %121, %123, %cst_129 {dimension_numbers = #tpu.dot_dimension_numbers<[1], [0], [0], [1], [0, 0, 1, 1], [], []>} : vector<128x16xf32>, vector<16x64xf32>, vector<128x64xf32> -> vector<128x64xf32>
    %125 = arith.addf %118, %124 : vector<128x64xf32>
    %c3_130 = arith.constant 3 : index
    %c0_131 = arith.constant 0 : index
    %c0_132 = arith.constant 0 : index
    %126 = vector.load %arg6[%c3_130, %c0_131, %c0_132] : memref<4x128x128xf32, #tpu.memory_space<vmem>>, vector<1x128x128xf32>
    %127 = vector.shape_cast %126 : vector<1x128x128xf32> to vector<128x128xf32>
    %cst_133 = arith.constant dense<0.000000e+00> : vector<128x16xf32>
    %128 = tpu.matmul %127, %105, %cst_133 {dimension_numbers = #tpu.dot_dimension_numbers<[1], [0], [0], [1], [0, 0, 1, 1], [], []>} : vector<128x128xf32>, vector<128x16xf32>, vector<128x16xf32> -> vector<128x16xf32>
    %c3_134 = arith.constant 3 : index
    %c0_135 = arith.constant 0 : index
    %c0_136 = arith.constant 0 : index
    %129 = vector.load %arg18[%c3_134, %c0_135, %c0_136] : memref<4x16x64xf32, #tpu.memory_space<vmem>>, vector<1x16x64xf32>
    %130 = vector.shape_cast %129 : vector<1x16x64xf32> to vector<16x64xf32>
    %cst_137 = arith.constant dense<0.000000e+00> : vector<128x64xf32>
    %131 = tpu.matmul %128, %130, %cst_137 {dimension_numbers = #tpu.dot_dimension_numbers<[1], [0], [0], [1], [0, 0, 1, 1], [], []>} : vector<128x16xf32>, vector<16x64xf32>, vector<128x64xf32> -> vector<128x64xf32>
    %132 = arith.addf %125, %131 : vector<128x64xf32>
    %c0_138 = arith.constant 0 : index
    %c0_139 = arith.constant 0 : index
    %133 = vector.load %arg7[%c0_138, %c0_139] : memref<128x1xf32, #tpu.memory_space<vmem>>, vector<128x1xf32>
    %134 = vector.broadcast %133 : vector<128x1xf32> to vector<128x64xf32>
    %135 = arith.addf %132, %134 : vector<128x64xf32>
    %cst_140 = arith.constant 0.000000e+00 : f32
    %136 = vector.broadcast %cst_140 : f32 to vector<128x64xf32>
    %137 = arith.maximumf %135, %136 : vector<128x64xf32>
    %c0_141 = arith.constant 0 : index
    %c0_142 = arith.constant 0 : index
    %c0_143 = arith.constant 0 : index
    %138 = vector.load %arg8[%c0_141, %c0_142, %c0_143] : memref<9x64x128xf32, #tpu.memory_space<vmem>>, vector<1x64x128xf32>
    %139 = vector.shape_cast %138 : vector<1x64x128xf32> to vector<64x128xf32>
    %cst_144 = arith.constant dense<0.000000e+00> : vector<64x64xf32>
    %140 = tpu.matmul %139, %137, %cst_144 {dimension_numbers = #tpu.dot_dimension_numbers<[1], [0], [0], [1], [0, 0, 1, 1], [], []>} : vector<64x128xf32>, vector<128x64xf32>, vector<64x64xf32> -> vector<64x64xf32>
    %c0_145 = arith.constant 0 : index
    %c0_146 = arith.constant 0 : index
    %c0_147 = arith.constant 0 : index
    %141 = vector.load %arg14[%c0_145, %c0_146, %c0_147] : memref<9x64x64xf32, #tpu.memory_space<vmem>>, vector<1x64x64xf32>
    %142 = vector.shape_cast %141 : vector<1x64x64xf32> to vector<64x64xf32>
    %cst_148 = arith.constant dense<0.000000e+00> : vector<64x64xf32>
    %143 = tpu.matmul %140, %142, %cst_148 {dimension_numbers = #tpu.dot_dimension_numbers<[1], [0], [0], [1], [0, 0, 1, 1], [], []>} : vector<64x64xf32>, vector<64x64xf32>, vector<64x64xf32> -> vector<64x64xf32>
    %c1_149 = arith.constant 1 : index
    %c0_150 = arith.constant 0 : index
    %c0_151 = arith.constant 0 : index
    %144 = vector.load %arg8[%c1_149, %c0_150, %c0_151] : memref<9x64x128xf32, #tpu.memory_space<vmem>>, vector<1x64x128xf32>
    %145 = vector.shape_cast %144 : vector<1x64x128xf32> to vector<64x128xf32>
    %cst_152 = arith.constant dense<0.000000e+00> : vector<64x64xf32>
    %146 = tpu.matmul %145, %137, %cst_152 {dimension_numbers = #tpu.dot_dimension_numbers<[1], [0], [0], [1], [0, 0, 1, 1], [], []>} : vector<64x128xf32>, vector<128x64xf32>, vector<64x64xf32> -> vector<64x64xf32>
    %c1_153 = arith.constant 1 : index
    %c0_154 = arith.constant 0 : index
    %c0_155 = arith.constant 0 : index
    %147 = vector.load %arg14[%c1_153, %c0_154, %c0_155] : memref<9x64x64xf32, #tpu.memory_space<vmem>>, vector<1x64x64xf32>
    %148 = vector.shape_cast %147 : vector<1x64x64xf32> to vector<64x64xf32>
    %cst_156 = arith.constant dense<0.000000e+00> : vector<64x64xf32>
    %149 = tpu.matmul %146, %148, %cst_156 {dimension_numbers = #tpu.dot_dimension_numbers<[1], [0], [0], [1], [0, 0, 1, 1], [], []>} : vector<64x64xf32>, vector<64x64xf32>, vector<64x64xf32> -> vector<64x64xf32>
    %150 = arith.addf %143, %149 : vector<64x64xf32>
    %c2_157 = arith.constant 2 : index
    %c0_158 = arith.constant 0 : index
    %c0_159 = arith.constant 0 : index
    %151 = vector.load %arg8[%c2_157, %c0_158, %c0_159] : memref<9x64x128xf32, #tpu.memory_space<vmem>>, vector<1x64x128xf32>
    %152 = vector.shape_cast %151 : vector<1x64x128xf32> to vector<64x128xf32>
    %cst_160 = arith.constant dense<0.000000e+00> : vector<64x64xf32>
    %153 = tpu.matmul %152, %137, %cst_160 {dimension_numbers = #tpu.dot_dimension_numbers<[1], [0], [0], [1], [0, 0, 1, 1], [], []>} : vector<64x128xf32>, vector<128x64xf32>, vector<64x64xf32> -> vector<64x64xf32>
    %c2_161 = arith.constant 2 : index
    %c0_162 = arith.constant 0 : index
    %c0_163 = arith.constant 0 : index
    %154 = vector.load %arg14[%c2_161, %c0_162, %c0_163] : memref<9x64x64xf32, #tpu.memory_space<vmem>>, vector<1x64x64xf32>
    %155 = vector.shape_cast %154 : vector<1x64x64xf32> to vector<64x64xf32>
    %cst_164 = arith.constant dense<0.000000e+00> : vector<64x64xf32>
    %156 = tpu.matmul %153, %155, %cst_164 {dimension_numbers = #tpu.dot_dimension_numbers<[1], [0], [0], [1], [0, 0, 1, 1], [], []>} : vector<64x64xf32>, vector<64x64xf32>, vector<64x64xf32> -> vector<64x64xf32>
    %157 = arith.addf %150, %156 : vector<64x64xf32>
    %c3_165 = arith.constant 3 : index
    %c0_166 = arith.constant 0 : index
    %c0_167 = arith.constant 0 : index
    %158 = vector.load %arg8[%c3_165, %c0_166, %c0_167] : memref<9x64x128xf32, #tpu.memory_space<vmem>>, vector<1x64x128xf32>
    %159 = vector.shape_cast %158 : vector<1x64x128xf32> to vector<64x128xf32>
    %cst_168 = arith.constant dense<0.000000e+00> : vector<64x64xf32>
    %160 = tpu.matmul %159, %137, %cst_168 {dimension_numbers = #tpu.dot_dimension_numbers<[1], [0], [0], [1], [0, 0, 1, 1], [], []>} : vector<64x128xf32>, vector<128x64xf32>, vector<64x64xf32> -> vector<64x64xf32>
    %c3_169 = arith.constant 3 : index
    %c0_170 = arith.constant 0 : index
    %c0_171 = arith.constant 0 : index
    %161 = vector.load %arg14[%c3_169, %c0_170, %c0_171] : memref<9x64x64xf32, #tpu.memory_space<vmem>>, vector<1x64x64xf32>
    %162 = vector.shape_cast %161 : vector<1x64x64xf32> to vector<64x64xf32>
    %cst_172 = arith.constant dense<0.000000e+00> : vector<64x64xf32>
    %163 = tpu.matmul %160, %162, %cst_172 {dimension_numbers = #tpu.dot_dimension_numbers<[1], [0], [0], [1], [0, 0, 1, 1], [], []>} : vector<64x64xf32>, vector<64x64xf32>, vector<64x64xf32> -> vector<64x64xf32>
    %164 = arith.addf %157, %163 : vector<64x64xf32>
    %c4_173 = arith.constant 4 : index
    %c0_174 = arith.constant 0 : index
    %c0_175 = arith.constant 0 : index
    %165 = vector.load %arg8[%c4_173, %c0_174, %c0_175] : memref<9x64x128xf32, #tpu.memory_space<vmem>>, vector<1x64x128xf32>
    %166 = vector.shape_cast %165 : vector<1x64x128xf32> to vector<64x128xf32>
    %cst_176 = arith.constant dense<0.000000e+00> : vector<64x64xf32>
    %167 = tpu.matmul %166, %137, %cst_176 {dimension_numbers = #tpu.dot_dimension_numbers<[1], [0], [0], [1], [0, 0, 1, 1], [], []>} : vector<64x128xf32>, vector<128x64xf32>, vector<64x64xf32> -> vector<64x64xf32>
    %c4_177 = arith.constant 4 : index
    %c0_178 = arith.constant 0 : index
    %c0_179 = arith.constant 0 : index
    %168 = vector.load %arg14[%c4_177, %c0_178, %c0_179] : memref<9x64x64xf32, #tpu.memory_space<vmem>>, vector<1x64x64xf32>
    %169 = vector.shape_cast %168 : vector<1x64x64xf32> to vector<64x64xf32>
    %cst_180 = arith.constant dense<0.000000e+00> : vector<64x64xf32>
    %170 = tpu.matmul %167, %169, %cst_180 {dimension_numbers = #tpu.dot_dimension_numbers<[1], [0], [0], [1], [0, 0, 1, 1], [], []>} : vector<64x64xf32>, vector<64x64xf32>, vector<64x64xf32> -> vector<64x64xf32>
    %171 = arith.addf %164, %170 : vector<64x64xf32>
    %c5_181 = arith.constant 5 : index
    %c0_182 = arith.constant 0 : index
    %c0_183 = arith.constant 0 : index
    %172 = vector.load %arg8[%c5_181, %c0_182, %c0_183] : memref<9x64x128xf32, #tpu.memory_space<vmem>>, vector<1x64x128xf32>
    %173 = vector.shape_cast %172 : vector<1x64x128xf32> to vector<64x128xf32>
    %cst_184 = arith.constant dense<0.000000e+00> : vector<64x64xf32>
    %174 = tpu.matmul %173, %137, %cst_184 {dimension_numbers = #tpu.dot_dimension_numbers<[1], [0], [0], [1], [0, 0, 1, 1], [], []>} : vector<64x128xf32>, vector<128x64xf32>, vector<64x64xf32> -> vector<64x64xf32>
    %c5_185 = arith.constant 5 : index
    %c0_186 = arith.constant 0 : index
    %c0_187 = arith.constant 0 : index
    %175 = vector.load %arg14[%c5_185, %c0_186, %c0_187] : memref<9x64x64xf32, #tpu.memory_space<vmem>>, vector<1x64x64xf32>
    %176 = vector.shape_cast %175 : vector<1x64x64xf32> to vector<64x64xf32>
    %cst_188 = arith.constant dense<0.000000e+00> : vector<64x64xf32>
    %177 = tpu.matmul %174, %176, %cst_188 {dimension_numbers = #tpu.dot_dimension_numbers<[1], [0], [0], [1], [0, 0, 1, 1], [], []>} : vector<64x64xf32>, vector<64x64xf32>, vector<64x64xf32> -> vector<64x64xf32>
    %178 = arith.addf %171, %177 : vector<64x64xf32>
    %c6_189 = arith.constant 6 : index
    %c0_190 = arith.constant 0 : index
    %c0_191 = arith.constant 0 : index
    %179 = vector.load %arg8[%c6_189, %c0_190, %c0_191] : memref<9x64x128xf32, #tpu.memory_space<vmem>>, vector<1x64x128xf32>
    %180 = vector.shape_cast %179 : vector<1x64x128xf32> to vector<64x128xf32>
    %cst_192 = arith.constant dense<0.000000e+00> : vector<64x64xf32>
    %181 = tpu.matmul %180, %137, %cst_192 {dimension_numbers = #tpu.dot_dimension_numbers<[1], [0], [0], [1], [0, 0, 1, 1], [], []>} : vector<64x128xf32>, vector<128x64xf32>, vector<64x64xf32> -> vector<64x64xf32>
    %c6_193 = arith.constant 6 : index
    %c0_194 = arith.constant 0 : index
    %c0_195 = arith.constant 0 : index
    %182 = vector.load %arg14[%c6_193, %c0_194, %c0_195] : memref<9x64x64xf32, #tpu.memory_space<vmem>>, vector<1x64x64xf32>
    %183 = vector.shape_cast %182 : vector<1x64x64xf32> to vector<64x64xf32>
    %cst_196 = arith.constant dense<0.000000e+00> : vector<64x64xf32>
    %184 = tpu.matmul %181, %183, %cst_196 {dimension_numbers = #tpu.dot_dimension_numbers<[1], [0], [0], [1], [0, 0, 1, 1], [], []>} : vector<64x64xf32>, vector<64x64xf32>, vector<64x64xf32> -> vector<64x64xf32>
    %185 = arith.addf %178, %184 : vector<64x64xf32>
    %c7_197 = arith.constant 7 : index
    %c0_198 = arith.constant 0 : index
    %c0_199 = arith.constant 0 : index
    %186 = vector.load %arg8[%c7_197, %c0_198, %c0_199] : memref<9x64x128xf32, #tpu.memory_space<vmem>>, vector<1x64x128xf32>
    %187 = vector.shape_cast %186 : vector<1x64x128xf32> to vector<64x128xf32>
    %cst_200 = arith.constant dense<0.000000e+00> : vector<64x64xf32>
    %188 = tpu.matmul %187, %137, %cst_200 {dimension_numbers = #tpu.dot_dimension_numbers<[1], [0], [0], [1], [0, 0, 1, 1], [], []>} : vector<64x128xf32>, vector<128x64xf32>, vector<64x64xf32> -> vector<64x64xf32>
    %c7_201 = arith.constant 7 : index
    %c0_202 = arith.constant 0 : index
    %c0_203 = arith.constant 0 : index
    %189 = vector.load %arg14[%c7_201, %c0_202, %c0_203] : memref<9x64x64xf32, #tpu.memory_space<vmem>>, vector<1x64x64xf32>
    %190 = vector.shape_cast %189 : vector<1x64x64xf32> to vector<64x64xf32>
    %cst_204 = arith.constant dense<0.000000e+00> : vector<64x64xf32>
    %191 = tpu.matmul %188, %190, %cst_204 {dimension_numbers = #tpu.dot_dimension_numbers<[1], [0], [0], [1], [0, 0, 1, 1], [], []>} : vector<64x64xf32>, vector<64x64xf32>, vector<64x64xf32> -> vector<64x64xf32>
    %192 = arith.addf %185, %191 : vector<64x64xf32>
    %c8_205 = arith.constant 8 : index
    %c0_206 = arith.constant 0 : index
    %c0_207 = arith.constant 0 : index
    %193 = vector.load %arg8[%c8_205, %c0_206, %c0_207] : memref<9x64x128xf32, #tpu.memory_space<vmem>>, vector<1x64x128xf32>
    %194 = vector.shape_cast %193 : vector<1x64x128xf32> to vector<64x128xf32>
    %cst_208 = arith.constant dense<0.000000e+00> : vector<64x64xf32>
    %195 = tpu.matmul %194, %137, %cst_208 {dimension_numbers = #tpu.dot_dimension_numbers<[1], [0], [0], [1], [0, 0, 1, 1], [], []>} : vector<64x128xf32>, vector<128x64xf32>, vector<64x64xf32> -> vector<64x64xf32>
    %c8_209 = arith.constant 8 : index
    %c0_210 = arith.constant 0 : index
    %c0_211 = arith.constant 0 : index
    %196 = vector.load %arg14[%c8_209, %c0_210, %c0_211] : memref<9x64x64xf32, #tpu.memory_space<vmem>>, vector<1x64x64xf32>
    %197 = vector.shape_cast %196 : vector<1x64x64xf32> to vector<64x64xf32>
    %cst_212 = arith.constant dense<0.000000e+00> : vector<64x64xf32>
    %198 = tpu.matmul %195, %197, %cst_212 {dimension_numbers = #tpu.dot_dimension_numbers<[1], [0], [0], [1], [0, 0, 1, 1], [], []>} : vector<64x64xf32>, vector<64x64xf32>, vector<64x64xf32> -> vector<64x64xf32>
    %199 = arith.addf %192, %198 : vector<64x64xf32>
    %c0_213 = arith.constant 0 : index
    %c0_214 = arith.constant 0 : index
    %200 = vector.load %arg9[%c0_213, %c0_214] : memref<64x1xf32, #tpu.memory_space<vmem>>, vector<64x1xf32>
    %201 = vector.broadcast %200 : vector<64x1xf32> to vector<64x64xf32>
    %202 = arith.addf %199, %201 : vector<64x64xf32>
    %cst_215 = arith.constant 0.000000e+00 : f32
    %203 = vector.broadcast %cst_215 : f32 to vector<64x64xf32>
    %204 = arith.maximumf %202, %203 : vector<64x64xf32>
    %c0_216 = arith.constant 0 : index
    %c0_217 = arith.constant 0 : index
    %c0_218 = arith.constant 0 : index
    %205 = vector.load %arg10[%c0_216, %c0_217, %c0_218] : memref<4x64x64xf32, #tpu.memory_space<vmem>>, vector<1x64x64xf32>
    %206 = vector.shape_cast %205 : vector<1x64x64xf32> to vector<64x64xf32>
    %cst_219 = arith.constant dense<0.000000e+00> : vector<64x64xf32>
    %207 = tpu.matmul %206, %204, %cst_219 {dimension_numbers = #tpu.dot_dimension_numbers<[1], [0], [0], [1], [0, 0, 1, 1], [], []>} : vector<64x64xf32>, vector<64x64xf32>, vector<64x64xf32> -> vector<64x64xf32>
    %c0_220 = arith.constant 0 : index
    %c0_221 = arith.constant 0 : index
    %c0_222 = arith.constant 0 : index
    %208 = vector.load %arg19[%c0_220, %c0_221, %c0_222] : memref<4x64x256xf32, #tpu.memory_space<vmem>>, vector<1x64x256xf32>
    %209 = vector.shape_cast %208 : vector<1x64x256xf32> to vector<64x256xf32>
    %cst_223 = arith.constant dense<0.000000e+00> : vector<64x256xf32>
    %210 = tpu.matmul %207, %209, %cst_223 {dimension_numbers = #tpu.dot_dimension_numbers<[1], [0], [0], [1], [0, 0, 1, 1], [], []>} : vector<64x64xf32>, vector<64x256xf32>, vector<64x256xf32> -> vector<64x256xf32>
    %c1_224 = arith.constant 1 : index
    %c0_225 = arith.constant 0 : index
    %c0_226 = arith.constant 0 : index
    %211 = vector.load %arg10[%c1_224, %c0_225, %c0_226] : memref<4x64x64xf32, #tpu.memory_space<vmem>>, vector<1x64x64xf32>
    %212 = vector.shape_cast %211 : vector<1x64x64xf32> to vector<64x64xf32>
    %cst_227 = arith.constant dense<0.000000e+00> : vector<64x64xf32>
    %213 = tpu.matmul %212, %204, %cst_227 {dimension_numbers = #tpu.dot_dimension_numbers<[1], [0], [0], [1], [0, 0, 1, 1], [], []>} : vector<64x64xf32>, vector<64x64xf32>, vector<64x64xf32> -> vector<64x64xf32>
    %c1_228 = arith.constant 1 : index
    %c0_229 = arith.constant 0 : index
    %c0_230 = arith.constant 0 : index
    %214 = vector.load %arg19[%c1_228, %c0_229, %c0_230] : memref<4x64x256xf32, #tpu.memory_space<vmem>>, vector<1x64x256xf32>
    %215 = vector.shape_cast %214 : vector<1x64x256xf32> to vector<64x256xf32>
    %cst_231 = arith.constant dense<0.000000e+00> : vector<64x256xf32>
    %216 = tpu.matmul %213, %215, %cst_231 {dimension_numbers = #tpu.dot_dimension_numbers<[1], [0], [0], [1], [0, 0, 1, 1], [], []>} : vector<64x64xf32>, vector<64x256xf32>, vector<64x256xf32> -> vector<64x256xf32>
    %217 = arith.addf %210, %216 : vector<64x256xf32>
    %c2_232 = arith.constant 2 : index
    %c0_233 = arith.constant 0 : index
    %c0_234 = arith.constant 0 : index
    %218 = vector.load %arg10[%c2_232, %c0_233, %c0_234] : memref<4x64x64xf32, #tpu.memory_space<vmem>>, vector<1x64x64xf32>
    %219 = vector.shape_cast %218 : vector<1x64x64xf32> to vector<64x64xf32>
    %cst_235 = arith.constant dense<0.000000e+00> : vector<64x64xf32>
    %220 = tpu.matmul %219, %204, %cst_235 {dimension_numbers = #tpu.dot_dimension_numbers<[1], [0], [0], [1], [0, 0, 1, 1], [], []>} : vector<64x64xf32>, vector<64x64xf32>, vector<64x64xf32> -> vector<64x64xf32>
    %c2_236 = arith.constant 2 : index
    %c0_237 = arith.constant 0 : index
    %c0_238 = arith.constant 0 : index
    %221 = vector.load %arg19[%c2_236, %c0_237, %c0_238] : memref<4x64x256xf32, #tpu.memory_space<vmem>>, vector<1x64x256xf32>
    %222 = vector.shape_cast %221 : vector<1x64x256xf32> to vector<64x256xf32>
    %cst_239 = arith.constant dense<0.000000e+00> : vector<64x256xf32>
    %223 = tpu.matmul %220, %222, %cst_239 {dimension_numbers = #tpu.dot_dimension_numbers<[1], [0], [0], [1], [0, 0, 1, 1], [], []>} : vector<64x64xf32>, vector<64x256xf32>, vector<64x256xf32> -> vector<64x256xf32>
    %224 = arith.addf %217, %223 : vector<64x256xf32>
    %c3_240 = arith.constant 3 : index
    %c0_241 = arith.constant 0 : index
    %c0_242 = arith.constant 0 : index
    %225 = vector.load %arg10[%c3_240, %c0_241, %c0_242] : memref<4x64x64xf32, #tpu.memory_space<vmem>>, vector<1x64x64xf32>
    %226 = vector.shape_cast %225 : vector<1x64x64xf32> to vector<64x64xf32>
    %cst_243 = arith.constant dense<0.000000e+00> : vector<64x64xf32>
    %227 = tpu.matmul %226, %204, %cst_243 {dimension_numbers = #tpu.dot_dimension_numbers<[1], [0], [0], [1], [0, 0, 1, 1], [], []>} : vector<64x64xf32>, vector<64x64xf32>, vector<64x64xf32> -> vector<64x64xf32>
    %c3_244 = arith.constant 3 : index
    %c0_245 = arith.constant 0 : index
    %c0_246 = arith.constant 0 : index
    %228 = vector.load %arg19[%c3_244, %c0_245, %c0_246] : memref<4x64x256xf32, #tpu.memory_space<vmem>>, vector<1x64x256xf32>
    %229 = vector.shape_cast %228 : vector<1x64x256xf32> to vector<64x256xf32>
    %cst_247 = arith.constant dense<0.000000e+00> : vector<64x256xf32>
    %230 = tpu.matmul %227, %229, %cst_247 {dimension_numbers = #tpu.dot_dimension_numbers<[1], [0], [0], [1], [0, 0, 1, 1], [], []>} : vector<64x64xf32>, vector<64x256xf32>, vector<64x256xf32> -> vector<64x256xf32>
    %231 = arith.addf %224, %230 : vector<64x256xf32>
    %c0_248 = arith.constant 0 : index
    %c0_249 = arith.constant 0 : index
    %232 = vector.load %arg11[%c0_248, %c0_249] : memref<64x1xf32, #tpu.memory_space<vmem>>, vector<64x1xf32>
    %233 = vector.broadcast %232 : vector<64x1xf32> to vector<64x256xf32>
    %234 = arith.addf %231, %233 : vector<64x256xf32>
    %cst_250 = arith.constant 0.000000e+00 : f32
    %235 = vector.broadcast %cst_250 : f32 to vector<64x256xf32>
    %236 = arith.maximumf %234, %235 : vector<64x256xf32>
    %c0_251 = arith.constant 0 : index
    %c0_252 = arith.constant 0 : index
    %237 = vector.load %arg12[%c0_251, %c0_252] : memref<9x64xf32, #tpu.memory_space<vmem>>, vector<9x64xf32>
    %cst_253 = arith.constant dense<0.000000e+00> : vector<9x256xf32>
    %238 = tpu.matmul %237, %236, %cst_253 {dimension_numbers = #tpu.dot_dimension_numbers<[1], [0], [0], [1], [0, 0, 1, 1], [], []>} : vector<9x64xf32>, vector<64x256xf32>, vector<9x256xf32> -> vector<9x256xf32>
    %c0_254 = arith.constant 0 : index
    %c0_255 = arith.constant 0 : index
    %c0_256 = arith.constant 0 : index
    %239 = vector.load %arg15[%c0_254, %c0_255, %c0_256] : memref<9x256x256xf32, #tpu.memory_space<vmem>>, vector<1x256x256xf32>
    %240 = vector.shape_cast %239 : vector<1x256x256xf32> to vector<256x256xf32>
    %cst_257 = arith.constant dense<0.000000e+00> : vector<9x256xf32>
    %241 = tpu.matmul %238, %240, %cst_257 {dimension_numbers = #tpu.dot_dimension_numbers<[1], [0], [0], [1], [0, 0, 1, 1], [], []>} : vector<9x256xf32>, vector<256x256xf32>, vector<9x256xf32> -> vector<9x256xf32>
    %242 = vector.extract_strided_slice %241 {offsets = [0, 0], sizes = [1, 256], strides = [1, 1]} : vector<9x256xf32> to vector<1x256xf32>
    %c1_258 = arith.constant 1 : index
    %c0_259 = arith.constant 0 : index
    %c0_260 = arith.constant 0 : index
    %243 = vector.load %arg15[%c1_258, %c0_259, %c0_260] : memref<9x256x256xf32, #tpu.memory_space<vmem>>, vector<1x256x256xf32>
    %244 = vector.shape_cast %243 : vector<1x256x256xf32> to vector<256x256xf32>
    %cst_261 = arith.constant dense<0.000000e+00> : vector<9x256xf32>
    %245 = tpu.matmul %238, %244, %cst_261 {dimension_numbers = #tpu.dot_dimension_numbers<[1], [0], [0], [1], [0, 0, 1, 1], [], []>} : vector<9x256xf32>, vector<256x256xf32>, vector<9x256xf32> -> vector<9x256xf32>
    %246 = vector.extract_strided_slice %245 {offsets = [1, 0], sizes = [1, 256], strides = [1, 1]} : vector<9x256xf32> to vector<1x256xf32>
    %247 = arith.addf %242, %246 : vector<1x256xf32>
    %c2_262 = arith.constant 2 : index
    %c0_263 = arith.constant 0 : index
    %c0_264 = arith.constant 0 : index
    %248 = vector.load %arg15[%c2_262, %c0_263, %c0_264] : memref<9x256x256xf32, #tpu.memory_space<vmem>>, vector<1x256x256xf32>
    %249 = vector.shape_cast %248 : vector<1x256x256xf32> to vector<256x256xf32>
    %cst_265 = arith.constant dense<0.000000e+00> : vector<9x256xf32>
    %250 = tpu.matmul %238, %249, %cst_265 {dimension_numbers = #tpu.dot_dimension_numbers<[1], [0], [0], [1], [0, 0, 1, 1], [], []>} : vector<9x256xf32>, vector<256x256xf32>, vector<9x256xf32> -> vector<9x256xf32>
    %251 = vector.extract_strided_slice %250 {offsets = [2, 0], sizes = [1, 256], strides = [1, 1]} : vector<9x256xf32> to vector<1x256xf32>
    %252 = arith.addf %247, %251 : vector<1x256xf32>
    %c3_266 = arith.constant 3 : index
    %c0_267 = arith.constant 0 : index
    %c0_268 = arith.constant 0 : index
    %253 = vector.load %arg15[%c3_266, %c0_267, %c0_268] : memref<9x256x256xf32, #tpu.memory_space<vmem>>, vector<1x256x256xf32>
    %254 = vector.shape_cast %253 : vector<1x256x256xf32> to vector<256x256xf32>
    %cst_269 = arith.constant dense<0.000000e+00> : vector<9x256xf32>
    %255 = tpu.matmul %238, %254, %cst_269 {dimension_numbers = #tpu.dot_dimension_numbers<[1], [0], [0], [1], [0, 0, 1, 1], [], []>} : vector<9x256xf32>, vector<256x256xf32>, vector<9x256xf32> -> vector<9x256xf32>
    %256 = vector.extract_strided_slice %255 {offsets = [3, 0], sizes = [1, 256], strides = [1, 1]} : vector<9x256xf32> to vector<1x256xf32>
    %257 = arith.addf %252, %256 : vector<1x256xf32>
    %c4_270 = arith.constant 4 : index
    %c0_271 = arith.constant 0 : index
    %c0_272 = arith.constant 0 : index
    %258 = vector.load %arg15[%c4_270, %c0_271, %c0_272] : memref<9x256x256xf32, #tpu.memory_space<vmem>>, vector<1x256x256xf32>
    %259 = vector.shape_cast %258 : vector<1x256x256xf32> to vector<256x256xf32>
    %cst_273 = arith.constant dense<0.000000e+00> : vector<9x256xf32>
    %260 = tpu.matmul %238, %259, %cst_273 {dimension_numbers = #tpu.dot_dimension_numbers<[1], [0], [0], [1], [0, 0, 1, 1], [], []>} : vector<9x256xf32>, vector<256x256xf32>, vector<9x256xf32> -> vector<9x256xf32>
    %261 = vector.extract_strided_slice %260 {offsets = [4, 0], sizes = [1, 256], strides = [1, 1]} : vector<9x256xf32> to vector<1x256xf32>
    %262 = arith.addf %257, %261 : vector<1x256xf32>
    %c5_274 = arith.constant 5 : index
    %c0_275 = arith.constant 0 : index
    %c0_276 = arith.constant 0 : index
    %263 = vector.load %arg15[%c5_274, %c0_275, %c0_276] : memref<9x256x256xf32, #tpu.memory_space<vmem>>, vector<1x256x256xf32>
    %264 = vector.shape_cast %263 : vector<1x256x256xf32> to vector<256x256xf32>
    %cst_277 = arith.constant dense<0.000000e+00> : vector<9x256xf32>
    %265 = tpu.matmul %238, %264, %cst_277 {dimension_numbers = #tpu.dot_dimension_numbers<[1], [0], [0], [1], [0, 0, 1, 1], [], []>} : vector<9x256xf32>, vector<256x256xf32>, vector<9x256xf32> -> vector<9x256xf32>
    %266 = vector.extract_strided_slice %265 {offsets = [5, 0], sizes = [1, 256], strides = [1, 1]} : vector<9x256xf32> to vector<1x256xf32>
    %267 = arith.addf %262, %266 : vector<1x256xf32>
    %c6_278 = arith.constant 6 : index
    %c0_279 = arith.constant 0 : index
    %c0_280 = arith.constant 0 : index
    %268 = vector.load %arg15[%c6_278, %c0_279, %c0_280] : memref<9x256x256xf32, #tpu.memory_space<vmem>>, vector<1x256x256xf32>
    %269 = vector.shape_cast %268 : vector<1x256x256xf32> to vector<256x256xf32>
    %cst_281 = arith.constant dense<0.000000e+00> : vector<9x256xf32>
    %270 = tpu.matmul %238, %269, %cst_281 {dimension_numbers = #tpu.dot_dimension_numbers<[1], [0], [0], [1], [0, 0, 1, 1], [], []>} : vector<9x256xf32>, vector<256x256xf32>, vector<9x256xf32> -> vector<9x256xf32>
    %271 = vector.extract_strided_slice %270 {offsets = [6, 0], sizes = [1, 256], strides = [1, 1]} : vector<9x256xf32> to vector<1x256xf32>
    %272 = arith.addf %267, %271 : vector<1x256xf32>
    %c7_282 = arith.constant 7 : index
    %c0_283 = arith.constant 0 : index
    %c0_284 = arith.constant 0 : index
    %273 = vector.load %arg15[%c7_282, %c0_283, %c0_284] : memref<9x256x256xf32, #tpu.memory_space<vmem>>, vector<1x256x256xf32>
    %274 = vector.shape_cast %273 : vector<1x256x256xf32> to vector<256x256xf32>
    %cst_285 = arith.constant dense<0.000000e+00> : vector<9x256xf32>
    %275 = tpu.matmul %238, %274, %cst_285 {dimension_numbers = #tpu.dot_dimension_numbers<[1], [0], [0], [1], [0, 0, 1, 1], [], []>} : vector<9x256xf32>, vector<256x256xf32>, vector<9x256xf32> -> vector<9x256xf32>
    %276 = vector.extract_strided_slice %275 {offsets = [7, 0], sizes = [1, 256], strides = [1, 1]} : vector<9x256xf32> to vector<1x256xf32>
    %277 = arith.addf %272, %276 : vector<1x256xf32>
    %c8_286 = arith.constant 8 : index
    %c0_287 = arith.constant 0 : index
    %c0_288 = arith.constant 0 : index
    %278 = vector.load %arg15[%c8_286, %c0_287, %c0_288] : memref<9x256x256xf32, #tpu.memory_space<vmem>>, vector<1x256x256xf32>
    %279 = vector.shape_cast %278 : vector<1x256x256xf32> to vector<256x256xf32>
    %cst_289 = arith.constant dense<0.000000e+00> : vector<9x256xf32>
    %280 = tpu.matmul %238, %279, %cst_289 {dimension_numbers = #tpu.dot_dimension_numbers<[1], [0], [0], [1], [0, 0, 1, 1], [], []>} : vector<9x256xf32>, vector<256x256xf32>, vector<9x256xf32> -> vector<9x256xf32>
    %281 = vector.extract_strided_slice %280 {offsets = [8, 0], sizes = [1, 256], strides = [1, 1]} : vector<9x256xf32> to vector<1x256xf32>
    %282 = arith.addf %277, %281 : vector<1x256xf32>
    %c0_290 = arith.constant 0 : index
    %c0_291 = arith.constant 0 : index
    %283 = vector.load %arg13[%c0_290, %c0_291] : memref<1x1xf32, #tpu.memory_space<vmem>>, vector<1x1xf32>
    %284 = vector.broadcast %283 : vector<1x1xf32> to vector<1x256xf32>
    %285 = arith.addf %282, %284 : vector<1x256xf32>
    %286 = math.tanh %285 : vector<1x256xf32>
    %c0_292 = arith.constant 0 : index
    %c0_293 = arith.constant 0 : index
    %c0_294 = arith.constant 0 : index
    %287 = vector.load %arg20[%c0_292, %c0_293, %c0_294] : memref<1x1x256xf32, #tpu.memory_space<vmem>>, vector<1x1x256xf32>
    %288 = vector.shape_cast %287 : vector<1x1x256xf32> to vector<1x256xf32>
    %289 = vector.shape_cast %286 : vector<1x256xf32> to vector<1x1x256xf32>
    tpu.vector_store %arg20[%c0_292, %c0_293, %c0_294], %289 {strides = array<i32>} : memref<1x1x256xf32, #tpu.memory_space<vmem>>, vector<1x1x256xf32>,
    return
  }
  func.func @transform_0(%arg0: i32) -> (i32, i32, i32) {
    %c0_i32 = arith.constant 0 : i32
    %c0_i32_0 = arith.constant 0 : i32
    %c0_i32_1 = arith.constant 0 : i32
    return %arg0, %c0_i32, %c0_i32_0 : i32, i32, i32
  }
  func.func @transform_1(%arg0: i32) -> (i32, i32) {
    %c0_i32 = arith.constant 0 : i32
    %c0_i32_0 = arith.constant 0 : i32
    %c0_i32_1 = arith.constant 0 : i32
    return %c0_i32, %c0_i32_0 : i32, i32
  }
  func.func @transform_2(%arg0: i32) -> (i32, i32) {
    %c0_i32 = arith.constant 0 : i32
    %c0_i32_0 = arith.constant 0 : i32
    %c0_i32_1 = arith.constant 0 : i32
    return %c0_i32, %c0_i32_0 : i32, i32
  }
  func.func @transform_3(%arg0: i32) -> (i32, i32, i32) {
    %c0_i32 = arith.constant 0 : i32
    %c0_i32_0 = arith.constant 0 : i32
    %c0_i32_1 = arith.constant 0 : i32
    %c0_i32_2 = arith.constant 0 : i32
    return %c0_i32, %c0_i32_0, %c0_i32_1 : i32, i32, i32
  }
  func.func @transform_4(%arg0: i32) -> (i32, i32) {
    %c0_i32 = arith.constant 0 : i32
    %c0_i32_0 = arith.constant 0 : i32
    %c0_i32_1 = arith.constant 0 : i32
    return %c0_i32, %c0_i32_0 : i32, i32
  }
  func.func @transform_5(%arg0: i32) -> (i32, i32, i32) {
    %c0_i32 = arith.constant 0 : i32
    %c0_i32_0 = arith.constant 0 : i32
    %c0_i32_1 = arith.constant 0 : i32
    %c0_i32_2 = arith.constant 0 : i32
    return %c0_i32, %c0_i32_0, %c0_i32_1 : i32, i32, i32
  }
  func.func @transform_6(%arg0: i32) -> (i32, i32) {
    %c0_i32 = arith.constant 0 : i32
    %c0_i32_0 = arith.constant 0 : i32
    %c0_i32_1 = arith.constant 0 : i32
    return %c0_i32, %c0_i32_0 : i32, i32
  }
  func.func @transform_7(%arg0: i32) -> (i32, i32, i32) {
    %c0_i32 = arith.constant 0 : i32
    %c0_i32_0 = arith.constant 0 : i32
    %c0_i32_1 = arith.constant 0 : i32
    %c0_i32_2 = arith.constant 0 : i32
    return %c0_i32, %c0_i32_0, %c0_i32_1 : i32, i32, i32
  }
  func.func @transform_8(%arg0: i32) -> (i32, i32) {
    %c0_i32 = arith.constant 0 : i32
    %c0_i32_0 = arith.constant 0 : i32
    %c0_i32_1 = arith.constant 0 : i32
    return %c0_i32, %c0_i32_0 : i32, i32
  }
  func.func @transform_9(%arg0: i32) -> (i32, i32, i32) {
    %c0_i32 = arith.constant 0 : i32
    %c0_i32_0 = arith.constant 0 : i32
    %c0_i32_1 = arith.constant 0 : i32
    %c0_i32_2 = arith.constant 0 : i32
    return %c0_i32, %c0_i32_0, %c0_i32_1 : i32, i32, i32
  }
  func.func @transform_10(%arg0: i32) -> (i32, i32) {
    %c0_i32 = arith.constant 0 : i32
    %c0_i32_0 = arith.constant 0 : i32
    %c0_i32_1 = arith.constant 0 : i32
    return %c0_i32, %c0_i32_0 : i32, i32
  }
  func.func @transform_11(%arg0: i32) -> (i32, i32) {
    %c0_i32 = arith.constant 0 : i32
    %c0_i32_0 = arith.constant 0 : i32
    %c0_i32_1 = arith.constant 0 : i32
    return %c0_i32, %c0_i32_0 : i32, i32
  }
  func.func @transform_12(%arg0: i32) -> (i32, i32) {
    %c0_i32 = arith.constant 0 : i32
    %c0_i32_0 = arith.constant 0 : i32
    %c0_i32_1 = arith.constant 0 : i32
    return %c0_i32, %c0_i32_0 : i32, i32
  }
  func.func @transform_13(%arg0: i32) -> (i32, i32, i32) {
    %c0_i32 = arith.constant 0 : i32
    %c0_i32_0 = arith.constant 0 : i32
    %c0_i32_1 = arith.constant 0 : i32
    %c0_i32_2 = arith.constant 0 : i32
    return %c0_i32, %c0_i32_0, %c0_i32_1 : i32, i32, i32
  }
  func.func @transform_14(%arg0: i32) -> (i32, i32, i32) {
    %c0_i32 = arith.constant 0 : i32
    %c0_i32_0 = arith.constant 0 : i32
    %c0_i32_1 = arith.constant 0 : i32
    %c0_i32_2 = arith.constant 0 : i32
    return %c0_i32, %c0_i32_0, %c0_i32_1 : i32, i32, i32
  }
  func.func @transform_15(%arg0: i32) -> (i32, i32, i32) {
    %c0_i32 = arith.constant 0 : i32
    %c0_i32_0 = arith.constant 0 : i32
    %c0_i32_1 = arith.constant 0 : i32
    %c0_i32_2 = arith.constant 0 : i32
    return %c0_i32, %c0_i32_0, %c0_i32_1 : i32, i32, i32
  }
  func.func @transform_16(%arg0: i32) -> (i32, i32, i32) {
    %c0_i32 = arith.constant 0 : i32
    %c0_i32_0 = arith.constant 0 : i32
    %c0_i32_1 = arith.constant 0 : i32
    %c0_i32_2 = arith.constant 0 : i32
    return %c0_i32, %c0_i32_0, %c0_i32_1 : i32, i32, i32
  }
  func.func @transform_17(%arg0: i32) -> (i32, i32, i32) {
    %c0_i32 = arith.constant 0 : i32
    %c0_i32_0 = arith.constant 0 : i32
    %c0_i32_1 = arith.constant 0 : i32
    %c0_i32_2 = arith.constant 0 : i32
    return %c0_i32, %c0_i32_0, %c0_i32_1 : i32, i32, i32
  }
  func.func @transform_18(%arg0: i32) -> (i32, i32, i32) {
    %c0_i32 = arith.constant 0 : i32
    %c0_i32_0 = arith.constant 0 : i32
    %c0_i32_1 = arith.constant 0 : i32
    %c0_i32_2 = arith.constant 0 : i32
    return %c0_i32, %c0_i32_0, %c0_i32_1 : i32, i32, i32
  }
  func.func @transform_19(%arg0: i32) -> (i32, i32, i32) {
    %c0_i32 = arith.constant 0 : i32
    %c0_i32_0 = arith.constant 0 : i32
    %c0_i32_1 = arith.constant 0 : i32
    return %arg0, %c0_i32, %c0_i32_0 : i32, i32, i32
  }
}

</mosaic_0001>

<bundles_post_ra>
// kernel: squeeze.3
= control target key start
LH: loop header
LB: loop body
LE: loop exit
PB: predicated region body
PF: predicated region fallthrough
CT: control target
= control target key end

     0   :  { %vm16_vm0 = vcmask 523264   ;;  %s61_s0 = inlined_call_operand.vmem [shape: f32[64,3,3], index: 0, kind: input, shape index: {}]   ;;  %s62_s1 = inlined_call_operand.vmem [shape: f32[64,9], index: 1, kind: output, shape index: {}]  }
   0x1   :  { %v29_v0 = vld [vmem:[%s61_s0 + $0x8] sm:$0xf]  ;;  %v30_v1 = vld [vmem:[%s61_s0 + $0x4] sm:$0xf]  ;;  %v13_v2 = vld [vmem:[%s61_s0] sm:$0xf] }
   0x2   :  { %8 = vst [vmem:[#allocation0 + $0x10] sm:$0xf] %v29_v0  ;;  %12 = vst [vmem:[#allocation0 + $0x8] sm:$0xf] %v30_v1 }
   0x3   :  { %14 = vst [vmem:[#allocation0] sm:$0xf] %v13_v2 }
   0x9   :  { %v19_v4 = vld [vmem:[#allocation0 + $0x8] sm:$0x7]   ;;  %v24_v5 = vld [vmem:[#allocation0 + $0x10] sm:$0x7]  }
   0xa   :  { %v15_v3 = vld [vmem:[#allocation0] sm:$0x7]   ;;  %31 = vst.msk [vmem:[%s62_s1 + $0x3] sm:$0x7] %vm16_vm0, %v19_v4   ;;  %32 = vst.msk [vmem:[%s62_s1 + $0x6] sm:$0x7] %vm16_vm0, %v24_v5  }
   0xb   :  { %17 = vst.msk [vmem:[%s62_s1] sm:$0x7] %vm16_vm0, %v15_v3  }

// kernel: net_forward.1
= control target key start
LH: loop header
LB: loop body
LE: loop exit
PB: predicated region body
PF: predicated region fallthrough
CT: control target
= control target key end

     0   :  { %s24158_s0 = inlined_call_operand.vmem [shape: f32[2,16,256], index: 0, kind: input, shape index: {}]   ;;  %s24159_s1 = inlined_call_operand.vmem [shape: f32[64,16], index: 1, kind: input, shape index: {}]   ;;  %s24160_s2 = inlined_call_operand.vmem [shape: f32[64,1], index: 2, kind: input, shape index: {}]   ;;  %s24161_s3 = inlined_call_operand.vmem [shape: f32[9,128,64], index: 3, kind: input, shape index: {}]   ;;  %s24162_s4 = inlined_call_operand.vmem [shape: f32[128,1], index: 4, kind: input, shape index: {}]   ;;  %s24163_s5 = inlined_call_operand.vmem [shape: f32[4,128,128], index: 5, kind: input, shape index: {}]   ;;  %s24164_s6 = inlined_call_operand.vmem [shape: f32[128,1], index: 6, kind: input, shape index: {}]   ;;  %s24165_s7 = inlined_call_operand.vmem [shape: f32[9,64,128], index: 7, kind: input, shape index: {}]   ;;  %s24166_s8 = inlined_call_operand.vmem [shape: f32[64,1], index: 8, kind: input, shape index: {}]   ;;  %s24167_s9 = inlined_call_operand.vmem [shape: f32[4,64,64], index: 9, kind: input, shape index: {}]   ;;  %s24168_s10 = inlined_call_operand.vmem [shape: f32[64,1], index: 10, kind: input, shape index: {}]   ;;  %s24169_s11 = inlined_call_operand.vmem [shape: f32[9,64], index: 11, kind: input, shape index: {}]   ;;  %s24170_s12 = inlined_call_operand.<no memory space> [shape: f32[1,1], index: 12, kind: input, shape index: {}]   ;;  %s24171_s13 = inlined_call_operand.hbm [shape: f32[9,64,64], index: 13, kind: input, shape index: {}]   ;;  %s24172_s14 = inlined_call_operand.vmem [shape: f32[9,256,256], index: 14, kind: input, shape index: {}]   ;;  %s24173_s15 = inlined_call_operand.vmem [shape: f32[4,256,64], index: 15, kind: input, shape index: {}]   ;;  %s24174_s16 = inlined_call_operand.hbm [shape: f32[4,64,16], index: 16, kind: input, shape index: {}]   ;;  %s24175_s17 = inlined_call_operand.hbm [shape: f32[4,16,64], index: 17, kind: input, shape index: {}]   ;;  %s24176_s18 = inlined_call_operand.vmem [shape: f32[4,64,256], index: 18, kind: input, shape index: {}]   ;;  %s24177_s19 = inlined_call_operand.vmem [shape: f32[2,1,256], index: 19, kind: output, shape index: {}]  }
   0x1   :  { %24205 = sst [smem:[#allocation20_spill]] %s24158_s0  ;;  %v24_v0 = vstv %s24170_s12 }
   0x2   :  { %24206 = sst [smem:[#allocation21_spill]] %s24159_s1  ;;  %25 = vst [vmem:[#allocation2] sm:$0x1] %v24_v0 }
   0x3   :  { %24207 = sst [smem:[#allocation22_spill]] %s24160_s2 }
   0x4   :  { %24208 = sst [smem:[#allocation23_spill]] %s24161_s3 }
   0x5   :  { %24209 = sst [smem:[#allocation24_spill]] %s24169_s11 }
   0x6   :  { %24210 = sst [smem:[#allocation25_spill]] %s24177_s19 }
   0x7   :  { %26 = vsyncpa [#allocation4], 0 }
   0x8   :  { %27 = vsyncpa [#allocation6], 0  ;;  %s18967_s20 = smov 0  }
   0x9 LB: > { %24211 = sst [smem:[#allocation10_spill]] %s18854_s20  ;;  %s18973_s21 = sadd.s32 4294967295, %s18854_s20   ;;  %s18854_s20 = sphi %s18967_s20, %s33_s20  }
   0xa   : > { %p12025_p0 = scmp.ge.s32.totalorder %s18854_s20, 1  ;;  %p468_p1 = scmp.lt.s32.totalorder %s18854_s20, 3 }
   0xb   : > { %p24181_p2 = scmp.eq.s32.totalorder %s18973_s21, 0  ;;  %s18856_s1 = smov [#allocation5]  }
   0xc   : > { %p18978_p3 = pnand %p12025_p0, %p468_p1  ;;  %s535_s22 = sshll.u32 %s18856_s1, 4  ;;  %s536_s22 = int_to_ptr.vmem [resolvable:$true] %s535_s22 }
   0xd   : > { %s18857_s2 = smov [#allocation3]   ;;  %s18858_s25 = smov [#allocation7]  }
   0xe   : > { %s24212_s12 = scalar_select %p18978_p3, 1, 0 }
   0xf   : > { %p18718_p4 = pneg %p18978_p3  ;;  %s516_s23 = sshll.u32 %s18857_s2, 4  ;;  %s18990_s23 = int_to_ptr.vmem [resolvable:$true] %s516_s23 }
  0x10   : > { %s548_s3 = sshll.u32 %s18858_s25, 4  ;;  %s18756_s28 = scalar_lea.hbm %s24174_s16, 4096  ;;  %s18992_s3 = int_to_ptr.vmem [resolvable:$true] %s548_s3 }
  0x11   : > { %p18986_p5 = pnand %p24181_p2, %p18718_p4  ;;  %p18757_p6 = scmp.ne.s32.totalorder %s24174_s16, %s18756_s28 }
  0x12   : > { %p18763_p10 = scmp.lt.u32.totalorder %s18756_s28, %s24174_s16 }
  0x13   : > { %p19002_p7 = pneg %p18986_p5 }
  0x15   : > { %p18759_p8 = pnand %p19002_p7, %p18757_p6 }
  0x17   : > { %p18760_p9 = pneg %p18759_p8 }
  0x19   : > { %p18765_p11 = pnand %p18763_p10, %p18760_p9 }
  0x1b   : > { %18768 = shalt.err (!%p18765_p11)
}
  0x1c   : > { %s18769_s25 = scalar_lea.vmem %s536_s22, 4096  ;;  %p18777_p1 = scmp.lt.s32.totalorder %s536_s22, %s536_s22 }
  0x1d   : > { %p18770_p12 = scmp.ne.s32.totalorder %s536_s22, %s18769_s25  ;;  %p18778_p4 = scmp.lt.s32.totalorder %s18769_s25, %s18769_s25 }
  0x1f   : > { %p18772_p13 = pnand %p18770_p12, %p19002_p7  ;;  %p18779_p2 = por %p18778_p4, %p18777_p1 }
  0x21   : > { %p18773_p0 = pneg %p18772_p13 }
  0x23   : > { %p18780_p3 = pnand %p18779_p2, %p18773_p0 }
  0x25   : > { %18783 = shalt.err (!%p18780_p3)
}
  0x26   : > { %s18859_s26 = smov 128   ;;  %s18860_s27 = smov 8  }
  0x27   : > { %18724 = dma.hbm_to_vmem [thread:$0]  (!%p18986_p5), %s24174_s16, 4096, %s536_s22, [#allocation6], %s18859_s26, %s18859_s26, %s18860_s27  }
  0x28   : > { %s18784_s2 = scalar_lea.hbm %s24171_s13, 9216 }
  0x29   : > { %p18785_p2 = scmp.ne.s32.totalorder %s24171_s13, %s18784_s2  ;;  %p18791_p8 = scmp.lt.u32.totalorder %s18784_s2, %s24171_s13 }
  0x2b   : > { %p18787_p3 = pnand %p18785_p2, %p19002_p7 }
  0x2d   : > { %p18788_p6 = pneg %p18787_p3 }
  0x2f   : > { %p18793_p9 = pnand %p18791_p8, %p18788_p6 }
  0x31   : > { %18796 = shalt.err (!%p18793_p9)
}
  0x32   : > { %s18797_s22 = scalar_lea.vmem %s18990_s23, 9216  ;;  %p18805_p13 = scmp.lt.s32.totalorder %s18990_s23, %s18990_s23 }
  0x33   : > { %p18798_p10 = scmp.ne.s32.totalorder %s18990_s23, %s18797_s22  ;;  %p18806_p0 = scmp.lt.s32.totalorder %s18797_s22, %s18797_s22 }
  0x35   : > { %p18800_p11 = pnand %p18798_p10, %p19002_p7  ;;  %p18807_p1 = por %p18806_p0, %p18805_p13 }
  0x37   : > { %p18801_p12 = pneg %p18800_p11 }
  0x39   : > { %p18808_p4 = pnand %p18807_p1, %p18801_p12 }
  0x3b   : > { %18811 = shalt.err (!%p18808_p4)
}
  0x3c   : > { %18721 = dma.hbm_to_vmem [thread:$0]  (!%p18986_p5), %s24171_s13, 9216, %s18990_s23, [#allocation4], %s18859_s26, %s18859_s26, %s18860_s27  }
  0x3d   : > { %s18812_s29 = scalar_lea.hbm %s24175_s17, 1024 }
  0x3e   : > { %p18813_p2 = scmp.ne.s32.totalorder %s24175_s17, %s18812_s29  ;;  %p18819_p8 = scmp.lt.u32.totalorder %s18812_s29, %s24175_s17 }
  0x40   : > { %p18815_p3 = pnand %p18813_p2, %p19002_p7 }
  0x42   : > { %p18816_p6 = pneg %p18815_p3 }
  0x44   : > { %p18821_p9 = pnand %p18819_p8, %p18816_p6 }
  0x46   : > { %18824 = shalt.err (!%p18821_p9)
}
  0x47   : > { %s18825_s23 = scalar_lea.vmem %s18992_s3, 1024  ;;  %p18833_p13 = scmp.lt.s32.totalorder %s18992_s3, %s18992_s3 }
  0x48   : > { %p18826_p10 = scmp.ne.s32.totalorder %s18992_s3, %s18825_s23  ;;  %p18834_p0 = scmp.lt.s32.totalorder %s18825_s23, %s18825_s23 }
  0x4a   : > { %p18828_p11 = pnand %p18826_p10, %p19002_p7  ;;  %p18835_p1 = por %p18834_p0, %p18833_p13 }
  0x4c   : > { %p18829_p12 = pneg %p18828_p11 }
  0x4e   : > { %p18836_p4 = pnand %p18835_p1, %p18829_p12 }
  0x50   : > { %18839 = shalt.err (!%p18836_p4)
}
  0x51   : > { %18727 = dma.hbm_to_vmem [thread:$0]  (!%p18986_p5), %s24175_s17, 1024, %s18992_s3, [#allocation6], %s18859_s26, %s18859_s26, %s18860_s27  }
  0x52   : > { %p24215_p2 = scmp.ne.s32.totalorder %s24212_s12, 0 }
  0x54   : > { %575 = sbr.rel (%p24215_p2) target bundleno = 4614 (0x1206), region = 96 }
  0x5b   : > { %p24216_p7 = scmp.eq.s32.totalorder %s18973_s21, 0 }
  0x5d   : > { %18845 = dma.done.wait (%p24216_p7), [#allocation4], 9216   ;;  %p24217_p3 = pmov %p24216_p7 }
  0x5f   : > { %18847 = vsyncadd (%p24217_p3), [#allocation4], 4294958080  ;;  %p24218_p6 = pmov %p24217_p3 }
  0x60   : > { %p24219_p8 = pmov %p24217_p3 }
  0x61   : > { %18849 = dma.done.wait (%p24218_p6), [#allocation6], 5120  }
  0x62   : > { %18851 = vsyncadd (%p24219_p8), [#allocation6], 4294962176  ;;  %p638_p9 = scmp.lt.s32.totalorder %s18973_s21, 1  ;;  %v18861_v1 = vmov 0   ;;  %v24185_v2 = vmov 0.0   ;;  %s24220_s30 = sld [smem:[#allocation20_spill]] }
  0x63   : > { %18751 = vset.pattern.permute.xlu1 %v18861_v1  ;;  %18750 = vset.pattern.permute.xlu0 %v18861_v1  ;;  %s24221_s20 = sld [smem:[#allocation22_spill]]  ;;  %vm707_vm0 = vcmask 130048   ;;  %v4488_v20 = vld [vmem:[%s24162_s4 + $0x8] sm:$0xff]  ;;  %v4487_v21 = vld [vmem:[%s24162_s4] sm:$0xff]  ;;  %v4490_v23 = vld [vmem:[%s24162_s4 + $0x18] sm:$0xff]  ;;  %vm1460_vm1 = vcmask 523264  }
  0x64   : > { %s24248_s21 = smov (!%p638_p9, %s18973_s21), 1  ;;  %796 = vmatprep.mubr.f32.mxu0 %v24185_v2  ;;  %v4489_v24 = vld [vmem:[%s24162_s4 + $0x10] sm:$0xff]  ;;  %v4492_v26 = vld [vmem:[%s24162_s4 + $0x28] sm:$0xff]  ;;  %v4491_v27 = vld [vmem:[%s24162_s4 + $0x20] sm:$0xff]  ;;  %s24232_s3 = sld [smem:[#allocation23_spill]] }
  0x65   : > { %s13449_s12 = sshll.u32 %s24248_s21, 5  ;;  %v4494_v29 = vld [vmem:[%s24162_s4 + $0x38] sm:$0xff]  ;;  %v4493_v30 = vld [vmem:[%s24162_s4 + $0x30] sm:$0xff]  ;;  %v4496_v32 = vld [vmem:[%s24162_s4 + $0x48] sm:$0xff]  ;;  %s24244_s23 = sld [smem:[#allocation24_spill]] }
  0x66   : > { %v4495_v33 = vld [vmem:[%s24162_s4 + $0x40] sm:$0xff]  ;;  %v4498_v35 = vld [vmem:[%s24162_s4 + $0x58] sm:$0xff]  ;;  %v4497_v36 = vld [vmem:[%s24162_s4 + $0x50] sm:$0xff]  ;;  %s12036_s22 = sshll.u32 %s24248_s21, 1 }
  0x67   : > { %v4500_v37 = vld [vmem:[%s24162_s4 + $0x68] sm:$0xff]  ;;  %v4499_v38 = vld [vmem:[%s24162_s4 + $0x60] sm:$0xff]  ;;  %v4502_v39 = vld [vmem:[%s24162_s4 + $0x78] sm:$0xff] }
  0x68   : > { %s642_s26 = scalar_lea.vmem %s24220_s30, %s13449_s12  ;;  %s24223_s12 = sld [smem:[#allocation21_spill]]  ;;  %v4501_v40 = vld [vmem:[%s24162_s4 + $0x70] sm:$0xff]  ;;  %v6789_v41 = vld [vmem:[%s24164_s6 + $0x8] sm:$0xff]  ;;  %v6788_v42 = vld [vmem:[%s24164_s6] sm:$0xff] }
  0x69   : > { %s24222_s28 = smov %s24221_s20  ;;  %v661_v3 = vld [vmem:[%s24221_s20 + $0x10] sm:$0xff]  ;;  %v648_v5 = vld [vmem:[%s642_s26 + $0x8] sm:$0xff]  ;;  %v650_v6 = vld [vmem:[%s642_s26 + $0x18] sm:$0xff]  ;;  %s24245_s30 = sld [smem:[#allocation25_spill]] }
  0x6a   : > { %v659_v4 = vld [vmem:[%s24222_s28] sm:$0xff]  ;;  %679 = vperm.xlu1 %18751, %v661_v3   ;;  %v649_v8 = vld [vmem:[%s642_s26 + $0x10] sm:$0xff]  ;;  %v16622_v9 = vpack.c.bf16 %v650_v6, %v648_v5  ;;  %v662_v11 = vld [vmem:[%s24222_s28 + $0x18] sm:$0xff] }
  0x6b   : > { %669 = vperm.xlu0 %18750, %v659_v4   ;;  %v647_v7 = vld [vmem:[%s642_s26] sm:$0xff]  ;;  %v660_v12 = vld [vmem:[%s24222_s28 + $0x8] sm:$0xff]  ;;  %v666_v17 = vld [vmem:[%s24222_s28 + $0x38] sm:$0xff] }
  0x6c   : > { %v16624_v10 = vpack.c.bf16 %v649_v8, %v647_v7  ;;  %16623 = vmatprep.subr.bf16.mxu0 %v16622_v9  ;;  %v664_v14 = vld [vmem:[%s24222_s28 + $0x28] sm:$0xff]  ;;  %v663_v15 = vld [vmem:[%s24222_s28 + $0x20] sm:$0xff]  ;;  %v665_v18 = vld [vmem:[%s24222_s28 + $0x30] sm:$0xff] }
  0x6d   : > { %v6791_v43 = vld [vmem:[%s24164_s6 + $0x18] sm:$0xff]  ;;  %v6790_v44 = vld [vmem:[%s24164_s6 + $0x10] sm:$0xff]  ;;  %v6793_v45 = vld [vmem:[%s24164_s6 + $0x28] sm:$0xff] }
  0x6e   : > { %16625 = vmatpush1.bf16.msra.mxu0 %v16624_v10  ;;  %684 = vperm.xlu1 %18751, %v662_v11   ;;  %v651_v13 = vld [vmem:[%s24223_s12] sm:$0xff]  ;;  %v652_v16 = vld [vmem:[%s24223_s12 + $0x8] sm:$0xff]  ;;  %v653_v19 = vld [vmem:[%s24223_s12 + $0x10] sm:$0xff] }
  0x6f   : > { %674 = vperm.xlu0 %18750, %v660_v12   ;;  %v654_v22 = vld [vmem:[%s24223_s12 + $0x18] sm:$0xff]  ;;  %v655_v25 = vld [vmem:[%s24223_s12 + $0x20] sm:$0xff]  ;;  %v656_v28 = vld [vmem:[%s24223_s12 + $0x28] sm:$0xff]  ;;  %s646_s26 = scalar_lea.vmem %s24245_s30, %s12036_s22 }
  0x70   : > { %v657_v31 = vld [vmem:[%s24223_s12 + $0x30] sm:$0xff]  ;;  %v658_v34 = vld [vmem:[%s24223_s12 + $0x38] sm:$0xff]  ;;  %v6792_v46 = vld [vmem:[%s24164_s6 + $0x20] sm:$0xff] }
  0x71   : > { %12037 = vmatmul.mubr.msk.f32.vlgmr.msra.gmra.mrb[0].mxu0 %vm707_vm0, %v651_v13  ;;  %v6795_v47 = vld [vmem:[%s24164_s6 + $0x38] sm:$0xff]  ;;  %v6794_v48 = vld [vmem:[%s24164_s6 + $0x30] sm:$0xff]  ;;  %v6797_v49 = vld [vmem:[%s24164_s6 + $0x48] sm:$0xff] }
  0x72   : > { %694 = vperm.xlu1 %18751, %v664_v14   ;;  %802 = vmatprep.mubr.f32.mxu0 %v24185_v2  ;;  %v6796_v50 = vld [vmem:[%s24164_s6 + $0x40] sm:$0xff]  ;;  %v878_v52 = vld [vmem:[%s24173_s15 + $0x88] sm:$0xff]  ;;  %v6799_v62 = vld [vmem:[%s24164_s6 + $0x58] sm:$0xff] }
  0x73   : > { %689 = vperm.xlu0 %18750, %v663_v15   ;;  %v877_v51 = vld [vmem:[%s24173_s15 + $0x80] sm:$0xff]  ;;  %v12062_v55 = vld [vmem:[%s24173_s15 + $0x188] sm:$0xff]  ;;  %v6798_v63 = vld [vmem:[%s24164_s6 + $0x50] sm:$0xff] }
  0x74   : > { %v12061_v53 = vld [vmem:[%s24173_s15 + $0x180] sm:$0xff]  ;;  %v16626_v54 = vpack.c.bf16 %v878_v52, %v877_v51  ;;  %v862_v57 = vld [vmem:[%s24173_s15 + $0x8] sm:$0xff]  ;;  %v879_v1 = vld [vmem:[%s24173_s15 + $0x90] sm:$0xff] }
  0x75   : > { %12038 = vmatmul.mubr.msk.f32.gmra.mrb[2].mxu0 %vm707_vm0, %v652_v16  ;;  %v861_v56 = vld [vmem:[%s24173_s15] sm:$0xff]  ;;  %v16658_v58 = vpack.c.bf16 %v12062_v55, %v12061_v53  ;;  %v12046_v61 = vld [vmem:[%s24173_s15 + $0x108] sm:$0xff]  ;;  %v880_v3 = vld [vmem:[%s24173_s15 + $0x98] sm:$0xff] }
  0x76   : > { %704 = vperm.xlu1 %18751, %v666_v17   ;;  %808 = vmatprep.mubr.f32.mxu0 %v24185_v2  ;;  %v16628_v59 = vpack.c.bf16 %v862_v57, %v861_v56  ;;  %v12045_v60 = vld [vmem:[%s24173_s15 + $0x100] sm:$0xff]  ;;  %v12063_v4 = vld [vmem:[%s24173_s15 + $0x190] sm:$0xff]  ;;  %v16630_v5 = vpack.c.bf16 %v880_v3, %v879_v1  ;;  %v12064_v6 = vld [vmem:[%s24173_s15 + $0x198] sm:$0xff] }
  0x77   : > { %699 = vperm.xlu0 %18750, %v665_v18   ;;  %16627 = vmatprep.subr.bf16.mxu1 %v16626_v54  ;;  %v16660_v0 = vpack.c.bf16 %v12046_v61, %v12045_v60  ;;  %v863_v7 = vld [vmem:[%s24173_s15 + $0x10] sm:$0xff]  ;;  %v864_v8 = vld [vmem:[%s24173_s15 + $0x18] sm:$0xff]  ;;  %v16662_v9 = vpack.c.bf16 %v12064_v6, %v12063_v4  ;;  %v6801_v13 = vld [vmem:[%s24164_s6 + $0x68] sm:$0xff] }
  0x78   : > { %16659 = vmatprep.subr.bf16.mxu0 %v16658_v58  ;;  %16629 = vmatpush3.bf16.msra.mxu1 %v16628_v59  ;;  %v16632_v10 = vpack.c.bf16 %v864_v8, %v863_v7  ;;  %v12047_v11 = vld [vmem:[%s24173_s15 + $0x110] sm:$0xff]  ;;  %v12048_v12 = vld [vmem:[%s24173_s15 + $0x118] sm:$0xff]  ;;  %v6800_v14 = vld [vmem:[%s24164_s6 + $0x60] sm:$0xff] }
  0x79   : > { %12039 = vmatmul.mubr.msk.f32.gmra.mrb[4].mxu0 %vm707_vm0, %v653_v19  ;;  %16631 = vmatprep.subr.bf16.mxu1 %v16630_v5  ;;  %v16664_v15 = vpack.c.bf16 %v12048_v12, %v12047_v11  ;;  %v881_v16 = vld [vmem:[%s24173_s15 + $0xa0] sm:$0xff]  ;;  %v882_v17 = vld [vmem:[%s24173_s15 + $0xa8] sm:$0xff]  ;;  %v9161_v55 = vld [vmem:[%s24166_s8 + $0x18] sm:$0xff] }
  0x7a   : > { %4510 = vperm.xlu1 %18751, %v4488_v20   ;;  %814 = vmatprep.mubr.f32.mxu0 %v24185_v2  ;;  %v12065_v18 = vld [vmem:[%s24173_s15 + $0x1a0] sm:$0xff]  ;;  %v16634_v19 = vpack.c.bf16 %v882_v17, %v881_v16  ;;  %v12066_v20 = vld [vmem:[%s24173_s15 + $0x1a8] sm:$0xff]  ;;  %v9160_v56 = vld [vmem:[%s24166_s8 + $0x10] sm:$0xff] }
  0x7b   : > { %4505 = vperm.xlu0 %18750, %v4487_v21   ;;  %16661 = vmatpush3.bf16.msra.mxu0 %v16660_v0  ;;  %v865_v21 = vld [vmem:[%s24173_s15 + $0x20] sm:$0xff]  ;;  %v12054_v54 = vld [vmem:[%s24173_s15 + $0x148] sm:$0xff]  ;;  %v887_v58 = vld [vmem:[%s24173_s15 + $0xd0] sm:$0xff] }
  0x7c   : > { %16663 = vmatprep.subr.bf16.mxu0 %v16662_v9  ;;  %16633 = vmatpush3.bf16.msra.mxu1 %v16632_v10  ;;  %v12053_v53 = vld [vmem:[%s24173_s15 + $0x140] sm:$0xff]  ;;  %v888_v59 = vld [vmem:[%s24173_s15 + $0xd8] sm:$0xff]  ;;  %v12071_v60 = vld [vmem:[%s24173_s15 + $0x1d0] sm:$0xff] }
  0x7d   : > { %12040 = vmatmul.mubr.msk.f32.gmra.mrb[6].mxu0 %vm707_vm0, %v654_v22  ;;  %v866_v22 = vld [vmem:[%s24173_s15 + $0x28] sm:$0xff]  ;;  %16635 = vmatprep.subr.bf16.mxu1 %v16634_v19  ;;  %v16676_v57 = vpack.c.bf16 %v12054_v54, %v12053_v53  ;;  %v16646_v61 = vpack.c.bf16 %v888_v59, %v887_v58  ;;  %v872_v0 = vld [vmem:[%s24173_s15 + $0x58] sm:$0xff]  ;;  %v12055_v4 = vld [vmem:[%s24173_s15 + $0x150] sm:$0xff] }
  0x7e   : > { %4520 = vperm.xlu1 %18751, %v4490_v23   ;;  %820 = vmatprep.mubr.f32.mxu0 %v24185_v2  ;;  %v16666_v23 = vpack.c.bf16 %v12066_v20, %v12065_v18  ;;  %v12056_v5 = vld [vmem:[%s24173_s15 + $0x158] sm:$0xff]  ;;  %v9163_v6 = vld [vmem:[%s24166_s8 + $0x28] sm:$0xff]  ;;  %v9162_v7 = vld [vmem:[%s24166_s8 + $0x20] sm:$0xff] }
  0x7f   : > { %4515 = vperm.xlu0 %18750, %v4489_v24   ;;  %16665 = vmatpush3.bf16.msra.mxu0 %v16664_v15  ;;  %v16636_v24 = vpack.c.bf16 %v866_v22, %v865_v21  ;;  %v16680_v8 = vpack.c.bf16 %v12056_v5, %v12055_v4  ;;  %v889_v9 = vld [vmem:[%s24173_s15 + $0xe0] sm:$0xff]  ;;  %v890_v10 = vld [vmem:[%s24173_s15 + $0xe8] sm:$0xff]  ;;  %v9165_v20 = vld [vmem:[%s24166_s8 + $0x38] sm:$0xff] }
  0x80   : > { %16667 = vmatprep.subr.bf16.mxu0 %v16666_v23  ;;  %v12073_v11 = vld [vmem:[%s24173_s15 + $0x1e0] sm:$0xff]  ;;  %v16650_v12 = vpack.c.bf16 %v890_v10, %v889_v9  ;;  %v874_v15 = vld [vmem:[%s24173_s15 + $0x68] sm:$0xff]  ;;  %v9164_v21 = vld [vmem:[%s24166_s8 + $0x30] sm:$0xff] }
  0x81   : > { %12041 = vmatmul.mubr.msk.f32.gmra.mrb[8].mxu0 %vm707_vm0, %v655_v25  ;;  %v12049_v25 = vld [vmem:[%s24173_s15 + $0x120] sm:$0xff]  ;;  %16637 = vmatpush3.bf16.msra.mxu1 %v16636_v24  ;;  %v12058_v19 = vld [vmem:[%s24173_s15 + $0x168] sm:$0xff]  ;;  %v891_v23 = vld [vmem:[%s24173_s15 + $0xf0] sm:$0xff] }
  0x82   : > { %4530 = vperm.xlu1 %18751, %v4492_v26   ;;  %826 = vmatprep.mubr.f32.mxu0 %v24185_v2  ;;  %v12050_v26 = vld [vmem:[%s24173_s15 + $0x128] sm:$0xff]  ;;  %v12057_v18 = vld [vmem:[%s24173_s15 + $0x160] sm:$0xff]  ;;  %v892_v24 = vld [vmem:[%s24173_s15 + $0xf8] sm:$0xff] }
  0x83   : > { %4525 = vperm.xlu0 %18750, %v4491_v27   ;;  %v6803_v27 = vld [vmem:[%s24164_s6 + $0x78] sm:$0xff]  ;;  %v16684_v22 = vpack.c.bf16 %v12058_v19, %v12057_v18  ;;  %v12078_v53 = vld [vmem:[%s24173_s15 + $0x208] sm:$0xff]  ;;  %v12095_v58 = vld [vmem:[%s24173_s15 + $0x290] sm:$0xff] }
  0x84   : > { %v12079_v5 = vld [vmem:[%s24173_s15 + $0x210] sm:$0xff]  ;;  %v12129_v18 = vld [vmem:[%s24173_s15 + $0x3a0] sm:$0xff]  ;;  %v12130_v19 = vld [vmem:[%s24173_s15 + $0x3a8] sm:$0xff] }
  0x85   : > { %12042 = vmatmul.mubr.msk.f32.gmra.mrb[10].mxu0 %vm707_vm0, %v656_v28  ;;  %v6802_v28 = vld [vmem:[%s24164_s6 + $0x70] sm:$0xff] }
  0x86   : > { %4540 = vperm.xlu1 %18751, %v4494_v29   ;;  %832 = vmatprep.mubr.f32.mxu0 %v24185_v2  ;;  %v16668_v29 = vpack.c.bf16 %v12050_v26, %v12049_v25  ;;  %v12075_v25 = vld [vmem:[%s24173_s15 + $0x1f0] sm:$0xff]  ;;  %v16654_v26 = vpack.c.bf16 %v892_v24, %v891_v23  ;;  %v12081_v24 = vld [vmem:[%s24173_s15 + $0x220] sm:$0xff] }
  0x87   : > { %4535 = vperm.xlu0 %18750, %v4493_v30   ;;  %v883_v30 = vld [vmem:[%s24173_s15 + $0xb0] sm:$0xff] }
  0x88   : > { %16669 = vmatpush3.bf16.msra.mxu0 %v16668_v29  ;;  %v876_v29 = vld [vmem:[%s24173_s15 + $0x78] sm:$0xff] }
  0x89   : > { %12043 = vmatmul.mubr.msk.f32.gmra.mrb[12].mxu0 %vm707_vm0, %v657_v31  ;;  %v884_v31 = vld [vmem:[%s24173_s15 + $0xb8] sm:$0xff] }
  0x8a   : > { %4550 = vperm.xlu1 %18751, %v4496_v32   ;;  %838 = vmatprep.mubr.f32.mxu0 %v24185_v2  ;;  %v12067_v32 = vld [vmem:[%s24173_s15 + $0x1b0] sm:$0xff] }
  0x8b   : > { %4545 = vperm.xlu0 %18750, %v4495_v33   ;;  %v16638_v33 = vpack.c.bf16 %v884_v31, %v883_v30 }
  0x8d   : > { %12044 = vmatmul.mubr.msk.f32.gmra.mrb[14].mxu0 %vm707_vm0, %v658_v34  ;;  %v12068_v34 = vld [vmem:[%s24173_s15 + $0x1b8] sm:$0xff]  ;;  %16639 = vmatprep.subr.bf16.mxu1 %v16638_v33 }
  0x8e   : > { %4560 = vperm.xlu1 %18751, %v4498_v35   ;;  %v867_v35 = vld [vmem:[%s24173_s15 + $0x30] sm:$0xff]  ;;  %v12060_v33 = vld [vmem:[%s24173_s15 + $0x178] sm:$0xff] }
  0x8f   : > { %4555 = vperm.xlu0 %18750, %v4497_v36   ;;  %v868_v36 = vld [vmem:[%s24173_s15 + $0x38] sm:$0xff] }
  0x92   : > { %4570 = vperm.xlu1 %18751, %v4500_v37   ;;  %v16670_v37 = vpack.c.bf16 %v12068_v34, %v12067_v32  ;;  %v12059_v32 = vld [vmem:[%s24173_s15 + $0x170] sm:$0xff]  ;;  %v10421_v34 = vld [vmem:[%s24168_s10 + $0x8] sm:$0xff] }
  0x93   : > { %4565 = vperm.xlu0 %18750, %v4499_v38   ;;  %v16640_v38 = vpack.c.bf16 %v868_v36, %v867_v35  ;;  %v10420_v35 = vld [vmem:[%s24168_s10] sm:$0xff]  ;;  %v16688_v36 = vpack.c.bf16 %v12060_v33, %v12059_v32  ;;  %v12114_v32 = vld [vmem:[%s24173_s15 + $0x328] sm:$0xff]  ;;  %v12099_v33 = vld [vmem:[%s24173_s15 + $0x2b0] sm:$0xff] }
  0x94   : > { %16671 = vmatprep.subr.bf16.mxu0 %v16670_v37  ;;  %v12093_v37 = vld [vmem:[%s24173_s15 + $0x280] sm:$0xff] }
  0x95   : > { %16641 = vmatpush3.bf16.msra.mxu1 %v16640_v38  ;;  %v12094_v38 = vld [vmem:[%s24173_s15 + $0x288] sm:$0xff] }
  0x96   : > { %4580 = vperm.xlu1 %18751, %v4502_v39   ;;  %v12051_v39 = vld [vmem:[%s24173_s15 + $0x130] sm:$0xff] }
  0x97   : > { %4575 = vperm.xlu0 %18750, %v4501_v40   ;;  %v12052_v40 = vld [vmem:[%s24173_s15 + $0x138] sm:$0xff] }
  0x9a   : > { %6811 = vperm.xlu1 %18751, %v6789_v41   ;;  %v9159_v41 = vld [vmem:[%s24166_s8 + $0x8] sm:$0xff] }
  0x9b   : > { %6806 = vperm.xlu0 %18750, %v6788_v42   ;;  %v9158_v42 = vld [vmem:[%s24166_s8] sm:$0xff] }
  0x9e   : > { %6821 = vperm.xlu1 %18751, %v6791_v43   ;;  %v16672_v43 = vpack.c.bf16 %v12052_v40, %v12051_v39  ;;  %v12125_v39 = vld [vmem:[%s24173_s15 + $0x380] sm:$0xff]  ;;  %v16690_v40 = vpack.c.bf16 %v12094_v38, %v12093_v37  ;;  %v12132_v37 = vld [vmem:[%s24173_s15 + $0x3b8] sm:$0xff] }
  0x9f   : > { %6816 = vperm.xlu0 %18750, %v6790_v44   ;;  %v885_v44 = vld [vmem:[%s24173_s15 + $0xc0] sm:$0xff] }
  0xa0   : > { %16673 = vmatpush3.bf16.msra.mxu0 %v16672_v43  ;;  %v10423_v43 = vld [vmem:[%s24168_s10 + $0x18] sm:$0xff] }
  0xa2   : > { %6831 = vperm.xlu1 %18751, %v6793_v45   ;;  %v886_v45 = vld [vmem:[%s24173_s15 + $0xc8] sm:$0xff] }
  0xa3   : > { %6826 = vperm.xlu0 %18750, %v6792_v46   ;;  %v12069_v46 = vld [vmem:[%s24173_s15 + $0x1c0] sm:$0xff] }
  0xa6   : > { %6841 = vperm.xlu1 %18751, %v6795_v47   ;;  %v16642_v47 = vpack.c.bf16 %v886_v45, %v885_v44  ;;  %v10422_v44 = vld [vmem:[%s24168_s10 + $0x10] sm:$0xff]  ;;  %v10425_v45 = vld [vmem:[%s24168_s10 + $0x28] sm:$0xff] }
  0xa7   : > { %6836 = vperm.xlu0 %18750, %v6794_v48   ;;  %v12070_v48 = vld [vmem:[%s24173_s15 + $0x1c8] sm:$0xff] }
  0xa8   : > { %v16674_v51 = vpack.c.bf16 %v12070_v48, %v12069_v46  ;;  %16643 = vmatprep.subr.bf16.mxu1 %v16642_v47  ;;  %v10424_v46 = vld [vmem:[%s24168_s10 + $0x20] sm:$0xff]  ;;  %v10427_v47 = vld [vmem:[%s24168_s10 + $0x38] sm:$0xff]  ;;  %v10426_v48 = vld [vmem:[%s24168_s10 + $0x30] sm:$0xff] }
  0xaa   : > { %6851 = vperm.xlu1 %18751, %v6797_v49   ;;  %v869_v49 = vld [vmem:[%s24173_s15 + $0x40] sm:$0xff]  ;;  %16675 = vmatprep.subr.bf16.mxu0 %v16674_v51 }
  0xab   : > { %6846 = vperm.xlu0 %18750, %v6796_v50   ;;  %v870_v50 = vld [vmem:[%s24173_s15 + $0x48] sm:$0xff]  ;;  %16677 = vmatpush3.bf16.msra.mxu0 %v16676_v57 }
  0xac   : > { %v16644_v52 = vpack.c.bf16 %v870_v50, %v869_v49  ;;  %v11902_v49 = vld [vmem:[#allocation2] sm:$0x1]  ;;  %v12110_v57 = vld [vmem:[%s24173_s15 + $0x308] sm:$0xff] }
  0xae   : > { %6861 = vperm.xlu1 %18751, %v6799_v62   ;;  %16645 = vmatpush3.bf16.msra.mxu1 %v16644_v52  ;;  %v12072_v62 = vld [vmem:[%s24173_s15 + $0x1d8] sm:$0xff]  ;;  %v12077_v52 = vld [vmem:[%s24173_s15 + $0x200] sm:$0xff] }
  0xaf   : > { %6856 = vperm.xlu0 %18750, %v6798_v63   ;;  %v871_v63 = vld [vmem:[%s24173_s15 + $0x50] sm:$0xff]  ;;  %v16678_v1 = vpack.c.bf16 %v12072_v62, %v12071_v60  ;;  %16647 = vmatprep.subr.bf16.mxu1 %v16646_v61  ;;  %v12096_v60 = vld [vmem:[%s24173_s15 + $0x298] sm:$0xff] }
  0xb0   : > { %v16648_v3 = vpack.c.bf16 %v872_v0, %v871_v63  ;;  %v12127_v61 = vld [vmem:[%s24173_s15 + $0x390] sm:$0xff]  ;;  %v12128_v62 = vld [vmem:[%s24173_s15 + $0x398] sm:$0xff]  ;;  %v16694_v10 = vpack.c.bf16 %v12096_v60, %v12095_v58 }
  0xb1   : > { %16679 = vmatprep.subr.bf16.mxu0 %v16678_v1 }
  0xb2   : > { %6871 = vperm.xlu1 %18751, %v6801_v13   ;;  %16649 = vmatpush3.bf16.msra.mxu1 %v16648_v3  ;;  %v12074_v13 = vld [vmem:[%s24173_s15 + $0x1e8] sm:$0xff]  ;;  %v16692_v3 = vpack.c.bf16 %v12078_v53, %v12077_v52  ;;  %v12101_v52 = vld [vmem:[%s24173_s15 + $0x2c0] sm:$0xff] }
  0xb3   : > { %6866 = vperm.xlu0 %18750, %v6800_v14   ;;  %16681 = vmatpush3.bf16.msra.mxu0 %v16680_v8  ;;  %v873_v14 = vld [vmem:[%s24173_s15 + $0x60] sm:$0xff]  ;;  %v16682_v16 = vpack.c.bf16 %v12074_v13, %v12073_v11  ;;  %v16726_v11 = vpack.c.bf16 %v12128_v62, %v12127_v61  ;;  %v12112_v13 = vld [vmem:[%s24173_s15 + $0x318] sm:$0xff] }
  0xb4   : > { %v16652_v17 = vpack.c.bf16 %v874_v15, %v873_v14  ;;  %16651 = vmatprep.subr.bf16.mxu1 %v16650_v12  ;;  %v12111_v12 = vld [vmem:[%s24173_s15 + $0x310] sm:$0xff]  ;;  %v12097_v14 = vld [vmem:[%s24173_s15 + $0x2a0] sm:$0xff] }
  0xb5   : > { %16683 = vmatprep.subr.bf16.mxu0 %v16682_v16  ;;  %v16728_v23 = vpack.c.bf16 %v12112_v13, %v12111_v12  ;;  %v12085_v62 = vld [vmem:[%s24173_s15 + $0x240] sm:$0xff]  ;;  %v12104_v12 = vld [vmem:[%s24173_s15 + $0x2d8] sm:$0xff]  ;;  %v12135_v13 = vld [vmem:[%s24173_s15 + $0x3d0] sm:$0xff] }
  0xb6   : > { %6881 = vperm.xlu1 %18751, %v6803_v27   ;;  %16653 = vmatpush3.bf16.msra.mxu1 %v16652_v17  ;;  %v12076_v27 = vld [vmem:[%s24173_s15 + $0x1f8] sm:$0xff]  ;;  %v12098_v17 = vld [vmem:[%s24173_s15 + $0x2a8] sm:$0xff] }
  0xb7   : > { %6876 = vperm.xlu0 %18750, %v6802_v28   ;;  %16685 = vmatpush3.bf16.msra.mxu0 %v16684_v22  ;;  %v875_v28 = vld [vmem:[%s24173_s15 + $0x70] sm:$0xff]  ;;  %v16686_v30 = vpack.c.bf16 %v12076_v27, %v12075_v25  ;;  %v12082_v25 = vld [vmem:[%s24173_s15 + $0x228] sm:$0xff] }
  0xb8   : > { %v16656_v31 = vpack.c.bf16 %v876_v29, %v875_v28  ;;  %16655 = vmatprep.subr.bf16.mxu1 %v16654_v26  ;;  %v16698_v29 = vpack.c.bf16 %v12098_v17, %v12097_v14  ;;  %v12136_v14 = vld [vmem:[%s24173_s15 + $0x3d8] sm:$0xff] }
  0xb9   : > { %16687 = vmatprep.subr.bf16.mxu0 %v16686_v30  ;;  %v16730_v30 = vpack.c.bf16 %v12130_v19, %v12129_v18 }
  0xba   : > { %9173 = vperm.xlu1 %18751, %v9159_v41   ;;  %16657 = vmatpush3.bf16.msra.mxu1 %v16656_v31  ;;  %v12126_v41 = vld [vmem:[%s24173_s15 + $0x388] sm:$0xff]  ;;  %v12113_v31 = vld [vmem:[%s24173_s15 + $0x320] sm:$0xff] }
  0xbb   : > { %9168 = vperm.xlu0 %18750, %v9158_v42   ;;  %16689 = vmatpush3.bf16.msra.mxu0 %v16688_v36  ;;  %v16722_v42 = vpack.c.bf16 %v12126_v41, %v12125_v39  ;;  %v12131_v36 = vld [vmem:[%s24173_s15 + $0x3b0] sm:$0xff]  ;;  %v16700_v41 = vpack.c.bf16 %v12082_v25, %v12081_v24 }
  0xbc   : > { %16691 = vmatprep.subr.bf16.mxu1 %v16690_v40 }
  0xbd   : > { %16723 = vmatprep.subr.bf16.mxu0 %v16722_v42  ;;  %v16732_v42 = vpack.c.bf16 %v12114_v32, %v12113_v31  ;;  %v12105_v31 = vld [vmem:[%s24173_s15 + $0x2e0] sm:$0xff] }
  0xbe   : > { %9183 = vperm.xlu1 %18751, %v9161_v55  }
  0xbf   : > { %9178 = vperm.xlu0 %18750, %v9160_v56   ;;  %v12109_v56 = vld [vmem:[%s24173_s15 + $0x300] sm:$0xff] }
  0xc0   : > { %v16724_v4 = vpack.c.bf16 %v12110_v57, %v12109_v56  ;;  %v12134_v56 = vld [vmem:[%s24173_s15 + $0x3c8] sm:$0xff] }
  0xc2   : > { %9193 = vperm.xlu1 %18751, %v9163_v6   ;;  %v12080_v6 = vld [vmem:[%s24173_s15 + $0x218] sm:$0xff] }
  0xc3   : > { %9188 = vperm.xlu0 %18750, %v9162_v7   ;;  %v16696_v22 = vpack.c.bf16 %v12080_v6, %v12079_v5 }
  0xc6   : > { %9203 = vperm.xlu1 %18751, %v9165_v20  }
  0xc7   : > { %9198 = vperm.xlu0 %18750, %v9164_v21  }
  0xca   : > { %10435 = vperm.xlu1 %18751, %v10421_v34  }
  0xcb   : > { %10430 = vperm.xlu0 %18750, %v10420_v35   ;;  %v12100_v35 = vld [vmem:[%s24173_s15 + $0x2b8] sm:$0xff] }
  0xce   : > { %10445 = vperm.xlu1 %18751, %v10423_v43   ;;  %v12083_v43 = vld [vmem:[%s24173_s15 + $0x230] sm:$0xff] }
  0xcf   : > { %10440 = vperm.xlu0 %18750, %v10422_v44   ;;  %v12084_v44 = vld [vmem:[%s24173_s15 + $0x238] sm:$0xff] }
  0xd0   : > { %v16704_v60 = vpack.c.bf16 %v12084_v44, %v12083_v43  ;;  %v12090_v43 = vld [vmem:[%s24173_s15 + $0x268] sm:$0xff] }
  0xd2   : > { %10455 = vperm.xlu1 %18751, %v10425_v45  }
  0xd3   : > { %10450 = vperm.xlu0 %18750, %v10424_v46  }
  0xd6   : > { %10465 = vperm.xlu1 %18751, %v10427_v47  }
  0xd7   : > { %10460 = vperm.xlu0 %18750, %v10426_v48   ;;  %v16702_v48 = vpack.c.bf16 %v12100_v35, %v12099_v33  ;;  %v12106_v33 = vld [vmem:[%s24173_s15 + $0x2e8] sm:$0xff] }
  0xd8   : > { %v12138_v35 = vld [vmem:[%s24173_s15 + $0x3e8] sm:$0xff] }
  0xdb   : > { %11905 = vperm.xlu0 %18750, %v11902_v49   ;;  %v16734_v49 = vpack.c.bf16 %v12132_v37, %v12131_v36 }
  0xe9   : > { %v680_v15 = vpop.permute.xlu1 %679 }
  0xea   : > { %v670_v50 = vpop.permute.xlu0 %669 }
  0xed   : > { %v685_v38 = vpop.permute.xlu1 %684 }
  0xee   : > { %v675_v63 = vpop.permute.xlu0 %674 }
  0xf2   : > { %v690_v57 = vpop.permute.xlu0 %689 }
  0xf6   : > { %v700_v36 = vpop.permute.xlu0 %699 }
 0x144   : > { %v798_v51 = vpop.f32.mrb[0].mxu0 }
 0x145   : > { %v799_v54 = vadd.f32 %v798_v51, %v670_v50  ;;  %v800_v55 = vpop.f32.mrb[1].mxu0  ;;  %v12116_v51 = vld [vmem:[%s24173_s15 + $0x338] sm:$0xff] }
 0x146   : > { %v801_v59 = vadd.f32 %v800_v55, %v670_v50  ;;  %v12115_v50 = vld [vmem:[%s24173_s15 + $0x330] sm:$0xff]  ;;  %v12133_v55 = vld [vmem:[%s24173_s15 + $0x3c0] sm:$0xff] }
 0x147   : > { %v19535_v7 = vmax.f32 %v799_v54, 0.0  ;;  %v12102_v54 = vld [vmem:[%s24173_s15 + $0x2c8] sm:$0xff]  ;;  %v16736_v61 = vpack.c.bf16 %v12116_v51, %v12115_v50  ;;  %v16738_v6 = vpack.c.bf16 %v12134_v56, %v12133_v55  ;;  %v12121_v50 = vld [vmem:[%s24173_s15 + $0x360] sm:$0xff]  ;;  %v12139_v55 = vld [vmem:[%s24173_s15 + $0x3f0] sm:$0xff] }
 0x148   : > { %v19527_v0 = vmax.f32 %v801_v59, 0.0  ;;  %v804_v1 = vpop.f32.mrb[2].mxu0  ;;  %v16706_v5 = vpack.c.bf16 %v12102_v54, %v12101_v52  ;;  %v12122_v51 = vld [vmem:[%s24173_s15 + $0x368] sm:$0xff]  ;;  %v12107_v52 = vld [vmem:[%s24173_s15 + $0x2f0] sm:$0xff]  ;;  %v12108_v54 = vld [vmem:[%s24173_s15 + $0x2f8] sm:$0xff] }
 0x149   : > { %v805_v8 = vadd.f32 %v804_v1, %v675_v63  ;;  %v806_v9 = vpop.f32.mrb[3].mxu0  ;;  %v12140_v56 = vld [vmem:[%s24173_s15 + $0x3f8] sm:$0xff] }
 0x14a   : > { %v807_v16 = vadd.f32 %v806_v9, %v675_v63  ;;  %957 = vmatprep.mubr.f32.mxu1 %v19527_v0  ;;  %1095 = vmatprep.mubr.f32.mxu0 %v19527_v0  ;;  %v12086_v63 = vld [vmem:[%s24173_s15 + $0x248] sm:$0xff] }
 0x14b   : > { %958 = vmatmul.mubr.f32.vlgmr.msra.gmra.mrb[0].mxu1 %v19535_v7  ;;  %1096 = vmatmul.mubr.f32.vlgmr.msra.gmra.mrb[16].mxu0 %v19535_v7  ;;  %v19567_v26 = vmax.f32 %v805_v8, 0.0  ;;  %v12117_v8 = vld [vmem:[%s24173_s15 + $0x340] sm:$0xff]  ;;  %v12118_v9 = vld [vmem:[%s24173_s15 + $0x348] sm:$0xff]  ;;  %v16708_v18 = vpack.c.bf16 %v12086_v63, %v12085_v62  ;;  %v16748_v62 = vpack.c.bf16 %v12122_v51, %v12121_v50 }
 0x14c   : > { %v19559_v20 = vmax.f32 %v807_v16, 0.0  ;;  %v810_v21 = vpop.f32.mrb[4].mxu0  ;;  %16693 = vmatpush3.bf16.msra.mxu1 %v16692_v3  ;;  %16725 = vmatpush3.bf16.msra.mxu0 %v16724_v4  ;;  %v16740_v19 = vpack.c.bf16 %v12118_v9, %v12117_v8  ;;  %v12091_v8 = vld [vmem:[%s24173_s15 + $0x270] sm:$0xff]  ;;  %v12092_v9 = vld [vmem:[%s24173_s15 + $0x278] sm:$0xff] }
 0x14d   : > { %v811_v27 = vadd.f32 %v810_v21, %v680_v15  ;;  %v812_v28 = vpop.f32.mrb[5].mxu0  ;;  %16695 = vmatprep.subr.bf16.mxu1 %v16694_v10  ;;  %16727 = vmatprep.subr.bf16.mxu0 %v16726_v11  ;;  %v12103_v10 = vld [vmem:[%s24173_s15 + $0x2d0] sm:$0xff] }
 0x14e   : > { %v813_v34 = vadd.f32 %v812_v28, %v680_v15  ;;  %962 = vmatprep.mubr.f32.mxu1 %v19559_v20  ;;  %1100 = vmatprep.mubr.f32.mxu0 %v19559_v20  ;;  %v695_v15 = vpop.permute.xlu1 %694  ;;  %v12087_v21 = vld [vmem:[%s24173_s15 + $0x250] sm:$0xff]  ;;  %v16742_v28 = vpack.c.bf16 %v12136_v14, %v12135_v13  ;;  %v16720_v14 = vpack.c.bf16 %v12092_v9, %v12091_v8 }
 0x14f   : > { %963 = vmatmul.mubr.f32.gmra.mrb[2].mxu1 %v19567_v26  ;;  %1101 = vmatmul.mubr.f32.gmra.mrb[18].mxu0 %v19567_v26  ;;  %v19599_v45 = vmax.f32 %v811_v27, 0.0  ;;  %v16710_v27 = vpack.c.bf16 %v12104_v12, %v12103_v10  ;;  %v12124_v12 = vld [vmem:[%s24173_s15 + $0x378] sm:$0xff] }
 0x150   : > { %v19591_v39 = vmax.f32 %v813_v34, 0.0  ;;  %v816_v40 = vpop.f32.mrb[6].mxu0  ;;  %16697 = vmatpush3.bf16.msra.mxu1 %v16696_v22  ;;  %16729 = vmatpush3.bf16.msra.mxu0 %v16728_v23  ;;  %v12088_v22 = vld [vmem:[%s24173_s15 + $0x258] sm:$0xff]  ;;  %v12137_v34 = vld [vmem:[%s24173_s15 + $0x3e0] sm:$0xff] }
 0x151   : > { %v817_v46 = vadd.f32 %v816_v40, %v685_v38  ;;  %v818_v47 = vpop.f32.mrb[7].mxu0  ;;  %16699 = vmatprep.subr.bf16.mxu1 %v16698_v29  ;;  %16731 = vmatprep.subr.bf16.mxu0 %v16730_v30  ;;  %v12119_v29 = vld [vmem:[%s24173_s15 + $0x350] sm:$0xff]  ;;  %v12120_v30 = vld [vmem:[%s24173_s15 + $0x358] sm:$0xff]  ;;  %v16712_v40 = vpack.c.bf16 %v12088_v22, %v12087_v21  ;;  %v1456_v22 = vld [vmem:[#allocation3 + $0x20] sm:$0xff] }
 0x152   : > { %v819_v53 = vadd.f32 %v818_v47, %v685_v38  ;;  %967 = vmatprep.mubr.f32.mxu1 %v19591_v39  ;;  %1105 = vmatprep.mubr.f32.mxu0 %v19591_v39 }
 0x153   : > { %968 = vmatmul.mubr.f32.gmra.mrb[4].mxu1 %v19599_v45  ;;  %1106 = vmatmul.mubr.f32.gmra.mrb[20].mxu0 %v19599_v45  ;;  %v19631_v1 = vmax.f32 %v817_v46, 0.0 }
 0x154   : > { %v19623_v58 = vmax.f32 %v819_v53, 0.0  ;;  %v822_v59 = vpop.f32.mrb[8].mxu0  ;;  %16701 = vmatpush3.bf16.msra.mxu1 %v16700_v41  ;;  %16733 = vmatpush3.bf16.msra.mxu0 %v16732_v42  ;;  %v16744_v41 = vpack.c.bf16 %v12120_v30, %v12119_v29  ;;  %v12089_v42 = vld [vmem:[%s24173_s15 + $0x260] sm:$0xff]  ;;  %v1458_v29 = vld [vmem:[#allocation3 + $0x30] sm:$0xff] }
 0x155   : > { %v823_v3 = vadd.f32 %v822_v59, %v690_v57  ;;  %v824_v4 = vpop.f32.mrb[9].mxu0  ;;  %16703 = vmatprep.subr.bf16.mxu1 %v16702_v48  ;;  %16735 = vmatprep.subr.bf16.mxu0 %v16734_v49  ;;  %v16714_v48 = vpack.c.bf16 %v12106_v33, %v12105_v31  ;;  %v16746_v49 = vpack.c.bf16 %v12138_v35, %v12137_v34  ;;  %v1459_v30 = vld [vmem:[#allocation3 + $0x38] sm:$0xff]  ;;  %v1614_v31 = vld [vmem:[#allocation3 + $0x70] sm:$0xff]  ;;  %v2125_v35 = vld [vmem:[#allocation3 + $0x80] sm:$0xff] }
 0x156   : > { %v825_v11 = vadd.f32 %v824_v4, %v690_v57  ;;  %972 = vmatprep.mubr.f32.mxu1 %v19623_v58  ;;  %1110 = vmatprep.mubr.f32.mxu0 %v19623_v58  ;;  %v705_v57 = vpop.permute.xlu1 %704  ;;  %v1615_v33 = vld [vmem:[#allocation3 + $0x78] sm:$0xff] }
 0x157   : > { %973 = vmatmul.mubr.f32.gmra.mrb[6].mxu1 %v19631_v1  ;;  %1111 = vmatmul.mubr.f32.gmra.mrb[22].mxu0 %v19631_v1  ;;  %v19663_v23 = vmax.f32 %v823_v3, 0.0  ;;  %v19781_v34 = vpack.c.bf16 %v1615_v33, %v1614_v31 }
 0x158   : > { %v19655_v16 = vmax.f32 %v825_v11, 0.0  ;;  %v828_v17 = vpop.f32.mrb[10].mxu0  ;;  %16705 = vmatpush3.bf16.msra.mxu1 %v16704_v60  ;;  %16737 = vmatpush3.bf16.msra.mxu0 %v16736_v61  ;;  %v16716_v61 = vpack.c.bf16 %v12090_v43, %v12089_v42  ;;  %v12123_v11 = vld [vmem:[%s24173_s15 + $0x370] sm:$0xff] }
 0x159   : > { %v829_v24 = vadd.f32 %v828_v17, %v695_v15  ;;  %v830_v25 = vpop.f32.mrb[11].mxu0  ;;  %16707 = vmatprep.subr.bf16.mxu1 %v16706_v5  ;;  %16739 = vmatprep.subr.bf16.mxu0 %v16738_v6  ;;  %v16718_v5 = vpack.c.bf16 %v12108_v54, %v12107_v52  ;;  %v16750_v6 = vpack.c.bf16 %v12140_v56, %v12139_v55 }
 0x15a   : > { %v831_v32 = vadd.f32 %v830_v25, %v695_v15  ;;  %977 = vmatprep.mubr.f32.mxu1 %v19655_v16  ;;  %1115 = vmatprep.mubr.f32.mxu0 %v19655_v16  ;;  %v16752_v17 = vpack.c.bf16 %v12124_v12, %v12123_v11 }
 0x15b   : > { %978 = vmatmul.mubr.f32.gmra.mrb[8].mxu1 %v19663_v23  ;;  %1116 = vmatmul.mubr.f32.gmra.mrb[24].mxu0 %v19663_v23  ;;  %v19695_v44 = vmax.f32 %v829_v24, 0.0  ;;  %v1612_v24 = vld [vmem:[#allocation3 + $0x60] sm:$0xff] }
 0x15c   : > { %v19687_v37 = vmax.f32 %v831_v32, 0.0  ;;  %v834_v38 = vpop.f32.mrb[12].mxu0  ;;  %16709 = vmatpush3.bf16.msra.mxu1 %v16708_v18  ;;  %16741 = vmatpush3.bf16.msra.mxu0 %v16740_v19  ;;  %v1611_v19 = vld [vmem:[#allocation3 + $0x58] sm:$0xff]  ;;  %v19779_v32 = vpack.c.bf16 %v1459_v30, %v1458_v29 }
 0x15d   : > { %v835_v46 = vadd.f32 %v834_v38, %v700_v36  ;;  %v836_v47 = vpop.f32.mrb[13].mxu0  ;;  %16711 = vmatprep.subr.bf16.mxu1 %v16710_v27  ;;  %16743 = vmatprep.subr.bf16.mxu0 %v16742_v28  ;;  %v1613_v27 = vld [vmem:[#allocation3 + $0x68] sm:$0xff] }
 0x15e   : > { %v837_v53 = vadd.f32 %v836_v47, %v700_v36  ;;  %982 = vmatprep.mubr.f32.mxu1 %v19687_v37  ;;  %1120 = vmatprep.mubr.f32.mxu0 %v19687_v37  ;;  %v19773_v28 = vpack.c.bf16 %v1613_v27, %v1612_v24  ;;  %v2126_v36 = vld [vmem:[#allocation3 + $0x88] sm:$0xff] }
 0x15f   : > { %983 = vmatmul.mubr.f32.gmra.mrb[10].mxu1 %v19695_v44  ;;  %1121 = vmatmul.mubr.f32.gmra.mrb[26].mxu0 %v19695_v44  ;;  %v857_v63 = vmax.f32 %v835_v46, 0.0 }
 0x160   : > { %v858_v59 = vmax.f32 %v837_v53, 0.0  ;;  %v840_v60 = vpop.f32.mrb[14].mxu0  ;;  %16713 = vmatpush3.bf16.msra.mxu1 %v16712_v40  ;;  %16745 = vmatpush3.bf16.msra.mxu0 %v16744_v41 }
 0x161   : > { %v841_v3 = vadd.f32 %v840_v60, %v705_v57  ;;  %v842_v4 = vpop.f32.mrb[15].mxu0  ;;  %16715 = vmatprep.subr.bf16.mxu1 %v16714_v48  ;;  %16747 = vmatprep.subr.bf16.mxu0 %v16746_v49 }
 0x162   : > { %v843_v10 = vadd.f32 %v842_v4, %v705_v57  ;;  %987 = vmatprep.mubr.f32.mxu1 %v858_v59  ;;  %1125 = vmatprep.mubr.f32.mxu0 %v858_v59 }
 0x163   : > { %988 = vmatmul.mubr.f32.gmra.mrb[12].mxu1 %v857_v63  ;;  %1126 = vmatmul.mubr.f32.gmra.mrb[28].mxu0 %v857_v63  ;;  %v859_v15 = vmax.f32 %v841_v3, 0.0 }
 0x164   : > { %v860_v13 = vmax.f32 %v843_v10, 0.0  ;;  %16717 = vmatpush3.bf16.msra.mxu1 %v16716_v61  ;;  %16749 = vmatpush3.bf16.msra.mxu0 %v16748_v62 }
 0x165   : > { %16719 = vmatprep.subr.bf16.mxu1 %v16718_v5  ;;  %16751 = vmatprep.subr.bf16.mxu0 %v16750_v6 }
 0x166   : > { %992 = vmatprep.mubr.f32.mxu1 %v860_v13  ;;  %1130 = vmatprep.mubr.f32.mxu0 %v860_v13 }
 0x167   : > { %993 = vmatmul.mubr.f32.gmra.mrb[14].mxu1 %v859_v15  ;;  %1131 = vmatmul.mubr.f32.gmra.mrb[30].mxu0 %v859_v15 }
 0x168   : > { %16721 = vmatpush3.bf16.msra.mxu1 %v16720_v14  ;;  %1241 = vmatprep.mubr.f32.mxu1 %v19527_v0 }
 0x169   : > { %16753 = vmatpush3.bf16.msra.mxu0 %v16752_v17  ;;  %1387 = vmatprep.mubr.f32.mxu0 %v19527_v0  ;;  %v1608_v0 = vld [vmem:[#allocation3 + $0x40] sm:$0xff] }
 0x16b   : > { %1242 = vmatmul.mubr.f32.vlgmr.msra.gmra.mrb[16].mxu1 %v19535_v7 }
 0x16c   : > { %1388 = vmatmul.mubr.f32.vlgmr.msra.gmra.mrb[32].mxu0 %v19535_v7  ;;  %1246 = vmatprep.mubr.f32.mxu1 %v19559_v20  ;;  %v1609_v7 = vld [vmem:[#allocation3 + $0x48] sm:$0xff] }
 0x16d   : > { %1392 = vmatprep.mubr.f32.mxu0 %v19559_v20  ;;  %v19755_v20 = vpack.c.bf16 %v1609_v7, %v1608_v0 }
 0x16f   : > { %1247 = vmatmul.mubr.f32.gmra.mrb[18].mxu1 %v19567_v26  ;;  %16771 = vmatprep.subr.bf16.mxu0 %v19755_v20 }
 0x170   : > { %1393 = vmatmul.mubr.f32.gmra.mrb[34].mxu0 %v19567_v26  ;;  %1251 = vmatprep.mubr.f32.mxu1 %v19591_v39  ;;  %v1452_v26 = vld [vmem:[#allocation3] sm:$0xff] }
 0x171   : > { %1397 = vmatprep.mubr.f32.mxu0 %v19591_v39  ;;  %v1453_v39 = vld [vmem:[#allocation3 + $0x8] sm:$0xff]  ;;  %16773 = vmatpush3.bf16.msra.mxu0 %v19755_v20 }
 0x173   : > { %1252 = vmatmul.mubr.f32.gmra.mrb[20].mxu1 %v19599_v45 }
 0x174   : > { %1398 = vmatmul.mubr.f32.gmra.mrb[36].mxu0 %v19599_v45  ;;  %1256 = vmatprep.mubr.f32.mxu1 %v19623_v58  ;;  %v19758_v45 = vpack.c.bf16 %v1453_v39, %v1452_v26 }
 0x175   : > { %1402 = vmatprep.mubr.f32.mxu0 %v19623_v58  ;;  %v1454_v58 = vld [vmem:[#allocation3 + $0x10] sm:$0xff] }
 0x176   : > { %16755 = vmatprep.subr.bf16.mxu1 %v19758_v45 }
 0x177   : > { %1257 = vmatmul.mubr.f32.gmra.mrb[22].mxu1 %v19631_v1 }
 0x178   : > { %1403 = vmatmul.mubr.f32.gmra.mrb[38].mxu0 %v19631_v1  ;;  %1261 = vmatprep.mubr.f32.mxu1 %v19655_v16  ;;  %v1455_v1 = vld [vmem:[#allocation3 + $0x18] sm:$0xff] }
 0x179   : > { %1407 = vmatprep.mubr.f32.mxu0 %v19655_v16  ;;  %16757 = vmatpush3.bf16.msra.mxu1 %v19758_v45  ;;  %v1610_v16 = vld [vmem:[#allocation3 + $0x50] sm:$0xff]  ;;  %v19763_v18 = vpack.c.bf16 %v1455_v1, %v1454_v58 }
 0x17a   : > { %v19765_v21 = vpack.c.bf16 %v1611_v19, %v1610_v16 }
 0x17b   : > { %1262 = vmatmul.mubr.f32.gmra.mrb[24].mxu1 %v19663_v23  ;;  %16759 = vmatprep.subr.bf16.mxu1 %v19763_v18 }
 0x17c   : > { %1408 = vmatmul.mubr.f32.gmra.mrb[40].mxu0 %v19663_v23  ;;  %1266 = vmatprep.mubr.f32.mxu1 %v19687_v37  ;;  %v1457_v23 = vld [vmem:[#allocation3 + $0x28] sm:$0xff] }
 0x17d   : > { %1412 = vmatprep.mubr.f32.mxu0 %v19687_v37  ;;  %16775 = vmatprep.subr.bf16.mxu0 %v19765_v21  ;;  %v19771_v25 = vpack.c.bf16 %v1457_v23, %v1456_v22  ;;  %v19787_v37 = vpack.c.bf16 %v2126_v36, %v2125_v35 }
 0x17e   : > { %16761 = vmatpush3.bf16.msra.mxu1 %v19763_v18  ;;  %16777 = vmatpush3.bf16.msra.mxu0 %v19765_v21 }
 0x17f   : > { %1267 = vmatmul.mubr.f32.gmra.mrb[26].mxu1 %v19695_v44  ;;  %16763 = vmatprep.subr.bf16.mxu1 %v19771_v25 }
 0x180   : > { %1413 = vmatmul.mubr.f32.gmra.mrb[42].mxu0 %v19695_v44  ;;  %1271 = vmatprep.mubr.f32.mxu1 %v858_v59 }
 0x181   : > { %1417 = vmatprep.mubr.f32.mxu0 %v858_v59  ;;  %16779 = vmatprep.subr.bf16.mxu0 %v19773_v28 }
 0x182   : > { %16765 = vmatpush3.bf16.msra.mxu1 %v19771_v25  ;;  %16781 = vmatpush3.bf16.msra.mxu0 %v19773_v28 }
 0x183   : > { %1272 = vmatmul.mubr.f32.gmra.mrb[28].mxu1 %v857_v63  ;;  %16767 = vmatprep.subr.bf16.mxu1 %v19779_v32 }
 0x184   : > { %1418 = vmatmul.mubr.f32.gmra.mrb[44].mxu0 %v857_v63  ;;  %1276 = vmatprep.mubr.f32.mxu1 %v860_v13 }
 0x185   : > { %1422 = vmatprep.mubr.f32.mxu0 %v860_v13  ;;  %16783 = vmatprep.subr.bf16.mxu0 %v19781_v34 }
 0x186   : > { %16769 = vmatpush3.bf16.msra.mxu1 %v19779_v32  ;;  %16785 = vmatpush3.bf16.msra.mxu0 %v19781_v34 }
 0x187   : > { %1277 = vmatmul.mubr.f32.gmra.mrb[30].mxu1 %v859_v15  ;;  %16819 = vmatprep.subr.bf16.mxu0 %v19787_v37 }
 0x188   : > { %1423 = vmatmul.mubr.f32.gmra.mrb[46].mxu0 %v859_v15 }
 0x21e   : > { %v13482_v38 = vpop.f32.mrb[0].mxu1  ;;  %v13538_v40 = vpop.f32.mrb[16].mxu0 }
 0x21f   : > { %v13483_v41 = vpop.f32.mrb[1].mxu1  ;;  %v13539_v42 = vpop.f32.mrb[17].mxu0 }
 0x220   : > { %v13484_v43 = vadd.f32 %v13483_v41, %v13482_v38  ;;  %v13540_v44 = vadd.f32 %v13539_v42, %v13538_v40 }
 0x222   : > { %v13485_v46 = vpop.f32.mrb[2].mxu1  ;;  %v13541_v47 = vpop.f32.mrb[18].mxu0  ;;  %v1136_v48 = vmax.f32 %v13484_v43, %v13540_v44 }
 0x223   : > { %v13486_v49 = vpop.f32.mrb[3].mxu1  ;;  %v13542_v50 = vpop.f32.mrb[19].mxu0 }
 0x224   : > { %v19790_v51 = vadd.f32 %v13486_v49, %v13485_v46  ;;  %v13543_v52 = vadd.f32 %v13542_v50, %v13541_v47 }
 0x226   : > { %v13488_v53 = vpop.f32.mrb[4].mxu1  ;;  %v13544_v54 = vpop.f32.mrb[20].mxu0  ;;  %v1137_v55 = vmax.f32 %v19790_v51, %v13543_v52 }
 0x227   : > { %v13489_v56 = vpop.f32.mrb[5].mxu1  ;;  %v13545_v57 = vpop.f32.mrb[21].mxu0 }
 0x228   : > { %v19793_v59 = vadd.f32 %v13489_v56, %v13488_v53  ;;  %v19795_v60 = vadd.f32 %v13545_v57, %v13544_v54 }
 0x22a   : > { %v13491_v61 = vpop.f32.mrb[6].mxu1  ;;  %v13547_v62 = vpop.f32.mrb[22].mxu0  ;;  %v1138_v63 = vmax.f32 %v19793_v59, %v19795_v60  ;;  %v2131_v60 = vld [vmem:[#allocation3 + $0xb0] sm:$0xff] }
 0x22b   : > { %v13492_v3 = vpop.f32.mrb[7].mxu1  ;;  %v13548_v4 = vpop.f32.mrb[23].mxu0 }
 0x22c   : > { %v19799_v5 = vadd.f32 %v13492_v3, %v13491_v61  ;;  %v19801_v6 = vadd.f32 %v13548_v4, %v13547_v62  ;;  %v2127_v61 = vld [vmem:[#allocation3 + $0x90] sm:$0xff]  ;;  %v2128_v62 = vld [vmem:[#allocation3 + $0x98] sm:$0xff] }
 0x22e   : > { %v13494_v8 = vpop.f32.mrb[8].mxu1  ;;  %v13550_v9 = vpop.f32.mrb[24].mxu0  ;;  %v1139_v10 = vmax.f32 %v19799_v5, %v19801_v6  ;;  %v2465_v6 = vld [vmem:[#allocation3 + $0xc0] sm:$0xff] }
 0x22f   : > { %v13495_v11 = vpop.f32.mrb[9].mxu1  ;;  %v13551_v12 = vpop.f32.mrb[25].mxu0 }
 0x230   : > { %v19805_v13 = vadd.f32 %v13495_v11, %v13494_v8  ;;  %v19807_v14 = vadd.f32 %v13551_v12, %v13550_v9 }
 0x232   : > { %v13497_v15 = vpop.f32.mrb[10].mxu1  ;;  %v13553_v17 = vpop.f32.mrb[26].mxu0  ;;  %v1140_v0 = vmax.f32 %v19805_v13, %v19807_v14 }
 0x233   : > { %v13498_v7 = vpop.f32.mrb[11].mxu1  ;;  %v13554_v26 = vpop.f32.mrb[27].mxu0 }
 0x234   : > { %v19811_v39 = vadd.f32 %v13498_v7, %v13497_v15  ;;  %v19813_v58 = vadd.f32 %v13554_v26, %v13553_v17  ;;  %v19837_v15 = vpack.c.bf16 %v2128_v62, %v2127_v61  ;;  %v2129_v7 = vld [vmem:[#allocation3 + $0xa0] sm:$0xff]  ;;  %v2130_v26 = vld [vmem:[#allocation3 + $0xa8] sm:$0xff] }
 0x236   : > { %v13500_v1 = vpop.f32.mrb[12].mxu1  ;;  %v13556_v16 = vpop.f32.mrb[28].mxu0  ;;  %v1141_v19 = vmax.f32 %v19811_v39, %v19813_v58 }
 0x237   : > { %v13501_v22 = vpop.f32.mrb[13].mxu1  ;;  %v13557_v23 = vpop.f32.mrb[29].mxu0 }
 0x238   : > { %v19817_v24 = vadd.f32 %v13501_v22, %v13500_v1  ;;  %v19819_v27 = vadd.f32 %v13557_v23, %v13556_v16 }
 0x23a   : > { %v13503_v29 = vpop.f32.mrb[14].mxu1  ;;  %v13559_v30 = vpop.f32.mrb[30].mxu0  ;;  %v1142_v31 = vmax.f32 %v19817_v24, %v19819_v27  ;;  %v2467_v27 = vld [vmem:[#allocation3 + $0xd0] sm:$0xff] }
 0x23b   : > { %v13504_v33 = vpop.f32.mrb[15].mxu1  ;;  %v13560_v35 = vpop.f32.mrb[31].mxu0 }
 0x23c   : > { %v19823_v36 = vadd.f32 %v13504_v33, %v13503_v29  ;;  %v19825_v38 = vadd.f32 %v13560_v35, %v13559_v30  ;;  %v19850_v33 = vpack.c.bf16 %v2130_v26, %v2129_v7 }
 0x23e   : > { %v13594_v40 = vpop.f32.mrb[16].mxu1  ;;  %v1143_v41 = vmax.f32 %v19823_v36, %v19825_v38  ;;  %v2469_v38 = vld [vmem:[#allocation3 + $0xe0] sm:$0xff] }
 0x23f   : > { %v13650_v42 = vpop.f32.mrb[32].mxu0  ;;  %v13595_v43 = vpop.f32.mrb[17].mxu1 }
 0x240   : > { %v13596_v44 = vadd.f32 %v13595_v43, %v13594_v40  ;;  %v13651_v46 = vpop.f32.mrb[33].mxu0 }
 0x241   : > { %v13652_v47 = vadd.f32 %v13651_v46, %v13650_v42 }
 0x242   : > { %v1282_v49 = vmax.f32 %v1136_v48, %v13596_v44  ;;  %v13597_v50 = vpop.f32.mrb[18].mxu1 }
 0x243   : > { %v13653_v51 = vpop.f32.mrb[34].mxu0  ;;  %v13598_v52 = vpop.f32.mrb[19].mxu1 }
 0x244   : > { %v19829_v53 = vmax.f32 %v1282_v49, %v13652_v47  ;;  %v13599_v54 = vadd.f32 %v13598_v52, %v13597_v50  ;;  %v13654_v56 = vpop.f32.mrb[35].mxu0 }
 0x245   : > { %v13655_v57 = vadd.f32 %v13654_v56, %v13653_v51 }
 0x246   : > { %v1283_v3 = vmax.f32 %v1137_v55, %v13599_v54  ;;  %v13600_v4 = vpop.f32.mrb[20].mxu1  ;;  %14770 = vmatprep.mubr.msk.f32.mxu1 %vm1460_vm1, %v19829_v53  ;;  %14798 = vmatprep.mubr.msk.f32.mxu0 %vm1460_vm1, %v19829_v53 }
 0x247   : > { %v13656_v48 = vpop.f32.mrb[36].mxu0  ;;  %v13601_v8 = vpop.f32.mrb[21].mxu1 }
 0x248   : > { %v19835_v9 = vmax.f32 %v1283_v3, %v13655_v57  ;;  %v13602_v11 = vadd.f32 %v13601_v8, %v13600_v4  ;;  %v13657_v12 = vpop.f32.mrb[37].mxu0 }
 0x249   : > { %v13658_v17 = vadd.f32 %v13657_v12, %v13656_v48 }
 0x24a   : > { %v1284_v55 = vmax.f32 %v1138_v63, %v13602_v11  ;;  %v13603_v1 = vpop.f32.mrb[22].mxu1  ;;  %14771 = vmatmul.mubr.msk.f32.vlgmr.msra.gmra.mrb[32].mxu1 %vm1460_vm1, %v19835_v9  ;;  %14799 = vmatmul.mubr.msk.f32.vlgmr.msra.gmra.mrb[48].mxu0 %vm1460_vm1, %v19835_v9  ;;  %v2132_v63 = vld [vmem:[#allocation3 + $0xb8] sm:$0xff] }
 0x24b   : > { %v13659_v16 = vpop.f32.mrb[38].mxu0  ;;  %v13604_v22 = vpop.f32.mrb[23].mxu1  ;;  %16821 = vmatpush3.bf16.msra.mxu0 %v19787_v37  ;;  %v19863_v49 = vpack.c.bf16 %v2132_v63, %v2131_v60  ;;  %v2805_v60 = vld [vmem:[#allocation3 + $0x100] sm:$0xff]  ;;  %v2806_v63 = vld [vmem:[#allocation3 + $0x108] sm:$0xff] }
 0x24c   : > { %v19847_v23 = vmax.f32 %v1284_v55, %v13658_v17  ;;  %v13605_v29 = vadd.f32 %v13604_v22, %v13603_v1  ;;  %v13660_v30 = vpop.f32.mrb[39].mxu0  ;;  %16823 = vmatprep.subr.bf16.mxu0 %v19837_v15 }
 0x24d   : > { %v13661_v59 = vadd.f32 %v13660_v30, %v13659_v16  ;;  %v2472_v30 = vld [vmem:[#allocation3 + $0xf8] sm:$0xff] }
 0x24e   : > { %v1285_v35 = vmax.f32 %v1139_v10, %v13605_v29  ;;  %v13606_v40 = vpop.f32.mrb[24].mxu1  ;;  %14773 = vmatprep.mubr.msk.f32.mxu1 %vm1460_vm1, %v19847_v23  ;;  %14801 = vmatprep.mubr.msk.f32.mxu0 %vm1460_vm1, %v19847_v23  ;;  %v2466_v10 = vld [vmem:[#allocation3 + $0xc8] sm:$0xff]  ;;  %v2471_v29 = vld [vmem:[#allocation3 + $0xf0] sm:$0xff] }
 0x24f   : > { %v13662_v42 = vpop.f32.mrb[40].mxu0  ;;  %v13607_v43 = vpop.f32.mrb[25].mxu1  ;;  %16825 = vmatpush3.bf16.msra.mxu0 %v19837_v15  ;;  %v19876_v62 = vpack.c.bf16 %v2466_v10, %v2465_v6  ;;  %v2811_v6 = vld [vmem:[#allocation3 + $0x130] sm:$0xff]  ;;  %v2812_v10 = vld [vmem:[#allocation3 + $0x138] sm:$0xff] }
 0x250   : > { %v19860_v44 = vmax.f32 %v1285_v35, %v13661_v59  ;;  %v13608_v46 = vadd.f32 %v13607_v43, %v13606_v40  ;;  %v13663_v47 = vpop.f32.mrb[41].mxu0  ;;  %16827 = vmatprep.subr.bf16.mxu0 %v19850_v33  ;;  %v19929_v59 = vpack.c.bf16 %v2472_v30, %v2471_v29  ;;  %v19937_v35 = vpack.c.bf16 %v2806_v63, %v2805_v60  ;;  %v2807_v40 = vld [vmem:[#allocation3 + $0x110] sm:$0xff]  ;;  %v3826_v29 = vld [vmem:[#allocation3 + $0x1c8] sm:$0xff]  ;;  %v3828_v63 = vld [vmem:[#allocation3 + $0x1d8] sm:$0xff] }
 0x251   : > { %v13664_v5 = vadd.f32 %v13663_v47, %v13662_v42  ;;  %v2808_v42 = vld [vmem:[#allocation3 + $0x118] sm:$0xff]  ;;  %v2810_v47 = vld [vmem:[#allocation3 + $0x128] sm:$0xff]  ;;  %v3827_v60 = vld [vmem:[#allocation3 + $0x1d0] sm:$0xff] }
 0x252   : > { %v1286_v50 = vmax.f32 %v1140_v0, %v13608_v46  ;;  %v13609_v51 = vpop.f32.mrb[26].mxu1  ;;  %14774 = vmatmul.mubr.msk.f32.gmra.mrb[34].mxu1 %vm1460_vm1, %v19860_v44  ;;  %14802 = vmatmul.mubr.msk.f32.gmra.mrb[50].mxu0 %vm1460_vm1, %v19860_v44  ;;  %v19945_v43 = vpack.c.bf16 %v2808_v42, %v2807_v40  ;;  %v2809_v46 = vld [vmem:[#allocation3 + $0x120] sm:$0xff]  ;;  %v20041_v40 = vpack.c.bf16 %v3828_v63, %v3827_v60 }
 0x253   : > { %v13665_v52 = vpop.f32.mrb[42].mxu0  ;;  %v13610_v54 = vpop.f32.mrb[27].mxu1  ;;  %16829 = vmatpush3.bf16.msra.mxu0 %v19850_v33  ;;  %v3829_v42 = vld [vmem:[#allocation3 + $0x1e0] sm:$0xff] }
 0x254   : > { %v19873_v56 = vmax.f32 %v1286_v50, %v13664_v5  ;;  %v13611_v57 = vadd.f32 %v13610_v54, %v13609_v51  ;;  %v13666_v61 = vpop.f32.mrb[43].mxu0  ;;  %16831 = vmatprep.subr.bf16.mxu0 %v19863_v49  ;;  %v19953_v5 = vpack.c.bf16 %v2810_v47, %v2809_v46  ;;  %v19961_v50 = vpack.c.bf16 %v2812_v10, %v2811_v6  ;;  %v3145_v51 = vld [vmem:[#allocation3 + $0x140] sm:$0xff]  ;;  %v3830_v46 = vld [vmem:[#allocation3 + $0x1e8] sm:$0xff]  ;;  %v3831_v6 = vld [vmem:[#allocation3 + $0x1f0] sm:$0xff] }
 0x255   : > { %v13667_v13 = vadd.f32 %v13666_v61, %v13665_v52  ;;  %v3146_v52 = vld [vmem:[#allocation3 + $0x148] sm:$0xff]  ;;  %v3148_v61 = vld [vmem:[#allocation3 + $0x158] sm:$0xff]  ;;  %24226 = vst [vmem:[#allocation13_spill] sm:$0xff] %v20041_v40  ;;  %v20049_v47 = vpack.c.bf16 %v3830_v46, %v3829_v42 }
 0x256   : > { %v1287_v14 = vmax.f32 %v1141_v19, %v13611_v57  ;;  %v13612_v0 = vpop.f32.mrb[28].mxu1  ;;  %14776 = vmatprep.mubr.msk.f32.mxu1 %vm1460_vm1, %v19873_v56  ;;  %14804 = vmatprep.mubr.msk.f32.mxu0 %vm1460_vm1, %v19873_v56  ;;  %v19969_v54 = vpack.c.bf16 %v3146_v52, %v3145_v51  ;;  %v3147_v57 = vld [vmem:[#allocation3 + $0x150] sm:$0xff]  ;;  %v3832_v10 = vld [vmem:[#allocation3 + $0x1f8] sm:$0xff]  ;;  %v4165_v52 = vld [vmem:[#allocation3 + $0x200] sm:$0xff] }
 0x257   : > { %v13668_v3 = vpop.f32.mrb[44].mxu0  ;;  %v13613_v4 = vpop.f32.mrb[29].mxu1  ;;  %16833 = vmatpush3.bf16.msra.mxu0 %v19863_v49  ;;  %24227 = vst [vmem:[#allocation14_spill] sm:$0xff] %v20049_v47  ;;  %v20057_v51 = vpack.c.bf16 %v3832_v10, %v3831_v6 }
 0x258   : > { %v19886_v48 = vmax.f32 %v1287_v14, %v13667_v13  ;;  %v13614_v8 = vadd.f32 %v13613_v4, %v13612_v0  ;;  %v13669_v11 = vpop.f32.mrb[45].mxu0  ;;  %16851 = vmatprep.subr.bf16.mxu0 %v19876_v62  ;;  %v19977_v13 = vpack.c.bf16 %v3148_v61, %v3147_v57  ;;  %v3149_v14 = vld [vmem:[#allocation3 + $0x160] sm:$0xff]  ;;  %v3150_v0 = vld [vmem:[#allocation3 + $0x168] sm:$0xff]  ;;  %v3151_v4 = vld [vmem:[#allocation3 + $0x170] sm:$0xff] }
 0x259   : > { %v13670_v12 = vadd.f32 %v13669_v11, %v13668_v3  ;;  %v19985_v3 = vpack.c.bf16 %v3150_v0, %v3149_v14  ;;  %24228 = vst [vmem:[#allocation15_spill] sm:$0xff] %v20057_v51  ;;  %v4166_v57 = vld [vmem:[#allocation3 + $0x208] sm:$0xff]  ;;  %v4167_v14 = vld [vmem:[#allocation3 + $0x210] sm:$0xff]  ;;  %v4168_v0 = vld [vmem:[#allocation3 + $0x218] sm:$0xff] }
 0x25a   : > { %v1288_v39 = vmax.f32 %v1142_v31, %v13614_v8  ;;  %v13615_v58 = vpop.f32.mrb[30].mxu1  ;;  %14777 = vmatmul.mubr.msk.f32.gmra.mrb[36].mxu1 %vm1460_vm1, %v19886_v48  ;;  %14805 = vmatmul.mubr.msk.f32.gmra.mrb[52].mxu0 %vm1460_vm1, %v19886_v48  ;;  %v2468_v31 = vld [vmem:[#allocation3 + $0xd8] sm:$0xff]  ;;  %v20065_v61 = vpack.c.bf16 %v4166_v57, %v4165_v52 }
 0x25b   : > { %v13671_v19 = vpop.f32.mrb[46].mxu0  ;;  %v13616_v17 = vpop.f32.mrb[31].mxu1  ;;  %v19913_v36 = vpack.c.bf16 %v2468_v31, %v2467_v27  ;;  %v3152_v8 = vld [vmem:[#allocation3 + $0x178] sm:$0xff]  ;;  %v3491_v27 = vld [vmem:[#allocation3 + $0x1b0] sm:$0xff] }
 0x25c   : > { %v19896_v7 = vmax.f32 %v1288_v39, %v13670_v12  ;;  %v13617_v26 = vadd.f32 %v13616_v17, %v13615_v58  ;;  %v13672_v55 = vpop.f32.mrb[47].mxu0  ;;  %v19993_v11 = vpack.c.bf16 %v3152_v8, %v3151_v4  ;;  %v3485_v12 = vld [vmem:[#allocation3 + $0x180] sm:$0xff]  ;;  %v3486_v39 = vld [vmem:[#allocation3 + $0x188] sm:$0xff]  ;;  %v3488_v17 = vld [vmem:[#allocation3 + $0x198] sm:$0xff]  ;;  %24229 = vst [vmem:[#allocation16_spill] sm:$0xff] %v20065_v61  ;;  %v20073_v4 = vpack.c.bf16 %v4168_v0, %v4167_v14 }
 0x25d   : > { %v13673_v1 = vadd.f32 %v13672_v55, %v13671_v19  ;;  %v20001_v58 = vpack.c.bf16 %v3486_v39, %v3485_v12  ;;  %v3487_v19 = vld [vmem:[#allocation3 + $0x190] sm:$0xff]  ;;  %v3489_v55 = vld [vmem:[#allocation3 + $0x1a0] sm:$0xff]  ;;  %v3492_v31 = vld [vmem:[#allocation3 + $0x1b8] sm:$0xff] }
 0x25e   : > { %v1289_v16 = vmax.f32 %v1143_v41, %v13617_v26  ;;  %14779 = vmatprep.mubr.msk.f32.mxu1 %vm1460_vm1, %v19896_v7  ;;  %14807 = vmatprep.mubr.msk.f32.mxu0 %vm1460_vm1, %v19896_v7  ;;  %v2470_v41 = vld [vmem:[#allocation3 + $0xe8] sm:$0xff]  ;;  %v20009_v26 = vpack.c.bf16 %v3488_v17, %v3487_v19  ;;  %24230 = vst [vmem:[#allocation17_spill] sm:$0xff] %v20073_v4  ;;  %v4169_v8 = vld [vmem:[#allocation3 + $0x220] sm:$0xff]  ;;  %v4171_v19 = vld [vmem:[#allocation3 + $0x230] sm:$0xff] }
 0x25f   : > { %v19921_v22 = vpack.c.bf16 %v2470_v41, %v2469_v38  ;;  %v20025_v38 = vpack.c.bf16 %v3492_v31, %v3491_v27  ;;  %v3825_v41 = vld [vmem:[#allocation3 + $0x1c0] sm:$0xff]  ;;  %v4170_v12 = vld [vmem:[#allocation3 + $0x228] sm:$0xff]  ;;  %v4172_v17 = vld [vmem:[#allocation3 + $0x238] sm:$0xff] }
 0x260   : > { %v19905_v24 = vmax.f32 %v1289_v16, %v13673_v1  ;;  %v3490_v1 = vld [vmem:[#allocation3 + $0x1a8] sm:$0xff]  ;;  %v20033_v30 = vpack.c.bf16 %v3826_v29, %v3825_v41  ;;  %v20081_v39 = vpack.c.bf16 %v4170_v12, %v4169_v8 }
 0x261   : > { %v20017_v16 = vpack.c.bf16 %v3490_v1, %v3489_v55  ;;  %24224 = vst [vmem:[#allocation11_spill] sm:$0xff] %v20025_v38  ;;  %v12149_v55 = vld [vmem:[%s24232_s3 + $0x80] sm:$0xff]  ;;  %v20092_v1 = vpack.c.bf16 %v4172_v17, %v4171_v19 }
 0x262   : > { %14780 = vmatmul.mubr.msk.f32.gmra.mrb[38].mxu1 %vm1460_vm1, %v19905_v24  ;;  %14808 = vmatmul.mubr.msk.f32.gmra.mrb[54].mxu0 %vm1460_vm1, %v19905_v24  ;;  %24225 = vst [vmem:[#allocation12_spill] sm:$0xff] %v20033_v30  ;;  %24231 = vst [vmem:[#allocation18_spill] sm:$0xff] %v20081_v39 }
 0x263   : > { %14906 = vmatprep.mubr.msk.f32.mxu0 %vm1460_vm1, %v19829_v53  ;;  %24233 = vst [vmem:[#allocation19_spill] sm:$0xff] %v20092_v1  ;;  %14826 = vmatprep.mubr.msk.f32.mxu1 %vm1460_vm1, %v12149_v55  ;;  %v12150_v55 = vld [vmem:[%s24232_s3 + $0x88] sm:$0xff] }
 0x266   : > { %14907 = vmatmul.mubr.msk.f32.vlgmr.msra.gmra.mrb[56].mxu0 %vm1460_vm1, %v19835_v9 }
 0x267   : > { %14909 = vmatprep.mubr.msk.f32.mxu0 %vm1460_vm1, %v19847_v23  ;;  %16853 = vmatpush3.bf16.msra.mxu0 %v19876_v62 }
 0x268   : > { %16855 = vmatprep.subr.bf16.mxu0 %v19913_v36 }
 0x26a   : > { %14910 = vmatmul.mubr.msk.f32.gmra.mrb[58].mxu0 %vm1460_vm1, %v19860_v44 }
 0x26b   : > { %14912 = vmatprep.mubr.msk.f32.mxu0 %vm1460_vm1, %v19873_v56  ;;  %16857 = vmatpush3.bf16.msra.mxu0 %v19913_v36 }
 0x26c   : > { %16859 = vmatprep.subr.bf16.mxu0 %v19921_v22 }
 0x26e   : > { %14913 = vmatmul.mubr.msk.f32.gmra.mrb[60].mxu0 %vm1460_vm1, %v19886_v48 }
 0x26f   : > { %14915 = vmatprep.mubr.msk.f32.mxu0 %vm1460_vm1, %v19896_v7  ;;  %16861 = vmatpush3.bf16.msra.mxu0 %v19921_v22 }
 0x270   : > { %16863 = vmatprep.subr.bf16.mxu0 %v19929_v59 }
 0x272   : > { %14916 = vmatmul.mubr.msk.f32.gmra.mrb[62].mxu0 %vm1460_vm1, %v19905_v24 }
 0x273   : > { %16865 = vmatpush3.bf16.msra.mxu0 %v19929_v59  ;;  %14974 = vmatprep.mubr.msk.f32.mxu0 %vm1460_vm1, %v19829_v53 }
 0x274   : > { %16883 = vmatprep.subr.bf16.mxu0 %v19937_v35 }
 0x276   : > { %14975 = vmatmul.mubr.msk.f32.vlgmr.msra.gmra.mrb[64].mxu0 %vm1460_vm1, %v19835_v9 }
 0x277   : > { %14977 = vmatprep.mubr.msk.f32.mxu0 %vm1460_vm1, %v19847_v23  ;;  %16885 = vmatpush3.bf16.msra.mxu0 %v19937_v35 }
 0x278   : > { %16887 = vmatprep.subr.bf16.mxu0 %v19945_v43 }
 0x27a   : > { %14978 = vmatmul.mubr.msk.f32.gmra.mrb[66].mxu0 %vm1460_vm1, %v19860_v44 }
 0x27b   : > { %14980 = vmatprep.mubr.msk.f32.mxu0 %vm1460_vm1, %v19873_v56  ;;  %16889 = vmatpush3.bf16.msra.mxu0 %v19945_v43 }
 0x27c   : > { %16891 = vmatprep.subr.bf16.mxu0 %v19953_v5 }
 0x27e   : > { %14981 = vmatmul.mubr.msk.f32.gmra.mrb[68].mxu0 %vm1460_vm1, %v19886_v48 }
 0x27f   : > { %14983 = vmatprep.mubr.msk.f32.mxu0 %vm1460_vm1, %v19896_v7  ;;  %16893 = vmatpush3.bf16.msra.mxu0 %v19953_v5 }
 0x280   : > { %16895 = vmatprep.subr.bf16.mxu0 %v19961_v50 }
 0x282   : > { %14984 = vmatmul.mubr.msk.f32.gmra.mrb[70].mxu0 %vm1460_vm1, %v19905_v24 }
 0x283   : > { %16897 = vmatpush3.bf16.msra.mxu0 %v19961_v50  ;;  %15042 = vmatprep.mubr.msk.f32.mxu0 %vm1460_vm1, %v19829_v53 }
 0x284   : > { %16915 = vmatprep.subr.bf16.mxu0 %v19969_v54 }
 0x286   : > { %15043 = vmatmul.mubr.msk.f32.vlgmr.msra.gmra.mrb[72].mxu0 %vm1460_vm1, %v19835_v9 }
 0x287   : > { %15045 = vmatprep.mubr.msk.f32.mxu0 %vm1460_vm1, %v19847_v23  ;;  %16917 = vmatpush3.bf16.msra.mxu0 %v19969_v54 }
 0x288   : > { %16919 = vmatprep.subr.bf16.mxu0 %v19977_v13 }
 0x28a   : > { %15046 = vmatmul.mubr.msk.f32.gmra.mrb[74].mxu0 %vm1460_vm1, %v19860_v44 }
 0x28b   : > { %15048 = vmatprep.mubr.msk.f32.mxu0 %vm1460_vm1, %v19873_v56  ;;  %16921 = vmatpush3.bf16.msra.mxu0 %v19977_v13 }
 0x28c   : > { %16923 = vmatprep.subr.bf16.mxu0 %v19985_v3 }
 0x28e   : > { %15049 = vmatmul.mubr.msk.f32.gmra.mrb[76].mxu0 %vm1460_vm1, %v19886_v48 }
 0x28f   : > { %15051 = vmatprep.mubr.msk.f32.mxu0 %vm1460_vm1, %v19896_v7  ;;  %16925 = vmatpush3.bf16.msra.mxu0 %v19985_v3 }
 0x290   : > { %16927 = vmatprep.subr.bf16.mxu0 %v19993_v11 }
 0x292   : > { %15052 = vmatmul.mubr.msk.f32.gmra.mrb[78].mxu0 %vm1460_vm1, %v19905_v24 }
 0x293   : > { %16929 = vmatpush3.bf16.msra.mxu0 %v19993_v11  ;;  %15110 = vmatprep.mubr.msk.f32.mxu0 %vm1460_vm1, %v19829_v53 }
 0x294   : > { %16947 = vmatprep.subr.bf16.mxu0 %v20001_v58 }
 0x296   : > { %15111 = vmatmul.mubr.msk.f32.vlgmr.msra.gmra.mrb[80].mxu0 %vm1460_vm1, %v19835_v9 }
 0x297   : > { %15113 = vmatprep.mubr.msk.f32.mxu0 %vm1460_vm1, %v19847_v23  ;;  %16949 = vmatpush3.bf16.msra.mxu0 %v20001_v58 }
 0x298   : > { %16951 = vmatprep.subr.bf16.mxu0 %v20009_v26 }
 0x29a   : > { %15114 = vmatmul.mubr.msk.f32.gmra.mrb[82].mxu0 %vm1460_vm1, %v19860_v44 }
 0x29b   : > { %15116 = vmatprep.mubr.msk.f32.mxu0 %vm1460_vm1, %v19873_v56  ;;  %16953 = vmatpush3.bf16.msra.mxu0 %v20009_v26 }
 0x29c   : > { %16955 = vmatprep.subr.bf16.mxu0 %v20017_v16 }
 0x29e   : > { %15117 = vmatmul.mubr.msk.f32.gmra.mrb[84].mxu0 %vm1460_vm1, %v19886_v48 }
 0x29f   : > { %15119 = vmatprep.mubr.msk.f32.mxu0 %vm1460_vm1, %v19896_v7  ;;  %16957 = vmatpush3.bf16.msra.mxu0 %v20017_v16 }
 0x2a0   : > { %16959 = vmatprep.subr.bf16.mxu0 %v20025_v38 }
 0x2a2   : > { %15120 = vmatmul.mubr.msk.f32.gmra.mrb[86].mxu0 %vm1460_vm1, %v19905_v24 }
 0x2a3   : > { %16961 = vmatpush3.bf16.msra.mxu0 %v20025_v38  ;;  %15178 = vmatprep.mubr.msk.f32.mxu0 %vm1460_vm1, %v19829_v53 }
 0x2a4   : > { %16979 = vmatprep.subr.bf16.mxu0 %v20033_v30 }
 0x2a6   : > { %15179 = vmatmul.mubr.msk.f32.vlgmr.msra.gmra.mrb[88].mxu0 %vm1460_vm1, %v19835_v9 }
 0x2a7   : > { %15181 = vmatprep.mubr.msk.f32.mxu0 %vm1460_vm1, %v19847_v23  ;;  %16981 = vmatpush3.bf16.msra.mxu0 %v20033_v30 }
 0x2a8   : > { %16983 = vmatprep.subr.bf16.mxu0 %v20041_v40 }
 0x2aa   : > { %15182 = vmatmul.mubr.msk.f32.gmra.mrb[90].mxu0 %vm1460_vm1, %v19860_v44 }
 0x2ab   : > { %15184 = vmatprep.mubr.msk.f32.mxu0 %vm1460_vm1, %v19873_v56  ;;  %16985 = vmatpush3.bf16.msra.mxu0 %v20041_v40 }
 0x2ac   : > { %16987 = vmatprep.subr.bf16.mxu0 %v20049_v47 }
 0x2ae   : > { %15185 = vmatmul.mubr.msk.f32.gmra.mrb[92].mxu0 %vm1460_vm1, %v19886_v48 }
 0x2af   : > { %15187 = vmatprep.mubr.msk.f32.mxu0 %vm1460_vm1, %v19896_v7  ;;  %16989 = vmatpush3.bf16.msra.mxu0 %v20049_v47 }
 0x2b0   : > { %16991 = vmatprep.subr.bf16.mxu0 %v20057_v51 }
 0x2b2   : > { %15188 = vmatmul.mubr.msk.f32.gmra.mrb[94].mxu0 %vm1460_vm1, %v19905_v24 }
 0x2b3   : > { %16993 = vmatpush3.bf16.msra.mxu0 %v20057_v51  ;;  %15246 = vmatprep.mubr.msk.f32.mxu0 %vm1460_vm1, %v19829_v53 }
 0x2b4   : > { %17011 = vmatprep.subr.bf16.mxu0 %v20065_v61 }
 0x2b6   : > { %15247 = vmatmul.mubr.msk.f32.vlgmr.msra.gmra.mrb[96].mxu0 %vm1460_vm1, %v19835_v9 }
 0x2b7   : > { %15249 = vmatprep.mubr.msk.f32.mxu0 %vm1460_vm1, %v19847_v23  ;;  %17013 = vmatpush3.bf16.msra.mxu0 %v20065_v61 }
 0x2b8   : > { %17015 = vmatprep.subr.bf16.mxu0 %v20073_v4 }
 0x2ba   : > { %15250 = vmatmul.mubr.msk.f32.gmra.mrb[98].mxu0 %vm1460_vm1, %v19860_v44 }
 0x2bb   : > { %15252 = vmatprep.mubr.msk.f32.mxu0 %vm1460_vm1, %v19873_v56  ;;  %17017 = vmatpush3.bf16.msra.mxu0 %v20073_v4 }
 0x2bc   : > { %17019 = vmatprep.subr.bf16.mxu0 %v20081_v39 }
 0x2be   : > { %15253 = vmatmul.mubr.msk.f32.gmra.mrb[100].mxu0 %vm1460_vm1, %v19886_v48 }
 0x2bf   : > { %15255 = vmatprep.mubr.msk.f32.mxu0 %vm1460_vm1, %v19896_v7  ;;  %17021 = vmatpush3.bf16.msra.mxu0 %v20081_v39 }
 0x2c0   : > { %17023 = vmatprep.subr.bf16.mxu0 %v20092_v1 }
 0x2c2   : > { %15256 = vmatmul.mubr.msk.f32.gmra.mrb[102].mxu0 %vm1460_vm1, %v19905_v24 }
 0x2c3   : > { %17025 = vmatpush3.bf16.msra.mxu0 %v20092_v1  ;;  %15314 = vmatprep.mubr.msk.f32.mxu0 %vm1460_vm1, %v19829_v53 }
 0x2c6   : > { %15315 = vmatmul.mubr.msk.f32.vlgmr.msra.gmra.mrb[104].mxu0 %vm1460_vm1, %v19835_v9 }
 0x2c7   : > { %15317 = vmatprep.mubr.msk.f32.mxu0 %vm1460_vm1, %v19847_v23 }
 0x2ca   : > { %15318 = vmatmul.mubr.msk.f32.gmra.mrb[106].mxu0 %vm1460_vm1, %v19860_v44 }
 0x2cb   : > { %15320 = vmatprep.mubr.msk.f32.mxu0 %vm1460_vm1, %v19873_v56 }
 0x2ce   : > { %15321 = vmatmul.mubr.msk.f32.gmra.mrb[108].mxu0 %vm1460_vm1, %v19886_v48 }
 0x2cf   : > { %15323 = vmatprep.mubr.msk.f32.mxu0 %vm1460_vm1, %v19896_v7 }
 0x2d2   : > { %15324 = vmatmul.mubr.msk.f32.gmra.mrb[110].mxu0 %vm1460_vm1, %v19905_v24 }
 0x31d   : > { %v14772_v53 = vpop.f32.mrb[32].mxu1  ;;  %v14800_v9 = vpop.f32.mrb[48].mxu0 }
 0x31e   : > { %v1551_v27 = vpop.f32.mrb[33].mxu1  ;;  %v1682_v31 = vpop.f32.mrb[49].mxu0 }
 0x31f   : > { %v16802_v23 = vpack.c.bf16 %v14772_v53, %v1551_v27  ;;  %v16786_v41 = vpack.c.bf16 %v14800_v9, %v1682_v31  ;;  %v12151_v53 = vld [vmem:[%s24232_s3 + $0x90] sm:$0xff] }
 0x321   : > { %16787 = vmatprep.subr.bf16.mxu1 %v16786_v41 }
 0x322   : > { %16789 = vmatpush3.bf16.msra.mxu1 %v16786_v41  ;;  %v12152_v41 = vld [vmem:[%s24232_s3 + $0x98] sm:$0xff] }
 0x325   : > { %v14775_v44 = vpop.f32.mrb[34].mxu1  ;;  %v14803_v29 = vpop.f32.mrb[50].mxu0 }
 0x326   : > { %v1561_v56 = vpop.f32.mrb[35].mxu1  ;;  %v1692_v60 = vpop.f32.mrb[51].mxu0 }
 0x327   : > { %v16806_v63 = vpack.c.bf16 %v14775_v44, %v1561_v56  ;;  %v16790_v48 = vpack.c.bf16 %v14803_v29, %v1692_v60  ;;  %v12153_v44 = vld [vmem:[%s24232_s3 + $0xa0] sm:$0xff] }
 0x329   : > { %16791 = vmatprep.subr.bf16.mxu1 %v16790_v48 }
 0x32a   : > { %16793 = vmatpush3.bf16.msra.mxu1 %v16790_v48  ;;  %v12155_v48 = vld [vmem:[%s24232_s3 + $0xb0] sm:$0xff] }
 0x32d   : > { %v14778_v7 = vpop.f32.mrb[36].mxu1  ;;  %v14806_v42 = vpop.f32.mrb[52].mxu0 }
 0x32e   : > { %v1571_v46 = vpop.f32.mrb[37].mxu1  ;;  %v1702_v24 = vpop.f32.mrb[53].mxu0 }
 0x32f   : > { %v16810_v6 = vpack.c.bf16 %v14778_v7, %v1571_v46  ;;  %v16794_v10 = vpack.c.bf16 %v14806_v42, %v1702_v24  ;;  %v12157_v24 = vld [vmem:[%s24232_s3 + $0xc0] sm:$0xff] }
 0x331   : > { %16795 = vmatprep.subr.bf16.mxu1 %v16794_v10 }
 0x332   : > { %16797 = vmatpush3.bf16.msra.mxu1 %v16794_v10 }
 0x335   : > { %v14781_v52 = vpop.f32.mrb[38].mxu1  ;;  %v14809_v57 = vpop.f32.mrb[54].mxu0 }
 0x336   : > { %v1581_v14 = vpop.f32.mrb[39].mxu1  ;;  %v1712_v0 = vpop.f32.mrb[55].mxu0 }
 0x337   : > { %v16814_v8 = vpack.c.bf16 %v14781_v52, %v1581_v14  ;;  %v16798_v12 = vpack.c.bf16 %v14809_v57, %v1712_v0  ;;  %v12159_v14 = vld [vmem:[%s24232_s3 + $0xd0] sm:$0xff] }
 0x339   : > { %16799 = vmatprep.subr.bf16.mxu1 %v16798_v12  ;;  %v14908_v19 = vpop.f32.mrb[56].mxu0 }
 0x33a   : > { %16801 = vmatpush3.bf16.msra.mxu1 %v16798_v12  ;;  %v2199_v17 = vpop.f32.mrb[57].mxu0 }
 0x33b   : > { %16803 = vmatprep.subr.bf16.mxu1 %v16802_v23  ;;  %v20126_v9 = vpack.c.bf16 %v14908_v19, %v2199_v17  ;;  %v12161_v17 = vld [vmem:[%s24232_s3 + $0xe0] sm:$0xff] }
 0x33d   : > { %14827 = vmatmul.mubr.msk.f32.vlgmr.msra.gmra.mrb[40].mxu1 %vm1460_vm1, %v12150_v55  ;;  %v14911_v27 = vpop.f32.mrb[58].mxu0 }
 0x33e   : > { %16805 = vmatpush3.bf16.msra.mxu1 %v16802_v23  ;;  %v2209_v31 = vpop.f32.mrb[59].mxu0  ;;  %14829 = vmatprep.mubr.msk.f32.mxu1 %vm1460_vm1, %v12151_v53  ;;  %v12154_v23 = vld [vmem:[%s24232_s3 + $0xa8] sm:$0xff] }
 0x33f   : > { %16807 = vmatprep.subr.bf16.mxu1 %v16806_v63  ;;  %v20136_v29 = vpack.c.bf16 %v14911_v27, %v2209_v31  ;;  %v12162_v31 = vld [vmem:[%s24232_s3 + $0xe8] sm:$0xff] }
 0x341   : > { %14830 = vmatmul.mubr.msk.f32.gmra.mrb[42].mxu1 %vm1460_vm1, %v12152_v41  ;;  %v14914_v56 = vpop.f32.mrb[60].mxu0  ;;  %v12163_v41 = vld [vmem:[%s24232_s3 + $0xf0] sm:$0xff] }
 0x342   : > { %16809 = vmatpush3.bf16.msra.mxu1 %v16806_v63  ;;  %v2219_v60 = vpop.f32.mrb[61].mxu0  ;;  %14832 = vmatprep.mubr.msk.f32.mxu1 %vm1460_vm1, %v12153_v44  ;;  %v12156_v63 = vld [vmem:[%s24232_s3 + $0xb8] sm:$0xff] }
 0x343   : > { %16811 = vmatprep.subr.bf16.mxu1 %v16810_v6  ;;  %v20146_v7 = vpack.c.bf16 %v14914_v56, %v2219_v60 }
 0x345   : > { %14833 = vmatmul.mubr.msk.f32.gmra.mrb[44].mxu1 %vm1460_vm1, %v12154_v23  ;;  %v14917_v42 = vpop.f32.mrb[62].mxu0  ;;  %v12164_v23 = vld [vmem:[%s24232_s3 + $0xf8] sm:$0xff] }
 0x346   : > { %16813 = vmatpush3.bf16.msra.mxu1 %v16810_v6  ;;  %v2229_v46 = vpop.f32.mrb[63].mxu0  ;;  %14835 = vmatprep.mubr.msk.f32.mxu1 %vm1460_vm1, %v12155_v48  ;;  %v12158_v6 = vld [vmem:[%s24232_s3 + $0xc8] sm:$0xff]  ;;  %v1436_v48 = vld [vmem:[%s24232_s3] sm:$0xff] }
 0x347   : > { %16815 = vmatprep.subr.bf16.mxu1 %v16814_v8  ;;  %v20156_v10 = vpack.c.bf16 %v14917_v42, %v2229_v46 }
 0x349   : > { %14836 = vmatmul.mubr.msk.f32.gmra.mrb[46].mxu1 %vm1460_vm1, %v12156_v63  ;;  %v14976_v52 = vpop.f32.mrb[64].mxu0 }
 0x34a   : > { %16817 = vmatpush3.bf16.msra.mxu1 %v16814_v8  ;;  %v2539_v57 = vpop.f32.mrb[65].mxu0  ;;  %14838 = vmatprep.mubr.msk.f32.mxu1 %vm1460_vm1, %v12157_v24  ;;  %v12160_v8 = vld [vmem:[%s24232_s3 + $0xd8] sm:$0xff]  ;;  %v1437_v24 = vld [vmem:[%s24232_s3 + $0x8] sm:$0xff] }
 0x34b   : > { %16835 = vmatprep.subr.bf16.mxu1 %v20126_v9  ;;  %v20167_v0 = vpack.c.bf16 %v14976_v52, %v2539_v57  ;;  %v1438_v57 = vld [vmem:[%s24232_s3 + $0x10] sm:$0xff] }
 0x34d   : > { %14839 = vmatmul.mubr.msk.f32.gmra.mrb[48].mxu1 %vm1460_vm1, %v12158_v6  ;;  %v14979_v12 = vpop.f32.mrb[66].mxu0 }
 0x34e   : > { %v2549_v19 = vpop.f32.mrb[67].mxu0  ;;  %14841 = vmatprep.mubr.msk.f32.mxu1 %vm1460_vm1, %v12159_v14 }
 0x34f   : > { %v20177_v55 = vpack.c.bf16 %v14979_v12, %v2549_v19  ;;  %v1439_v12 = vld [vmem:[%s24232_s3 + $0x18] sm:$0xff] }
 0x351   : > { %14842 = vmatmul.mubr.msk.f32.gmra.mrb[50].mxu1 %vm1460_vm1, %v12160_v8  ;;  %v14982_v53 = vpop.f32.mrb[68].mxu0  ;;  %v1440_v8 = vld [vmem:[%s24232_s3 + $0x20] sm:$0xff] }
 0x352   : > { %v2559_v27 = vpop.f32.mrb[69].mxu0  ;;  %14844 = vmatprep.mubr.msk.f32.mxu1 %vm1460_vm1, %v12161_v17 }
 0x353   : > { %v20187_v44 = vpack.c.bf16 %v14982_v53, %v2559_v27  ;;  %v1441_v53 = vld [vmem:[%s24232_s3 + $0x28] sm:$0xff] }
 0x355   : > { %14845 = vmatmul.mubr.msk.f32.gmra.mrb[52].mxu1 %vm1460_vm1, %v12162_v31  ;;  %v14985_v56 = vpop.f32.mrb[70].mxu0  ;;  %v1442_v31 = vld [vmem:[%s24232_s3 + $0x30] sm:$0xff] }
 0x356   : > { %v2569_v60 = vpop.f32.mrb[71].mxu0  ;;  %14847 = vmatprep.mubr.msk.f32.mxu1 %vm1460_vm1, %v12163_v41 }
 0x357   : > { %v20197_v42 = vpack.c.bf16 %v14985_v56, %v2569_v60  ;;  %v1443_v56 = vld [vmem:[%s24232_s3 + $0x38] sm:$0xff] }
 0x359   : > { %14848 = vmatmul.mubr.msk.f32.gmra.mrb[54].mxu1 %vm1460_vm1, %v12164_v23  ;;  %v15044_v46 = vpop.f32.mrb[72].mxu0  ;;  %v1444_v23 = vld [vmem:[%s24232_s3 + $0x40] sm:$0xff] }
 0x35a   : > { %v2879_v63 = vpop.f32.mrb[73].mxu0  ;;  %14866 = vmatprep.mubr.msk.f32.mxu1 %vm1460_vm1, %v1436_v48 }
 0x35b   : > { %v20204_v52 = vpack.c.bf16 %v15044_v46, %v2879_v63  ;;  %v1445_v46 = vld [vmem:[%s24232_s3 + $0x48] sm:$0xff] }
 0x35d   : > { %14867 = vmatmul.mubr.msk.f32.vlgmr.msra.gmra.mrb[40].mxu1 %vm1460_vm1, %v1437_v24  ;;  %v15047_v6 = vpop.f32.mrb[74].mxu0  ;;  %v1446_v24 = vld [vmem:[%s24232_s3 + $0x50] sm:$0xff] }
 0x35e   : > { %16837 = vmatpush3.bf16.msra.mxu1 %v20126_v9  ;;  %v2889_v14 = vpop.f32.mrb[75].mxu0  ;;  %14869 = vmatprep.mubr.msk.f32.mxu1 %vm1460_vm1, %v1438_v57 }
 0x35f   : > { %16839 = vmatprep.subr.bf16.mxu1 %v20136_v29  ;;  %v20216_v19 = vpack.c.bf16 %v15047_v6, %v2889_v14 }
 0x361   : > { %14870 = vmatmul.mubr.msk.f32.gmra.mrb[42].mxu1 %vm1460_vm1, %v1439_v12  ;;  %v15050_v17 = vpop.f32.mrb[76].mxu0  ;;  %v1448_v12 = vld [vmem:[%s24232_s3 + $0x60] sm:$0xff] }
 0x362   : > { %16841 = vmatpush3.bf16.msra.mxu1 %v20136_v29  ;;  %v2899_v9 = vpop.f32.mrb[77].mxu0  ;;  %14872 = vmatprep.mubr.msk.f32.mxu1 %vm1460_vm1, %v1440_v8 }
 0x363   : > { %16843 = vmatprep.subr.bf16.mxu1 %v20146_v7  ;;  %v20228_v27 = vpack.c.bf16 %v15050_v17, %v2899_v9  ;;  %v1449_v9 = vld [vmem:[%s24232_s3 + $0x68] sm:$0xff] }
 0x365   : > { %14873 = vmatmul.mubr.msk.f32.gmra.mrb[44].mxu1 %vm1460_vm1, %v1441_v53  ;;  %v15053_v41 = vpop.f32.mrb[78].mxu0 }
 0x366   : > { %16845 = vmatpush3.bf16.msra.mxu1 %v20146_v7  ;;  %v2909_v29 = vpop.f32.mrb[79].mxu0  ;;  %14875 = vmatprep.mubr.msk.f32.mxu1 %vm1460_vm1, %v1442_v31  ;;  %v1450_v31 = vld [vmem:[%s24232_s3 + $0x70] sm:$0xff] }
 0x367   : > { %16847 = vmatprep.subr.bf16.mxu1 %v20156_v10  ;;  %v20240_v60 = vpack.c.bf16 %v15053_v41, %v2909_v29 }
 0x369   : > { %14876 = vmatmul.mubr.msk.f32.gmra.mrb[46].mxu1 %vm1460_vm1, %v1443_v56  ;;  %v15112_v48 = vpop.f32.mrb[80].mxu0  ;;  %v1451_v56 = vld [vmem:[%s24232_s3 + $0x78] sm:$0xff] }
 0x36a   : > { %16849 = vmatpush3.bf16.msra.mxu1 %v20156_v10  ;;  %v3219_v7 = vpop.f32.mrb[81].mxu0  ;;  %14878 = vmatprep.mubr.msk.f32.mxu1 %vm1460_vm1, %v1444_v23  ;;  %v1447_v10 = vld [vmem:[%s24232_s3 + $0x58] sm:$0xff] }
 0x36b   : > { %16867 = vmatprep.subr.bf16.mxu1 %v20167_v0  ;;  %v20252_v63 = vpack.c.bf16 %v15112_v48, %v3219_v7  ;;  %v12205_v48 = vld [vmem:[%s24232_s3 + $0x100] sm:$0xff] }
 0x36d   : > { %14879 = vmatmul.mubr.msk.f32.gmra.mrb[48].mxu1 %vm1460_vm1, %v1445_v46  ;;  %v15115_v57 = vpop.f32.mrb[82].mxu0 }
 0x36e   : > { %v3229_v6 = vpop.f32.mrb[83].mxu0  ;;  %14881 = vmatprep.mubr.msk.f32.mxu1 %vm1460_vm1, %v1446_v24  ;;  %v12206_v24 = vld [vmem:[%s24232_s3 + $0x108] sm:$0xff] }
 0x36f   : > { %v20262_v14 = vpack.c.bf16 %v15115_v57, %v3229_v6  ;;  %v12207_v6 = vld [vmem:[%s24232_s3 + $0x110] sm:$0xff] }
 0x371   : > { %14882 = vmatmul.mubr.msk.f32.gmra.mrb[50].mxu1 %vm1460_vm1, %v1447_v10  ;;  %v15118_v8 = vpop.f32.mrb[84].mxu0 }
 0x372   : > { %v3239_v17 = vpop.f32.mrb[85].mxu0  ;;  %14884 = vmatprep.mubr.msk.f32.mxu1 %vm1460_vm1, %v1448_v12 }
 0x373   : > { %v20272_v53 = vpack.c.bf16 %v15118_v8, %v3239_v17  ;;  %v12208_v8 = vld [vmem:[%s24232_s3 + $0x118] sm:$0xff] }
 0x375   : > { %14885 = vmatmul.mubr.msk.f32.gmra.mrb[52].mxu1 %vm1460_vm1, %v1449_v9  ;;  %v15121_v41 = vpop.f32.mrb[86].mxu0  ;;  %v12209_v9 = vld [vmem:[%s24232_s3 + $0x120] sm:$0xff] }
 0x376   : > { %v3249_v29 = vpop.f32.mrb[87].mxu0  ;;  %14887 = vmatprep.mubr.msk.f32.mxu1 %vm1460_vm1, %v1450_v31 }
 0x377   : > { %v20282_v23 = vpack.c.bf16 %v15121_v41, %v3249_v29  ;;  %v12210_v41 = vld [vmem:[%s24232_s3 + $0x128] sm:$0xff] }
 0x379   : > { %14888 = vmatmul.mubr.msk.f32.gmra.mrb[54].mxu1 %vm1460_vm1, %v1451_v56  ;;  %v15180_v7 = vpop.f32.mrb[88].mxu0  ;;  %v12211_v56 = vld [vmem:[%s24232_s3 + $0x130] sm:$0xff] }
 0x37a   : > { %v3559_v46 = vpop.f32.mrb[89].mxu0  ;;  %14934 = vmatprep.mubr.msk.f32.mxu1 %vm1460_vm1, %v12205_v48 }
 0x37b   : > { %v20292_v57 = vpack.c.bf16 %v15180_v7, %v3559_v46  ;;  %v12212_v7 = vld [vmem:[%s24232_s3 + $0x138] sm:$0xff] }
 0x37d   : > { %14935 = vmatmul.mubr.msk.f32.vlgmr.msra.gmra.mrb[40].mxu1 %vm1460_vm1, %v12206_v24  ;;  %v15183_v10 = vpop.f32.mrb[90].mxu0  ;;  %v12213_v24 = vld [vmem:[%s24232_s3 + $0x140] sm:$0xff] }
 0x37e   : > { %16869 = vmatpush3.bf16.msra.mxu1 %v20167_v0  ;;  %v3569_v12 = vpop.f32.mrb[91].mxu0  ;;  %14937 = vmatprep.mubr.msk.f32.mxu1 %vm1460_vm1, %v12207_v6 }
 0x37f   : > { %16871 = vmatprep.subr.bf16.mxu1 %v20177_v55  ;;  %v20304_v17 = vpack.c.bf16 %v15183_v10, %v3569_v12  ;;  %v12214_v10 = vld [vmem:[%s24232_s3 + $0x148] sm:$0xff] }
 0x381   : > { %14938 = vmatmul.mubr.msk.f32.gmra.mrb[42].mxu1 %vm1460_vm1, %v12208_v8  ;;  %v15186_v31 = vpop.f32.mrb[92].mxu0  ;;  %v12215_v8 = vld [vmem:[%s24232_s3 + $0x150] sm:$0xff] }
 0x382   : > { %16873 = vmatpush3.bf16.msra.mxu1 %v20177_v55  ;;  %v3579_v0 = vpop.f32.mrb[93].mxu0  ;;  %14940 = vmatprep.mubr.msk.f32.mxu1 %vm1460_vm1, %v12209_v9 }
 0x383   : > { %16875 = vmatprep.subr.bf16.mxu1 %v20187_v44  ;;  %v20316_v29 = vpack.c.bf16 %v15186_v31, %v3579_v0 }
 0x385   : > { %14941 = vmatmul.mubr.msk.f32.gmra.mrb[44].mxu1 %vm1460_vm1, %v12210_v41  ;;  %v15189_v48 = vpop.f32.mrb[94].mxu0  ;;  %v12217_v41 = vld [vmem:[%s24232_s3 + $0x160] sm:$0xff] }
 0x386   : > { %16877 = vmatpush3.bf16.msra.mxu1 %v20187_v44  ;;  %v3589_v55 = vpop.f32.mrb[95].mxu0  ;;  %14943 = vmatprep.mubr.msk.f32.mxu1 %vm1460_vm1, %v12211_v56 }
 0x387   : > { %16879 = vmatprep.subr.bf16.mxu1 %v20197_v42  ;;  %v20328_v46 = vpack.c.bf16 %v15189_v48, %v3589_v55  ;;  %v12218_v55 = vld [vmem:[%s24232_s3 + $0x168] sm:$0xff] }
 0x389   : > { %14944 = vmatmul.mubr.msk.f32.gmra.mrb[46].mxu1 %vm1460_vm1, %v12212_v7  ;;  %v15248_v6 = vpop.f32.mrb[96].mxu0 }
 0x38a   : > { %16881 = vmatpush3.bf16.msra.mxu1 %v20197_v42  ;;  %v3899_v44 = vpop.f32.mrb[97].mxu0  ;;  %14946 = vmatprep.mubr.msk.f32.mxu1 %vm1460_vm1, %v12213_v24  ;;  %v12216_v42 = vld [vmem:[%s24232_s3 + $0x158] sm:$0xff]  ;;  %v12219_v24 = vld [vmem:[%s24232_s3 + $0x170] sm:$0xff] }
 0x38b   : > { %16899 = vmatprep.subr.bf16.mxu1 %v20204_v52  ;;  %v20340_v12 = vpack.c.bf16 %v15248_v6, %v3899_v44 }
 0x38d   : > { %14947 = vmatmul.mubr.msk.f32.gmra.mrb[48].mxu1 %vm1460_vm1, %v12214_v10  ;;  %v15251_v9 = vpop.f32.mrb[98].mxu0  ;;  %v12220_v10 = vld [vmem:[%s24232_s3 + $0x178] sm:$0xff] }
 0x38e   : > { %v3909_v31 = vpop.f32.mrb[99].mxu0  ;;  %14949 = vmatprep.mubr.msk.f32.mxu1 %vm1460_vm1, %v12215_v8 }
 0x38f   : > { %v20350_v0 = vpack.c.bf16 %v15251_v9, %v3909_v31  ;;  %v12245_v9 = vld [vmem:[%s24232_s3 + $0x180] sm:$0xff] }
 0x391   : > { %14950 = vmatmul.mubr.msk.f32.gmra.mrb[50].mxu1 %vm1460_vm1, %v12216_v42  ;;  %v15254_v56 = vpop.f32.mrb[100].mxu0 }
 0x392   : > { %v3919_v48 = vpop.f32.mrb[101].mxu0  ;;  %14952 = vmatprep.mubr.msk.f32.mxu1 %vm1460_vm1, %v12217_v41  ;;  %v12246_v41 = vld [vmem:[%s24232_s3 + $0x188] sm:$0xff] }
 0x393   : > { %v20360_v7 = vpack.c.bf16 %v15254_v56, %v3919_v48  ;;  %v12247_v48 = vld [vmem:[%s24232_s3 + $0x190] sm:$0xff] }
 0x395   : > { %14953 = vmatmul.mubr.msk.f32.gmra.mrb[52].mxu1 %vm1460_vm1, %v12218_v55  ;;  %v15257_v6 = vpop.f32.mrb[102].mxu0 }
 0x396   : > { %v3929_v44 = vpop.f32.mrb[103].mxu0  ;;  %14955 = vmatprep.mubr.msk.f32.mxu1 %vm1460_vm1, %v12219_v24 }
 0x397   : > { %v20370_v8 = vpack.c.bf16 %v15257_v6, %v3929_v44  ;;  %v12248_v6 = vld [vmem:[%s24232_s3 + $0x198] sm:$0xff] }
 0x399   : > { %14956 = vmatmul.mubr.msk.f32.gmra.mrb[54].mxu1 %vm1460_vm1, %v12220_v10  ;;  %v15316_v31 = vpop.f32.mrb[104].mxu0  ;;  %v12249_v10 = vld [vmem:[%s24232_s3 + $0x1a0] sm:$0xff] }
 0x39a   : > { %v4239_v42 = vpop.f32.mrb[105].mxu0  ;;  %15002 = vmatprep.mubr.msk.f32.mxu1 %vm1460_vm1, %v12245_v9 }
 0x39b   : > { %v20380_v56 = vpack.c.bf16 %v15316_v31, %v4239_v42  ;;  %v12250_v31 = vld [vmem:[%s24232_s3 + $0x1a8] sm:$0xff] }
 0x39d   : > { %15003 = vmatmul.mubr.msk.f32.vlgmr.msra.gmra.mrb[40].mxu1 %vm1460_vm1, %v12246_v41  ;;  %v15319_v55 = vpop.f32.mrb[106].mxu0  ;;  %v12251_v41 = vld [vmem:[%s24232_s3 + $0x1b0] sm:$0xff] }
 0x39e   : > { %16901 = vmatpush3.bf16.msra.mxu1 %v20204_v52  ;;  %v4249_v24 = vpop.f32.mrb[107].mxu0  ;;  %15005 = vmatprep.mubr.msk.f32.mxu1 %vm1460_vm1, %v12247_v48 }
 0x39f   : > { %16903 = vmatprep.subr.bf16.mxu1 %v20216_v19  ;;  %v20392_v44 = vpack.c.bf16 %v15319_v55, %v4249_v24  ;;  %v12252_v55 = vld [vmem:[%s24232_s3 + $0x1b8] sm:$0xff] }
 0x3a1   : > { %15006 = vmatmul.mubr.msk.f32.gmra.mrb[42].mxu1 %vm1460_vm1, %v12248_v6  ;;  %v15322_v9 = vpop.f32.mrb[108].mxu0  ;;  %v12253_v6 = vld [vmem:[%s24232_s3 + $0x1c0] sm:$0xff] }
 0x3a2   : > { %16905 = vmatpush3.bf16.msra.mxu1 %v20216_v19  ;;  %v4259_v52 = vpop.f32.mrb[109].mxu0  ;;  %15008 = vmatprep.mubr.msk.f32.mxu1 %vm1460_vm1, %v12249_v10  ;;  %v12255_v10 = vld [vmem:[%s24232_s3 + $0x1d0] sm:$0xff] }
 0x3a3   : > { %16907 = vmatprep.subr.bf16.mxu1 %v20228_v27  ;;  %v20404_v42 = vpack.c.bf16 %v15322_v9, %v4259_v52  ;;  %v12257_v9 = vld [vmem:[%s24232_s3 + $0x1e0] sm:$0xff]  ;;  %v12258_v52 = vld [vmem:[%s24232_s3 + $0x1e8] sm:$0xff] }
 0x3a5   : > { %15009 = vmatmul.mubr.msk.f32.gmra.mrb[44].mxu1 %vm1460_vm1, %v12250_v31  ;;  %v15325_v48 = vpop.f32.mrb[110].mxu0  ;;  %v12259_v31 = vld [vmem:[%s24232_s3 + $0x1f0] sm:$0xff] }
 0x3a6   : > { %16909 = vmatpush3.bf16.msra.mxu1 %v20228_v27  ;;  %v4269_v19 = vpop.f32.mrb[111].mxu0  ;;  %15011 = vmatprep.mubr.msk.f32.mxu1 %vm1460_vm1, %v12251_v41  ;;  %v12254_v27 = vld [vmem:[%s24232_s3 + $0x1c8] sm:$0xff]  ;;  %v12260_v41 = vld [vmem:[%s24232_s3 + $0x1f8] sm:$0xff] }
 0x3a7   : > { %16911 = vmatprep.subr.bf16.mxu1 %v20240_v60  ;;  %v20416_v24 = vpack.c.bf16 %v15325_v48, %v4269_v19  ;;  %v12285_v48 = vld [vmem:[%s24232_s3 + $0x200] sm:$0xff]  ;;  %v12286_v19 = vld [vmem:[%s24232_s3 + $0x208] sm:$0xff] }
 0x3a9   : > { %15012 = vmatmul.mubr.msk.f32.gmra.mrb[46].mxu1 %vm1460_vm1, %v12252_v55  ;;  %v12287_v55 = vld [vmem:[%s24232_s3 + $0x210] sm:$0xff] }
 0x3aa   : > { %16913 = vmatpush3.bf16.msra.mxu1 %v20240_v60  ;;  %15014 = vmatprep.mubr.msk.f32.mxu1 %vm1460_vm1, %v12253_v6  ;;  %v12256_v60 = vld [vmem:[%s24232_s3 + $0x1d8] sm:$0xff] }
 0x3ab   : > { %16931 = vmatprep.subr.bf16.mxu1 %v20252_v63  ;;  %v12288_v6 = vld [vmem:[%s24232_s3 + $0x218] sm:$0xff] }
 0x3ad   : > { %15015 = vmatmul.mubr.msk.f32.gmra.mrb[48].mxu1 %vm1460_vm1, %v12254_v27  ;;  %v12289_v27 = vld [vmem:[%s24232_s3 + $0x220] sm:$0xff] }
 0x3ae   : > { %15017 = vmatprep.mubr.msk.f32.mxu1 %vm1460_vm1, %v12255_v10  ;;  %v12291_v10 = vld [vmem:[%s24232_s3 + $0x230] sm:$0xff] }
 0x3b1   : > { %15018 = vmatmul.mubr.msk.f32.gmra.mrb[50].mxu1 %vm1460_vm1, %v12256_v60  ;;  %v12293_v60 = vld [vmem:[%s24232_s3 + $0x240] sm:$0xff] }
 0x3b2   : > { %15020 = vmatprep.mubr.msk.f32.mxu1 %vm1460_vm1, %v12257_v9  ;;  %v12295_v9 = vld [vmem:[%s24232_s3 + $0x250] sm:$0xff] }
 0x3b5   : > { %15021 = vmatmul.mubr.msk.f32.gmra.mrb[52].mxu1 %vm1460_vm1, %v12258_v52  ;;  %v12297_v52 = vld [vmem:[%s24232_s3 + $0x260] sm:$0xff] }
 0x3b6   : > { %15023 = vmatprep.mubr.msk.f32.mxu1 %vm1460_vm1, %v12259_v31  ;;  %v12298_v31 = vld [vmem:[%s24232_s3 + $0x268] sm:$0xff] }
 0x3b9   : > { %15024 = vmatmul.mubr.msk.f32.gmra.mrb[54].mxu1 %vm1460_vm1, %v12260_v41  ;;  %v12299_v41 = vld [vmem:[%s24232_s3 + $0x270] sm:$0xff] }
 0x3ba   : > { %15070 = vmatprep.mubr.msk.f32.mxu1 %vm1460_vm1, %v12285_v48  ;;  %v12300_v48 = vld [vmem:[%s24232_s3 + $0x278] sm:$0xff] }
 0x3bd   : > { %15071 = vmatmul.mubr.msk.f32.vlgmr.msra.gmra.mrb[40].mxu1 %vm1460_vm1, %v12286_v19  ;;  %v12325_v19 = vld [vmem:[%s24232_s3 + $0x280] sm:$0xff] }
 0x3be   : > { %16933 = vmatpush3.bf16.msra.mxu1 %v20252_v63  ;;  %15073 = vmatprep.mubr.msk.f32.mxu1 %vm1460_vm1, %v12287_v55  ;;  %v12290_v63 = vld [vmem:[%s24232_s3 + $0x228] sm:$0xff] }
 0x3bf   : > { %16935 = vmatprep.subr.bf16.mxu1 %v20262_v14  ;;  %v4615_v55 = vld [vmem:[#allocation5] sm:$0xff] }
 0x3c1   : > { %15074 = vmatmul.mubr.msk.f32.gmra.mrb[42].mxu1 %vm1460_vm1, %v12288_v6  ;;  %v4616_v6 = vld [vmem:[#allocation5 + $0x8] sm:$0xff] }
 0x3c2   : > { %16937 = vmatpush3.bf16.msra.mxu1 %v20262_v14  ;;  %15076 = vmatprep.mubr.msk.f32.mxu1 %vm1460_vm1, %v12289_v27  ;;  %v12292_v14 = vld [vmem:[%s24232_s3 + $0x238] sm:$0xff] }
 0x3c3   : > { %16939 = vmatprep.subr.bf16.mxu1 %v20272_v53  ;;  %v4617_v27 = vld [vmem:[#allocation5 + $0x10] sm:$0xff] }
 0x3c5   : > { %15077 = vmatmul.mubr.msk.f32.gmra.mrb[44].mxu1 %vm1460_vm1, %v12290_v63  ;;  %v12326_v63 = vld [vmem:[%s24232_s3 + $0x288] sm:$0xff] }
 0x3c6   : > { %16941 = vmatpush3.bf16.msra.mxu1 %v20272_v53  ;;  %15079 = vmatprep.mubr.msk.f32.mxu1 %vm1460_vm1, %v12291_v10  ;;  %v12294_v53 = vld [vmem:[%s24232_s3 + $0x248] sm:$0xff]  ;;  %v17042_v10 = vpack.c.bf16 %v4616_v6, %v4615_v55  ;;  %v12335_v55 = vld [vmem:[%s24232_s3 + $0x2d0] sm:$0xff]  ;;  %v12337_v6 = vld [vmem:[%s24232_s3 + $0x2e0] sm:$0xff] }
 0x3c7   : > { %16943 = vmatprep.subr.bf16.mxu1 %v20282_v23 }
 0x3c8   : > { %17043 = vmatprep.subr.bf16.mxu0 %v17042_v10 }
 0x3c9   : > { %15080 = vmatmul.mubr.msk.f32.gmra.mrb[46].mxu1 %vm1460_vm1, %v12292_v14  ;;  %v4618_v14 = vld [vmem:[#allocation5 + $0x18] sm:$0xff]  ;;  %17045 = vmatpush3.bf16.msra.mxu0 %v17042_v10 }
 0x3ca   : > { %16945 = vmatpush3.bf16.msra.mxu1 %v20282_v23  ;;  %15082 = vmatprep.mubr.msk.f32.mxu1 %vm1460_vm1, %v12293_v60  ;;  %v12296_v23 = vld [vmem:[%s24232_s3 + $0x258] sm:$0xff]  ;;  %v12327_v60 = vld [vmem:[%s24232_s3 + $0x290] sm:$0xff] }
 0x3cb   : > { %16963 = vmatprep.subr.bf16.mxu1 %v20292_v57  ;;  %v12340_v10 = vld [vmem:[%s24232_s3 + $0x2f8] sm:$0xff] }
 0x3cd   : > { %15083 = vmatmul.mubr.msk.f32.gmra.mrb[48].mxu1 %vm1460_vm1, %v12294_v53  ;;  %v17046_v53 = vpack.c.bf16 %v4618_v14, %v4617_v27  ;;  %v12338_v27 = vld [vmem:[%s24232_s3 + $0x2e8] sm:$0xff]  ;;  %v12365_v14 = vld [vmem:[%s24232_s3 + $0x300] sm:$0xff] }
 0x3ce   : > { %15085 = vmatprep.mubr.msk.f32.mxu1 %vm1460_vm1, %v12295_v9  ;;  %v4619_v9 = vld [vmem:[#allocation5 + $0x20] sm:$0xff] }
 0x3cf   : > { %17047 = vmatprep.subr.bf16.mxu0 %v17046_v53 }
 0x3d0   : > { %17049 = vmatpush3.bf16.msra.mxu0 %v17046_v53  ;;  %v12367_v53 = vld [vmem:[%s24232_s3 + $0x310] sm:$0xff] }
 0x3d1   : > { %15086 = vmatmul.mubr.msk.f32.gmra.mrb[50].mxu1 %vm1460_vm1, %v12296_v23  ;;  %v4620_v23 = vld [vmem:[#allocation5 + $0x28] sm:$0xff] }
 0x3d2   : > { %15088 = vmatprep.mubr.msk.f32.mxu1 %vm1460_vm1, %v12297_v52  ;;  %v12328_v52 = vld [vmem:[%s24232_s3 + $0x298] sm:$0xff] }
 0x3d5   : > { %15089 = vmatmul.mubr.msk.f32.gmra.mrb[52].mxu1 %vm1460_vm1, %v12298_v31  ;;  %v12329_v31 = vld [vmem:[%s24232_s3 + $0x2a0] sm:$0xff] }
 0x3d6   : > { %15091 = vmatprep.mubr.msk.f32.mxu1 %vm1460_vm1, %v12299_v41  ;;  %v17050_v41 = vpack.c.bf16 %v4620_v23, %v4619_v9  ;;  %v12368_v9 = vld [vmem:[%s24232_s3 + $0x318] sm:$0xff]  ;;  %v12369_v23 = vld [vmem:[%s24232_s3 + $0x320] sm:$0xff] }
 0x3d8   : > { %17051 = vmatprep.subr.bf16.mxu0 %v17050_v41 }
 0x3d9   : > { %15092 = vmatmul.mubr.msk.f32.gmra.mrb[54].mxu1 %vm1460_vm1, %v12300_v48  ;;  %v12331_v48 = vld [vmem:[%s24232_s3 + $0x2b0] sm:$0xff]  ;;  %17053 = vmatpush3.bf16.msra.mxu0 %v17050_v41 }
 0x3da   : > { %15138 = vmatprep.mubr.msk.f32.mxu1 %vm1460_vm1, %v12325_v19  ;;  %v12333_v19 = vld [vmem:[%s24232_s3 + $0x2c0] sm:$0xff]  ;;  %v12375_v41 = vld [vmem:[%s24232_s3 + $0x350] sm:$0xff] }
 0x3dd   : > { %15139 = vmatmul.mubr.msk.f32.vlgmr.msra.gmra.mrb[40].mxu1 %vm1460_vm1, %v12326_v63  ;;  %v12339_v63 = vld [vmem:[%s24232_s3 + $0x2f0] sm:$0xff] }
 0x3de   : > { %16965 = vmatpush3.bf16.msra.mxu1 %v20292_v57  ;;  %15141 = vmatprep.mubr.msk.f32.mxu1 %vm1460_vm1, %v12327_v60  ;;  %v12330_v57 = vld [vmem:[%s24232_s3 + $0x2a8] sm:$0xff] }
 0x3df   : > { %16967 = vmatprep.subr.bf16.mxu1 %v20304_v17  ;;  %v12366_v60 = vld [vmem:[%s24232_s3 + $0x308] sm:$0xff] }
 0x3e1   : > { %15142 = vmatmul.mubr.msk.f32.gmra.mrb[42].mxu1 %vm1460_vm1, %v12328_v52  ;;  %v12371_v52 = vld [vmem:[%s24232_s3 + $0x330] sm:$0xff] }
 0x3e2   : > { %16969 = vmatpush3.bf16.msra.mxu1 %v20304_v17  ;;  %15144 = vmatprep.mubr.msk.f32.mxu1 %vm1460_vm1, %v12329_v31  ;;  %v12332_v17 = vld [vmem:[%s24232_s3 + $0x2b8] sm:$0xff]  ;;  %v12373_v31 = vld [vmem:[%s24232_s3 + $0x340] sm:$0xff] }
 0x3e3   : > { %16971 = vmatprep.subr.bf16.mxu1 %v20316_v29 }
 0x3e5   : > { %15145 = vmatmul.mubr.msk.f32.gmra.mrb[44].mxu1 %vm1460_vm1, %v12330_v57  ;;  %v12377_v57 = vld [vmem:[%s24232_s3 + $0x360] sm:$0xff] }
 0x3e6   : > { %16973 = vmatpush3.bf16.msra.mxu1 %v20316_v29  ;;  %15147 = vmatprep.mubr.msk.f32.mxu1 %vm1460_vm1, %v12331_v48  ;;  %v12334_v29 = vld [vmem:[%s24232_s3 + $0x2c8] sm:$0xff] }
 0x3e7   : > { %16975 = vmatprep.subr.bf16.mxu1 %v20328_v46  ;;  %v12378_v48 = vld [vmem:[%s24232_s3 + $0x368] sm:$0xff] }
 0x3e9   : > { %15148 = vmatmul.mubr.msk.f32.gmra.mrb[46].mxu1 %vm1460_vm1, %v12332_v17  ;;  %v12379_v17 = vld [vmem:[%s24232_s3 + $0x370] sm:$0xff] }
 0x3ea   : > { %16977 = vmatpush3.bf16.msra.mxu1 %v20328_v46  ;;  %15150 = vmatprep.mubr.msk.f32.mxu1 %vm1460_vm1, %v12333_v19  ;;  %v12336_v46 = vld [vmem:[%s24232_s3 + $0x2d8] sm:$0xff] }
 0x3eb   : > { %16995 = vmatprep.subr.bf16.mxu1 %v20340_v12  ;;  %v12380_v19 = vld [vmem:[%s24232_s3 + $0x378] sm:$0xff] }
 0x3ed   : > { %15151 = vmatmul.mubr.msk.f32.gmra.mrb[48].mxu1 %vm1460_vm1, %v12334_v29  ;;  %v12405_v29 = vld [vmem:[%s24232_s3 + $0x380] sm:$0xff] }
 0x3ee   : > { %15153 = vmatprep.mubr.msk.f32.mxu1 %vm1460_vm1, %v12335_v55  ;;  %v12406_v55 = vld [vmem:[%s24232_s3 + $0x388] sm:$0xff] }
 0x3f1   : > { %15154 = vmatmul.mubr.msk.f32.gmra.mrb[50].mxu1 %vm1460_vm1, %v12336_v46  ;;  %v12407_v46 = vld [vmem:[%s24232_s3 + $0x390] sm:$0xff] }
 0x3f2   : > { %15156 = vmatprep.mubr.msk.f32.mxu1 %vm1460_vm1, %v12337_v6  ;;  %v12408_v6 = vld [vmem:[%s24232_s3 + $0x398] sm:$0xff] }
 0x3f5   : > { %15157 = vmatmul.mubr.msk.f32.gmra.mrb[52].mxu1 %vm1460_vm1, %v12338_v27  ;;  %v12409_v27 = vld [vmem:[%s24232_s3 + $0x3a0] sm:$0xff] }
 0x3f6   : > { %15159 = vmatprep.mubr.msk.f32.mxu1 %vm1460_vm1, %v12339_v63  ;;  %v12411_v63 = vld [vmem:[%s24232_s3 + $0x3b0] sm:$0xff] }
 0x3f9   : > { %15160 = vmatmul.mubr.msk.f32.gmra.mrb[54].mxu1 %vm1460_vm1, %v12340_v10  ;;  %v12413_v10 = vld [vmem:[%s24232_s3 + $0x3c0] sm:$0xff] }
 0x3fa   : > { %15206 = vmatprep.mubr.msk.f32.mxu1 %vm1460_vm1, %v12365_v14  ;;  %v12415_v14 = vld [vmem:[%s24232_s3 + $0x3d0] sm:$0xff] }
 0x3fd   : > { %15207 = vmatmul.mubr.msk.f32.vlgmr.msra.gmra.mrb[40].mxu1 %vm1460_vm1, %v12366_v60  ;;  %v12416_v60 = vld [vmem:[%s24232_s3 + $0x3d8] sm:$0xff] }
 0x3fe   : > { %16997 = vmatpush3.bf16.msra.mxu1 %v20340_v12  ;;  %15209 = vmatprep.mubr.msk.f32.mxu1 %vm1460_vm1, %v12367_v53  ;;  %v12370_v12 = vld [vmem:[%s24232_s3 + $0x328] sm:$0xff] }
 0x3ff   : > { %16999 = vmatprep.subr.bf16.mxu1 %v20350_v0  ;;  %v12418_v53 = vld [vmem:[%s24232_s3 + $0x3e8] sm:$0xff] }
 0x401   : > { %15210 = vmatmul.mubr.msk.f32.gmra.mrb[42].mxu1 %vm1460_vm1, %v12368_v9  ;;  %v12419_v9 = vld [vmem:[%s24232_s3 + $0x3f0] sm:$0xff] }
 0x402   : > { %17001 = vmatpush3.bf16.msra.mxu1 %v20350_v0  ;;  %15212 = vmatprep.mubr.msk.f32.mxu1 %vm1460_vm1, %v12369_v23  ;;  %v12372_v0 = vld [vmem:[%s24232_s3 + $0x338] sm:$0xff] }
 0x403   : > { %17003 = vmatprep.subr.bf16.mxu1 %v20360_v7  ;;  %v12420_v23 = vld [vmem:[%s24232_s3 + $0x3f8] sm:$0xff] }
 0x405   : > { %15213 = vmatmul.mubr.msk.f32.gmra.mrb[44].mxu1 %vm1460_vm1, %v12370_v12  ;;  %v12445_v12 = vld [vmem:[%s24232_s3 + $0x400] sm:$0xff] }
 0x406   : > { %17005 = vmatpush3.bf16.msra.mxu1 %v20360_v7  ;;  %15215 = vmatprep.mubr.msk.f32.mxu1 %vm1460_vm1, %v12371_v52  ;;  %v12374_v7 = vld [vmem:[%s24232_s3 + $0x348] sm:$0xff] }
 0x407   : > { %17007 = vmatprep.subr.bf16.mxu1 %v20370_v8  ;;  %v12446_v52 = vld [vmem:[%s24232_s3 + $0x408] sm:$0xff] }
 0x409   : > { %15216 = vmatmul.mubr.msk.f32.gmra.mrb[46].mxu1 %vm1460_vm1, %v12372_v0  ;;  %v12447_v0 = vld [vmem:[%s24232_s3 + $0x410] sm:$0xff] }
 0x40a   : > { %17009 = vmatpush3.bf16.msra.mxu1 %v20370_v8  ;;  %15218 = vmatprep.mubr.msk.f32.mxu1 %vm1460_vm1, %v12373_v31  ;;  %v12376_v8 = vld [vmem:[%s24232_s3 + $0x358] sm:$0xff] }
 0x40b   : > { %17027 = vmatprep.subr.bf16.mxu1 %v20380_v56  ;;  %v12448_v31 = vld [vmem:[%s24232_s3 + $0x418] sm:$0xff] }
 0x40d   : > { %15219 = vmatmul.mubr.msk.f32.gmra.mrb[48].mxu1 %vm1460_vm1, %v12374_v7  ;;  %v12449_v7 = vld [vmem:[%s24232_s3 + $0x420] sm:$0xff] }
 0x40e   : > { %15221 = vmatprep.mubr.msk.f32.mxu1 %vm1460_vm1, %v12375_v41  ;;  %v12450_v41 = vld [vmem:[%s24232_s3 + $0x428] sm:$0xff] }
 0x411   : > { %15222 = vmatmul.mubr.msk.f32.gmra.mrb[50].mxu1 %vm1460_vm1, %v12376_v8  ;;  %v12451_v8 = vld [vmem:[%s24232_s3 + $0x430] sm:$0xff] }
 0x412   : > { %15224 = vmatprep.mubr.msk.f32.mxu1 %vm1460_vm1, %v12377_v57  ;;  %v12452_v57 = vld [vmem:[%s24232_s3 + $0x438] sm:$0xff] }
 0x415   : > { %15225 = vmatmul.mubr.msk.f32.gmra.mrb[52].mxu1 %vm1460_vm1, %v12378_v48  ;;  %v12453_v48 = vld [vmem:[%s24232_s3 + $0x440] sm:$0xff] }
 0x416   : > { %15227 = vmatprep.mubr.msk.f32.mxu1 %vm1460_vm1, %v12379_v17  ;;  %v12454_v17 = vld [vmem:[%s24232_s3 + $0x448] sm:$0xff] }
 0x419   : > { %15228 = vmatmul.mubr.msk.f32.gmra.mrb[54].mxu1 %vm1460_vm1, %v12380_v19  ;;  %v12455_v19 = vld [vmem:[%s24232_s3 + $0x450] sm:$0xff] }
 0x41a   : > { %15274 = vmatprep.mubr.msk.f32.mxu1 %vm1460_vm1, %v12405_v29  ;;  %v12456_v29 = vld [vmem:[%s24232_s3 + $0x458] sm:$0xff] }
 0x41d   : > { %15275 = vmatmul.mubr.msk.f32.vlgmr.msra.gmra.mrb[40].mxu1 %vm1460_vm1, %v12406_v55  ;;  %v12457_v55 = vld [vmem:[%s24232_s3 + $0x460] sm:$0xff] }
 0x41e   : > { %17029 = vmatpush3.bf16.msra.mxu1 %v20380_v56  ;;  %15277 = vmatprep.mubr.msk.f32.mxu1 %vm1460_vm1, %v12407_v46  ;;  %v12410_v56 = vld [vmem:[%s24232_s3 + $0x3a8] sm:$0xff] }
 0x41f   : > { %17031 = vmatprep.subr.bf16.mxu1 %v20392_v44  ;;  %v12458_v46 = vld [vmem:[%s24232_s3 + $0x468] sm:$0xff] }
 0x421   : > { %15278 = vmatmul.mubr.msk.f32.gmra.mrb[42].mxu1 %vm1460_vm1, %v12408_v6  ;;  %v12459_v6 = vld [vmem:[%s24232_s3 + $0x470] sm:$0xff] }
 0x422   : > { %17033 = vmatpush3.bf16.msra.mxu1 %v20392_v44  ;;  %15280 = vmatprep.mubr.msk.f32.mxu1 %vm1460_vm1, %v12409_v27  ;;  %v12412_v44 = vld [vmem:[%s24232_s3 + $0x3b8] sm:$0xff] }
 0x423   : > { %17035 = vmatprep.subr.bf16.mxu1 %v20404_v42  ;;  %v12460_v27 = vld [vmem:[%s24232_s3 + $0x478] sm:$0xff] }
 0x425   : > { %15281 = vmatmul.mubr.msk.f32.gmra.mrb[44].mxu1 %vm1460_vm1, %v12410_v56  ;;  %v4621_v56 = vld [vmem:[#allocation5 + $0x30] sm:$0xff] }
 0x426   : > { %17037 = vmatpush3.bf16.msra.mxu1 %v20404_v42  ;;  %15283 = vmatprep.mubr.msk.f32.mxu1 %vm1460_vm1, %v12411_v63  ;;  %v12414_v42 = vld [vmem:[%s24232_s3 + $0x3c8] sm:$0xff]  ;;  %v4622_v63 = vld [vmem:[#allocation5 + $0x38] sm:$0xff] }
 0x427   : > { %17039 = vmatprep.subr.bf16.mxu1 %v20416_v24 }
 0x429   : > { %15284 = vmatmul.mubr.msk.f32.gmra.mrb[46].mxu1 %vm1460_vm1, %v12412_v44  ;;  %v17054_v44 = vpack.c.bf16 %v4622_v63, %v4621_v56  ;;  %v4821_v56 = vld [vmem:[#allocation5 + $0x60] sm:$0xff]  ;;  %v4822_v63 = vld [vmem:[#allocation5 + $0x68] sm:$0xff] }
 0x42a   : > { %17041 = vmatpush3.bf16.msra.mxu1 %v20416_v24  ;;  %15286 = vmatprep.mubr.msk.f32.mxu1 %vm1460_vm1, %v12413_v10  ;;  %v12417_v24 = vld [vmem:[%s24232_s3 + $0x3e0] sm:$0xff] }
 0x42b   : > { %17055 = vmatprep.subr.bf16.mxu0 %v17054_v44  ;;  %v4817_v10 = vld [vmem:[#allocation5 + $0x40] sm:$0xff] }
 0x42c   : > { %17057 = vmatpush3.bf16.msra.mxu0 %v17054_v44 }
 0x42d   : > { %15287 = vmatmul.mubr.msk.f32.gmra.mrb[48].mxu1 %vm1460_vm1, %v12414_v42  ;;  %v4818_v42 = vld [vmem:[#allocation5 + $0x48] sm:$0xff] }
 0x42e   : > { %15289 = vmatprep.mubr.msk.f32.mxu1 %vm1460_vm1, %v12415_v14  ;;  %v17058_v14 = vpack.c.bf16 %v4818_v42, %v4817_v10 }
 0x430   : > { %17059 = vmatprep.subr.bf16.mxu0 %v17058_v14 }
 0x431   : > { %15290 = vmatmul.mubr.msk.f32.gmra.mrb[50].mxu1 %vm1460_vm1, %v12416_v60  ;;  %v4511_v60 = vpop.permute.xlu1 %4510 }
 0x432   : > { %15292 = vmatprep.mubr.msk.f32.mxu1 %vm1460_vm1, %v12417_v24  ;;  %v4506_v24 = vpop.permute.xlu0 %4505 }
 0x435   : > { %15293 = vmatmul.mubr.msk.f32.gmra.mrb[52].mxu1 %vm1460_vm1, %v12418_v53  ;;  %v4521_v53 = vpop.permute.xlu1 %4520 }
 0x436   : > { %15295 = vmatprep.mubr.msk.f32.mxu1 %vm1460_vm1, %v12419_v9  ;;  %v4516_v9 = vpop.permute.xlu0 %4515 }
 0x439   : > { %15296 = vmatmul.mubr.msk.f32.gmra.mrb[54].mxu1 %vm1460_vm1, %v12420_v23  ;;  %v4531_v23 = vpop.permute.xlu1 %4530 }
 0x43a   : > { %15342 = vmatprep.mubr.msk.f32.mxu1 %vm1460_vm1, %v12445_v12  ;;  %v4526_v12 = vpop.permute.xlu0 %4525 }
 0x43d   : > { %15343 = vmatmul.mubr.msk.f32.vlgmr.msra.gmra.mrb[40].mxu1 %vm1460_vm1, %v12446_v52 }
 0x43e   : > { %15345 = vmatprep.mubr.msk.f32.mxu1 %vm1460_vm1, %v12447_v0 }
 0x441   : > { %15346 = vmatmul.mubr.msk.f32.gmra.mrb[42].mxu1 %vm1460_vm1, %v12448_v31 }
 0x442   : > { %15348 = vmatprep.mubr.msk.f32.mxu1 %vm1460_vm1, %v12449_v7 }
 0x445   : > { %15349 = vmatmul.mubr.msk.f32.gmra.mrb[44].mxu1 %vm1460_vm1, %v12450_v41  ;;  %v4819_v41 = vld [vmem:[#allocation5 + $0x50] sm:$0xff] }
 0x446   : > { %15351 = vmatprep.mubr.msk.f32.mxu1 %vm1460_vm1, %v12451_v8  ;;  %v4820_v8 = vld [vmem:[#allocation5 + $0x58] sm:$0xff] }
 0x449   : > { %15352 = vmatmul.mubr.msk.f32.gmra.mrb[46].mxu1 %vm1460_vm1, %v12452_v57  ;;  %v4541_v57 = vpop.permute.xlu1 %4540 }
 0x44a   : > { %15354 = vmatprep.mubr.msk.f32.mxu1 %vm1460_vm1, %v12453_v48 }
 0x44d   : > { %15355 = vmatmul.mubr.msk.f32.gmra.mrb[48].mxu1 %vm1460_vm1, %v12454_v17 }
 0x44e   : > { %15357 = vmatprep.mubr.msk.f32.mxu1 %vm1460_vm1, %v12455_v19  ;;  %v4536_v19 = vpop.permute.xlu0 %4535 }
 0x451   : > { %15358 = vmatmul.mubr.msk.f32.gmra.mrb[50].mxu1 %vm1460_vm1, %v12456_v29 }
 0x452   : > { %15360 = vmatprep.mubr.msk.f32.mxu1 %vm1460_vm1, %v12457_v55 }
 0x455   : > { %15361 = vmatmul.mubr.msk.f32.gmra.mrb[52].mxu1 %vm1460_vm1, %v12458_v46 }
 0x456   : > { %15363 = vmatprep.mubr.msk.f32.mxu1 %vm1460_vm1, %v12459_v6  ;;  %v17062_v6 = vpack.c.bf16 %v4820_v8, %v4819_v41 }
 0x459   : > { %15364 = vmatmul.mubr.msk.f32.gmra.mrb[54].mxu1 %vm1460_vm1, %v12460_v27 }
 0x510   : > { %v15344_v52 = vpop.f32.mrb[40].mxu1 }
 0x511   : > { %v4584_v0 = vadd.f32 %v15344_v52, %v4511_v60  ;;  %v4392_v31 = vpop.f32.mrb[41].mxu1  ;;  %v4551_v52 = vpop.permute.xlu1 %4550 }
 0x512   : > { %v4583_v7 = vadd.f32 %v4506_v24, %v4392_v31  ;;  %v4824_v31 = vld [vmem:[#allocation5 + $0x78] sm:$0xff] }
 0x513   : > { %v20806_v29 = vmax.f32 %v4584_v0, 0.0  ;;  %v4823_v0 = vld [vmem:[#allocation5 + $0x70] sm:$0xff] }
 0x514   : > { %v20804_v48 = vmax.f32 %v4583_v7, 0.0  ;;  %v15347_v17 = vpop.f32.mrb[42].mxu1  ;;  %v4546_v7 = vpop.permute.xlu0 %4545 }
 0x515   : > { %v4586_v55 = vadd.f32 %v15347_v17, %v4521_v53  ;;  %v4402_v46 = vpop.f32.mrb[43].mxu1  ;;  %v17066_v53 = vpack.c.bf16 %v4822_v63, %v4821_v56  ;;  %v4561_v56 = vpop.permute.xlu1 %4560 }
 0x516   : > { %v4585_v27 = vadd.f32 %v4516_v9, %v4402_v46  ;;  %15382 = vmatprep.mubr.msk.f32.mxu0 %vm1460_vm1, %v20804_v48  ;;  %v4987_v46 = vld [vmem:[#allocation5 + $0x80] sm:$0xff] }
 0x517   : > { %15383 = vmatmul.mubr.msk.f32.vlgmr.msra.gmra.mrb[112].mxu0 %vm1460_vm1, %v20806_v29  ;;  %v20814_v42 = vmax.f32 %v4586_v55, 0.0  ;;  %v17070_v55 = vpack.c.bf16 %v4824_v31, %v4823_v0 }
 0x518   : > { %v20812_v44 = vmax.f32 %v4585_v27, 0.0  ;;  %v15350_v10 = vpop.f32.mrb[44].mxu1  ;;  %17061 = vmatpush3.bf16.msra.mxu0 %v17058_v14  ;;  %v4988_v27 = vld [vmem:[#allocation5 + $0x88] sm:$0xff] }
 0x519   : > { %v4588_v60 = vadd.f32 %v15350_v10, %v4531_v23  ;;  %v4412_v24 = vpop.f32.mrb[45].mxu1  ;;  %17063 = vmatprep.subr.bf16.mxu0 %v17062_v6 }
 0x51a   : > { %v4587_v9 = vadd.f32 %v4526_v12, %v4412_v24  ;;  %15385 = vmatprep.mubr.msk.f32.mxu0 %vm1460_vm1, %v20812_v44 }
 0x51b   : > { %15386 = vmatmul.mubr.msk.f32.gmra.mrb[114].mxu0 %vm1460_vm1, %v20814_v42  ;;  %v20822_v8 = vmax.f32 %v4588_v60, 0.0 }
 0x51c   : > { %v20820_v41 = vmax.f32 %v4587_v9, 0.0  ;;  %v15353_v14 = vpop.f32.mrb[46].mxu1  ;;  %17065 = vmatpush3.bf16.msra.mxu0 %v17062_v6  ;;  %v4556_v6 = vpop.permute.xlu0 %4555 }
 0x51d   : > { %v4590_v23 = vadd.f32 %v15353_v14, %v4541_v57  ;;  %v4422_v17 = vpop.f32.mrb[47].mxu1  ;;  %17067 = vmatprep.subr.bf16.mxu0 %v17066_v53 }
 0x51e   : > { %v4589_v12 = vadd.f32 %v4536_v19, %v4422_v17  ;;  %15388 = vmatprep.mubr.msk.f32.mxu0 %vm1460_vm1, %v20820_v41  ;;  %v17074_v19 = vpack.c.bf16 %v4988_v27, %v4987_v46 }
 0x51f   : > { %15389 = vmatmul.mubr.msk.f32.gmra.mrb[116].mxu0 %vm1460_vm1, %v20822_v8  ;;  %v20830_v60 = vmax.f32 %v4590_v23, 0.0 }
 0x520   : > { %v20828_v63 = vmax.f32 %v4589_v12, 0.0  ;;  %v15356_v10 = vpop.f32.mrb[48].mxu1  ;;  %17069 = vmatpush3.bf16.msra.mxu0 %v17066_v53 }
 0x521   : > { %v4592_v57 = vadd.f32 %v15356_v10, %v4551_v52  ;;  %v4432_v24 = vpop.f32.mrb[49].mxu1  ;;  %17071 = vmatprep.subr.bf16.mxu0 %v17070_v55  ;;  %v4571_v52 = vpop.permute.xlu1 %4570 }
 0x522   : > { %v4591_v9 = vadd.f32 %v4546_v7, %v4432_v24  ;;  %15391 = vmatprep.mubr.msk.f32.mxu0 %vm1460_vm1, %v20828_v63  ;;  %v4566_v7 = vpop.permute.xlu0 %4565 }
 0x523   : > { %15392 = vmatmul.mubr.msk.f32.gmra.mrb[118].mxu0 %vm1460_vm1, %v20830_v60  ;;  %v20838_v14 = vmax.f32 %v4592_v57, 0.0 }
 0x524   : > { %v20836_v0 = vmax.f32 %v4591_v9, 0.0  ;;  %v15359_v31 = vpop.f32.mrb[50].mxu1  ;;  %17073 = vmatpush3.bf16.msra.mxu0 %v17070_v55 }
 0x525   : > { %v4594_v53 = vadd.f32 %v15359_v31, %v4561_v56  ;;  %v4442_v23 = vpop.f32.mrb[51].mxu1  ;;  %17075 = vmatprep.subr.bf16.mxu0 %v17074_v19  ;;  %v4581_v56 = vpop.permute.xlu1 %4580 }
 0x526   : > { %v4593_v17 = vadd.f32 %v4556_v6, %v4442_v23  ;;  %15394 = vmatprep.mubr.msk.f32.mxu0 %vm1460_vm1, %v20836_v0  ;;  %v4576_v9 = vpop.permute.xlu0 %4575 }
 0x527   : > { %15395 = vmatmul.mubr.msk.f32.gmra.mrb[120].mxu0 %vm1460_vm1, %v20838_v14  ;;  %v20846_v27 = vmax.f32 %v4594_v53, 0.0 }
 0x528   : > { %v20844_v12 = vmax.f32 %v4593_v17, 0.0  ;;  %v15362_v46 = vpop.f32.mrb[52].mxu1 }
 0x529   : > { %v4596_v55 = vadd.f32 %v15362_v46, %v4571_v52  ;;  %v4452_v10 = vpop.f32.mrb[53].mxu1  ;;  %v4989_v46 = vld [vmem:[#allocation5 + $0x90] sm:$0xff] }
 0x52a   : > { %v4595_v57 = vadd.f32 %v4566_v7, %v4452_v10  ;;  %15397 = vmatprep.mubr.msk.f32.mxu0 %vm1460_vm1, %v20844_v12  ;;  %v4990_v10 = vld [vmem:[#allocation5 + $0x98] sm:$0xff] }
 0x52b   : > { %15398 = vmatmul.mubr.msk.f32.gmra.mrb[122].mxu0 %vm1460_vm1, %v20846_v27  ;;  %v20854_v31 = vmax.f32 %v4596_v55, 0.0  ;;  %v17078_v55 = vpack.c.bf16 %v4990_v10, %v4989_v46  ;;  %v5158_v46 = vld [vmem:[#allocation5 + $0xc8] sm:$0xff]  ;;  %v5159_v10 = vld [vmem:[#allocation5 + $0xd0] sm:$0xff] }
 0x52c   : > { %v20852_v6 = vmax.f32 %v4595_v57, 0.0  ;;  %v15365_v24 = vpop.f32.mrb[54].mxu1  ;;  %v4991_v57 = vld [vmem:[#allocation5 + $0xa0] sm:$0xff] }
 0x52d   : > { %v4598_v23 = vadd.f32 %v15365_v24, %v4581_v56  ;;  %v4462_v17 = vpop.f32.mrb[55].mxu1  ;;  %v4992_v56 = vld [vmem:[#allocation5 + $0xa8] sm:$0xff] }
 0x52e   : > { %v4597_v53 = vadd.f32 %v4576_v9, %v4462_v17  ;;  %15400 = vmatprep.mubr.msk.f32.mxu0 %vm1460_vm1, %v20852_v6  ;;  %v17082_v24 = vpack.c.bf16 %v4992_v56, %v4991_v57  ;;  %v4993_v9 = vld [vmem:[#allocation5 + $0xb0] sm:$0xff]  ;;  %v5161_v56 = vld [vmem:[#allocation5 + $0xe0] sm:$0xff] }
 0x52f   : > { %15401 = vmatmul.mubr.msk.f32.gmra.mrb[124].mxu0 %vm1460_vm1, %v20854_v31  ;;  %v20862_v7 = vmax.f32 %v4598_v23, 0.0  ;;  %v4994_v23 = vld [vmem:[#allocation5 + $0xb8] sm:$0xff] }
 0x530   : > { %v20860_v52 = vmax.f32 %v4597_v53, 0.0  ;;  %v17086_v17 = vpack.c.bf16 %v4994_v23, %v4993_v9  ;;  %v5157_v53 = vld [vmem:[#allocation5 + $0xc0] sm:$0xff]  ;;  %v5163_v23 = vld [vmem:[#allocation5 + $0xf0] sm:$0xff] }
 0x532   : > { %15403 = vmatprep.mubr.msk.f32.mxu0 %vm1460_vm1, %v20860_v52 }
 0x533   : > { %15404 = vmatmul.mubr.msk.f32.gmra.mrb[126].mxu0 %vm1460_vm1, %v20862_v7 }
 0x534   : > { %15422 = vmatprep.mubr.msk.f32.mxu0 %vm1460_vm1, %v20804_v48 }
 0x537   : > { %15423 = vmatmul.mubr.msk.f32.vlgmr.msra.gmra.mrb[128].mxu0 %vm1460_vm1, %v20806_v29 }
 0x538   : > { %15425 = vmatprep.mubr.msk.f32.mxu0 %vm1460_vm1, %v20812_v44  ;;  %17077 = vmatpush3.bf16.msra.mxu0 %v17074_v19  ;;  %v17090_v19 = vpack.c.bf16 %v5158_v46, %v5157_v53 }
 0x539   : > { %17079 = vmatprep.subr.bf16.mxu0 %v17078_v55 }
 0x53b   : > { %15426 = vmatmul.mubr.msk.f32.gmra.mrb[130].mxu0 %vm1460_vm1, %v20814_v42 }
 0x53c   : > { %15428 = vmatprep.mubr.msk.f32.mxu0 %vm1460_vm1, %v20820_v41  ;;  %17081 = vmatpush3.bf16.msra.mxu0 %v17078_v55  ;;  %v5160_v55 = vld [vmem:[#allocation5 + $0xd8] sm:$0xff] }
 0x53d   : > { %17083 = vmatprep.subr.bf16.mxu0 %v17082_v24  ;;  %v17094_v57 = vpack.c.bf16 %v5160_v55, %v5159_v10 }
 0x53f   : > { %15429 = vmatmul.mubr.msk.f32.gmra.mrb[132].mxu0 %vm1460_vm1, %v20822_v8 }
 0x540   : > { %15431 = vmatprep.mubr.msk.f32.mxu0 %vm1460_vm1, %v20828_v63  ;;  %17085 = vmatpush3.bf16.msra.mxu0 %v17082_v24  ;;  %v5162_v24 = vld [vmem:[#allocation5 + $0xe8] sm:$0xff] }
 0x541   : > { %17087 = vmatprep.subr.bf16.mxu0 %v17086_v17  ;;  %v17098_v9 = vpack.c.bf16 %v5162_v24, %v5161_v56 }
 0x543   : > { %15432 = vmatmul.mubr.msk.f32.gmra.mrb[134].mxu0 %vm1460_vm1, %v20830_v60 }
 0x544   : > { %15434 = vmatprep.mubr.msk.f32.mxu0 %vm1460_vm1, %v20836_v0  ;;  %17089 = vmatpush3.bf16.msra.mxu0 %v17086_v17  ;;  %v5164_v17 = vld [vmem:[#allocation5 + $0xf8] sm:$0xff] }
 0x545   : > { %17091 = vmatprep.subr.bf16.mxu0 %v17090_v19  ;;  %v17102_v53 = vpack.c.bf16 %v5164_v17, %v5163_v23 }
 0x547   : > { %15435 = vmatmul.mubr.msk.f32.gmra.mrb[136].mxu0 %vm1460_vm1, %v20838_v14 }
 0x548   : > { %15437 = vmatprep.mubr.msk.f32.mxu0 %vm1460_vm1, %v20844_v12 }
 0x54b   : > { %15438 = vmatmul.mubr.msk.f32.gmra.mrb[138].mxu0 %vm1460_vm1, %v20846_v27 }
 0x54c   : > { %15440 = vmatprep.mubr.msk.f32.mxu0 %vm1460_vm1, %v20852_v6 }
 0x54f   : > { %15441 = vmatmul.mubr.msk.f32.gmra.mrb[140].mxu0 %vm1460_vm1, %v20854_v31 }
 0x550   : > { %15443 = vmatprep.mubr.msk.f32.mxu0 %vm1460_vm1, %v20860_v52 }
 0x553   : > { %15444 = vmatmul.mubr.msk.f32.gmra.mrb[142].mxu0 %vm1460_vm1, %v20862_v7 }
 0x554   : > { %15462 = vmatprep.mubr.msk.f32.mxu0 %vm1460_vm1, %v20804_v48 }
 0x557   : > { %15463 = vmatmul.mubr.msk.f32.vlgmr.msra.gmra.mrb[144].mxu0 %vm1460_vm1, %v20806_v29 }
 0x558   : > { %15465 = vmatprep.mubr.msk.f32.mxu0 %vm1460_vm1, %v20812_v44  ;;  %17093 = vmatpush3.bf16.msra.mxu0 %v17090_v19 }
 0x559   : > { %17095 = vmatprep.subr.bf16.mxu0 %v17094_v57 }
 0x55b   : > { %15466 = vmatmul.mubr.msk.f32.gmra.mrb[146].mxu0 %vm1460_vm1, %v20814_v42 }
 0x55c   : > { %15468 = vmatprep.mubr.msk.f32.mxu0 %vm1460_vm1, %v20820_v41  ;;  %17097 = vmatpush3.bf16.msra.mxu0 %v17094_v57 }
 0x55d   : > { %17099 = vmatprep.subr.bf16.mxu0 %v17098_v9 }
 0x55f   : > { %15469 = vmatmul.mubr.msk.f32.gmra.mrb[148].mxu0 %vm1460_vm1, %v20822_v8 }
 0x560   : > { %15471 = vmatprep.mubr.msk.f32.mxu0 %vm1460_vm1, %v20828_v63  ;;  %17101 = vmatpush3.bf16.msra.mxu0 %v17098_v9 }
 0x561   : > { %17103 = vmatprep.subr.bf16.mxu0 %v17102_v53 }
 0x563   : > { %15472 = vmatmul.mubr.msk.f32.gmra.mrb[150].mxu0 %vm1460_vm1, %v20830_v60 }
 0x564   : > { %15474 = vmatprep.mubr.msk.f32.mxu0 %vm1460_vm1, %v20836_v0  ;;  %17105 = vmatpush3.bf16.msra.mxu0 %v17102_v53 }
 0x567   : > { %15475 = vmatmul.mubr.msk.f32.gmra.mrb[152].mxu0 %vm1460_vm1, %v20838_v14 }
 0x568   : > { %15477 = vmatprep.mubr.msk.f32.mxu0 %vm1460_vm1, %v20844_v12 }
 0x56b   : > { %15478 = vmatmul.mubr.msk.f32.gmra.mrb[154].mxu0 %vm1460_vm1, %v20846_v27 }
 0x56c   : > { %15480 = vmatprep.mubr.msk.f32.mxu0 %vm1460_vm1, %v20852_v6 }
 0x56f   : > { %15481 = vmatmul.mubr.msk.f32.gmra.mrb[156].mxu0 %vm1460_vm1, %v20854_v31 }
 0x570   : > { %15483 = vmatprep.mubr.msk.f32.mxu0 %vm1460_vm1, %v20860_v52 }
 0x573   : > { %15484 = vmatmul.mubr.msk.f32.gmra.mrb[158].mxu0 %vm1460_vm1, %v20862_v7 }
 0x574   : > { %15502 = vmatprep.mubr.msk.f32.mxu0 %vm1460_vm1, %v20804_v48 }
 0x577   : > { %15503 = vmatmul.mubr.msk.f32.vlgmr.msra.gmra.mrb[160].mxu0 %vm1460_vm1, %v20806_v29 }
 0x578   : > { %15505 = vmatprep.mubr.msk.f32.mxu0 %vm1460_vm1, %v20812_v44 }
 0x57b   : > { %15506 = vmatmul.mubr.msk.f32.gmra.mrb[162].mxu0 %vm1460_vm1, %v20814_v42  ;;  %v5326_v42 = vld [vmem:[%s24163_s5] sm:$0xff] }
 0x57c   : > { %15508 = vmatprep.mubr.msk.f32.mxu0 %vm1460_vm1, %v20820_v41 }
 0x57f   : > { %15509 = vmatmul.mubr.msk.f32.gmra.mrb[164].mxu0 %vm1460_vm1, %v20822_v8 }
 0x580   : > { %15511 = vmatprep.mubr.msk.f32.mxu0 %vm1460_vm1, %v20828_v63 }
 0x583   : > { %15512 = vmatmul.mubr.msk.f32.gmra.mrb[166].mxu0 %vm1460_vm1, %v20830_v60 }
 0x584   : > { %15514 = vmatprep.mubr.msk.f32.mxu0 %vm1460_vm1, %v20836_v0 }
 0x587   : > { %15515 = vmatmul.mubr.msk.f32.gmra.mrb[168].mxu0 %vm1460_vm1, %v20838_v14 }
 0x588   : > { %15517 = vmatprep.mubr.msk.f32.mxu0 %vm1460_vm1, %v20844_v12 }
 0x58b   : > { %15518 = vmatmul.mubr.msk.f32.gmra.mrb[170].mxu0 %vm1460_vm1, %v20846_v27 }
 0x58c   : > { %15520 = vmatprep.mubr.msk.f32.mxu0 %vm1460_vm1, %v20852_v6 }
 0x58f   : > { %15521 = vmatmul.mubr.msk.f32.gmra.mrb[172].mxu0 %vm1460_vm1, %v20854_v31 }
 0x590   : > { %15523 = vmatprep.mubr.msk.f32.mxu0 %vm1460_vm1, %v20860_v52 }
 0x593   : > { %15524 = vmatmul.mubr.msk.f32.gmra.mrb[174].mxu0 %vm1460_vm1, %v20862_v7 }
 0x594   : > { %15558 = vmatprep.mubr.f32.mxu0 %v5326_v42 }
 0x5ea   : > { %v15384_v48 = vpop.f32.mrb[112].mxu0 }
 0x5eb   : > { %v4737_v29 = vpop.f32.mrb[113].mxu0 }
 0x5ee   : > { %v15387_v44 = vpop.f32.mrb[114].mxu0 }
 0x5ef   : > { %v4747_v41 = vpop.f32.mrb[115].mxu0 }
 0x5f2   : > { %v15390_v8 = vpop.f32.mrb[116].mxu0 }
 0x5f3   : > { %v4757_v63 = vpop.f32.mrb[117].mxu0 }
 0x5f6   : > { %v15393_v60 = vpop.f32.mrb[118].mxu0 }
 0x5f7   : > { %v4767_v0 = vpop.f32.mrb[119].mxu0 }
 0x5fa   : > { %v15396_v14 = vpop.f32.mrb[120].mxu0 }
 0x5fb   : > { %v4777_v12 = vpop.f32.mrb[121].mxu0 }
 0x5fe   : > { %v15399_v27 = vpop.f32.mrb[122].mxu0 }
 0x5ff   : > { %v4787_v6 = vpop.f32.mrb[123].mxu0 }
 0x602   : > { %v15402_v31 = vpop.f32.mrb[124].mxu0 }
 0x603   : > { %v20967_v52 = vpop.f32.mrb[125].mxu0 }
 0x606   : > { %v20969_v7 = vpop.f32.mrb[126].mxu0 }
 0x607   : > { %v20971_v46 = vpop.f32.mrb[127].mxu0 }
 0x60a   : > { %v15424_v19 = vpop.f32.mrb[128].mxu0 }
 0x60b   : > { %v4971_v10 = vmax.f32 %v15384_v48, %v15424_v19  ;;  %v4891_v55 = vpop.f32.mrb[129].mxu0 }
 0x60c   : > { %v4970_v57 = vmax.f32 %v4737_v29, %v4891_v55 }
 0x60e   : > { %v15427_v56 = vpop.f32.mrb[130].mxu0 }
 0x60f   : > { %v4973_v24 = vmax.f32 %v15387_v44, %v15427_v56  ;;  %v4901_v9 = vpop.f32.mrb[131].mxu0 }
 0x610   : > { %v4972_v23 = vmax.f32 %v4747_v41, %v4901_v9 }
 0x612   : > { %v15430_v17 = vpop.f32.mrb[132].mxu0 }
 0x613   : > { %v4975_v53 = vmax.f32 %v15390_v8, %v15430_v17  ;;  %v4911_v42 = vpop.f32.mrb[133].mxu0 }
 0x614   : > { %v4974_v2 = vmax.f32 %v4757_v63, %v4911_v42 }
 0x616   : > { %v15433_v1 = vpop.f32.mrb[134].mxu0 }
 0x617   : > { %v4977_v39 = vmax.f32 %v15393_v60, %v15433_v1  ;;  %v4921_v4 = vpop.f32.mrb[135].mxu0 }
 0x618   : > { %v4976_v61 = vmax.f32 %v4767_v0, %v4921_v4 }
 0x61a   : > { %v15436_v51 = vpop.f32.mrb[136].mxu0 }
 0x61b   : > { %v4979_v47 = vmax.f32 %v15396_v14, %v15436_v51  ;;  %v4931_v40 = vpop.f32.mrb[137].mxu0 }
 0x61c   : > { %v4978_v30 = vmax.f32 %v4777_v12, %v4931_v40 }
 0x61e   : > { %v15439_v38 = vpop.f32.mrb[138].mxu0 }
 0x61f   : > { %v4981_v48 = vmax.f32 %v15399_v27, %v15439_v38  ;;  %v4941_v19 = vpop.f32.mrb[139].mxu0 }
 0x620   : > { %v4980_v29 = vmax.f32 %v4787_v6, %v4941_v19 }
 0x622   : > { %v15442_v55 = vpop.f32.mrb[140].mxu0 }
 0x623   : > { %v4983_v44 = vmax.f32 %v15402_v31, %v15442_v55  ;;  %v4951_v56 = vpop.f32.mrb[141].mxu0 }
 0x624   : > { %v4982_v41 = vmax.f32 %v20967_v52, %v4951_v56 }
 0x626   : > { %v15445_v8 = vpop.f32.mrb[142].mxu0 }
 0x627   : > { %v4985_v63 = vmax.f32 %v20969_v7, %v15445_v8  ;;  %v4961_v9 = vpop.f32.mrb[143].mxu0 }
 0x628   : > { %v4984_v1 = vmax.f32 %v20971_v46, %v4961_v9 }
 0x62a   : > { %v15464_v4 = vpop.f32.mrb[144].mxu0 }
 0x62b   : > { %v5141_v60 = vmax.f32 %v4971_v10, %v15464_v4  ;;  %v5061_v51 = vpop.f32.mrb[145].mxu0 }
 0x62c   : > { %v5140_v0 = vmax.f32 %v4970_v57, %v5061_v51 }
 0x62e   : > { %v15467_v40 = vpop.f32.mrb[146].mxu0 }
 0x62f   : > { %v5143_v14 = vmax.f32 %v4973_v24, %v15467_v40  ;;  %v5071_v38 = vpop.f32.mrb[147].mxu0 }
 0x630   : > { %v5142_v12 = vmax.f32 %v4972_v23, %v5071_v38 }
 0x632   : > { %v15470_v27 = vpop.f32.mrb[148].mxu0 }
 0x633   : > { %v5145_v6 = vmax.f32 %v4975_v53, %v15470_v27  ;;  %v5081_v31 = vpop.f32.mrb[149].mxu0 }
 0x634   : > { %v5144_v17 = vmax.f32 %v4974_v2, %v5081_v31 }
 0x636   : > { %v15473_v42 = vpop.f32.mrb[150].mxu0 }
 0x637   : > { %v5147_v52 = vmax.f32 %v4977_v39, %v15473_v42  ;;  %v5091_v19 = vpop.f32.mrb[151].mxu0 }
 0x638   : > { %v5146_v55 = vmax.f32 %v4976_v61, %v5091_v19 }
 0x63a   : > { %v15476_v7 = vpop.f32.mrb[152].mxu0 }
 0x63b   : > { %v5149_v56 = vmax.f32 %v4979_v47, %v15476_v7  ;;  %v5101_v8 = vpop.f32.mrb[153].mxu0 }
 0x63c   : > { %v5148_v46 = vmax.f32 %v4978_v30, %v5101_v8 }
 0x63e   : > { %v15479_v9 = vpop.f32.mrb[154].mxu0 }
 0x63f   : > { %v5151_v10 = vmax.f32 %v4981_v48, %v15479_v9  ;;  %v5111_v4 = vpop.f32.mrb[155].mxu0 }
 0x640   : > { %v5150_v57 = vmax.f32 %v4980_v29, %v5111_v4 }
 0x642   : > { %v15482_v51 = vpop.f32.mrb[156].mxu0 }
 0x643   : > { %v5153_v24 = vmax.f32 %v4983_v44, %v15482_v51  ;;  %v5121_v40 = vpop.f32.mrb[157].mxu0 }
 0x644   : > { %v5152_v23 = vmax.f32 %v4982_v41, %v5121_v40 }
 0x646   : > { %v15485_v38 = vpop.f32.mrb[158].mxu0 }
 0x647   : > { %v5155_v53 = vmax.f32 %v4985_v63, %v15485_v38  ;;  %v5131_v27 = vpop.f32.mrb[159].mxu0 }
 0x648   : > { %v5154_v2 = vmax.f32 %v4984_v1, %v5131_v27 }
 0x64a   : > { %v15504_v31 = vpop.f32.mrb[160].mxu0 }
 0x64b   : > { %v5311_v39 = vmax.f32 %v5141_v60, %v15504_v31  ;;  %v5231_v42 = vpop.f32.mrb[161].mxu0 }
 0x64c   : > { %v5310_v61 = vmax.f32 %v5140_v0, %v5231_v42 }
 0x64e   : > { %v20976_v19 = vpack.c.bf16 %v5311_v39, %v5310_v61  ;;  %v15507_v47 = vpop.f32.mrb[162].mxu0 }
 0x64f   : > { %v5313_v30 = vmax.f32 %v5143_v14, %v15507_v47  ;;  %v5241_v7 = vpop.f32.mrb[163].mxu0 }
 0x650   : > { %v5312_v48 = vmax.f32 %v5142_v12, %v5241_v7  ;;  %17107 = vmatprep.subr.bf16.mxu0 %v20976_v19 }
 0x651   : > { %17109 = vmatpush3.bf16.msra.mxu0 %v20976_v19 }
 0x652   : > { %v20980_v29 = vpack.c.bf16 %v5313_v30, %v5312_v48  ;;  %v15510_v44 = vpop.f32.mrb[164].mxu0  ;;  %v5331_v48 = vld [vmem:[%s24163_s5 + $0x28] sm:$0xff] }
 0x653   : > { %v5315_v41 = vmax.f32 %v5145_v6, %v15510_v44  ;;  %v5251_v63 = vpop.f32.mrb[165].mxu0  ;;  %v5332_v44 = vld [vmem:[%s24163_s5 + $0x30] sm:$0xff] }
 0x654   : > { %v5314_v1 = vmax.f32 %v5144_v17, %v5251_v63  ;;  %17111 = vmatprep.subr.bf16.mxu0 %v20980_v29  ;;  %v5334_v63 = vld [vmem:[%s24163_s5 + $0x40] sm:$0xff] }
 0x655   : > { %17113 = vmatpush3.bf16.msra.mxu0 %v20980_v29 }
 0x656   : > { %v20984_v60 = vpack.c.bf16 %v5315_v41, %v5314_v1  ;;  %v15513_v0 = vpop.f32.mrb[166].mxu0  ;;  %v5333_v41 = vld [vmem:[%s24163_s5 + $0x38] sm:$0xff]  ;;  %v5335_v1 = vld [vmem:[%s24163_s5 + $0x48] sm:$0xff] }
 0x657   : > { %v5317_v14 = vmax.f32 %v5147_v52, %v15513_v0  ;;  %v5261_v8 = vpop.f32.mrb[167].mxu0  ;;  %v5336_v0 = vld [vmem:[%s24163_s5 + $0x50] sm:$0xff] }
 0x658   : > { %v5316_v12 = vmax.f32 %v5146_v55, %v5261_v8  ;;  %17115 = vmatprep.subr.bf16.mxu0 %v20984_v60  ;;  %v5338_v8 = vld [vmem:[%s24163_s5 + $0x60] sm:$0xff] }
 0x659   : > { %17117 = vmatpush3.bf16.msra.mxu0 %v20984_v60 }
 0x65a   : > { %v20988_v9 = vpack.c.bf16 %v5317_v14, %v5316_v12  ;;  %v15516_v4 = vpop.f32.mrb[168].mxu0  ;;  %v5337_v14 = vld [vmem:[%s24163_s5 + $0x58] sm:$0xff]  ;;  %v5339_v12 = vld [vmem:[%s24163_s5 + $0x68] sm:$0xff] }
 0x65b   : > { %v5319_v6 = vmax.f32 %v5149_v56, %v15516_v4  ;;  %v5271_v51 = vpop.f32.mrb[169].mxu0  ;;  %v5340_v4 = vld [vmem:[%s24163_s5 + $0x70] sm:$0xff] }
 0x65c   : > { %v5318_v17 = vmax.f32 %v5148_v46, %v5271_v51  ;;  %17119 = vmatprep.subr.bf16.mxu0 %v20988_v9  ;;  %v12549_v51 = vld [vmem:[%s24163_s5 + $0x80] sm:$0xff] }
 0x65d   : > { %17121 = vmatpush3.bf16.msra.mxu0 %v20988_v9 }
 0x65e   : > { %v20992_v40 = vpack.c.bf16 %v5319_v6, %v5318_v17  ;;  %v15519_v38 = vpop.f32.mrb[170].mxu0  ;;  %v5341_v6 = vld [vmem:[%s24163_s5 + $0x78] sm:$0xff]  ;;  %v12550_v17 = vld [vmem:[%s24163_s5 + $0x88] sm:$0xff] }
 0x65f   : > { %v5321_v52 = vmax.f32 %v5151_v10, %v15519_v38  ;;  %v5281_v27 = vpop.f32.mrb[171].mxu0  ;;  %v12551_v38 = vld [vmem:[%s24163_s5 + $0x90] sm:$0xff] }
 0x660   : > { %v5320_v55 = vmax.f32 %v5150_v57, %v5281_v27  ;;  %17123 = vmatprep.subr.bf16.mxu0 %v20992_v40  ;;  %v12553_v27 = vld [vmem:[%s24163_s5 + $0xa0] sm:$0xff] }
 0x661   : > { %17125 = vmatpush3.bf16.msra.mxu0 %v20992_v40 }
 0x662   : > { %v20996_v31 = vpack.c.bf16 %v5321_v52, %v5320_v55  ;;  %v15522_v39 = vpop.f32.mrb[172].mxu0  ;;  %v12552_v52 = vld [vmem:[%s24163_s5 + $0x98] sm:$0xff]  ;;  %v12554_v55 = vld [vmem:[%s24163_s5 + $0xa8] sm:$0xff] }
 0x663   : > { %v5323_v56 = vmax.f32 %v5153_v24, %v15522_v39  ;;  %v5291_v42 = vpop.f32.mrb[173].mxu0  ;;  %v5327_v24 = vld [vmem:[%s24163_s5 + $0x8] sm:$0xff]  ;;  %v12555_v39 = vld [vmem:[%s24163_s5 + $0xb0] sm:$0xff] }
 0x664   : > { %v5322_v46 = vmax.f32 %v5152_v23, %v5291_v42  ;;  %17127 = vmatprep.subr.bf16.mxu0 %v20996_v31  ;;  %v5328_v23 = vld [vmem:[%s24163_s5 + $0x10] sm:$0xff]  ;;  %v12557_v42 = vld [vmem:[%s24163_s5 + $0xc0] sm:$0xff] }
 0x665   : > { %17129 = vmatpush3.bf16.msra.mxu0 %v20996_v31 }
 0x666   : > { %v21000_v61 = vpack.c.bf16 %v5323_v56, %v5322_v46  ;;  %v15525_v47 = vpop.f32.mrb[174].mxu0  ;;  %v12556_v56 = vld [vmem:[%s24163_s5 + $0xb8] sm:$0xff]  ;;  %v12558_v46 = vld [vmem:[%s24163_s5 + $0xc8] sm:$0xff] }
 0x667   : > { %v5325_v10 = vmax.f32 %v5155_v53, %v15525_v47  ;;  %v5301_v30 = vpop.f32.mrb[175].mxu0  ;;  %v5329_v53 = vld [vmem:[%s24163_s5 + $0x18] sm:$0xff]  ;;  %v12559_v47 = vld [vmem:[%s24163_s5 + $0xd0] sm:$0xff] }
 0x668   : > { %v5324_v57 = vmax.f32 %v5154_v2, %v5301_v30  ;;  %17131 = vmatprep.subr.bf16.mxu0 %v21000_v61  ;;  %v5330_v2 = vld [vmem:[%s24163_s5 + $0x20] sm:$0xff] }
 0x669   : > { %17133 = vmatpush3.bf16.msra.mxu0 %v21000_v61  ;;  %v12561_v30 = vld [vmem:[%s24163_s5 + $0xe0] sm:$0xff] }
 0x66a   : > { %v21004_v7 = vpack.c.bf16 %v5325_v10, %v5324_v57  ;;  %v12560_v10 = vld [vmem:[%s24163_s5 + $0xd8] sm:$0xff]  ;;  %v12562_v57 = vld [vmem:[%s24163_s5 + $0xe8] sm:$0xff] }
 0x66c   : > { %17135 = vmatprep.subr.bf16.mxu0 %v21004_v7 }
 0x66d   : > { %17137 = vmatpush3.bf16.msra.mxu0 %v21004_v7 }
 0x66e   : > { %17139 = vmatprep.subr.bf16.mxu0 %v20976_v19 }
 0x670   : > { %15559 = vmatmul.mubr.f32.vlgmr.msra.gmra.mrb[176].mxu0 %v5327_v24  ;;  %v12563_v24 = vld [vmem:[%s24163_s5 + $0xf0] sm:$0xff] }
 0x671   : > { %17141 = vmatpush3.bf16.msra.mxu0 %v20976_v19  ;;  %15561 = vmatprep.mubr.f32.mxu0 %v5328_v23  ;;  %v12564_v23 = vld [vmem:[%s24163_s5 + $0xf8] sm:$0xff] }
 0x672   : > { %17143 = vmatprep.subr.bf16.mxu0 %v20980_v29 }
 0x674   : > { %15562 = vmatmul.mubr.f32.gmra.mrb[178].mxu0 %v5329_v53  ;;  %v12597_v53 = vld [vmem:[%s24163_s5 + $0x100] sm:$0xff] }
 0x675   : > { %17145 = vmatpush3.bf16.msra.mxu0 %v20980_v29  ;;  %15564 = vmatprep.mubr.f32.mxu0 %v5330_v2  ;;  %v12598_v2 = vld [vmem:[%s24163_s5 + $0x108] sm:$0xff] }
 0x676   : > { %17147 = vmatprep.subr.bf16.mxu0 %v20984_v60 }
 0x678   : > { %15565 = vmatmul.mubr.f32.gmra.mrb[180].mxu0 %v5331_v48  ;;  %v12599_v48 = vld [vmem:[%s24163_s5 + $0x110] sm:$0xff] }
 0x679   : > { %17149 = vmatpush3.bf16.msra.mxu0 %v20984_v60  ;;  %15567 = vmatprep.mubr.f32.mxu0 %v5332_v44  ;;  %v12600_v44 = vld [vmem:[%s24163_s5 + $0x118] sm:$0xff] }
 0x67a   : > { %17151 = vmatprep.subr.bf16.mxu0 %v20988_v9 }
 0x67c   : > { %15568 = vmatmul.mubr.f32.gmra.mrb[182].mxu0 %v5333_v41  ;;  %v12601_v41 = vld [vmem:[%s24163_s5 + $0x120] sm:$0xff] }
 0x67d   : > { %17153 = vmatpush3.bf16.msra.mxu0 %v20988_v9  ;;  %15570 = vmatprep.mubr.f32.mxu0 %v5334_v63  ;;  %v12602_v63 = vld [vmem:[%s24163_s5 + $0x128] sm:$0xff] }
 0x67e   : > { %17155 = vmatprep.subr.bf16.mxu0 %v20992_v40 }
 0x680   : > { %15571 = vmatmul.mubr.f32.gmra.mrb[184].mxu0 %v5335_v1  ;;  %v12604_v1 = vld [vmem:[%s24163_s5 + $0x138] sm:$0xff] }
 0x681   : > { %17157 = vmatpush3.bf16.msra.mxu0 %v20992_v40  ;;  %15573 = vmatprep.mubr.f32.mxu0 %v5336_v0  ;;  %v12606_v0 = vld [vmem:[%s24163_s5 + $0x148] sm:$0xff] }
 0x682   : > { %17159 = vmatprep.subr.bf16.mxu0 %v20996_v31 }
 0x684   : > { %15574 = vmatmul.mubr.f32.gmra.mrb[186].mxu0 %v5337_v14  ;;  %v12608_v14 = vld [vmem:[%s24163_s5 + $0x158] sm:$0xff] }
 0x685   : > { %17161 = vmatpush3.bf16.msra.mxu0 %v20996_v31  ;;  %15576 = vmatprep.mubr.f32.mxu0 %v5338_v8  ;;  %v5652_v8 = vld [vmem:[#allocation7 + $0x10] sm:$0xff] }
 0x686   : > { %17163 = vmatprep.subr.bf16.mxu0 %v21000_v61 }
 0x688   : > { %15577 = vmatmul.mubr.f32.gmra.mrb[188].mxu0 %v5339_v12  ;;  %v5653_v12 = vld [vmem:[#allocation7 + $0x18] sm:$0xff] }
 0x689   : > { %17165 = vmatpush3.bf16.msra.mxu0 %v21000_v61  ;;  %15579 = vmatprep.mubr.f32.mxu0 %v5340_v4  ;;  %v17170_v4 = vpack.c.bf16 %v5653_v12, %v5652_v8 }
 0x68a   : > { %17167 = vmatprep.subr.bf16.mxu0 %v21004_v7 }
 0x68b   : > { %17171 = vmatprep.subr.bf16.mxu1 %v17170_v4 }
 0x68c   : > { %15580 = vmatmul.mubr.f32.gmra.mrb[190].mxu0 %v5341_v6  ;;  %v12611_v6 = vld [vmem:[%s24163_s5 + $0x170] sm:$0xff]  ;;  %17173 = vmatpush3.bf16.msra.mxu1 %v17170_v4 }
 0x68d   : > { %17169 = vmatpush3.bf16.msra.mxu0 %v21004_v7  ;;  %15614 = vmatprep.mubr.f32.mxu0 %v12549_v51  ;;  %v12629_v51 = vld [vmem:[%s24163_s5 + $0x180] sm:$0xff] }
 0x68e   : > { %17179 = vmatprep.subr.bf16.mxu0 %v20976_v19 }
 0x690   : > { %15615 = vmatmul.mubr.f32.vlgmr.msra.gmra.mrb[192].mxu0 %v12550_v17  ;;  %v12630_v17 = vld [vmem:[%s24163_s5 + $0x188] sm:$0xff] }
 0x691   : > { %17181 = vmatpush3.bf16.msra.mxu0 %v20976_v19  ;;  %15617 = vmatprep.mubr.f32.mxu0 %v12551_v38  ;;  %v12632_v38 = vld [vmem:[%s24163_s5 + $0x198] sm:$0xff] }
 0x692   : > { %17183 = vmatprep.subr.bf16.mxu0 %v20980_v29 }
 0x694   : > { %15618 = vmatmul.mubr.f32.gmra.mrb[194].mxu0 %v12552_v52  ;;  %v12633_v52 = vld [vmem:[%s24163_s5 + $0x1a0] sm:$0xff] }
 0x695   : > { %17185 = vmatpush3.bf16.msra.mxu0 %v20980_v29  ;;  %15620 = vmatprep.mubr.f32.mxu0 %v12553_v27  ;;  %v12635_v27 = vld [vmem:[%s24163_s5 + $0x1b0] sm:$0xff] }
 0x696   : > { %17187 = vmatprep.subr.bf16.mxu0 %v20984_v60 }
 0x698   : > { %15621 = vmatmul.mubr.f32.gmra.mrb[196].mxu0 %v12554_v55  ;;  %v12636_v55 = vld [vmem:[%s24163_s5 + $0x1b8] sm:$0xff] }
 0x699   : > { %17189 = vmatpush3.bf16.msra.mxu0 %v20984_v60  ;;  %15623 = vmatprep.mubr.f32.mxu0 %v12555_v39  ;;  %v12637_v39 = vld [vmem:[%s24163_s5 + $0x1c0] sm:$0xff] }
 0x69a   : > { %17191 = vmatprep.subr.bf16.mxu0 %v20988_v9 }
 0x69c   : > { %15624 = vmatmul.mubr.f32.gmra.mrb[198].mxu0 %v12556_v56  ;;  %v12638_v56 = vld [vmem:[%s24163_s5 + $0x1c8] sm:$0xff] }
 0x69d   : > { %17193 = vmatpush3.bf16.msra.mxu0 %v20988_v9  ;;  %15626 = vmatprep.mubr.f32.mxu0 %v12557_v42  ;;  %v12639_v42 = vld [vmem:[%s24163_s5 + $0x1d0] sm:$0xff] }
 0x69e   : > { %17195 = vmatprep.subr.bf16.mxu0 %v20992_v40 }
 0x6a0   : > { %15627 = vmatmul.mubr.f32.gmra.mrb[200].mxu0 %v12558_v46  ;;  %v12640_v46 = vld [vmem:[%s24163_s5 + $0x1d8] sm:$0xff] }
 0x6a1   : > { %17197 = vmatpush3.bf16.msra.mxu0 %v20992_v40  ;;  %15629 = vmatprep.mubr.f32.mxu0 %v12559_v47  ;;  %v12641_v47 = vld [vmem:[%s24163_s5 + $0x1e0] sm:$0xff] }
 0x6a2   : > { %17199 = vmatprep.subr.bf16.mxu0 %v20996_v31 }
 0x6a4   : > { %15630 = vmatmul.mubr.f32.gmra.mrb[202].mxu0 %v12560_v10  ;;  %v12642_v10 = vld [vmem:[%s24163_s5 + $0x1e8] sm:$0xff] }
 0x6a5   : > { %17201 = vmatpush3.bf16.msra.mxu0 %v20996_v31  ;;  %15632 = vmatprep.mubr.f32.mxu0 %v12561_v30  ;;  %v12643_v30 = vld [vmem:[%s24163_s5 + $0x1f0] sm:$0xff] }
 0x6a6   : > { %17203 = vmatprep.subr.bf16.mxu0 %v21000_v61 }
 0x6a8   : > { %15633 = vmatmul.mubr.f32.gmra.mrb[204].mxu0 %v12562_v57  ;;  %v5487_v57 = vld [vmem:[#allocation7] sm:$0xff] }
 0x6a9   : > { %17205 = vmatpush3.bf16.msra.mxu0 %v21000_v61  ;;  %15635 = vmatprep.mubr.f32.mxu0 %v12563_v24  ;;  %v5488_v24 = vld [vmem:[#allocation7 + $0x8] sm:$0xff] }
 0x6aa   : > { %17207 = vmatprep.subr.bf16.mxu0 %v21004_v7 }
 0x6ac   : > { %15636 = vmatmul.mubr.f32.gmra.mrb[206].mxu0 %v12564_v23  ;;  %v17174_v23 = vpack.c.bf16 %v5488_v24, %v5487_v57 }
 0x6ad   : > { %17209 = vmatpush3.bf16.msra.mxu0 %v21004_v7  ;;  %15726 = vmatprep.mubr.f32.mxu0 %v12597_v53  ;;  %v12644_v53 = vld [vmem:[%s24163_s5 + $0x1f8] sm:$0xff] }
 0x6ae   : > { %17215 = vmatprep.subr.bf16.mxu0 %v20976_v19  ;;  %17175 = vmatprep.subr.bf16.mxu1 %v17174_v23 }
 0x6b0   : > { %15727 = vmatmul.mubr.f32.vlgmr.msra.gmra.mrb[208].mxu0 %v12598_v2 }
 0x6b1   : > { %17217 = vmatpush3.bf16.msra.mxu0 %v20976_v19  ;;  %15729 = vmatprep.mubr.f32.mxu0 %v12599_v48  ;;  %v12603_v19 = vld [vmem:[%s24163_s5 + $0x130] sm:$0xff] }
 0x6b2   : > { %17219 = vmatprep.subr.bf16.mxu0 %v20980_v29 }
 0x6b4   : > { %15730 = vmatmul.mubr.f32.gmra.mrb[210].mxu0 %v12600_v44 }
 0x6b5   : > { %17221 = vmatpush3.bf16.msra.mxu0 %v20980_v29  ;;  %15732 = vmatprep.mubr.f32.mxu0 %v12601_v41  ;;  %v12605_v29 = vld [vmem:[%s24163_s5 + $0x140] sm:$0xff] }
 0x6b6   : > { %17223 = vmatprep.subr.bf16.mxu0 %v20984_v60 }
 0x6b8   : > { %15733 = vmatmul.mubr.f32.gmra.mrb[212].mxu0 %v12602_v63 }
 0x6b9   : > { %17225 = vmatpush3.bf16.msra.mxu0 %v20984_v60  ;;  %15735 = vmatprep.mubr.f32.mxu0 %v12603_v19  ;;  %v12607_v60 = vld [vmem:[%s24163_s5 + $0x150] sm:$0xff] }
 0x6ba   : > { %17227 = vmatprep.subr.bf16.mxu0 %v20988_v9 }
 0x6bc   : > { %15736 = vmatmul.mubr.f32.gmra.mrb[214].mxu0 %v12604_v1 }
 0x6bd   : > { %17229 = vmatpush3.bf16.msra.mxu0 %v20988_v9  ;;  %15738 = vmatprep.mubr.f32.mxu0 %v12605_v29  ;;  %v12609_v9 = vld [vmem:[%s24163_s5 + $0x160] sm:$0xff] }
 0x6be   : > { %17231 = vmatprep.subr.bf16.mxu0 %v20992_v40 }
 0x6c0   : > { %15739 = vmatmul.mubr.f32.gmra.mrb[216].mxu0 %v12606_v0 }
 0x6c1   : > { %17233 = vmatpush3.bf16.msra.mxu0 %v20992_v40  ;;  %15741 = vmatprep.mubr.f32.mxu0 %v12607_v60  ;;  %v12610_v40 = vld [vmem:[%s24163_s5 + $0x168] sm:$0xff] }
 0x6c2   : > { %17235 = vmatprep.subr.bf16.mxu0 %v20996_v31 }
 0x6c4   : > { %15742 = vmatmul.mubr.f32.gmra.mrb[218].mxu0 %v12608_v14 }
 0x6c5   : > { %17237 = vmatpush3.bf16.msra.mxu0 %v20996_v31  ;;  %15744 = vmatprep.mubr.f32.mxu0 %v12609_v9  ;;  %v12612_v31 = vld [vmem:[%s24163_s5 + $0x178] sm:$0xff] }
 0x6c6   : > { %17239 = vmatprep.subr.bf16.mxu0 %v21000_v61 }
 0x6c8   : > { %15745 = vmatmul.mubr.f32.gmra.mrb[220].mxu0 %v12610_v40 }
 0x6c9   : > { %17241 = vmatpush3.bf16.msra.mxu0 %v21000_v61  ;;  %15747 = vmatprep.mubr.f32.mxu0 %v12611_v6  ;;  %v12631_v61 = vld [vmem:[%s24163_s5 + $0x190] sm:$0xff]  ;;  %v6203_v6 = vld [vmem:[#allocation7 + $0x20] sm:$0xff] }
 0x6ca   : > { %17243 = vmatprep.subr.bf16.mxu0 %v21004_v7 }
 0x6cc   : > { %15748 = vmatmul.mubr.f32.gmra.mrb[222].mxu0 %v12612_v31  ;;  %v6204_v31 = vld [vmem:[#allocation7 + $0x28] sm:$0xff] }
 0x6cd   : > { %17245 = vmatpush3.bf16.msra.mxu0 %v21004_v7  ;;  %15810 = vmatprep.mubr.f32.mxu0 %v12629_v51  ;;  %v12634_v7 = vld [vmem:[%s24163_s5 + $0x1a8] sm:$0xff] }
 0x6d0   : > { %15811 = vmatmul.mubr.f32.vlgmr.msra.gmra.mrb[224].mxu0 %v12630_v17 }
 0x6d1   : > { %15813 = vmatprep.mubr.f32.mxu0 %v12631_v61  ;;  %v17210_v61 = vpack.c.bf16 %v6204_v31, %v6203_v6 }
 0x6d4   : > { %15814 = vmatmul.mubr.f32.gmra.mrb[226].mxu0 %v12632_v38 }
 0x6d5   : > { %15816 = vmatprep.mubr.f32.mxu0 %v12633_v52 }
 0x6d8   : > { %15817 = vmatmul.mubr.f32.gmra.mrb[228].mxu0 %v12634_v7 }
 0x6d9   : > { %15819 = vmatprep.mubr.f32.mxu0 %v12635_v27 }
 0x6dc   : > { %15820 = vmatmul.mubr.f32.gmra.mrb[230].mxu0 %v12636_v55 }
 0x6dd   : > { %15822 = vmatprep.mubr.f32.mxu0 %v12637_v39 }
 0x6e0   : > { %15823 = vmatmul.mubr.f32.gmra.mrb[232].mxu0 %v12638_v56 }
 0x6e1   : > { %15825 = vmatprep.mubr.f32.mxu0 %v12639_v42 }
 0x6e4   : > { %15826 = vmatmul.mubr.f32.gmra.mrb[234].mxu0 %v12640_v46 }
 0x6e5   : > { %15828 = vmatprep.mubr.f32.mxu0 %v12641_v47 }
 0x6e8   : > { %15829 = vmatmul.mubr.f32.gmra.mrb[236].mxu0 %v12642_v10 }
 0x6e9   : > { %15831 = vmatprep.mubr.f32.mxu0 %v12643_v30 }
 0x6ec   : > { %15832 = vmatmul.mubr.f32.gmra.mrb[238].mxu0 %v12644_v53  ;;  %v6578_v53 = vld [vmem:[#allocation7 + $0x38] sm:$0xff] }
 0x743   : > { %v15560_v2 = vpop.f32.mrb[176].mxu0 }
 0x744   : > { %v5408_v48 = vpop.f32.mrb[177].mxu0 }
 0x747   : > { %v21245_v44 = vpop.f32.mrb[178].mxu0 }
 0x748   : > { %v5418_v41 = vpop.f32.mrb[179].mxu0 }
 0x74b   : > { %v21247_v63 = vpop.f32.mrb[180].mxu0 }
 0x74c   : > { %v5428_v19 = vpop.f32.mrb[181].mxu0 }
 0x74f   : > { %v21249_v1 = vpop.f32.mrb[182].mxu0 }
 0x750   : > { %v21251_v29 = vpop.f32.mrb[183].mxu0 }
 0x753   : > { %v21253_v0 = vpop.f32.mrb[184].mxu0 }
 0x754   : > { %v21255_v60 = vpop.f32.mrb[185].mxu0 }
 0x757   : > { %v21257_v14 = vpop.f32.mrb[186].mxu0 }
 0x758   : > { %v21259_v9 = vpop.f32.mrb[187].mxu0 }
 0x75b   : > { %v21261_v8 = vpop.f32.mrb[188].mxu0 }
 0x75c   : > { %v21263_v12 = vpop.f32.mrb[189].mxu0 }
 0x75f   : > { %v21265_v40 = vpop.f32.mrb[190].mxu0 }
 0x760   : > { %v21267_v4 = vpop.f32.mrb[191].mxu0 }
 0x763   : > { %v15616_v51 = vpop.f32.mrb[192].mxu0 }
 0x764   : > { %v5572_v17 = vpop.f32.mrb[193].mxu0 }
 0x765   : > { %15642 = vmatprep.mubr.msk.f32.mxu1 %vm707_vm0, %v5572_v17 }
 0x766   : > { %15643 = vmatmul.mubr.msk.f32.vlgmr.msra.gmra.mrb[56].mxu1 %vm707_vm0, %v15616_v51 }
 0x767   : > { %v15619_v38 = vpop.f32.mrb[194].mxu0  ;;  %17177 = vmatpush3.bf16.msra.mxu1 %v17174_v23  ;;  %v6577_v23 = vld [vmem:[#allocation7 + $0x30] sm:$0xff] }
 0x768   : > { %v5582_v52 = vpop.f32.mrb[195].mxu0  ;;  %17211 = vmatprep.subr.bf16.mxu1 %v17210_v61  ;;  %v17246_v51 = vpack.c.bf16 %v6578_v53, %v6577_v23 }
 0x769   : > { %15645 = vmatprep.mubr.msk.f32.mxu1 %vm707_vm0, %v5582_v52 }
 0x76a   : > { %15646 = vmatmul.mubr.msk.f32.gmra.mrb[58].mxu1 %vm707_vm0, %v15619_v38 }
 0x76b   : > { %v15622_v7 = vpop.f32.mrb[196].mxu0 }
 0x76c   : > { %v5592_v27 = vpop.f32.mrb[197].mxu0 }
 0x76d   : > { %15648 = vmatprep.mubr.msk.f32.mxu1 %vm707_vm0, %v5592_v27 }
 0x76e   : > { %15649 = vmatmul.mubr.msk.f32.gmra.mrb[60].mxu1 %vm707_vm0, %v15622_v7 }
 0x76f   : > { %v15625_v55 = vpop.f32.mrb[198].mxu0 }
 0x770   : > { %v5602_v39 = vpop.f32.mrb[199].mxu0 }
 0x771   : > { %15651 = vmatprep.mubr.msk.f32.mxu1 %vm707_vm0, %v5602_v39 }
 0x772   : > { %15652 = vmatmul.mubr.msk.f32.gmra.mrb[62].mxu1 %vm707_vm0, %v15625_v55 }
 0x773   : > { %v15628_v56 = vpop.f32.mrb[200].mxu0 }
 0x774   : > { %v5612_v42 = vpop.f32.mrb[201].mxu0 }
 0x775   : > { %15654 = vmatprep.mubr.msk.f32.mxu1 %vm707_vm0, %v5612_v42 }
 0x776   : > { %15655 = vmatmul.mubr.msk.f32.gmra.mrb[64].mxu1 %vm707_vm0, %v15628_v56 }
 0x777   : > { %v15631_v46 = vpop.f32.mrb[202].mxu0 }
 0x778   : > { %v5622_v47 = vpop.f32.mrb[203].mxu0 }
 0x779   : > { %15657 = vmatprep.mubr.msk.f32.mxu1 %vm707_vm0, %v5622_v47 }
 0x77a   : > { %15658 = vmatmul.mubr.msk.f32.gmra.mrb[66].mxu1 %vm707_vm0, %v15631_v46 }
 0x77b   : > { %v15634_v10 = vpop.f32.mrb[204].mxu0 }
 0x77c   : > { %v5632_v30 = vpop.f32.mrb[205].mxu0 }
 0x77d   : > { %15660 = vmatprep.mubr.msk.f32.mxu1 %vm707_vm0, %v5632_v30 }
 0x77e   : > { %15661 = vmatmul.mubr.msk.f32.gmra.mrb[68].mxu1 %vm707_vm0, %v15634_v10 }
 0x77f   : > { %v15637_v57 = vpop.f32.mrb[206].mxu0 }
 0x780   : > { %v5642_v24 = vpop.f32.mrb[207].mxu0 }
 0x781   : > { %15663 = vmatprep.mubr.msk.f32.mxu1 %vm707_vm0, %v5642_v24 }
 0x782   : > { %15664 = vmatmul.mubr.msk.f32.gmra.mrb[70].mxu1 %vm707_vm0, %v15637_v57 }
 0x783   : > { %15670 = vmatprep.mubr.msk.f32.mxu1 %vm707_vm0, %v5408_v48  ;;  %v15728_v6 = vpop.f32.mrb[208].mxu0 }
 0x784   : > { %v6123_v31 = vpop.f32.mrb[209].mxu0 }
 0x786   : > { %15671 = vmatmul.mubr.msk.f32.vlgmr.msra.gmra.mrb[56].mxu1 %vm707_vm0, %v15560_v2 }
 0x787   : > { %15673 = vmatprep.mubr.msk.f32.mxu1 %vm707_vm0, %v5418_v41  ;;  %17213 = vmatpush3.bf16.msra.mxu1 %v17210_v61  ;;  %v15731_v17 = vpop.f32.mrb[210].mxu0 }
 0x788   : > { %17247 = vmatprep.subr.bf16.mxu1 %v17246_v51  ;;  %v6133_v38 = vpop.f32.mrb[211].mxu0 }
 0x78a   : > { %15674 = vmatmul.mubr.msk.f32.gmra.mrb[58].mxu1 %vm707_vm0, %v21245_v44 }
 0x78b   : > { %15676 = vmatprep.mubr.msk.f32.mxu1 %vm707_vm0, %v5428_v19  ;;  %v15734_v52 = vpop.f32.mrb[212].mxu0 }
 0x78c   : > { %v6143_v7 = vpop.f32.mrb[213].mxu0 }
 0x78e   : > { %15677 = vmatmul.mubr.msk.f32.gmra.mrb[60].mxu1 %vm707_vm0, %v21247_v63 }
 0x78f   : > { %15679 = vmatprep.mubr.msk.f32.mxu1 %vm707_vm0, %v21251_v29  ;;  %v15737_v2 = vpop.f32.mrb[214].mxu0 }
 0x790   : > { %v6153_v48 = vpop.f32.mrb[215].mxu0 }
 0x792   : > { %15680 = vmatmul.mubr.msk.f32.gmra.mrb[62].mxu1 %vm707_vm0, %v21249_v1 }
 0x793   : > { %15682 = vmatprep.mubr.msk.f32.mxu1 %vm707_vm0, %v21255_v60  ;;  %v15740_v41 = vpop.f32.mrb[216].mxu0 }
 0x794   : > { %v6163_v44 = vpop.f32.mrb[217].mxu0 }
 0x796   : > { %15683 = vmatmul.mubr.msk.f32.gmra.mrb[64].mxu1 %vm707_vm0, %v21253_v0 }
 0x797   : > { %15685 = vmatprep.mubr.msk.f32.mxu1 %vm707_vm0, %v21259_v9  ;;  %v15743_v63 = vpop.f32.mrb[218].mxu0 }
 0x798   : > { %v6173_v19 = vpop.f32.mrb[219].mxu0 }
 0x79a   : > { %15686 = vmatmul.mubr.msk.f32.gmra.mrb[66].mxu1 %vm707_vm0, %v21257_v14 }
 0x79b   : > { %15688 = vmatprep.mubr.msk.f32.mxu1 %vm707_vm0, %v21263_v12  ;;  %v15746_v1 = vpop.f32.mrb[220].mxu0 }
 0x79c   : > { %v6183_v29 = vpop.f32.mrb[221].mxu0 }
 0x79e   : > { %15689 = vmatmul.mubr.msk.f32.gmra.mrb[68].mxu1 %vm707_vm0, %v21261_v8 }
 0x79f   : > { %15691 = vmatprep.mubr.msk.f32.mxu1 %vm707_vm0, %v21267_v4  ;;  %v15749_v0 = vpop.f32.mrb[222].mxu0 }
 0x7a0   : > { %v6193_v60 = vpop.f32.mrb[223].mxu0 }
 0x7a2   : > { %15692 = vmatmul.mubr.msk.f32.gmra.mrb[70].mxu1 %vm707_vm0, %v21265_v40 }
 0x7a3   : > { %15754 = vmatprep.mubr.msk.f32.mxu1 %vm707_vm0, %v6123_v31  ;;  %v15812_v9 = vpop.f32.mrb[224].mxu0 }
 0x7a4   : > { %v6497_v14 = vpop.f32.mrb[225].mxu0 }
 0x7a6   : > { %15755 = vmatmul.mubr.msk.f32.vlgmr.msra.gmra.mrb[56].mxu1 %vm707_vm0, %v15728_v6 }
 0x7a7   : > { %17249 = vmatpush3.bf16.msra.mxu1 %v17246_v51  ;;  %15757 = vmatprep.mubr.msk.f32.mxu1 %vm707_vm0, %v6133_v38  ;;  %v15815_v12 = vpop.f32.mrb[226].mxu0 }
 0x7a8   : > { %v6507_v61 = vpop.f32.mrb[227].mxu0  ;;  %17315 = vmatprep.subr.bf16.mxu1 %v19755_v20 }
 0x7aa   : > { %15758 = vmatmul.mubr.msk.f32.gmra.mrb[58].mxu1 %vm707_vm0, %v15731_v17 }
 0x7ab   : > { %15760 = vmatprep.mubr.msk.f32.mxu1 %vm707_vm0, %v6143_v7  ;;  %v15818_v8 = vpop.f32.mrb[228].mxu0 }
 0x7ac   : > { %v6517_v4 = vpop.f32.mrb[229].mxu0 }
 0x7ae   : > { %15761 = vmatmul.mubr.msk.f32.gmra.mrb[60].mxu1 %vm707_vm0, %v15734_v52 }
 0x7af   : > { %15763 = vmatprep.mubr.msk.f32.mxu1 %vm707_vm0, %v6153_v48  ;;  %v15821_v40 = vpop.f32.mrb[230].mxu0 }
 0x7b0   : > { %v6527_v27 = vpop.f32.mrb[231].mxu0 }
 0x7b2   : > { %15764 = vmatmul.mubr.msk.f32.gmra.mrb[62].mxu1 %vm707_vm0, %v15737_v2 }
 0x7b3   : > { %15766 = vmatprep.mubr.msk.f32.mxu1 %vm707_vm0, %v6163_v44  ;;  %v15824_v55 = vpop.f32.mrb[232].mxu0 }
 0x7b4   : > { %v6537_v39 = vpop.f32.mrb[233].mxu0 }
 0x7b6   : > { %15767 = vmatmul.mubr.msk.f32.gmra.mrb[64].mxu1 %vm707_vm0, %v15740_v41 }
 0x7b7   : > { %15769 = vmatprep.mubr.msk.f32.mxu1 %vm707_vm0, %v6173_v19  ;;  %v15827_v56 = vpop.f32.mrb[234].mxu0 }
 0x7b8   : > { %v6547_v42 = vpop.f32.mrb[235].mxu0 }
 0x7ba   : > { %15770 = vmatmul.mubr.msk.f32.gmra.mrb[66].mxu1 %vm707_vm0, %v15743_v63 }
 0x7bb   : > { %15772 = vmatprep.mubr.msk.f32.mxu1 %vm707_vm0, %v6183_v29  ;;  %v15830_v46 = vpop.f32.mrb[236].mxu0 }
 0x7bc   : > { %v6557_v47 = vpop.f32.mrb[237].mxu0 }
 0x7be   : > { %15773 = vmatmul.mubr.msk.f32.gmra.mrb[68].mxu1 %vm707_vm0, %v15746_v1 }
 0x7bf   : > { %15775 = vmatprep.mubr.msk.f32.mxu1 %vm707_vm0, %v6193_v60  ;;  %v15833_v10 = vpop.f32.mrb[238].mxu0 }
 0x7c0   : > { %v6567_v30 = vpop.f32.mrb[239].mxu0 }
 0x7c2   : > { %15776 = vmatmul.mubr.msk.f32.gmra.mrb[70].mxu1 %vm707_vm0, %v15749_v0 }
 0x7c3   : > { %15838 = vmatprep.mubr.msk.f32.mxu1 %vm707_vm0, %v6497_v14 }
 0x7c6   : > { %15839 = vmatmul.mubr.msk.f32.vlgmr.msra.gmra.mrb[56].mxu1 %vm707_vm0, %v15812_v9 }
 0x7c7   : > { %15841 = vmatprep.mubr.msk.f32.mxu1 %vm707_vm0, %v6507_v61  ;;  %17317 = vmatpush3.bf16.msra.mxu1 %v19755_v20  ;;  %v6916_v20 = vld [vmem:[%s24165_s7] sm:$0xff] }
 0x7c8   : > { %17319 = vmatprep.subr.bf16.mxu1 %v19765_v21  ;;  %15894 = vmatprep.mubr.f32.mxu0 %v6916_v20 }
 0x7ca   : > { %15842 = vmatmul.mubr.msk.f32.gmra.mrb[58].mxu1 %vm707_vm0, %v15815_v12 }
 0x7cb   : > { %15844 = vmatprep.mubr.msk.f32.mxu1 %vm707_vm0, %v6517_v4  ;;  %17321 = vmatpush3.bf16.msra.mxu1 %v19765_v21  ;;  %v6812_v21 = vpop.permute.xlu1 %6811 }
 0x7cc   : > { %17323 = vmatprep.subr.bf16.mxu1 %v19773_v28 }
 0x7ce   : > { %15845 = vmatmul.mubr.msk.f32.gmra.mrb[60].mxu1 %vm707_vm0, %v15818_v8 }
 0x7cf   : > { %15847 = vmatprep.mubr.msk.f32.mxu1 %vm707_vm0, %v6527_v27  ;;  %17325 = vmatpush3.bf16.msra.mxu1 %v19773_v28  ;;  %v6807_v28 = vpop.permute.xlu0 %6806 }
 0x7d0   : > { %17327 = vmatprep.subr.bf16.mxu1 %v19781_v34 }
 0x7d2   : > { %15848 = vmatmul.mubr.msk.f32.gmra.mrb[62].mxu1 %vm707_vm0, %v15821_v40 }
 0x7d3   : > { %15850 = vmatprep.mubr.msk.f32.mxu1 %vm707_vm0, %v6537_v39  ;;  %17329 = vmatpush3.bf16.msra.mxu1 %v19781_v34  ;;  %v6822_v34 = vpop.permute.xlu1 %6821  ;;  %v6817_v57 = vpop.permute.xlu0 %6816 }
 0x7d4   : > { %17331 = vmatprep.subr.bf16.mxu1 %v19758_v45 }
 0x7d6   : > { %15851 = vmatmul.mubr.msk.f32.gmra.mrb[64].mxu1 %vm707_vm0, %v15824_v55 }
 0x7d7   : > { %15853 = vmatprep.mubr.msk.f32.mxu1 %vm707_vm0, %v6547_v42  ;;  %v6832_v24 = vpop.permute.xlu1 %6831  ;;  %v6827_v23 = vpop.permute.xlu0 %6826 }
 0x7da   : > { %15854 = vmatmul.mubr.msk.f32.gmra.mrb[66].mxu1 %vm707_vm0, %v15827_v56 }
 0x7db   : > { %15856 = vmatprep.mubr.msk.f32.mxu1 %vm707_vm0, %v6557_v47  ;;  %v6842_v38 = vpop.permute.xlu1 %6841  ;;  %v6837_v2 = vpop.permute.xlu0 %6836 }
 0x7de   : > { %15857 = vmatmul.mubr.msk.f32.gmra.mrb[68].mxu1 %vm707_vm0, %v15830_v46 }
 0x7df   : > { %15859 = vmatprep.mubr.msk.f32.mxu1 %vm707_vm0, %v6567_v30  ;;  %v6852_v9 = vpop.permute.xlu1 %6851  ;;  %v6847_v61 = vpop.permute.xlu0 %6846 }
 0x7e2   : > { %15860 = vmatmul.mubr.msk.f32.gmra.mrb[70].mxu1 %vm707_vm0, %v15833_v10 }
 0x7e3   : > { %v6862_v46 = vpop.permute.xlu1 %6861  ;;  %v6857_v30 = vpop.permute.xlu0 %6856 }
 0x899   : > { %v15840_v53 = vpop.f32.mrb[56].mxu1 }
 0x89a   : > { %v6885_v6 = vadd.f32 %v15840_v53, %v6812_v21  ;;  %v6693_v31 = vpop.f32.mrb[57].mxu1 }
 0x89b   : > { %v6884_v51 = vadd.f32 %v6807_v28, %v6693_v31  ;;  %v6872_v31 = vpop.permute.xlu1 %6871 }
 0x89c   : > { %v6901_v17 = vmax.f32 %v6885_v6, 0.0 }
 0x89d   : > { %v6900_v52 = vmax.f32 %v6884_v51, 0.0  ;;  %v15843_v7 = vpop.f32.mrb[58].mxu1 }
 0x89e   : > { %v6887_v48 = vadd.f32 %v15843_v7, %v6822_v34  ;;  %v6703_v41 = vpop.f32.mrb[59].mxu1 }
 0x89f   : > { %v21357_v44 = vpack.c.bf16 %v6901_v17, %v6900_v52  ;;  %v6886_v63 = vadd.f32 %v6817_v57, %v6703_v41 }
 0x8a0   : > { %v6903_v19 = vmax.f32 %v6887_v48, 0.0 }
 0x8a1   : > { %v6902_v1 = vmax.f32 %v6886_v63, 0.0  ;;  %v15846_v29 = vpop.f32.mrb[60].mxu1  ;;  %17251 = vmatprep.subr.bf16.mxu0 %v21357_v44 }
 0x8a2   : > { %v6889_v0 = vadd.f32 %v15846_v29, %v6832_v24  ;;  %v6713_v60 = vpop.f32.mrb[61].mxu1  ;;  %17253 = vmatpush3.bf16.msra.mxu0 %v21357_v44  ;;  %v6882_v29 = vpop.permute.xlu1 %6881 }
 0x8a3   : > { %v21361_v14 = vpack.c.bf16 %v6903_v19, %v6902_v1  ;;  %v6888_v12 = vadd.f32 %v6827_v23, %v6713_v60 }
 0x8a4   : > { %v6905_v8 = vmax.f32 %v6889_v0, 0.0 }
 0x8a5   : > { %v6904_v4 = vmax.f32 %v6888_v12, 0.0  ;;  %v15849_v40 = vpop.f32.mrb[62].mxu1  ;;  %17255 = vmatprep.subr.bf16.mxu0 %v21361_v14 }
 0x8a6   : > { %v6891_v27 = vadd.f32 %v15849_v40, %v6842_v38  ;;  %v6723_v55 = vpop.f32.mrb[63].mxu1  ;;  %17257 = vmatpush3.bf16.msra.mxu0 %v21361_v14  ;;  %v6867_v38 = vpop.permute.xlu0 %6866 }
 0x8a7   : > { %v21365_v39 = vpack.c.bf16 %v6905_v8, %v6904_v4  ;;  %v6890_v56 = vadd.f32 %v6837_v2, %v6723_v55 }
 0x8a8   : > { %v6907_v42 = vmax.f32 %v6891_v27, 0.0 }
 0x8a9   : > { %v6906_v47 = vmax.f32 %v6890_v56, 0.0  ;;  %v15852_v10 = vpop.f32.mrb[64].mxu1  ;;  %17259 = vmatprep.subr.bf16.mxu0 %v21365_v39  ;;  %v6917_v56 = vld [vmem:[%s24165_s7 + $0x8] sm:$0xff] }
 0x8aa   : > { %v6893_v20 = vadd.f32 %v15852_v10, %v6852_v9  ;;  %v6733_v21 = vpop.f32.mrb[65].mxu1  ;;  %17261 = vmatpush3.bf16.msra.mxu0 %v21365_v39  ;;  %v6877_v9 = vpop.permute.xlu0 %6876  ;;  %v6921_v10 = vld [vmem:[%s24165_s7 + $0x28] sm:$0xff] }
 0x8ab   : > { %v21369_v28 = vpack.c.bf16 %v6907_v42, %v6906_v47  ;;  %v6892_v34 = vadd.f32 %v6847_v61, %v6733_v21  ;;  %v6918_v42 = vld [vmem:[%s24165_s7 + $0x10] sm:$0xff]  ;;  %v6920_v47 = vld [vmem:[%s24165_s7 + $0x20] sm:$0xff] }
 0x8ac   : > { %v6909_v57 = vmax.f32 %v6893_v20, 0.0  ;;  %v6923_v20 = vld [vmem:[%s24165_s7 + $0x38] sm:$0xff]  ;;  %v12661_v21 = vld [vmem:[%s24165_s7 + $0x40] sm:$0xff] }
 0x8ad   : > { %v6908_v24 = vmax.f32 %v6892_v34, 0.0  ;;  %v15855_v23 = vpop.f32.mrb[66].mxu1  ;;  %17263 = vmatprep.subr.bf16.mxu0 %v21369_v28  ;;  %v12662_v34 = vld [vmem:[%s24165_s7 + $0x48] sm:$0xff] }
 0x8ae   : > { %v6895_v53 = vadd.f32 %v15855_v23, %v6862_v46  ;;  %v6743_v6 = vpop.f32.mrb[67].mxu1  ;;  %17265 = vmatpush3.bf16.msra.mxu0 %v21369_v28  ;;  %v6919_v46 = vld [vmem:[%s24165_s7 + $0x18] sm:$0xff]  ;;  %v12665_v23 = vld [vmem:[%s24165_s7 + $0x60] sm:$0xff] }
 0x8af   : > { %v21373_v51 = vpack.c.bf16 %v6909_v57, %v6908_v24  ;;  %v6894_v17 = vadd.f32 %v6857_v30, %v6743_v6  ;;  %v6922_v30 = vld [vmem:[%s24165_s7 + $0x30] sm:$0xff]  ;;  %v12664_v24 = vld [vmem:[%s24165_s7 + $0x58] sm:$0xff] }
 0x8b0   : > { %v6911_v52 = vmax.f32 %v6895_v53, 0.0  ;;  %v12663_v57 = vld [vmem:[%s24165_s7 + $0x50] sm:$0xff]  ;;  %v12666_v53 = vld [vmem:[%s24165_s7 + $0x68] sm:$0xff] }
 0x8b1   : > { %v6910_v7 = vmax.f32 %v6894_v17, 0.0  ;;  %v15858_v2 = vpop.f32.mrb[68].mxu1  ;;  %17267 = vmatprep.subr.bf16.mxu0 %v21373_v51  ;;  %v12667_v6 = vld [vmem:[%s24165_s7 + $0x70] sm:$0xff]  ;;  %v12685_v17 = vld [vmem:[%s24165_s7 + $0x80] sm:$0xff] }
 0x8b2   : > { %v6897_v48 = vadd.f32 %v15858_v2, %v6872_v31  ;;  %v6753_v41 = vpop.f32.mrb[69].mxu1  ;;  %17269 = vmatpush3.bf16.msra.mxu0 %v21373_v51  ;;  %v12668_v31 = vld [vmem:[%s24165_s7 + $0x78] sm:$0xff]  ;;  %v12689_v2 = vld [vmem:[%s24165_s7 + $0xa0] sm:$0xff] }
 0x8b3   : > { %v21377_v63 = vpack.c.bf16 %v6911_v52, %v6910_v7  ;;  %v6896_v19 = vadd.f32 %v6867_v38, %v6753_v41  ;;  %v12686_v38 = vld [vmem:[%s24165_s7 + $0x88] sm:$0xff]  ;;  %v12687_v52 = vld [vmem:[%s24165_s7 + $0x90] sm:$0xff]  ;;  %v12688_v7 = vld [vmem:[%s24165_s7 + $0x98] sm:$0xff] }
 0x8b4   : > { %v6913_v1 = vmax.f32 %v6897_v48, 0.0  ;;  %v12690_v48 = vld [vmem:[%s24165_s7 + $0xa8] sm:$0xff]  ;;  %v12691_v41 = vld [vmem:[%s24165_s7 + $0xb0] sm:$0xff] }
 0x8b5   : > { %v6912_v0 = vmax.f32 %v6896_v19, 0.0  ;;  %v15861_v60 = vpop.f32.mrb[70].mxu1  ;;  %17271 = vmatprep.subr.bf16.mxu0 %v21377_v63  ;;  %v12692_v19 = vld [vmem:[%s24165_s7 + $0xb8] sm:$0xff] }
 0x8b6   : > { %v6899_v12 = vadd.f32 %v15861_v60, %v6882_v29  ;;  %v6763_v61 = vpop.f32.mrb[71].mxu1  ;;  %17273 = vmatpush3.bf16.msra.mxu0 %v21377_v63  ;;  %v12702_v29 = vld [vmem:[%s24165_s7 + $0xc8] sm:$0xff]  ;;  %v12704_v60 = vld [vmem:[%s24165_s7 + $0xd8] sm:$0xff] }
 0x8b7   : > { %v21381_v8 = vpack.c.bf16 %v6913_v1, %v6912_v0  ;;  %v6898_v4 = vadd.f32 %v6877_v9, %v6763_v61  ;;  %v12701_v1 = vld [vmem:[%s24165_s7 + $0xc0] sm:$0xff]  ;;  %v12703_v0 = vld [vmem:[%s24165_s7 + $0xd0] sm:$0xff] }
 0x8b8   : > { %v6915_v40 = vmax.f32 %v6899_v12, 0.0  ;;  %v12705_v9 = vld [vmem:[%s24165_s7 + $0xe0] sm:$0xff]  ;;  %v12706_v12 = vld [vmem:[%s24165_s7 + $0xe8] sm:$0xff]  ;;  %v12707_v61 = vld [vmem:[%s24165_s7 + $0xf0] sm:$0xff] }
 0x8b9   : > { %v6914_v27 = vmax.f32 %v6898_v4, 0.0  ;;  %17275 = vmatprep.subr.bf16.mxu0 %v21381_v8  ;;  %v12708_v4 = vld [vmem:[%s24165_s7 + $0xf8] sm:$0xff] }
 0x8ba   : > { %17277 = vmatpush3.bf16.msra.mxu0 %v21381_v8 }
 0x8bb   : > { %v21385_v55 = vpack.c.bf16 %v6915_v40, %v6914_v27  ;;  %v12733_v40 = vld [vmem:[%s24165_s7 + $0x140] sm:$0xff]  ;;  %v12734_v27 = vld [vmem:[%s24165_s7 + $0x148] sm:$0xff] }
 0x8bd   : > { %17279 = vmatprep.subr.bf16.mxu0 %v21385_v55 }
 0x8be   : > { %17281 = vmatpush3.bf16.msra.mxu0 %v21385_v55 }
 0x8bf   : > { %17283 = vmatprep.subr.bf16.mxu0 %v21357_v44 }
 0x8c1   : > { %15895 = vmatmul.mubr.f32.vlgmr.msra.gmra.mrb[240].mxu0 %v6917_v56  ;;  %v12735_v56 = vld [vmem:[%s24165_s7 + $0x150] sm:$0xff] }
 0x8c2   : > { %17285 = vmatpush3.bf16.msra.mxu0 %v21357_v44  ;;  %15897 = vmatprep.mubr.f32.mxu0 %v6918_v42  ;;  %v12736_v42 = vld [vmem:[%s24165_s7 + $0x158] sm:$0xff] }
 0x8c3   : > { %17287 = vmatprep.subr.bf16.mxu0 %v21361_v14 }
 0x8c5   : > { %15898 = vmatmul.mubr.f32.gmra.mrb[242].mxu0 %v6919_v46  ;;  %v12737_v46 = vld [vmem:[%s24165_s7 + $0x160] sm:$0xff] }
 0x8c6   : > { %17289 = vmatpush3.bf16.msra.mxu0 %v21361_v14  ;;  %15900 = vmatprep.mubr.f32.mxu0 %v6920_v47  ;;  %v12738_v47 = vld [vmem:[%s24165_s7 + $0x168] sm:$0xff] }
 0x8c7   : > { %17291 = vmatprep.subr.bf16.mxu0 %v21365_v39 }
 0x8c9   : > { %15901 = vmatmul.mubr.f32.gmra.mrb[244].mxu0 %v6921_v10  ;;  %v12739_v10 = vld [vmem:[%s24165_s7 + $0x170] sm:$0xff] }
 0x8ca   : > { %17293 = vmatpush3.bf16.msra.mxu0 %v21365_v39  ;;  %15903 = vmatprep.mubr.f32.mxu0 %v6922_v30  ;;  %v12740_v30 = vld [vmem:[%s24165_s7 + $0x178] sm:$0xff] }
 0x8cb   : > { %17295 = vmatprep.subr.bf16.mxu0 %v21369_v28 }
 0x8cd   : > { %15904 = vmatmul.mubr.f32.gmra.mrb[246].mxu0 %v6923_v20  ;;  %v12749_v20 = vld [vmem:[%s24165_s7 + $0x180] sm:$0xff] }
 0x8ce   : > { %17297 = vmatpush3.bf16.msra.mxu0 %v21369_v28  ;;  %15938 = vmatprep.mubr.f32.mxu0 %v12661_v21  ;;  %v12750_v21 = vld [vmem:[%s24165_s7 + $0x188] sm:$0xff] }
 0x8cf   : > { %17299 = vmatprep.subr.bf16.mxu0 %v21373_v51 }
 0x8d2   : > { %17301 = vmatpush3.bf16.msra.mxu0 %v21373_v51 }
 0x8d3   : > { %17303 = vmatprep.subr.bf16.mxu0 %v21377_v63 }
 0x8d6   : > { %17305 = vmatpush3.bf16.msra.mxu0 %v21377_v63 }
 0x8d7   : > { %17307 = vmatprep.subr.bf16.mxu0 %v21381_v8 }
 0x8da   : > { %17309 = vmatpush3.bf16.msra.mxu0 %v21381_v8 }
 0x8db   : > { %17311 = vmatprep.subr.bf16.mxu0 %v21385_v55 }
 0x8de   : > { %17313 = vmatpush3.bf16.msra.mxu0 %v21385_v55 }
 0x8df   : > { %17347 = vmatprep.subr.bf16.mxu0 %v21357_v44 }
 0x8e1   : > { %15939 = vmatmul.mubr.f32.vlgmr.msra.gmra.mrb[248].mxu0 %v12662_v34 }
 0x8e2   : > { %17349 = vmatpush3.bf16.msra.mxu0 %v21357_v44  ;;  %15941 = vmatprep.mubr.f32.mxu0 %v12663_v57 }
 0x8e3   : > { %17351 = vmatprep.subr.bf16.mxu0 %v21361_v14 }
 0x8e5   : > { %15942 = vmatmul.mubr.f32.gmra.mrb[250].mxu0 %v12664_v24 }
 0x8e6   : > { %17353 = vmatpush3.bf16.msra.mxu0 %v21361_v14  ;;  %15944 = vmatprep.mubr.f32.mxu0 %v12665_v23 }
 0x8e7   : > { %17355 = vmatprep.subr.bf16.mxu0 %v21365_v39 }
 0x8e9   : > { %15945 = vmatmul.mubr.f32.gmra.mrb[252].mxu0 %v12666_v53 }
 0x8ea   : > { %17357 = vmatpush3.bf16.msra.mxu0 %v21365_v39  ;;  %15947 = vmatprep.mubr.f32.mxu0 %v12667_v6 }
 0x8eb   : > { %17359 = vmatprep.subr.bf16.mxu0 %v21369_v28 }
 0x8ed   : > { %15948 = vmatmul.mubr.f32.gmra.mrb[254].mxu0 %v12668_v31 }
 0x8ee   : > { %17361 = vmatpush3.bf16.msra.mxu0 %v21369_v28  ;;  %16038 = vmatprep.mubr.f32.mxu0 %v12685_v17 }
 0x8ef   : > { %17363 = vmatprep.subr.bf16.mxu0 %v21373_v51 }
 0x8f2   : > { %17365 = vmatpush3.bf16.msra.mxu0 %v21373_v51 }
 0x8f3   : > { %17367 = vmatprep.subr.bf16.mxu0 %v21377_v63 }
 0x8f6   : > { %17369 = vmatpush3.bf16.msra.mxu0 %v21377_v63 }
 0x8f7   : > { %17371 = vmatprep.subr.bf16.mxu0 %v21381_v8 }
 0x8fa   : > { %17373 = vmatpush3.bf16.msra.mxu0 %v21381_v8 }
 0x8fb   : > { %17375 = vmatprep.subr.bf16.mxu0 %v21385_v55 }
 0x8fe   : > { %17377 = vmatpush3.bf16.msra.mxu0 %v21385_v55 }
 0x8ff   : > { %17395 = vmatprep.subr.bf16.mxu0 %v21357_v44 }
 0x901   : > { %16039 = vmatmul.mubr.f32.vlgmr.msra.gmra.mrb[0].mxu0 %v12686_v38  ;;  %v12751_v38 = vld [vmem:[%s24165_s7 + $0x190] sm:$0xff] }
 0x902   : > { %17397 = vmatpush3.bf16.msra.mxu0 %v21357_v44  ;;  %16041 = vmatprep.mubr.f32.mxu0 %v12687_v52  ;;  %v12752_v52 = vld [vmem:[%s24165_s7 + $0x198] sm:$0xff] }
 0x903   : > { %17399 = vmatprep.subr.bf16.mxu0 %v21361_v14 }
 0x905   : > { %16042 = vmatmul.mubr.f32.gmra.mrb[2].mxu0 %v12688_v7  ;;  %v12753_v7 = vld [vmem:[%s24165_s7 + $0x1a0] sm:$0xff] }
 0x906   : > { %17401 = vmatpush3.bf16.msra.mxu0 %v21361_v14  ;;  %16044 = vmatprep.mubr.f32.mxu0 %v12689_v2  ;;  %v12754_v2 = vld [vmem:[%s24165_s7 + $0x1a8] sm:$0xff] }
 0x907   : > { %17403 = vmatprep.subr.bf16.mxu0 %v21365_v39 }
 0x909   : > { %16045 = vmatmul.mubr.f32.gmra.mrb[4].mxu0 %v12690_v48  ;;  %v12755_v48 = vld [vmem:[%s24165_s7 + $0x1b0] sm:$0xff] }
 0x90a   : > { %17405 = vmatpush3.bf16.msra.mxu0 %v21365_v39  ;;  %16047 = vmatprep.mubr.f32.mxu0 %v12691_v41  ;;  %v12756_v41 = vld [vmem:[%s24165_s7 + $0x1b8] sm:$0xff] }
 0x90b   : > { %17407 = vmatprep.subr.bf16.mxu0 %v21369_v28 }
 0x90d   : > { %16048 = vmatmul.mubr.f32.gmra.mrb[6].mxu0 %v12692_v19  ;;  %v12765_v19 = vld [vmem:[%s24165_s7 + $0x1c0] sm:$0xff] }
 0x90e   : > { %17409 = vmatpush3.bf16.msra.mxu0 %v21369_v28  ;;  %16110 = vmatprep.mubr.f32.mxu0 %v12701_v1  ;;  %v12766_v1 = vld [vmem:[%s24165_s7 + $0x1c8] sm:$0xff] }
 0x90f   : > { %17411 = vmatprep.subr.bf16.mxu0 %v21373_v51 }
 0x912   : > { %17413 = vmatpush3.bf16.msra.mxu0 %v21373_v51 }
 0x913   : > { %17415 = vmatprep.subr.bf16.mxu0 %v21377_v63 }
 0x916   : > { %17417 = vmatpush3.bf16.msra.mxu0 %v21377_v63 }
 0x917   : > { %17419 = vmatprep.subr.bf16.mxu0 %v21381_v8 }
 0x91a   : > { %17421 = vmatpush3.bf16.msra.mxu0 %v21381_v8 }
 0x91b   : > { %17423 = vmatprep.subr.bf16.mxu0 %v21385_v55 }
 0x91e   : > { %17425 = vmatpush3.bf16.msra.mxu0 %v21385_v55 }
 0x91f   : > { %17491 = vmatprep.subr.bf16.mxu0 %v21357_v44 }
 0x921   : > { %16111 = vmatmul.mubr.f32.vlgmr.msra.gmra.mrb[8].mxu0 %v12702_v29  ;;  %v12767_v29 = vld [vmem:[%s24165_s7 + $0x1d0] sm:$0xff] }
 0x922   : > { %17493 = vmatpush3.bf16.msra.mxu0 %v21357_v44  ;;  %16113 = vmatprep.mubr.f32.mxu0 %v12703_v0  ;;  %v12768_v0 = vld [vmem:[%s24165_s7 + $0x1d8] sm:$0xff] }
 0x923   : > { %17495 = vmatprep.subr.bf16.mxu0 %v21361_v14 }
 0x925   : > { %16114 = vmatmul.mubr.f32.gmra.mrb[10].mxu0 %v12704_v60  ;;  %v12769_v60 = vld [vmem:[%s24165_s7 + $0x1e0] sm:$0xff] }
 0x926   : > { %17497 = vmatpush3.bf16.msra.mxu0 %v21361_v14  ;;  %16116 = vmatprep.mubr.f32.mxu0 %v12705_v9 }
 0x927   : > { %17499 = vmatprep.subr.bf16.mxu0 %v21365_v39 }
 0x929   : > { %16117 = vmatmul.mubr.f32.gmra.mrb[12].mxu0 %v12706_v12 }
 0x92a   : > { %17501 = vmatpush3.bf16.msra.mxu0 %v21365_v39  ;;  %16119 = vmatprep.mubr.f32.mxu0 %v12707_v61  ;;  %v12770_v61 = vld [vmem:[%s24165_s7 + $0x1e8] sm:$0xff] }
 0x92b   : > { %17503 = vmatprep.subr.bf16.mxu0 %v21369_v28 }
 0x92d   : > { %16120 = vmatmul.mubr.f32.gmra.mrb[14].mxu0 %v12708_v4  ;;  %v12771_v4 = vld [vmem:[%s24165_s7 + $0x1f0] sm:$0xff] }
 0x92e   : > { %17505 = vmatpush3.bf16.msra.mxu0 %v21369_v28  ;;  %16254 = vmatprep.mubr.f32.mxu0 %v12733_v40 }
 0x92f   : > { %17507 = vmatprep.subr.bf16.mxu0 %v21373_v51 }
 0x932   : > { %17509 = vmatpush3.bf16.msra.mxu0 %v21373_v51 }
 0x933   : > { %17511 = vmatprep.subr.bf16.mxu0 %v21377_v63 }
 0x936   : > { %17513 = vmatpush3.bf16.msra.mxu0 %v21377_v63 }
 0x937   : > { %17515 = vmatprep.subr.bf16.mxu0 %v21381_v8 }
 0x93a   : > { %17517 = vmatpush3.bf16.msra.mxu0 %v21381_v8 }
 0x93b   : > { %17519 = vmatprep.subr.bf16.mxu0 %v21385_v55 }
 0x93e   : > { %17521 = vmatpush3.bf16.msra.mxu0 %v21385_v55 }
 0x93f   : > { %17539 = vmatprep.subr.bf16.mxu0 %v21357_v44 }
 0x941   : > { %16255 = vmatmul.mubr.f32.vlgmr.msra.gmra.mrb[16].mxu0 %v12734_v27 }
 0x942   : > { %17541 = vmatpush3.bf16.msra.mxu0 %v21357_v44  ;;  %16257 = vmatprep.mubr.f32.mxu0 %v12735_v56  ;;  %v12772_v56 = vld [vmem:[%s24165_s7 + $0x1f8] sm:$0xff] }
 0x943   : > { %17543 = vmatprep.subr.bf16.mxu0 %v21361_v14 }
 0x945   : > { %16258 = vmatmul.mubr.f32.gmra.mrb[18].mxu0 %v12736_v42 }
 0x946   : > { %17545 = vmatpush3.bf16.msra.mxu0 %v21361_v14  ;;  %16260 = vmatprep.mubr.f32.mxu0 %v12737_v46 }
 0x947   : > { %17547 = vmatprep.subr.bf16.mxu0 %v21365_v39 }
 0x949   : > { %16261 = vmatmul.mubr.f32.gmra.mrb[20].mxu0 %v12738_v47 }
 0x94a   : > { %17549 = vmatpush3.bf16.msra.mxu0 %v21365_v39  ;;  %16263 = vmatprep.mubr.f32.mxu0 %v12739_v10 }
 0x94b   : > { %17551 = vmatprep.subr.bf16.mxu0 %v21369_v28 }
 0x94d   : > { %16264 = vmatmul.mubr.f32.gmra.mrb[22].mxu0 %v12740_v30 }
 0x94e   : > { %17553 = vmatpush3.bf16.msra.mxu0 %v21369_v28  ;;  %16326 = vmatprep.mubr.f32.mxu0 %v12749_v20 }
 0x94f   : > { %17555 = vmatprep.subr.bf16.mxu0 %v21373_v51 }
 0x952   : > { %17557 = vmatpush3.bf16.msra.mxu0 %v21373_v51 }
 0x953   : > { %17559 = vmatprep.subr.bf16.mxu0 %v21377_v63 }
 0x956   : > { %17561 = vmatpush3.bf16.msra.mxu0 %v21377_v63 }
 0x957   : > { %17563 = vmatprep.subr.bf16.mxu0 %v21381_v8 }
 0x95a   : > { %17565 = vmatpush3.bf16.msra.mxu0 %v21381_v8 }
 0x95b   : > { %17567 = vmatprep.subr.bf16.mxu0 %v21385_v55 }
 0x95e   : > { %17569 = vmatpush3.bf16.msra.mxu0 %v21385_v55 }
 0x95f   : > { %17587 = vmatprep.subr.bf16.mxu0 %v21357_v44 }
 0x961   : > { %16327 = vmatmul.mubr.f32.vlgmr.msra.gmra.mrb[24].mxu0 %v12750_v21 }
 0x962   : > { %17589 = vmatpush3.bf16.msra.mxu0 %v21357_v44  ;;  %16329 = vmatprep.mubr.f32.mxu0 %v12751_v38  ;;  %v12722_v38 = vld [vmem:[%s24165_s7 + $0x128] sm:$0xff] }
 0x963   : > { %17591 = vmatprep.subr.bf16.mxu0 %v21361_v14 }
 0x965   : > { %16330 = vmatmul.mubr.f32.gmra.mrb[26].mxu0 %v12752_v52  ;;  %v12723_v52 = vld [vmem:[%s24165_s7 + $0x130] sm:$0xff] }
 0x966   : > { %17593 = vmatpush3.bf16.msra.mxu0 %v21361_v14  ;;  %16332 = vmatprep.mubr.f32.mxu0 %v12753_v7 }
 0x967   : > { %17595 = vmatprep.subr.bf16.mxu0 %v21365_v39 }
 0x969   : > { %16333 = vmatmul.mubr.f32.gmra.mrb[28].mxu0 %v12754_v2 }
 0x96a   : > { %17597 = vmatpush3.bf16.msra.mxu0 %v21365_v39  ;;  %16335 = vmatprep.mubr.f32.mxu0 %v12755_v48 }
 0x96b   : > { %17599 = vmatprep.subr.bf16.mxu0 %v21369_v28 }
 0x96d   : > { %16336 = vmatmul.mubr.f32.gmra.mrb[30].mxu0 %v12756_v41 }
 0x96e   : > { %17601 = vmatpush3.bf16.msra.mxu0 %v21369_v28  ;;  %16398 = vmatprep.mubr.f32.mxu0 %v12765_v19 }
 0x96f   : > { %17603 = vmatprep.subr.bf16.mxu0 %v21373_v51 }
 0x972   : > { %17605 = vmatpush3.bf16.msra.mxu0 %v21373_v51 }
 0x973   : > { %17607 = vmatprep.subr.bf16.mxu0 %v21377_v63 }
 0x976   : > { %17609 = vmatpush3.bf16.msra.mxu0 %v21377_v63 }
 0x977   : > { %17611 = vmatprep.subr.bf16.mxu0 %v21381_v8 }
 0x97a   : > { %17613 = vmatpush3.bf16.msra.mxu0 %v21381_v8 }
 0x97b   : > { %17615 = vmatprep.subr.bf16.mxu0 %v21385_v55 }
 0x97e   : > { %17617 = vmatpush3.bf16.msra.mxu0 %v21385_v55 }
 0x981   : > { %16399 = vmatmul.mubr.f32.vlgmr.msra.gmra.mrb[32].mxu0 %v12766_v1 }
 0x982   : > { %16401 = vmatprep.mubr.f32.mxu0 %v12767_v29 }
 0x985   : > { %16402 = vmatmul.mubr.f32.gmra.mrb[34].mxu0 %v12768_v0 }
 0x986   : > { %16404 = vmatprep.mubr.f32.mxu0 %v12769_v60 }
 0x989   : > { %16405 = vmatmul.mubr.f32.gmra.mrb[36].mxu0 %v12770_v61 }
 0x98a   : > { %16407 = vmatprep.mubr.f32.mxu0 %v12771_v4 }
 0x98d   : > { %16408 = vmatmul.mubr.f32.gmra.mrb[38].mxu0 %v12772_v56 }
 0x994   : > { %v15896_v34 = vpop.f32.mrb[240].mxu0 }
 0x995   : > { %v6990_v57 = vpop.f32.mrb[241].mxu0 }
 0x998   : > { %v21608_v24 = vpop.f32.mrb[242].mxu0 }
 0x999   : > { %v7000_v23 = vpop.f32.mrb[243].mxu0 }
 0x99c   : > { %v21610_v53 = vpop.f32.mrb[244].mxu0 }
 0x99d   : > { %v7010_v6 = vpop.f32.mrb[245].mxu0 }
 0x9a0   : > { %v21612_v31 = vpop.f32.mrb[246].mxu0 }
 0x9a1   : > { %v21614_v17 = vpop.f32.mrb[247].mxu0 }
 0x9b4   : > { %v15940_v9 = vpop.f32.mrb[248].mxu0 }
 0x9b5   : > { %v7104_v12 = vpop.f32.mrb[249].mxu0 }
 0x9b6   : > { %15966 = vmatprep.mubr.msk.f32.mxu1 %vm1460_vm1, %v7104_v12 }
 0x9b7   : > { %15967 = vmatmul.mubr.msk.f32.vlgmr.msra.gmra.mrb[72].mxu1 %vm1460_vm1, %v15940_v9 }
 0x9b8   : > { %17333 = vmatpush3.bf16.msra.mxu1 %v19758_v45  ;;  %v15943_v40 = vpop.f32.mrb[250].mxu0 }
 0x9b9   : > { %v7114_v27 = vpop.f32.mrb[251].mxu0  ;;  %17335 = vmatprep.subr.bf16.mxu1 %v19763_v18 }
 0x9ba   : > { %15969 = vmatprep.mubr.msk.f32.mxu1 %vm1460_vm1, %v7114_v27 }
 0x9bb   : > { %15970 = vmatmul.mubr.msk.f32.gmra.mrb[74].mxu1 %vm1460_vm1, %v15943_v40 }
 0x9bc   : > { %17337 = vmatpush3.bf16.msra.mxu1 %v19763_v18  ;;  %v15946_v42 = vpop.f32.mrb[252].mxu0 }
 0x9bd   : > { %v7124_v46 = vpop.f32.mrb[253].mxu0  ;;  %17339 = vmatprep.subr.bf16.mxu1 %v19771_v25 }
 0x9be   : > { %15972 = vmatprep.mubr.msk.f32.mxu1 %vm1460_vm1, %v7124_v46 }
 0x9bf   : > { %15973 = vmatmul.mubr.msk.f32.gmra.mrb[76].mxu1 %vm1460_vm1, %v15946_v42 }
 0x9c0   : > { %17341 = vmatpush3.bf16.msra.mxu1 %v19771_v25  ;;  %v15949_v45 = vpop.f32.mrb[254].mxu0 }
 0x9c1   : > { %v7134_v47 = vpop.f32.mrb[255].mxu0  ;;  %17343 = vmatprep.subr.bf16.mxu1 %v19779_v32 }
 0x9c2   : > { %15975 = vmatprep.mubr.msk.f32.mxu1 %vm1460_vm1, %v7134_v47 }
 0x9c3   : > { %15976 = vmatmul.mubr.msk.f32.gmra.mrb[78].mxu1 %vm1460_vm1, %v15949_v45 }
 0x9c4   : > { %17345 = vmatpush3.bf16.msra.mxu1 %v19779_v32  ;;  %15994 = vmatprep.mubr.msk.f32.mxu1 %vm1460_vm1, %v6990_v57  ;;  %v12717_v57 = vld [vmem:[%s24165_s7 + $0x100] sm:$0xff] }
 0x9c5   : > { %17379 = vmatprep.subr.bf16.mxu1 %v19787_v37 }
 0x9c7   : > { %15995 = vmatmul.mubr.msk.f32.vlgmr.msra.gmra.mrb[72].mxu1 %vm1460_vm1, %v15896_v34 }
 0x9c8   : > { %17381 = vmatpush3.bf16.msra.mxu1 %v19787_v37  ;;  %15997 = vmatprep.mubr.msk.f32.mxu1 %vm1460_vm1, %v7000_v23 }
 0x9c9   : > { %17383 = vmatprep.subr.bf16.mxu1 %v19837_v15 }
 0x9cb   : > { %15998 = vmatmul.mubr.msk.f32.gmra.mrb[74].mxu1 %vm1460_vm1, %v21608_v24  ;;  %v12718_v24 = vld [vmem:[%s24165_s7 + $0x108] sm:$0xff] }
 0x9cc   : > { %17385 = vmatpush3.bf16.msra.mxu1 %v19837_v15  ;;  %16000 = vmatprep.mubr.msk.f32.mxu1 %vm1460_vm1, %v7010_v6 }
 0x9cd   : > { %17387 = vmatprep.subr.bf16.mxu1 %v19850_v33 }
 0x9cf   : > { %16001 = vmatmul.mubr.msk.f32.gmra.mrb[76].mxu1 %vm1460_vm1, %v21610_v53  ;;  %v12719_v53 = vld [vmem:[%s24165_s7 + $0x110] sm:$0xff] }
 0x9d0   : > { %17389 = vmatpush3.bf16.msra.mxu1 %v19850_v33  ;;  %16003 = vmatprep.mubr.msk.f32.mxu1 %vm1460_vm1, %v21614_v17  ;;  %v12721_v17 = vld [vmem:[%s24165_s7 + $0x120] sm:$0xff] }
 0x9d1   : > { %17391 = vmatprep.subr.bf16.mxu1 %v19863_v49 }
 0x9d3   : > { %16004 = vmatmul.mubr.msk.f32.gmra.mrb[78].mxu1 %vm1460_vm1, %v21612_v31  ;;  %v12720_v31 = vld [vmem:[%s24165_s7 + $0x118] sm:$0xff] }
 0x9d4   : > { %17393 = vmatpush3.bf16.msra.mxu1 %v19863_v49  ;;  %v16040_v18 = vpop.f32.mrb[0].mxu0 }
 0x9d5   : > { %v7476_v25 = vpop.f32.mrb[1].mxu0  ;;  %17427 = vmatprep.subr.bf16.mxu1 %v19876_v62 }
 0x9d6   : > { %16066 = vmatprep.mubr.msk.f32.mxu1 %vm1460_vm1, %v7476_v25 }
 0x9d7   : > { %16067 = vmatmul.mubr.msk.f32.vlgmr.msra.gmra.mrb[72].mxu1 %vm1460_vm1, %v16040_v18 }
 0x9d8   : > { %17429 = vmatpush3.bf16.msra.mxu1 %v19876_v62  ;;  %v16043_v32 = vpop.f32.mrb[2].mxu0 }
 0x9d9   : > { %17431 = vmatprep.subr.bf16.mxu1 %v19913_v36  ;;  %v7486_v37 = vpop.f32.mrb[3].mxu0 }
 0x9da   : > { %16069 = vmatprep.mubr.msk.f32.mxu1 %vm1460_vm1, %v7486_v37 }
 0x9db   : > { %16070 = vmatmul.mubr.msk.f32.gmra.mrb[74].mxu1 %vm1460_vm1, %v16043_v32 }
 0x9dc   : > { %17433 = vmatpush3.bf16.msra.mxu1 %v19913_v36  ;;  %v16046_v15 = vpop.f32.mrb[4].mxu0 }
 0x9dd   : > { %17435 = vmatprep.subr.bf16.mxu1 %v19921_v22  ;;  %v7496_v33 = vpop.f32.mrb[5].mxu0 }
 0x9de   : > { %16072 = vmatprep.mubr.msk.f32.mxu1 %vm1460_vm1, %v7496_v33 }
 0x9df   : > { %16073 = vmatmul.mubr.msk.f32.gmra.mrb[76].mxu1 %vm1460_vm1, %v16046_v15 }
 0x9e0   : > { %17437 = vmatpush3.bf16.msra.mxu1 %v19921_v22  ;;  %v16049_v49 = vpop.f32.mrb[6].mxu0 }
 0x9e1   : > { %17439 = vmatprep.subr.bf16.mxu1 %v19929_v59  ;;  %v7506_v62 = vpop.f32.mrb[7].mxu0 }
 0x9e2   : > { %16075 = vmatprep.mubr.msk.f32.mxu1 %vm1460_vm1, %v7506_v62  ;;  %v12788_v62 = vld [vmem:[%s24165_s7 + $0x238] sm:$0xff] }
 0x9e3   : > { %16076 = vmatmul.mubr.msk.f32.gmra.mrb[78].mxu1 %vm1460_vm1, %v16049_v49  ;;  %v24241_v49 = vld [vmem:[#allocation18_spill] sm:$0xff] }
 0x9e4   : > { %17441 = vmatpush3.bf16.msra.mxu1 %v19929_v59 }
 0x9e5   : > { %17443 = vmatprep.subr.bf16.mxu1 %v21357_v44 }
 0x9f4   : > { %v16112_v36 = vpop.f32.mrb[8].mxu0 }
 0x9f5   : > { %v7727_v10 = vpop.f32.mrb[9].mxu0 }
 0x9f6   : > { %16138 = vmatprep.mubr.msk.f32.mxu1 %vm1460_vm1, %v7727_v10 }
 0x9f7   : > { %16139 = vmatmul.mubr.msk.f32.vlgmr.msra.gmra.mrb[72].mxu1 %vm1460_vm1, %v16112_v36  ;;  %v24242_v36 = vld [vmem:[#allocation19_spill] sm:$0xff] }
 0x9f8   : > { %17445 = vmatpush3.bf16.msra.mxu1 %v21357_v44  ;;  %v16115_v22 = vpop.f32.mrb[10].mxu0 }
 0x9f9   : > { %17447 = vmatprep.subr.bf16.mxu1 %v21361_v14  ;;  %v7737_v30 = vpop.f32.mrb[11].mxu0 }
 0x9fa   : > { %16141 = vmatprep.mubr.msk.f32.mxu1 %vm1460_vm1, %v7737_v30 }
 0x9fb   : > { %16142 = vmatmul.mubr.msk.f32.gmra.mrb[74].mxu1 %vm1460_vm1, %v16115_v22 }
 0x9fc   : > { %17449 = vmatpush3.bf16.msra.mxu1 %v21361_v14  ;;  %v16118_v59 = vpop.f32.mrb[12].mxu0 }
 0x9fd   : > { %17451 = vmatprep.subr.bf16.mxu1 %v21365_v39  ;;  %v7747_v20 = vpop.f32.mrb[13].mxu0 }
 0x9fe   : > { %16144 = vmatprep.mubr.msk.f32.mxu1 %vm1460_vm1, %v7747_v20 }
 0x9ff   : > { %16145 = vmatmul.mubr.msk.f32.gmra.mrb[76].mxu1 %vm1460_vm1, %v16118_v59 }
 0xa00   : > { %17453 = vmatpush3.bf16.msra.mxu1 %v21365_v39  ;;  %v16121_v21 = vpop.f32.mrb[14].mxu0 }
 0xa01   : > { %17455 = vmatprep.subr.bf16.mxu1 %v21369_v28  ;;  %v7757_v34 = vpop.f32.mrb[15].mxu0 }
 0xa02   : > { %16147 = vmatprep.mubr.msk.f32.mxu1 %vm1460_vm1, %v7757_v34 }
 0xa03   : > { %16148 = vmatmul.mubr.msk.f32.gmra.mrb[78].mxu1 %vm1460_vm1, %v16121_v21 }
 0xa04   : > { %17457 = vmatpush3.bf16.msra.mxu1 %v21369_v28  ;;  %16182 = vmatprep.mubr.f32.mxu1 %v12717_v57 }
 0xa05   : > { %17459 = vmatprep.subr.bf16.mxu1 %v21373_v51 }
 0xa08   : > { %17461 = vmatpush3.bf16.msra.mxu1 %v21373_v51 }
 0xa09   : > { %17463 = vmatprep.subr.bf16.mxu1 %v21377_v63 }
 0xa0c   : > { %17465 = vmatpush3.bf16.msra.mxu1 %v21377_v63 }
 0xa0d   : > { %17467 = vmatprep.subr.bf16.mxu1 %v21381_v8 }
 0xa10   : > { %17469 = vmatpush3.bf16.msra.mxu1 %v21381_v8 }
 0xa11   : > { %17471 = vmatprep.subr.bf16.mxu1 %v21385_v55 }
 0xa14   : > { %17473 = vmatpush3.bf16.msra.mxu1 %v21385_v55  ;;  %v21739_v23 = vpop.f32.mrb[16].mxu0 }
 0xa15   : > { %v21744_v6 = vpop.f32.mrb[17].mxu0  ;;  %17475 = vmatprep.subr.bf16.mxu1 %v19937_v35 }
 0xa17   : > { %16183 = vmatmul.mubr.f32.vlgmr.msra.gmra.mrb[80].mxu1 %v12718_v24  ;;  %v9222_v24 = vld [vmem:[%s24167_s9] sm:$0xff] }
 0xa18   : > { %16185 = vmatprep.mubr.f32.mxu1 %v12719_v53  ;;  %17477 = vmatpush3.bf16.msra.mxu1 %v19937_v35  ;;  %v12724_v35 = vld [vmem:[%s24165_s7 + $0x138] sm:$0xff]  ;;  %v9174_v53 = vpop.permute.xlu1 %9173 }
 0xa19   : > { %17479 = vmatprep.subr.bf16.mxu1 %v19945_v43  ;;  %16526 = vmatprep.mubr.msk.f32.mxu0 %vm1460_vm1, %v9222_v24  ;;  %v12811_v24 = vld [vmem:[%s24167_s9 + $0x70] sm:$0xff] }
 0xa1b   : > { %16186 = vmatmul.mubr.f32.gmra.mrb[82].mxu1 %v12720_v31 }
 0xa1c   : > { %16188 = vmatprep.mubr.f32.mxu1 %v12721_v17  ;;  %17481 = vmatpush3.bf16.msra.mxu1 %v19945_v43  ;;  %v16259_v43 = vpop.f32.mrb[18].mxu0  ;;  %v9184_v31 = vpop.permute.xlu1 %9183 }
 0xa1d   : > { %17483 = vmatprep.subr.bf16.mxu1 %v19953_v5  ;;  %v8239_v7 = vpop.f32.mrb[19].mxu0 }
 0xa1e   : > { %v16262_v2 = vpop.f32.mrb[20].mxu0 }
 0xa1f   : > { %16189 = vmatmul.mubr.f32.gmra.mrb[84].mxu1 %v12722_v38  ;;  %v8249_v48 = vpop.f32.mrb[21].mxu0 }
 0xa20   : > { %16191 = vmatprep.mubr.f32.mxu1 %v12723_v52  ;;  %17485 = vmatpush3.bf16.msra.mxu1 %v19953_v5  ;;  %v16265_v41 = vpop.f32.mrb[22].mxu0 }
 0xa21   : > { %17487 = vmatprep.subr.bf16.mxu1 %v19961_v50  ;;  %v8259_v19 = vpop.f32.mrb[23].mxu0 }
 0xa23   : > { %16192 = vmatmul.mubr.f32.gmra.mrb[86].mxu1 %v12724_v35 }
 0xa24   : > { %17489 = vmatpush3.bf16.msra.mxu1 %v19961_v50 }
 0xa25   : > { %17523 = vmatprep.subr.bf16.mxu1 %v19969_v54 }
 0xa34   : > { %v16328_v1 = vpop.f32.mrb[24].mxu0 }
 0xa35   : > { %v8480_v29 = vpop.f32.mrb[25].mxu0 }
 0xa38   : > { %v16331_v0 = vpop.f32.mrb[26].mxu0 }
 0xa39   : > { %v8490_v60 = vpop.f32.mrb[27].mxu0 }
 0xa3c   : > { %v16334_v9 = vpop.f32.mrb[28].mxu0 }
 0xa3d   : > { %v8500_v12 = vpop.f32.mrb[29].mxu0 }
 0xa40   : > { %v21770_v5 = vpop.f32.mrb[30].mxu0 }
 0xa41   : > { %v8510_v61 = vpop.f32.mrb[31].mxu0 }
 0xa54   : > { %v21772_v4 = vpop.f32.mrb[32].mxu0 }
 0xa55   : > { %v8731_v50 = vpop.f32.mrb[33].mxu0 }
 0xa58   : > { %v21774_v40 = vpop.f32.mrb[34].mxu0 }
 0xa59   : > { %v21776_v27 = vpop.f32.mrb[35].mxu0 }
 0xa5c   : > { %v21778_v56 = vpop.f32.mrb[36].mxu0 }
 0xa5d   : > { %v21780_v42 = vpop.f32.mrb[37].mxu0 }
 0xa60   : > { %v21782_v46 = vpop.f32.mrb[38].mxu0 }
 0xa61   : > { %v21784_v45 = vpop.f32.mrb[39].mxu0 }
 0xaea   : > { %v16184_v47 = vpop.f32.mrb[80].mxu1 }
 0xaeb   : > { %v7978_v18 = vpop.f32.mrb[81].mxu1 }
 0xaec   : > { %16210 = vmatprep.mubr.msk.f32.mxu1 %vm1460_vm1, %v7978_v18 }
 0xaed   : > { %16211 = vmatmul.mubr.msk.f32.vlgmr.msra.gmra.mrb[72].mxu1 %vm1460_vm1, %v16184_v47 }
 0xaee   : > { %17525 = vmatpush3.bf16.msra.mxu1 %v19969_v54  ;;  %v16187_v25 = vpop.f32.mrb[82].mxu1 }
 0xaef   : > { %v7988_v32 = vpop.f32.mrb[83].mxu1  ;;  %17527 = vmatprep.subr.bf16.mxu1 %v19977_v13 }
 0xaf0   : > { %16213 = vmatprep.mubr.msk.f32.mxu1 %vm1460_vm1, %v7988_v32 }
 0xaf1   : > { %16214 = vmatmul.mubr.msk.f32.gmra.mrb[74].mxu1 %vm1460_vm1, %v16187_v25 }
 0xaf2   : > { %17529 = vmatpush3.bf16.msra.mxu1 %v19977_v13  ;;  %v16190_v37 = vpop.f32.mrb[84].mxu1  ;;  %v24234_v13 = vld [vmem:[#allocation11_spill] sm:$0xff] }
 0xaf3   : > { %v7998_v15 = vpop.f32.mrb[85].mxu1  ;;  %17531 = vmatprep.subr.bf16.mxu1 %v19985_v3 }
 0xaf4   : > { %16216 = vmatprep.mubr.msk.f32.mxu1 %vm1460_vm1, %v7998_v15 }
 0xaf5   : > { %16217 = vmatmul.mubr.msk.f32.gmra.mrb[76].mxu1 %vm1460_vm1, %v16190_v37 }
 0xaf6   : > { %17533 = vmatpush3.bf16.msra.mxu1 %v19985_v3  ;;  %v16193_v54 = vpop.f32.mrb[86].mxu1  ;;  %v24235_v3 = vld [vmem:[#allocation12_spill] sm:$0xff] }
 0xaf7   : > { %v8008_v33 = vpop.f32.mrb[87].mxu1  ;;  %17535 = vmatprep.subr.bf16.mxu1 %v19993_v11 }
 0xaf8   : > { %16219 = vmatprep.mubr.msk.f32.mxu1 %vm1460_vm1, %v8008_v33  ;;  %v9223_v33 = vld [vmem:[%s24167_s9 + $0x8] sm:$0xff] }
 0xaf9   : > { %16220 = vmatmul.mubr.msk.f32.gmra.mrb[78].mxu1 %vm1460_vm1, %v16193_v54 }
 0xafa   : > { %17537 = vmatpush3.bf16.msra.mxu1 %v19993_v11  ;;  %16282 = vmatprep.mubr.msk.f32.mxu1 %vm1460_vm1, %v21744_v6  ;;  %v24236_v11 = vld [vmem:[#allocation13_spill] sm:$0xff]  ;;  %v9169_v6 = vpop.permute.xlu0 %9168 }
 0xafb   : > { %17571 = vmatprep.subr.bf16.mxu1 %v20001_v58 }
 0xafd   : > { %16283 = vmatmul.mubr.msk.f32.vlgmr.msra.gmra.mrb[72].mxu1 %vm1460_vm1, %v21739_v23  ;;  %v12853_v23 = vld [vmem:[%s24167_s9 + $0x80] sm:$0xff] }
 0xafe   : > { %17573 = vmatpush3.bf16.msra.mxu1 %v20001_v58  ;;  %16285 = vmatprep.mubr.msk.f32.mxu1 %vm1460_vm1, %v8239_v7  ;;  %v24237_v58 = vld [vmem:[#allocation14_spill] sm:$0xff]  ;;  %v9179_v38 = vpop.permute.xlu0 %9178 }
 0xaff   : > { %17575 = vmatprep.subr.bf16.mxu1 %v20009_v26 }
 0xb01   : > { %16286 = vmatmul.mubr.msk.f32.gmra.mrb[74].mxu1 %vm1460_vm1, %v16259_v43 }
 0xb02   : > { %17577 = vmatpush3.bf16.msra.mxu1 %v20009_v26  ;;  %16288 = vmatprep.mubr.msk.f32.mxu1 %vm1460_vm1, %v8249_v48  ;;  %v24238_v26 = vld [vmem:[#allocation15_spill] sm:$0xff] }
 0xb03   : > { %17579 = vmatprep.subr.bf16.mxu1 %v20017_v16 }
 0xb05   : > { %16289 = vmatmul.mubr.msk.f32.gmra.mrb[76].mxu1 %vm1460_vm1, %v16262_v2 }
 0xb06   : > { %17581 = vmatpush3.bf16.msra.mxu1 %v20017_v16  ;;  %16291 = vmatprep.mubr.msk.f32.mxu1 %vm1460_vm1, %v8259_v19  ;;  %v12781_v16 = vld [vmem:[%s24165_s7 + $0x200] sm:$0xff] }
 0xb07   : > { %17583 = vmatprep.subr.bf16.mxu1 %v24234_v13 }
 0xb09   : > { %16292 = vmatmul.mubr.msk.f32.gmra.mrb[78].mxu1 %vm1460_vm1, %v16265_v41 }
 0xb0a   : > { %17585 = vmatpush3.bf16.msra.mxu1 %v24234_v13  ;;  %16354 = vmatprep.mubr.msk.f32.mxu1 %vm1460_vm1, %v8480_v29  ;;  %v12854_v13 = vld [vmem:[%s24167_s9 + $0x88] sm:$0xff] }
 0xb0b   : > { %17619 = vmatprep.subr.bf16.mxu1 %v24235_v3 }
 0xb0d   : > { %16355 = vmatmul.mubr.msk.f32.vlgmr.msra.gmra.mrb[72].mxu1 %vm1460_vm1, %v16328_v1  ;;  %v9194_v1 = vpop.permute.xlu1 %9193 }
 0xb0e   : > { %17621 = vmatpush3.bf16.msra.mxu1 %v24235_v3  ;;  %16357 = vmatprep.mubr.msk.f32.mxu1 %vm1460_vm1, %v8490_v60  ;;  %v9189_v60 = vpop.permute.xlu0 %9188  ;;  %v9224_v3 = vld [vmem:[%s24167_s9 + $0x10] sm:$0xff] }
 0xb0f   : > { %17623 = vmatprep.subr.bf16.mxu1 %v24236_v11 }
 0xb11   : > { %16358 = vmatmul.mubr.msk.f32.gmra.mrb[74].mxu1 %vm1460_vm1, %v16331_v0 }
 0xb12   : > { %17625 = vmatpush3.bf16.msra.mxu1 %v24236_v11  ;;  %16360 = vmatprep.mubr.msk.f32.mxu1 %vm1460_vm1, %v8500_v12  ;;  %v12855_v11 = vld [vmem:[%s24167_s9 + $0x90] sm:$0xff] }
 0xb13   : > { %17627 = vmatprep.subr.bf16.mxu1 %v24237_v58 }
 0xb15   : > { %16361 = vmatmul.mubr.msk.f32.gmra.mrb[76].mxu1 %vm1460_vm1, %v16334_v9 }
 0xb16   : > { %17629 = vmatpush3.bf16.msra.mxu1 %v24237_v58  ;;  %16363 = vmatprep.mubr.msk.f32.mxu1 %vm1460_vm1, %v8510_v61  ;;  %v9225_v58 = vld [vmem:[%s24167_s9 + $0x18] sm:$0xff] }
 0xb17   : > { %17631 = vmatprep.subr.bf16.mxu1 %v24238_v26 }
 0xb19   : > { %16364 = vmatmul.mubr.msk.f32.gmra.mrb[78].mxu1 %vm1460_vm1, %v21770_v5 }
 0xb1a   : > { %17633 = vmatpush3.bf16.msra.mxu1 %v24238_v26  ;;  %16426 = vmatprep.mubr.msk.f32.mxu1 %vm1460_vm1, %v8731_v50  ;;  %v12856_v26 = vld [vmem:[%s24167_s9 + $0x98] sm:$0xff] }
 0xb1b   : > { %17635 = vmatprep.subr.bf16.mxu1 %v21357_v44 }
 0xb1d   : > { %16427 = vmatmul.mubr.msk.f32.vlgmr.msra.gmra.mrb[72].mxu1 %vm1460_vm1, %v21772_v4 }
 0xb1e   : > { %17637 = vmatpush3.bf16.msra.mxu1 %v21357_v44  ;;  %16429 = vmatprep.mubr.msk.f32.mxu1 %vm1460_vm1, %v21776_v27  ;;  %v12782_v44 = vld [vmem:[%s24165_s7 + $0x208] sm:$0xff] }
 0xb1f   : > { %17639 = vmatprep.subr.bf16.mxu1 %v21361_v14 }
 0xb21   : > { %16430 = vmatmul.mubr.msk.f32.gmra.mrb[74].mxu1 %vm1460_vm1, %v21774_v40 }
 0xb22   : > { %17641 = vmatpush3.bf16.msra.mxu1 %v21361_v14  ;;  %16432 = vmatprep.mubr.msk.f32.mxu1 %vm1460_vm1, %v21780_v42  ;;  %v12783_v14 = vld [vmem:[%s24165_s7 + $0x210] sm:$0xff] }
 0xb23   : > { %17643 = vmatprep.subr.bf16.mxu1 %v21365_v39 }
 0xb25   : > { %16433 = vmatmul.mubr.msk.f32.gmra.mrb[76].mxu1 %vm1460_vm1, %v21778_v56  ;;  %v9204_v56 = vpop.permute.xlu1 %9203 }
 0xb26   : > { %17645 = vmatpush3.bf16.msra.mxu1 %v21365_v39  ;;  %16435 = vmatprep.mubr.msk.f32.mxu1 %vm1460_vm1, %v21784_v45  ;;  %v24239_v39 = vld [vmem:[#allocation16_spill] sm:$0xff]  ;;  %v9199_v45 = vpop.permute.xlu0 %9198 }
 0xb27   : > { %17647 = vmatprep.subr.bf16.mxu1 %v21369_v28 }
 0xb29   : > { %16436 = vmatmul.mubr.msk.f32.gmra.mrb[78].mxu1 %vm1460_vm1, %v21782_v46 }
 0xb2a   : > { %17649 = vmatpush3.bf16.msra.mxu1 %v21369_v28  ;;  %16470 = vmatprep.mubr.f32.mxu1 %v12781_v16  ;;  %v12784_v28 = vld [vmem:[%s24165_s7 + $0x218] sm:$0xff]  ;;  %v9226_v16 = vld [vmem:[%s24167_s9 + $0x20] sm:$0xff] }
 0xb2b   : > { %17651 = vmatprep.subr.bf16.mxu1 %v21373_v51 }
 0xb2e   : > { %17653 = vmatpush3.bf16.msra.mxu1 %v21373_v51  ;;  %v12785_v51 = vld [vmem:[%s24165_s7 + $0x220] sm:$0xff] }
 0xb2f   : > { %17655 = vmatprep.subr.bf16.mxu1 %v21377_v63 }
 0xb32   : > { %17657 = vmatpush3.bf16.msra.mxu1 %v21377_v63  ;;  %v24240_v63 = vld [vmem:[#allocation17_spill] sm:$0xff] }
 0xb33   : > { %17659 = vmatprep.subr.bf16.mxu1 %v21381_v8 }
 0xb36   : > { %17661 = vmatpush3.bf16.msra.mxu1 %v21381_v8  ;;  %v12786_v8 = vld [vmem:[%s24165_s7 + $0x228] sm:$0xff] }
 0xb37   : > { %17663 = vmatprep.subr.bf16.mxu1 %v21385_v55 }
 0xb3a   : > { %17665 = vmatpush3.bf16.msra.mxu1 %v21385_v55  ;;  %v12787_v55 = vld [vmem:[%s24165_s7 + $0x230] sm:$0xff] }
 0xb3b   : > { %17667 = vmatprep.subr.bf16.mxu1 %v24239_v39 }
 0xb3d   : > { %16471 = vmatmul.mubr.f32.vlgmr.msra.gmra.mrb[88].mxu1 %v12782_v44  ;;  %v12857_v44 = vld [vmem:[%s24167_s9 + $0xa0] sm:$0xff] }
 0xb3e   : > { %16473 = vmatprep.mubr.f32.mxu1 %v12783_v14  ;;  %17669 = vmatpush3.bf16.msra.mxu1 %v24239_v39  ;;  %v9227_v14 = vld [vmem:[%s24167_s9 + $0x28] sm:$0xff] }
 0xb3f   : > { %17671 = vmatprep.subr.bf16.mxu1 %v24240_v63  ;;  %v12858_v39 = vld [vmem:[%s24167_s9 + $0xa8] sm:$0xff] }
 0xb41   : > { %16474 = vmatmul.mubr.f32.gmra.mrb[90].mxu1 %v12784_v28  ;;  %v9228_v28 = vld [vmem:[%s24167_s9 + $0x30] sm:$0xff] }
 0xb42   : > { %16476 = vmatprep.mubr.f32.mxu1 %v12785_v51  ;;  %17673 = vmatpush3.bf16.msra.mxu1 %v24240_v63  ;;  %v12859_v51 = vld [vmem:[%s24167_s9 + $0xb0] sm:$0xff]  ;;  %v9229_v63 = vld [vmem:[%s24167_s9 + $0x38] sm:$0xff] }
 0xb43   : > { %17675 = vmatprep.subr.bf16.mxu1 %v24241_v49 }
 0xb45   : > { %16477 = vmatmul.mubr.f32.gmra.mrb[92].mxu1 %v12786_v8  ;;  %v12860_v8 = vld [vmem:[%s24167_s9 + $0xb8] sm:$0xff] }
 0xb46   : > { %16479 = vmatprep.mubr.f32.mxu1 %v12787_v55  ;;  %17677 = vmatpush3.bf16.msra.mxu1 %v24241_v49  ;;  %v12805_v55 = vld [vmem:[%s24167_s9 + $0x40] sm:$0xff] }
 0xb47   : > { %17679 = vmatprep.subr.bf16.mxu1 %v24242_v36  ;;  %v12893_v49 = vld [vmem:[%s24167_s9 + $0xc0] sm:$0xff] }
 0xb49   : > { %16480 = vmatmul.mubr.f32.gmra.mrb[94].mxu1 %v12788_v62  ;;  %v12806_v62 = vld [vmem:[%s24167_s9 + $0x48] sm:$0xff] }
 0xb4a   : > { %17681 = vmatpush3.bf16.msra.mxu1 %v24242_v36  ;;  %v12894_v36 = vld [vmem:[%s24167_s9 + $0xc8] sm:$0xff] }
 0xc10   : > { %v16472_v10 = vpop.f32.mrb[88].mxu1 }
 0xc11   : > { %v8982_v22 = vpop.f32.mrb[89].mxu1 }
 0xc12   : > { %16498 = vmatprep.mubr.msk.f32.mxu1 %vm1460_vm1, %v8982_v22  ;;  %v12895_v22 = vld [vmem:[%s24167_s9 + $0xd0] sm:$0xff] }
 0xc13   : > { %16499 = vmatmul.mubr.msk.f32.vlgmr.msra.gmra.mrb[72].mxu1 %vm1460_vm1, %v16472_v10  ;;  %v12807_v10 = vld [vmem:[%s24167_s9 + $0x50] sm:$0xff] }
 0xc14   : > { %v16475_v30 = vpop.f32.mrb[90].mxu1 }
 0xc15   : > { %v8992_v59 = vpop.f32.mrb[91].mxu1 }
 0xc16   : > { %16501 = vmatprep.mubr.msk.f32.mxu1 %vm1460_vm1, %v8992_v59  ;;  %v12896_v59 = vld [vmem:[%s24167_s9 + $0xd8] sm:$0xff] }
 0xc17   : > { %16502 = vmatmul.mubr.msk.f32.gmra.mrb[74].mxu1 %vm1460_vm1, %v16475_v30  ;;  %v12808_v30 = vld [vmem:[%s24167_s9 + $0x58] sm:$0xff] }
 0xc18   : > { %v16478_v20 = vpop.f32.mrb[92].mxu1 }
 0xc19   : > { %v9002_v21 = vpop.f32.mrb[93].mxu1 }
 0xc1a   : > { %16504 = vmatprep.mubr.msk.f32.mxu1 %vm1460_vm1, %v9002_v21  ;;  %v12897_v21 = vld [vmem:[%s24167_s9 + $0xe0] sm:$0xff] }
 0xc1b   : > { %16505 = vmatmul.mubr.msk.f32.gmra.mrb[76].mxu1 %vm1460_vm1, %v16478_v20  ;;  %v12809_v20 = vld [vmem:[%s24167_s9 + $0x60] sm:$0xff] }
 0xc1c   : > { %v16481_v34 = vpop.f32.mrb[94].mxu1 }
 0xc1d   : > { %v9012_v57 = vpop.f32.mrb[95].mxu1 }
 0xc1e   : > { %16507 = vmatprep.mubr.msk.f32.mxu1 %vm1460_vm1, %v9012_v57  ;;  %v12898_v57 = vld [vmem:[%s24167_s9 + $0xe8] sm:$0xff] }
 0xc1f   : > { %16508 = vmatmul.mubr.msk.f32.gmra.mrb[78].mxu1 %vm1460_vm1, %v16481_v34  ;;  %v12810_v34 = vld [vmem:[%s24167_s9 + $0x68] sm:$0xff] }
 0xc20   : > { %16582 = vmatprep.mubr.msk.f32.mxu1 %vm1460_vm1, %v12853_v23  ;;  %v12899_v23 = vld [vmem:[%s24167_s9 + $0xf0] sm:$0xff] }
 0xce6   : > { %v16500_v17 = vpop.f32.mrb[72].mxu1 }
 0xce7   : > { %v9207_v52 = vadd.f32 %v16500_v17, %v9174_v53  ;;  %v9111_v35 = vpop.f32.mrb[73].mxu1  ;;  %v12812_v53 = vld [vmem:[%s24167_s9 + $0x78] sm:$0xff]  ;;  %v12822_v17 = vld [vmem:[%s24176_s18 + $0x88] sm:$0xff] }
 0xce8   : > { %v9206_v43 = vadd.f32 %v9169_v6, %v9111_v35  ;;  %v12900_v6 = vld [vmem:[%s24167_s9 + $0xf8] sm:$0xff]  ;;  %v12821_v35 = vld [vmem:[%s24176_s18 + $0x80] sm:$0xff] }
 0xce9   : > { %v9215_v7 = vmax.f32 %v9207_v52, 0.0 }
 0xcea   : > { %v9214_v2 = vmax.f32 %v9206_v43, 0.0  ;;  %v16503_v48 = vpop.f32.mrb[74].mxu1  ;;  %v12823_v43 = vld [vmem:[%s24176_s18 + $0x90] sm:$0xff] }
 0xceb   : > { %v9209_v41 = vadd.f32 %v16503_v48, %v9184_v31  ;;  %v9121_v19 = vpop.f32.mrb[75].mxu1  ;;  %v24243_v31 = vmov 0.0   ;;  %v12828_v48 = vld [vmem:[%s24176_s18 + $0xb8] sm:$0xff] }
 0xcec   : > { %v17682_v29 = vpack.c.bf16 %v9215_v7, %v9214_v2  ;;  %v9208_v0 = vadd.f32 %v9179_v38, %v9121_v19  ;;  %v12824_v38 = vld [vmem:[%s24176_s18 + $0x98] sm:$0xff]  ;;  %v17716_v7 = vpack.c.bf16 %v12823_v43, %v12821_v35  ;;  %v12826_v2 = vld [vmem:[%s24176_s18 + $0xa8] sm:$0xff]  ;;  %v12825_v19 = vld [vmem:[%s24176_s18 + $0xa0] sm:$0xff] }
 0xced   : > { %v9217_v9 = vmax.f32 %v9209_v41, 0.0  ;;  %v17714_v52 = vpack.c.bf16 %v12824_v38, %v12822_v17  ;;  %v17718_v41 = vpack.c.bf16 %v12828_v48, %v12826_v2  ;;  %v9372_v38 = vld [vmem:[%s24176_s18 + $0x68] sm:$0xff]  ;;  %v9371_v48 = vld [vmem:[%s24176_s18 + $0x60] sm:$0xff] }
 0xcee   : > { %v9216_v12 = vmax.f32 %v9208_v0, 0.0  ;;  %v16506_v5 = vpop.f32.mrb[76].mxu1  ;;  %17683 = vmatprep.subr.bf16.mxu0 %v17682_v29  ;;  %17747 = vmatprep.subr.bf16.mxu1 %v17682_v29  ;;  %v12830_v0 = vld [vmem:[%s24176_s18 + $0xc8] sm:$0xff] }
 0xcef   : > { %v9211_v61 = vadd.f32 %v16506_v5, %v9194_v1  ;;  %v9131_v4 = vpop.f32.mrb[77].mxu1  ;;  %17685 = vmatpush3.bf16.msra.mxu0 %v17682_v29  ;;  %17749 = vmatpush3.bf16.msra.mxu1 %v17682_v29  ;;  %v12827_v1 = vld [vmem:[%s24176_s18 + $0xb0] sm:$0xff] }
 0xcf0   : > { %v17686_v50 = vpack.c.bf16 %v9217_v9, %v9216_v12  ;;  %v9210_v40 = vadd.f32 %v9189_v60, %v9131_v4  ;;  %v12832_v60 = vld [vmem:[%s24176_s18 + $0xd8] sm:$0xff]  ;;  %v12829_v12 = vld [vmem:[%s24176_s18 + $0xc0] sm:$0xff]  ;;  %v12831_v5 = vld [vmem:[%s24176_s18 + $0xd0] sm:$0xff] }
 0xcf1   : > { %v9219_v27 = vmax.f32 %v9211_v61, 0.0  ;;  %v17722_v9 = vpack.c.bf16 %v12832_v60, %v12830_v0  ;;  %v17724_v61 = vpack.c.bf16 %v12831_v5, %v12829_v12  ;;  %v12834_v4 = vld [vmem:[%s24176_s18 + $0xe8] sm:$0xff]  ;;  %v12872_v0 = vld [vmem:[%s24176_s18 + $0x118] sm:$0xff] }
 0xcf2   : > { %v9218_v42 = vmax.f32 %v9210_v40, 0.0  ;;  %v16509_v46 = vpop.f32.mrb[78].mxu1  ;;  %17687 = vmatprep.subr.bf16.mxu0 %v17686_v50  ;;  %17751 = vmatprep.subr.bf16.mxu1 %v17686_v50 }
 0xcf3   : > { %v9213_v47 = vadd.f32 %v16509_v46, %v9204_v56  ;;  %v9141_v18 = vpop.f32.mrb[79].mxu1  ;;  %17689 = vmatpush3.bf16.msra.mxu0 %v17686_v50  ;;  %17753 = vmatpush3.bf16.msra.mxu1 %v17686_v50  ;;  %v12835_v56 = vld [vmem:[%s24176_s18 + $0xf0] sm:$0xff]  ;;  %v9360_v46 = vld [vmem:[%s24176_s18 + $0x8] sm:$0xff] }
 0xcf4   : > { %v17690_v25 = vpack.c.bf16 %v9219_v27, %v9218_v42  ;;  %v9212_v32 = vadd.f32 %v9199_v45, %v9141_v18  ;;  %v12833_v27 = vld [vmem:[%s24176_s18 + $0xe0] sm:$0xff]  ;;  %v9362_v45 = vld [vmem:[%s24176_s18 + $0x18] sm:$0xff] }
 0xcf5   : > { %v9221_v37 = vmax.f32 %v9213_v47, 0.0  ;;  %v17728_v42 = vpack.c.bf16 %v12835_v56, %v12833_v27  ;;  %v17730_v47 = vpack.c.bf16 %v9362_v45, %v9360_v46  ;;  %v12871_v27 = vld [vmem:[%s24176_s18 + $0x110] sm:$0xff]  ;;  %v12874_v56 = vld [vmem:[%s24176_s18 + $0x128] sm:$0xff] }
 0xcf6   : > { %v9220_v15 = vmax.f32 %v9212_v32, 0.0  ;;  %17691 = vmatprep.subr.bf16.mxu0 %v17690_v25  ;;  %17755 = vmatprep.subr.bf16.mxu1 %v17690_v25 }
 0xcf7   : > { %17693 = vmatpush3.bf16.msra.mxu0 %v17690_v25  ;;  %17757 = vmatpush3.bf16.msra.mxu1 %v17690_v25 }
 0xcf8   : > { %v17694_v54 = vpack.c.bf16 %v9221_v37, %v9220_v15 }
 0xcfa   : > { %17695 = vmatprep.subr.bf16.mxu0 %v17694_v54  ;;  %17759 = vmatprep.subr.bf16.mxu1 %v17694_v54 }
 0xcfb   : > { %17697 = vmatpush3.bf16.msra.mxu0 %v17694_v54  ;;  %17761 = vmatpush3.bf16.msra.mxu1 %v17694_v54 }
 0xcfc   : > { %17699 = vmatprep.subr.bf16.mxu0 %v17682_v29  ;;  %17779 = vmatprep.subr.bf16.mxu1 %v17682_v29 }
 0xcfe   : > { %16527 = vmatmul.mubr.msk.f32.vlgmr.msra.gmra.mrb[40].mxu0 %vm1460_vm1, %v9223_v33  ;;  %16583 = vmatmul.mubr.msk.f32.vlgmr.msra.gmra.mrb[96].mxu1 %vm1460_vm1, %v12854_v13 }
 0xcff   : > { %17701 = vmatpush3.bf16.msra.mxu0 %v17682_v29  ;;  %17781 = vmatpush3.bf16.msra.mxu1 %v17682_v29  ;;  %v17720_v29 = vpack.c.bf16 %v12827_v1, %v12825_v19 }
 0xd00   : > { %17703 = vmatprep.subr.bf16.mxu0 %v17686_v50  ;;  %17783 = vmatprep.subr.bf16.mxu1 %v17686_v50 }
 0xd01   : > { %16529 = vmatprep.mubr.msk.f32.mxu0 %vm1460_vm1, %v9224_v3  ;;  %16585 = vmatprep.mubr.msk.f32.mxu1 %vm1460_vm1, %v12855_v11 }
 0xd02   : > { %16530 = vmatmul.mubr.msk.f32.gmra.mrb[42].mxu0 %vm1460_vm1, %v9225_v58  ;;  %16586 = vmatmul.mubr.msk.f32.gmra.mrb[98].mxu1 %vm1460_vm1, %v12856_v26 }
 0xd03   : > { %17705 = vmatpush3.bf16.msra.mxu0 %v17686_v50  ;;  %17785 = vmatpush3.bf16.msra.mxu1 %v17686_v50  ;;  %v12836_v50 = vld [vmem:[%s24176_s18 + $0xf8] sm:$0xff] }
 0xd04   : > { %17707 = vmatprep.subr.bf16.mxu0 %v17690_v25  ;;  %17787 = vmatprep.subr.bf16.mxu1 %v17690_v25  ;;  %v17726_v40 = vpack.c.bf16 %v12836_v50, %v12834_v4 }
 0xd05   : > { %16532 = vmatprep.mubr.msk.f32.mxu0 %vm1460_vm1, %v9226_v16  ;;  %16588 = vmatprep.mubr.msk.f32.mxu1 %vm1460_vm1, %v12857_v44  ;;  %v9359_v44 = vld [vmem:[%s24176_s18] sm:$0xff] }
 0xd06   : > { %16533 = vmatmul.mubr.msk.f32.gmra.mrb[44].mxu0 %vm1460_vm1, %v9227_v14  ;;  %16589 = vmatmul.mubr.msk.f32.gmra.mrb[100].mxu1 %vm1460_vm1, %v12858_v39  ;;  %v9361_v14 = vld [vmem:[%s24176_s18 + $0x10] sm:$0xff] }
 0xd07   : > { %17709 = vmatpush3.bf16.msra.mxu0 %v17690_v25  ;;  %17789 = vmatpush3.bf16.msra.mxu1 %v17690_v25 }
 0xd08   : > { %17711 = vmatprep.subr.bf16.mxu0 %v17694_v54  ;;  %17791 = vmatprep.subr.bf16.mxu1 %v17694_v54 }
 0xd09   : > { %16535 = vmatprep.mubr.msk.f32.mxu0 %vm1460_vm1, %v9228_v28  ;;  %16591 = vmatprep.mubr.msk.f32.mxu1 %vm1460_vm1, %v12859_v51  ;;  %v9364_v51 = vld [vmem:[%s24176_s18 + $0x28] sm:$0xff] }
 0xd0a   : > { %16536 = vmatmul.mubr.msk.f32.gmra.mrb[46].mxu0 %vm1460_vm1, %v9229_v63  ;;  %16592 = vmatmul.mubr.msk.f32.gmra.mrb[102].mxu1 %vm1460_vm1, %v12860_v8  ;;  %v9366_v63 = vld [vmem:[%s24176_s18 + $0x38] sm:$0xff] }
 0xd0b   : > { %17713 = vmatpush3.bf16.msra.mxu0 %v17694_v54  ;;  %17793 = vmatpush3.bf16.msra.mxu1 %v17694_v54 }
 0xd0c   : > { %16554 = vmatprep.mubr.msk.f32.mxu0 %vm1460_vm1, %v12805_v55  ;;  %16610 = vmatprep.mubr.msk.f32.mxu1 %vm1460_vm1, %v12893_v49  ;;  %v17732_v55 = vpack.c.bf16 %v9361_v14, %v9359_v44  ;;  %v12875_v44 = vld [vmem:[%s24176_s18 + $0x130] sm:$0xff]  ;;  %v12878_v14 = vld [vmem:[%s24176_s18 + $0x148] sm:$0xff] }
 0xd0d   : > { %17715 = vmatprep.subr.bf16.mxu0 %v17714_v52  ;;  %v9374_v52 = vld [vmem:[%s24176_s18 + $0x78] sm:$0xff] }
 0xd0e   : > { %16555 = vmatmul.mubr.msk.f32.vlgmr.msra.gmra.mrb[48].mxu0 %vm1460_vm1, %v12806_v62  ;;  %16611 = vmatmul.mubr.msk.f32.vlgmr.msra.gmra.mrb[104].mxu1 %vm1460_vm1, %v12894_v36  ;;  %v17734_v62 = vpack.c.bf16 %v9366_v63, %v9364_v51  ;;  %v9363_v36 = vld [vmem:[%s24176_s18 + $0x20] sm:$0xff]  ;;  %v17742_v2 = vpack.c.bf16 %v9374_v52, %v9372_v38  ;;  %v12880_v51 = vld [vmem:[%s24176_s18 + $0x158] sm:$0xff]  ;;  %v12918_v38 = vld [vmem:[%s24176_s18 + $0x1c8] sm:$0xff] }
 0xd0f   : > { %16557 = vmatprep.mubr.msk.f32.mxu0 %vm1460_vm1, %v12807_v10  ;;  %16613 = vmatprep.mubr.msk.f32.mxu1 %vm1460_vm1, %v12895_v22  ;;  %v9365_v10 = vld [vmem:[%s24176_s18 + $0x30] sm:$0xff] }
 0xd10   : > { %17717 = vmatpush1.bf16.msra.mxu0 %v17716_v7 }
 0xd11   : > { %17719 = vmatprep.subr.bf16.mxu0 %v17718_v41  ;;  %v9373_v41 = vld [vmem:[%s24176_s18 + $0x70] sm:$0xff] }
 0xd12   : > { %16558 = vmatmul.mubr.msk.f32.gmra.mrb[50].mxu0 %vm1460_vm1, %v12808_v30  ;;  %16614 = vmatmul.mubr.msk.f32.gmra.mrb[106].mxu1 %vm1460_vm1, %v12896_v59  ;;  %v9368_v59 = vld [vmem:[%s24176_s18 + $0x48] sm:$0xff] }
 0xd13   : > { %16560 = vmatprep.mubr.msk.f32.mxu0 %vm1460_vm1, %v12809_v20  ;;  %16616 = vmatprep.mubr.msk.f32.mxu1 %vm1460_vm1, %v12897_v21  ;;  %v9370_v20 = vld [vmem:[%s24176_s18 + $0x58] sm:$0xff] }
 0xd14   : > { %17721 = vmatpush1.bf16.msra.mxu0 %v17720_v29  ;;  %v12870_v29 = vld [vmem:[%s24176_s18 + $0x108] sm:$0xff] }
 0xd15   : > { %17723 = vmatprep.subr.bf16.mxu0 %v17722_v9  ;;  %v17744_v9 = vpack.c.bf16 %v9373_v41, %v9371_v48  ;;  %v17762_v5 = vpack.c.bf16 %v12872_v0, %v12870_v29  ;;  %v12922_v48 = vld [vmem:[%s24176_s18 + $0x1e8] sm:$0xff]  ;;  %v12921_v29 = vld [vmem:[%s24176_s18 + $0x1e0] sm:$0xff]  ;;  %v12923_v0 = vld [vmem:[%s24176_s18 + $0x1f0] sm:$0xff] }
 0xd16   : > { %16561 = vmatmul.mubr.msk.f32.gmra.mrb[52].mxu0 %vm1460_vm1, %v12810_v34  ;;  %16617 = vmatmul.mubr.msk.f32.gmra.mrb[108].mxu1 %vm1460_vm1, %v12898_v57  ;;  %v17736_v34 = vpack.c.bf16 %v9365_v10, %v9363_v36  ;;  %v12882_v36 = vld [vmem:[%s24176_s18 + $0x168] sm:$0xff] }
 0xd17   : > { %16563 = vmatprep.mubr.msk.f32.mxu0 %vm1460_vm1, %v12811_v24  ;;  %16619 = vmatprep.mubr.msk.f32.mxu1 %vm1460_vm1, %v12899_v23  ;;  %v17738_v24 = vpack.c.bf16 %v9370_v20, %v9368_v59  ;;  %v9367_v23 = vld [vmem:[%s24176_s18 + $0x40] sm:$0xff]  ;;  %v12883_v20 = vld [vmem:[%s24176_s18 + $0x170] sm:$0xff] }
 0xd18   : > { %17725 = vmatpush1.bf16.msra.mxu0 %v17724_v61  ;;  %v12881_v59 = vld [vmem:[%s24176_s18 + $0x160] sm:$0xff] }
 0xd19   : > { %17727 = vmatprep.subr.bf16.mxu0 %v17726_v40  ;;  %v12869_v40 = vld [vmem:[%s24176_s18 + $0x100] sm:$0xff] }
 0xd1a   : > { %16564 = vmatmul.mubr.msk.f32.gmra.mrb[54].mxu0 %vm1460_vm1, %v12812_v53  ;;  %16620 = vmatmul.mubr.msk.f32.gmra.mrb[110].mxu1 %vm1460_vm1, %v12900_v6  ;;  %v9369_v53 = vld [vmem:[%s24176_s18 + $0x50] sm:$0xff]  ;;  %v17764_v46 = vpack.c.bf16 %v12871_v27, %v12869_v40  ;;  %v12950_v27 = vld [vmem:[%s24172_s14 + $0x278] sm:$0xff] }
 0xd1b   : > { %9618 = vmatprep.mubr.f32.mxu0 %v24243_v31  ;;  %10572 = vmatprep.mubr.f32.mxu1 %v24243_v31  ;;  %v17740_v43 = vpack.c.bf16 %v9369_v53, %v9367_v23  ;;  %v12913_v53 = vld [vmem:[%s24176_s18 + $0x1a0] sm:$0xff] }
 0xd1c   : > { %17729 = vmatpush1.bf16.msra.mxu0 %v17728_v42  ;;  %v12876_v42 = vld [vmem:[%s24176_s18 + $0x138] sm:$0xff] }
 0xd1d   : > { %17731 = vmatprep.subr.bf16.mxu0 %v17730_v47  ;;  %v17766_v45 = vpack.c.bf16 %v12876_v42, %v12874_v56  ;;  %v12873_v47 = vld [vmem:[%s24176_s18 + $0x120] sm:$0xff] }
 0xd1e   : > { %v17768_v63 = vpack.c.bf16 %v12875_v44, %v12873_v47  ;;  %v12947_v42 = vld [vmem:[%s24172_s14 + $0x260] sm:$0xff]  ;;  %v12954_v47 = vld [vmem:[%s24172_s14 + $0x298] sm:$0xff] }
 0xdd1   : > { %v22091_v18 = vpop.f32.mrb[40].mxu0  ;;  %v22093_v25 = vpop.f32.mrb[96].mxu1 }
 0xdd2   : > { %v22095_v32 = vpop.f32.mrb[41].mxu0  ;;  %v22097_v37 = vpop.f32.mrb[97].mxu1 }
 0xdd5   : > { %v22099_v15 = vpop.f32.mrb[42].mxu0  ;;  %v22101_v54 = vpop.f32.mrb[98].mxu1 }
 0xdd6   : > { %v22103_v33 = vpop.f32.mrb[43].mxu0  ;;  %v22105_v13 = vpop.f32.mrb[99].mxu1 }
 0xdd9   : > { %v22107_v3 = vpop.f32.mrb[44].mxu0  ;;  %v22109_v11 = vpop.f32.mrb[100].mxu1 }
 0xdda   : > { %v22111_v58 = vpop.f32.mrb[45].mxu0  ;;  %v22113_v26 = vpop.f32.mrb[101].mxu1 }
 0xddd   : > { %v22115_v16 = vpop.f32.mrb[46].mxu0  ;;  %v22123_v39 = vpop.f32.mrb[102].mxu1 }
 0xdde   : > { %v22125_v28 = vpop.f32.mrb[47].mxu0  ;;  %v22133_v8 = vpop.f32.mrb[103].mxu1 }
 0xde1   : > { %v16556_v49 = vpop.f32.mrb[48].mxu0  ;;  %v22141_v22 = vpop.f32.mrb[104].mxu1 }
 0xde2   : > { %v9474_v30 = vpop.f32.mrb[49].mxu0  ;;  %v22149_v21 = vpop.f32.mrb[105].mxu1 }
 0xde3   : > { %12837 = vmatmul.mubr.msk.f32.vlgmr.msra.gmra.mrb[56].mxu0 %vm1460_vm1, %v9474_v30 }
 0xde4   : > { %17733 = vmatpush1.bf16.msra.mxu0 %v17732_v55  ;;  %9624 = vmatprep.mubr.f32.mxu0 %v24243_v31  ;;  %v17770_v55 = vpack.c.bf16 %v12880_v51, %v12878_v14  ;;  %v12951_v51 = vld [vmem:[%s24172_s14 + $0x280] sm:$0xff] }
 0xde5   : > { %v16559_v57 = vpop.f32.mrb[50].mxu0  ;;  %17735 = vmatprep.subr.bf16.mxu0 %v17734_v62  ;;  %v22159_v6 = vpop.f32.mrb[106].mxu1  ;;  %v12879_v62 = vld [vmem:[%s24176_s18 + $0x150] sm:$0xff] }
 0xde6   : > { %v9484_v17 = vpop.f32.mrb[51].mxu0  ;;  %v22167_v35 = vpop.f32.mrb[107].mxu1 }
 0xde7   : > { %12838 = vmatmul.mubr.msk.f32.gmra.mrb[58].mxu0 %vm1460_vm1, %v16556_v49  ;;  %v12877_v49 = vld [vmem:[%s24176_s18 + $0x140] sm:$0xff] }
 0xde8   : > { %9630 = vmatprep.mubr.f32.mxu0 %v24243_v31  ;;  %17737 = vmatpush1.bf16.msra.mxu0 %v17736_v34  ;;  %v17772_v10 = vpack.c.bf16 %v12879_v62, %v12877_v49  ;;  %v12910_v34 = vld [vmem:[%s24176_s18 + $0x188] sm:$0xff]  ;;  %v12958_v49 = vld [vmem:[%s24172_s14 + $0x2b8] sm:$0xff] }
 0xde9   : > { %v16562_v7 = vpop.f32.mrb[52].mxu0  ;;  %17739 = vmatprep.subr.bf16.mxu0 %v17738_v24  ;;  %v22177_v19 = vpop.f32.mrb[108].mxu1 }
 0xdea   : > { %v9494_v1 = vpop.f32.mrb[53].mxu0  ;;  %v22185_v60 = vpop.f32.mrb[109].mxu1 }
 0xdeb   : > { %12839 = vmatmul.mubr.msk.f32.gmra.mrb[60].mxu0 %vm1460_vm1, %v9484_v17  ;;  %v12915_v17 = vld [vmem:[%s24176_s18 + $0x1b0] sm:$0xff] }
 0xdec   : > { %9636 = vmatprep.mubr.f32.mxu0 %v24243_v31  ;;  %17741 = vmatpush1.bf16.msra.mxu0 %v17740_v43  ;;  %v17800_v52 = vpack.c.bf16 %v12915_v17, %v12913_v53  ;;  %v12970_v53 = vld [vmem:[%s24172_s14 + $0x318] sm:$0xff] }
 0xded   : > { %v16565_v12 = vpop.f32.mrb[54].mxu0  ;;  %17743 = vmatprep.subr.bf16.mxu0 %v17742_v2  ;;  %v22189_v61 = vpop.f32.mrb[110].mxu1  ;;  %v12919_v2 = vld [vmem:[%s24176_s18 + $0x1d0] sm:$0xff] }
 0xdee   : > { %v9504_v4 = vpop.f32.mrb[55].mxu0  ;;  %v22191_v50 = vpop.f32.mrb[111].mxu1 }
 0xdef   : > { %12840 = vmatmul.mubr.msk.f32.gmra.mrb[62].mxu0 %vm1460_vm1, %v16559_v57  ;;  %v17776_v57 = vpack.c.bf16 %v12883_v20, %v12881_v59  ;;  %v12962_v59 = vld [vmem:[%s24172_s14 + $0x2d8] sm:$0xff] }
 0xdf0   : > { %9642 = vmatprep.mubr.f32.mxu0 %v24243_v31  ;;  %17745 = vmatpush1.bf16.msra.mxu0 %v17744_v9  ;;  %v12944_v9 = vld [vmem:[%s24172_s14 + $0x248] sm:$0xff] }
 0xdf1   : > { %17763 = vmatprep.subr.bf16.mxu0 %v17762_v5 }
 0xdf3   : > { %12841 = vmatmul.mubr.msk.f32.gmra.mrb[64].mxu0 %vm1460_vm1, %v9494_v1 }
 0xdf4   : > { %9648 = vmatprep.mubr.f32.mxu0 %v24243_v31 }
 0xdf7   : > { %12842 = vmatmul.mubr.msk.f32.gmra.mrb[66].mxu0 %vm1460_vm1, %v16562_v7  ;;  %v12917_v7 = vld [vmem:[%s24176_s18 + $0x1c0] sm:$0xff] }
 0xdf8   : > { %9654 = vmatprep.mubr.f32.mxu0 %v24243_v31  ;;  %v17804_v41 = vpack.c.bf16 %v12919_v2, %v12917_v7  ;;  %v12974_v7 = vld [vmem:[%s24172_s14 + $0x338] sm:$0xff] }
 0xdfb   : > { %12843 = vmatmul.mubr.msk.f32.gmra.mrb[68].mxu0 %vm1460_vm1, %v9504_v4  ;;  %v12945_v4 = vld [vmem:[%s24172_s14 + $0x250] sm:$0xff] }
 0xdfc   : > { %9660 = vmatprep.mubr.f32.mxu0 %v24243_v31 }
 0xdff   : > { %12844 = vmatmul.mubr.msk.f32.gmra.mrb[70].mxu0 %vm1460_vm1, %v16565_v12  ;;  %v12946_v12 = vld [vmem:[%s24172_s14 + $0x258] sm:$0xff] }
 0xe00   : > { %9755 = vmatprep.mubr.f32.mxu0 %v24243_v31  ;;  %v17898_v5 = vpack.c.bf16 %v12946_v12, %v12944_v9  ;;  %v12983_v9 = vld [vmem:[%s24172_s14 + $0x380] sm:$0xff]  ;;  %v12985_v12 = vld [vmem:[%s24172_s14 + $0x390] sm:$0xff] }
 0xe03   : > { %12845 = vmatmul.mubr.msk.f32.vlgmr.msra.gmra.mrb[56].mxu0 %vm1460_vm1, %v22095_v32  ;;  %v12884_v32 = vld [vmem:[%s24176_s18 + $0x178] sm:$0xff] }
 0xe04   : > { %17765 = vmatpush1.bf16.msra.mxu0 %v17764_v46  ;;  %9761 = vmatprep.mubr.f32.mxu0 %v24243_v31  ;;  %v17774_v30 = vpack.c.bf16 %v12884_v32, %v12882_v36  ;;  %v12949_v46 = vld [vmem:[%s24172_s14 + $0x270] sm:$0xff]  ;;  %v12955_v32 = vld [vmem:[%s24172_s14 + $0x2a0] sm:$0xff] }
 0xe05   : > { %17767 = vmatprep.subr.bf16.mxu0 %v17766_v45  ;;  %v12952_v45 = vld [vmem:[%s24172_s14 + $0x288] sm:$0xff]  ;;  %v17904_v44 = vpack.c.bf16 %v12949_v46, %v12947_v42  ;;  %v12994_v42 = vld [vmem:[%s24172_s14 + $0x3d8] sm:$0xff] }
 0xe06   : > { %v17906_v14 = vpack.c.bf16 %v12954_v47, %v12952_v45  ;;  %v12991_v47 = vld [vmem:[%s24172_s14 + $0x3c0] sm:$0xff] }
 0xe07   : > { %12846 = vmatmul.mubr.msk.f32.gmra.mrb[58].mxu0 %vm1460_vm1, %v22091_v18  ;;  %v12912_v18 = vld [vmem:[%s24176_s18 + $0x198] sm:$0xff] }
 0xe08   : > { %9767 = vmatprep.mubr.f32.mxu0 %v24243_v31  ;;  %17769 = vmatpush1.bf16.msra.mxu0 %v17768_v63  ;;  %v17794_v24 = vpack.c.bf16 %v12912_v18, %v12910_v34  ;;  %v12953_v63 = vld [vmem:[%s24172_s14 + $0x290] sm:$0xff]  ;;  %v12959_v18 = vld [vmem:[%s24172_s14 + $0x2c0] sm:$0xff] }
 0xe09   : > { %17771 = vmatprep.subr.bf16.mxu0 %v17770_v55  ;;  %v12956_v55 = vld [vmem:[%s24172_s14 + $0x2a8] sm:$0xff]  ;;  %v17908_v62 = vpack.c.bf16 %v12953_v63, %v12951_v51  ;;  %v12998_v51 = vld [vmem:[%s24172_s14 + $0x3f8] sm:$0xff] }
 0xe0a   : > { %v17910_v36 = vpack.c.bf16 %v12958_v49, %v12956_v55  ;;  %v12995_v49 = vld [vmem:[%s24172_s14 + $0x3e0] sm:$0xff] }
 0xe0b   : > { %12847 = vmatmul.mubr.msk.f32.gmra.mrb[60].mxu0 %vm1460_vm1, %v22103_v33  ;;  %v12911_v33 = vld [vmem:[%s24176_s18 + $0x190] sm:$0xff] }
 0xe0c   : > { %9773 = vmatprep.mubr.f32.mxu0 %v24243_v31  ;;  %17773 = vmatpush1.bf16.msra.mxu0 %v17772_v10  ;;  %v12957_v10 = vld [vmem:[%s24172_s14 + $0x2b0] sm:$0xff] }
 0xe0d   : > { %17775 = vmatprep.subr.bf16.mxu0 %v17774_v30  ;;  %v12960_v30 = vld [vmem:[%s24172_s14 + $0x2c8] sm:$0xff]  ;;  %v17912_v20 = vpack.c.bf16 %v12957_v10, %v12955_v32 }
 0xe0e   : > { %v17914_v34 = vpack.c.bf16 %v12962_v59, %v12960_v30  ;;  %v10431_v30 = vpop.permute.xlu0 %10430 }
 0xe0f   : > { %12848 = vmatmul.mubr.msk.f32.gmra.mrb[62].mxu0 %vm1460_vm1, %v22099_v15  ;;  %v12909_v15 = vld [vmem:[%s24176_s18 + $0x180] sm:$0xff] }
 0xe10   : > { %9779 = vmatprep.mubr.f32.mxu0 %v24243_v31  ;;  %17777 = vmatpush1.bf16.msra.mxu0 %v17776_v57  ;;  %v12961_v57 = vld [vmem:[%s24172_s14 + $0x2d0] sm:$0xff] }
 0xe11   : > { %17795 = vmatprep.subr.bf16.mxu0 %v17794_v24  ;;  %v12964_v24 = vld [vmem:[%s24172_s14 + $0x2e8] sm:$0xff] }
 0xe13   : > { %12849 = vmatmul.mubr.msk.f32.gmra.mrb[64].mxu0 %vm1460_vm1, %v22111_v58  ;;  %v12914_v58 = vld [vmem:[%s24176_s18 + $0x1a8] sm:$0xff] }
 0xe14   : > { %9785 = vmatprep.mubr.f32.mxu0 %v24243_v31 }
 0xe17   : > { %12850 = vmatmul.mubr.msk.f32.gmra.mrb[66].mxu0 %vm1460_vm1, %v22107_v3  ;;  %v12916_v3 = vld [vmem:[%s24176_s18 + $0x1b8] sm:$0xff] }
 0xe18   : > { %9791 = vmatprep.mubr.f32.mxu0 %v24243_v31  ;;  %v17798_v23 = vpack.c.bf16 %v12916_v3, %v12914_v58  ;;  %v12963_v3 = vld [vmem:[%s24172_s14 + $0x2e0] sm:$0xff] }
 0xe1b   : > { %12851 = vmatmul.mubr.msk.f32.gmra.mrb[68].mxu0 %vm1460_vm1, %v22125_v28  ;;  %v17796_v28 = vpack.c.bf16 %v12911_v33, %v12909_v15  ;;  %v12966_v15 = vld [vmem:[%s24172_s14 + $0x2f8] sm:$0xff]  ;;  %v17916_v33 = vpack.c.bf16 %v12961_v57, %v12959_v18 }
 0xe1c   : > { %9797 = vmatprep.mubr.f32.mxu0 %v24243_v31  ;;  %v17918_v58 = vpack.c.bf16 %v12966_v15, %v12964_v24 }
 0xe1f   : > { %12852 = vmatmul.mubr.msk.f32.gmra.mrb[70].mxu0 %vm1460_vm1, %v22115_v16  ;;  %v12920_v16 = vld [vmem:[%s24176_s18 + $0x1d8] sm:$0xff] }
 0xe20   : > { %10047 = vmatprep.mubr.f32.mxu0 %v24243_v31  ;;  %v17802_v43 = vpack.c.bf16 %v12920_v16, %v12918_v38  ;;  %v12967_v16 = vld [vmem:[%s24172_s14 + $0x300] sm:$0xff] }
 0xe23   : > { %12885 = vmatmul.mubr.msk.f32.vlgmr.msra.gmra.mrb[56].mxu0 %vm1460_vm1, %v22097_v37  ;;  %v12924_v37 = vld [vmem:[%s24176_s18 + $0x1f8] sm:$0xff] }
 0xe24   : > { %17797 = vmatpush1.bf16.msra.mxu0 %v17796_v28  ;;  %10053 = vmatprep.mubr.f32.mxu0 %v24243_v31  ;;  %v17806_v1 = vpack.c.bf16 %v12924_v37, %v12922_v48  ;;  %v12965_v28 = vld [vmem:[%s24172_s14 + $0x2f0] sm:$0xff]  ;;  %v12971_v37 = vld [vmem:[%s24172_s14 + $0x320] sm:$0xff] }
 0xe25   : > { %17799 = vmatprep.subr.bf16.mxu0 %v17798_v23  ;;  %v12968_v23 = vld [vmem:[%s24172_s14 + $0x308] sm:$0xff]  ;;  %v17920_v17 = vpack.c.bf16 %v12965_v28, %v12963_v3 }
 0xe26   : > { %v17922_v38 = vpack.c.bf16 %v12970_v53, %v12968_v23 }
 0xe27   : > { %12886 = vmatmul.mubr.msk.f32.gmra.mrb[58].mxu0 %vm1460_vm1, %v22093_v25  ;;  %v17808_v25 = vpack.c.bf16 %v12923_v0, %v12921_v29  ;;  %v12978_v29 = vld [vmem:[%s24172_s14 + $0x358] sm:$0xff] }
 0xe28   : > { %10059 = vmatprep.mubr.f32.mxu0 %v24243_v31  ;;  %17801 = vmatpush1.bf16.msra.mxu0 %v17800_v52  ;;  %v12969_v52 = vld [vmem:[%s24172_s14 + $0x310] sm:$0xff] }
 0xe29   : > { %17803 = vmatprep.subr.bf16.mxu0 %v17802_v43  ;;  %v12972_v43 = vld [vmem:[%s24172_s14 + $0x328] sm:$0xff]  ;;  %v17924_v2 = vpack.c.bf16 %v12969_v52, %v12967_v16 }
 0xe2a   : > { %v17926_v48 = vpack.c.bf16 %v12974_v7, %v12972_v43 }
 0xe2b   : > { %12887 = vmatmul.mubr.msk.f32.gmra.mrb[60].mxu0 %vm1460_vm1, %v22105_v13  ;;  %v12938_v13 = vld [vmem:[%s24172_s14 + $0x218] sm:$0xff] }
 0xe2c   : > { %10065 = vmatprep.mubr.f32.mxu0 %v24243_v31  ;;  %17805 = vmatpush1.bf16.msra.mxu0 %v17804_v41  ;;  %v12973_v41 = vld [vmem:[%s24172_s14 + $0x330] sm:$0xff] }
 0xe2d   : > { %17807 = vmatprep.subr.bf16.mxu0 %v17806_v1  ;;  %v12976_v1 = vld [vmem:[%s24172_s14 + $0x348] sm:$0xff]  ;;  %v17928_v0 = vpack.c.bf16 %v12973_v41, %v12971_v37 }
 0xe2f   : > { %12888 = vmatmul.mubr.msk.f32.gmra.mrb[62].mxu0 %vm1460_vm1, %v22101_v54  ;;  %v12936_v54 = vld [vmem:[%s24172_s14 + $0x208] sm:$0xff] }
 0xe30   : > { %10071 = vmatprep.mubr.f32.mxu0 %v24243_v31  ;;  %17809 = vmatpush1.bf16.msra.mxu0 %v17808_v25  ;;  %v17930_v25 = vpack.c.bf16 %v12978_v29, %v12976_v1 }
 0xe33   : > { %12889 = vmatmul.mubr.msk.f32.gmra.mrb[64].mxu0 %vm1460_vm1, %v22113_v26  ;;  %v12935_v26 = vld [vmem:[%s24172_s14 + $0x200] sm:$0xff] }
 0xe34   : > { %10077 = vmatprep.mubr.f32.mxu0 %v24243_v31 }
 0xe37   : > { %12890 = vmatmul.mubr.msk.f32.gmra.mrb[66].mxu0 %vm1460_vm1, %v22109_v11  ;;  %v17890_v11 = vpack.c.bf16 %v12938_v13, %v12936_v54  ;;  %v12975_v54 = vld [vmem:[%s24172_s14 + $0x340] sm:$0xff]  ;;  %v12977_v13 = vld [vmem:[%s24172_s14 + $0x350] sm:$0xff] }
 0xe38   : > { %10083 = vmatprep.mubr.f32.mxu0 %v24243_v31 }
 0xe39   : > { %17891 = vmatprep.subr.bf16.mxu0 %v17890_v11  ;;  %v12980_v11 = vld [vmem:[%s24172_s14 + $0x368] sm:$0xff] }
 0xe3b   : > { %12891 = vmatmul.mubr.msk.f32.gmra.mrb[68].mxu0 %vm1460_vm1, %v22133_v8 }
 0xe3c   : > { %10089 = vmatprep.mubr.f32.mxu0 %v24243_v31 }
 0xe3f   : > { %12892 = vmatmul.mubr.msk.f32.gmra.mrb[70].mxu0 %vm1460_vm1, %v22123_v39  ;;  %v12937_v39 = vld [vmem:[%s24172_s14 + $0x210] sm:$0xff] }
 0xe40   : > { %10355 = vmatprep.mubr.f32.mxu0 %v24243_v31  ;;  %v17892_v8 = vpack.c.bf16 %v12937_v39, %v12935_v26  ;;  %v12982_v26 = vld [vmem:[%s24172_s14 + $0x378] sm:$0xff]  ;;  %v17932_v39 = vpack.c.bf16 %v12977_v13, %v12975_v54 }
 0xe43   : > { %12925 = vmatmul.mubr.msk.f32.vlgmr.msra.gmra.mrb[56].mxu0 %vm1460_vm1, %v22149_v21  ;;  %v12942_v21 = vld [vmem:[%s24172_s14 + $0x238] sm:$0xff] }
 0xe44   : > { %10361 = vmatprep.mubr.f32.mxu0 %v24243_v31  ;;  %17893 = vmatpush1.bf16.msra.mxu0 %v17892_v8  ;;  %v17934_v8 = vpack.c.bf16 %v12982_v26, %v12980_v11 }
 0xe47   : > { %12926 = vmatmul.mubr.msk.f32.gmra.mrb[58].mxu0 %vm1460_vm1, %v22141_v22  ;;  %v12940_v22 = vld [vmem:[%s24172_s14 + $0x228] sm:$0xff] }
 0xe48   : > { %10367 = vmatprep.mubr.f32.mxu0 %v24243_v31 }
 0xe4b   : > { %12927 = vmatmul.mubr.msk.f32.gmra.mrb[60].mxu0 %vm1460_vm1, %v22167_v35  ;;  %v12939_v35 = vld [vmem:[%s24172_s14 + $0x220] sm:$0xff] }
 0xe4c   : > { %10373 = vmatprep.mubr.f32.mxu0 %v24243_v31 }
 0xe4f   : > { %12928 = vmatmul.mubr.msk.f32.gmra.mrb[62].mxu0 %vm1460_vm1, %v22159_v6  ;;  %v17894_v6 = vpack.c.bf16 %v12942_v21, %v12940_v22  ;;  %v12979_v22 = vld [vmem:[%s24172_s14 + $0x360] sm:$0xff]  ;;  %v12981_v21 = vld [vmem:[%s24172_s14 + $0x370] sm:$0xff] }
 0xe50   : > { %10379 = vmatprep.mubr.f32.mxu0 %v24243_v31 }
 0xe51   : > { %17895 = vmatprep.subr.bf16.mxu0 %v17894_v6  ;;  %v12984_v6 = vld [vmem:[%s24172_s14 + $0x388] sm:$0xff] }
 0xe53   : > { %12929 = vmatmul.mubr.msk.f32.gmra.mrb[64].mxu0 %vm1460_vm1, %v22185_v60 }
 0xe54   : > { %10385 = vmatprep.mubr.f32.mxu0 %v24243_v31 }
 0xe57   : > { %12930 = vmatmul.mubr.msk.f32.gmra.mrb[66].mxu0 %vm1460_vm1, %v22177_v19  ;;  %v12941_v19 = vld [vmem:[%s24172_s14 + $0x230] sm:$0xff] }
 0xe58   : > { %10391 = vmatprep.mubr.f32.mxu0 %v24243_v31  ;;  %v17896_v60 = vpack.c.bf16 %v12941_v19, %v12939_v35  ;;  %v12986_v35 = vld [vmem:[%s24172_s14 + $0x398] sm:$0xff]  ;;  %v17936_v19 = vpack.c.bf16 %v12981_v21, %v12979_v22 }
 0xe5a   : > { %17897 = vmatpush1.bf16.msra.mxu0 %v17896_v60  ;;  %v17938_v60 = vpack.c.bf16 %v12986_v35, %v12984_v6 }
 0xe5b   : > { %12931 = vmatmul.mubr.msk.f32.gmra.mrb[68].mxu0 %vm1460_vm1, %v22191_v50  ;;  %v12948_v50 = vld [vmem:[%s24172_s14 + $0x268] sm:$0xff]  ;;  %17899 = vmatprep.subr.bf16.mxu0 %v17898_v5 }
 0xe5c   : > { %10397 = vmatprep.mubr.f32.mxu0 %v24243_v31  ;;  %v17902_v56 = vpack.c.bf16 %v12950_v27, %v12948_v50  ;;  %v12988_v5 = vld [vmem:[%s24172_s14 + $0x3a8] sm:$0xff]  ;;  %v12989_v27 = vld [vmem:[%s24172_s14 + $0x3b0] sm:$0xff] }
 0xe5f   : > { %12932 = vmatmul.mubr.msk.f32.gmra.mrb[70].mxu0 %vm1460_vm1, %v22189_v61  ;;  %v12943_v61 = vld [vmem:[%s24172_s14 + $0x240] sm:$0xff] }
 0xe60   : > { %v17900_v40 = vpack.c.bf16 %v12945_v4, %v12943_v61  ;;  %v12990_v61 = vld [vmem:[%s24172_s14 + $0x3b8] sm:$0xff]  ;;  %v17940_v4 = vpack.c.bf16 %v12985_v12, %v12983_v9 }
 0xe61   : > { %v17942_v50 = vpack.c.bf16 %v12990_v61, %v12988_v5 }
 0xe62   : > { %17901 = vmatpush1.bf16.msra.mxu0 %v17900_v40  ;;  %v12987_v40 = vld [vmem:[%s24172_s14 + $0x3a0] sm:$0xff] }
 0xe63   : > { %17903 = vmatprep.subr.bf16.mxu0 %v17902_v56  ;;  %v12992_v56 = vld [vmem:[%s24172_s14 + $0x3c8] sm:$0xff]  ;;  %v17944_v46 = vpack.c.bf16 %v12989_v27, %v12987_v40 }
 0xe64   : > { %v17946_v45 = vpack.c.bf16 %v12994_v42, %v12992_v56 }
 0xe66   : > { %17905 = vmatpush1.bf16.msra.mxu0 %v17904_v44  ;;  %v12993_v44 = vld [vmem:[%s24172_s14 + $0x3d0] sm:$0xff] }
 0xe67   : > { %17907 = vmatprep.subr.bf16.mxu0 %v17906_v14  ;;  %v12996_v14 = vld [vmem:[%s24172_s14 + $0x3e8] sm:$0xff]  ;;  %v17948_v63 = vpack.c.bf16 %v12993_v44, %v12991_v47 }
 0xe68   : > { %v17950_v55 = vpack.c.bf16 %v12998_v51, %v12996_v14 }
 0xe6a   : > { %17909 = vmatpush1.bf16.msra.mxu0 %v17908_v62  ;;  %v12997_v62 = vld [vmem:[%s24172_s14 + $0x3f0] sm:$0xff] }
 0xe6b   : > { %17911 = vmatprep.subr.bf16.mxu0 %v17910_v36  ;;  %v17952_v36 = vpack.c.bf16 %v12997_v62, %v12995_v49  ;;  %v10586_v49 = vld [vmem:[%s24172_s14 + $0x8] sm:$0xff]  ;;  %v10588_v62 = vld [vmem:[%s24172_s14 + $0x18] sm:$0xff] }
 0xe6e   : > { %17913 = vmatpush1.bf16.msra.mxu0 %v17912_v20  ;;  %v10436_v20 = vpop.permute.xlu1 %10435 }
 0xe6f   : > { %17915 = vmatprep.subr.bf16.mxu0 %v17914_v34 }
 0xe72   : > { %17917 = vmatpush1.bf16.msra.mxu0 %v17916_v33  ;;  %v10446_v43 = vpop.permute.xlu1 %10445 }
 0xe73   : > { %17919 = vmatprep.subr.bf16.mxu0 %v17918_v58 }
 0xe76   : > { %17921 = vmatpush1.bf16.msra.mxu0 %v17920_v17  ;;  %v10456_v22 = vpop.permute.xlu1 %10455 }
 0xe77   : > { %17923 = vmatprep.subr.bf16.mxu0 %v17922_v38  ;;  %v10441_v38 = vpop.permute.xlu0 %10440 }
 0xe7a   : > { %17925 = vmatpush1.bf16.msra.mxu0 %v17924_v2 }
 0xe7b   : > { %17927 = vmatprep.subr.bf16.mxu0 %v17926_v48  ;;  %v10451_v26 = vpop.permute.xlu0 %10450 }
 0xe7e   : > { %17929 = vmatpush1.bf16.msra.mxu0 %v17928_v0 }
 0xe7f   : > { %17931 = vmatprep.subr.bf16.mxu0 %v17930_v25  ;;  %v10461_v27 = vpop.permute.xlu0 %10460 }
 0xe82   : > { %17933 = vmatpush1.bf16.msra.mxu0 %v17932_v39 }
 0xe83   : > { %17935 = vmatprep.subr.bf16.mxu0 %v17934_v8 }
 0xe86   : > { %17937 = vmatpush1.bf16.msra.mxu0 %v17936_v19 }
 0xe87   : > { %17939 = vmatprep.subr.bf16.mxu0 %v17938_v60 }
 0xe8a   : > { %17941 = vmatpush1.bf16.msra.mxu0 %v17940_v4 }
 0xe8b   : > { %17943 = vmatprep.subr.bf16.mxu0 %v17942_v50 }
 0xe8e   : > { %17945 = vmatpush1.bf16.msra.mxu0 %v17944_v46  ;;  %v10466_v46 = vpop.permute.xlu1 %10465 }
 0xe8f   : > { %17947 = vmatprep.subr.bf16.mxu0 %v17946_v45 }
 0xe92   : > { %17949 = vmatpush1.bf16.msra.mxu0 %v17948_v63 }
 0xe93   : > { %17951 = vmatprep.subr.bf16.mxu0 %v17950_v55 }
 0xe96   : > { %17953 = vmatpush1.bf16.msra.mxu0 %v17952_v36 }
 0xf16   : > { %v10357_v32 = vpop.f32.mrb[56].mxu0 }
 0xf17   : > { %v10359_v10 = vpop.f32.mrb[57].mxu0  ;;  %v10468_v59 = vadd.f32 %v10431_v30, %v10357_v32 }
 0xf18   : > { %v10469_v34 = vadd.f32 %v10431_v30, %v10359_v10 }
 0xf19   : > { %v10484_v33 = vmax.f32 %v10468_v59, 0.0  ;;  %v17826_v59 = vpack.c.bf16 %v10588_v62, %v10586_v49  ;;  %v10623_v49 = vld [vmem:[%s24172_s14 + $0x130] sm:$0xff]  ;;  %v10626_v62 = vld [vmem:[%s24172_s14 + $0x148] sm:$0xff] }
 0xf1a   : > { %v10363_v18 = vpop.f32.mrb[58].mxu0  ;;  %v10485_v3 = vmax.f32 %v10469_v34, 0.0  ;;  %v10587_v34 = vld [vmem:[%s24172_s14 + $0x10] sm:$0xff] }
 0xf1b   : > { %v10470_v57 = vadd.f32 %v10436_v20, %v10363_v18  ;;  %v10365_v24 = vpop.f32.mrb[59].mxu0  ;;  %v10590_v18 = vld [vmem:[%s24172_s14 + $0x28] sm:$0xff] }
 0xf1c   : > { %v10471_v15 = vadd.f32 %v10436_v20, %v10365_v24  ;;  %v10585_v20 = vld [vmem:[%s24172_s14] sm:$0xff] }
 0xf1d   : > { %v10486_v58 = vmax.f32 %v10470_v57, 0.0  ;;  %v10592_v57 = vld [vmem:[%s24172_s14 + $0x38] sm:$0xff]  ;;  %v10500_v24 = vld [vmem:[%s24244_s23] sm:$0xff] }
 0xf1e   : > { %v10487_v28 = vmax.f32 %v10471_v15, 0.0  ;;  %v10369_v23 = vpop.f32.mrb[60].mxu0  ;;  %v17828_v15 = vpack.c.bf16 %v10587_v34, %v10585_v20  ;;  %v10630_v20 = vld [vmem:[%s24172_s14 + $0x168] sm:$0xff]  ;;  %v10632_v34 = vld [vmem:[%s24172_s14 + $0x178] sm:$0xff] }
 0xf1f   : > { %v17812_v53 = vpack.c.bf16 %v10486_v58, %v10484_v33  ;;  %v10371_v17 = vpop.f32.mrb[61].mxu0  ;;  %v10472_v52 = vadd.f32 %v10441_v38, %v10369_v23  ;;  %v17830_v33 = vpack.c.bf16 %v10592_v57, %v10590_v18  ;;  %v10589_v58 = vld [vmem:[%s24172_s14 + $0x20] sm:$0xff]  ;;  %v10596_v23 = vld [vmem:[%s24172_s14 + $0x58] sm:$0xff]  ;;  %v17870_v57 = vpack.c.bf16 %v10632_v34, %v10630_v20 }
 0xf20   : > { %v17810_v16 = vpack.c.bf16 %v10487_v28, %v10485_v3  ;;  %v10473_v7 = vadd.f32 %v10441_v38, %v10371_v17  ;;  %v10591_v3 = vld [vmem:[%s24172_s14 + $0x30] sm:$0xff]  ;;  %v10594_v28 = vld [vmem:[%s24172_s14 + $0x48] sm:$0xff]  ;;  %v13071_v34 = vld [vmem:[%s24172_s14 + $0x640] sm:$0xff] }
 0xf21   : > { %v10488_v1 = vmax.f32 %v10472_v52, 0.0  ;;  %v17832_v17 = vpack.c.bf16 %v10591_v3, %v10589_v58  ;;  %v17834_v38 = vpack.c.bf16 %v10596_v23, %v10594_v28  ;;  %v10595_v52 = vld [vmem:[%s24172_s14 + $0x50] sm:$0xff]  ;;  %v10636_v58 = vld [vmem:[%s24172_s14 + $0x198] sm:$0xff]  ;;  %v10633_v23 = vld [vmem:[%s24172_s14 + $0x180] sm:$0xff] }
 0xf22   : > { %v10375_v2 = vpop.f32.mrb[62].mxu0  ;;  %17811 = vmatprep.subr.bf16.mxu1 %v17810_v16  ;;  %v10489_v0 = vmax.f32 %v10473_v7, 0.0  ;;  %v10593_v16 = vld [vmem:[%s24172_s14 + $0x40] sm:$0xff] }
 0xf23   : > { %v10474_v48 = vadd.f32 %v10446_v43, %v10375_v2  ;;  %v10377_v37 = vpop.f32.mrb[63].mxu0  ;;  %17813 = vmatpush1.bf16.msra.mxu1 %v17812_v53  ;;  %v10501_v53 = vld [vmem:[%s24244_s23 + $0x8] sm:$0x1]  ;;  %v17836_v7 = vpack.c.bf16 %v10595_v52, %v10593_v16 }
 0xf24   : > { %v10475_v41 = vadd.f32 %v10446_v43, %v10377_v37  ;;  %v10600_v43 = vld [vmem:[%s24172_s14 + $0x78] sm:$0xff]  ;;  %v10599_v37 = vld [vmem:[%s24172_s14 + $0x70] sm:$0xff] }
 0xf25   : > { %v10490_v29 = vmax.f32 %v10474_v48, 0.0  ;;  %v10597_v48 = vld [vmem:[%s24172_s14 + $0x60] sm:$0xff] }
 0xf26   : > { %v10491_v25 = vmax.f32 %v10475_v41, 0.0  ;;  %v10381_v54 = vpop.f32.mrb[64].mxu0  ;;  %v10602_v41 = vld [vmem:[%s24172_s14 + $0x88] sm:$0xff] }
 0xf27   : > { %v17816_v13 = vpack.c.bf16 %v10490_v29, %v10488_v1  ;;  %v10383_v11 = vpop.f32.mrb[65].mxu0  ;;  %v10476_v8 = vadd.f32 %v10451_v26, %v10381_v54  ;;  %v10604_v1 = vld [vmem:[%s24172_s14 + $0x98] sm:$0xff]  ;;  %v17840_v29 = vpack.c.bf16 %v10599_v37, %v10597_v48  ;;  %v10603_v54 = vld [vmem:[%s24172_s14 + $0x90] sm:$0xff] }
 0xf28   : > { %v17814_v39 = vpack.c.bf16 %v10491_v25, %v10489_v0  ;;  %v10477_v21 = vadd.f32 %v10451_v26, %v10383_v11  ;;  %v17842_v0 = vpack.c.bf16 %v10604_v1, %v10602_v41  ;;  %v10601_v25 = vld [vmem:[%s24172_s14 + $0x80] sm:$0xff]  ;;  %v10608_v11 = vld [vmem:[%s24172_s14 + $0xb8] sm:$0xff]  ;;  %v10643_v1 = vld [vmem:[%s24172_s14 + $0x1d0] sm:$0xff] }
 0xf29   : > { %v10492_v9 = vmax.f32 %v10476_v8, 0.0  ;;  %v17844_v26 = vpack.c.bf16 %v10603_v54, %v10601_v25  ;;  %v10605_v8 = vld [vmem:[%s24172_s14 + $0xa0] sm:$0xff] }
 0xf2a   : > { %v10387_v6 = vpop.f32.mrb[66].mxu0  ;;  %17815 = vmatprep.subr.bf16.mxu1 %v17814_v39  ;;  %v10493_v5 = vmax.f32 %v10477_v21, 0.0  ;;  %v10610_v21 = vld [vmem:[%s24172_s14 + $0xc8] sm:$0xff]  ;;  %v10641_v41 = vld [vmem:[%s24172_s14 + $0x1c0] sm:$0xff] }
 0xf2b   : > { %v10478_v35 = vadd.f32 %v10456_v22, %v10387_v6  ;;  %v10389_v19 = vpop.f32.mrb[67].mxu0  ;;  %17817 = vmatpush1.bf16.msra.mxu1 %v17816_v13  ;;  %v10606_v13 = vld [vmem:[%s24172_s14 + $0xa8] sm:$0xff]  ;;  %v10612_v6 = vld [vmem:[%s24172_s14 + $0xd8] sm:$0xff]  ;;  %v17884_v25 = vpack.c.bf16 %v10643_v1, %v10641_v41  ;;  %v13015_v1 = vld [vmem:[%s24172_s14 + $0x480] sm:$0xff] }
 0xf2c   : > { %v10479_v60 = vadd.f32 %v10456_v22, %v10389_v19  ;;  %v17846_v39 = vpack.c.bf16 %v10608_v11, %v10606_v13  ;;  %v10607_v22 = vld [vmem:[%s24172_s14 + $0xb0] sm:$0xff]  ;;  %v17850_v19 = vpack.c.bf16 %v10612_v6, %v10610_v21  ;;  %v10645_v13 = vld [vmem:[%s24172_s14 + $0x1e0] sm:$0xff]  ;;  %v13066_v6 = vld [vmem:[%s24172_s14 + $0x618] sm:$0xff] }
 0xf2d   : > { %v10494_v12 = vmax.f32 %v10478_v35, 0.0  ;;  %v17848_v35 = vpack.c.bf16 %v10607_v22, %v10605_v8  ;;  %v10647_v11 = vld [vmem:[%s24172_s14 + $0x1f0] sm:$0xff]  ;;  %v13002_v8 = vld [vmem:[%s24172_s14 + $0x418] sm:$0xff]  ;;  %v13064_v22 = vld [vmem:[%s24172_s14 + $0x608] sm:$0xff] }
 0xf2e   : > { %v10495_v61 = vmax.f32 %v10479_v60, 0.0  ;;  %v10393_v4 = vpop.f32.mrb[68].mxu0  ;;  %v10609_v60 = vld [vmem:[%s24172_s14 + $0xc0] sm:$0xff] }
 0xf2f   : > { %v17820_v50 = vpack.c.bf16 %v10494_v12, %v10492_v9  ;;  %v10395_v40 = vpop.f32.mrb[69].mxu0  ;;  %v10480_v42 = vadd.f32 %v10461_v27, %v10393_v4  ;;  %v10611_v9 = vld [vmem:[%s24172_s14 + $0xd0] sm:$0xff]  ;;  %v10614_v12 = vld [vmem:[%s24172_s14 + $0xe8] sm:$0xff] }
 0xf30   : > { %v17818_v56 = vpack.c.bf16 %v10495_v61, %v10493_v5  ;;  %v10481_v45 = vadd.f32 %v10461_v27, %v10395_v40  ;;  %v10616_v5 = vld [vmem:[%s24172_s14 + $0xf8] sm:$0xff]  ;;  %v17852_v61 = vpack.c.bf16 %v10611_v9, %v10609_v60  ;;  %v10615_v40 = vld [vmem:[%s24172_s14 + $0xf0] sm:$0xff]  ;;  %v10618_v27 = vld [vmem:[%s24172_s14 + $0x108] sm:$0xff] }
 0xf31   : > { %v10496_v63 = vmax.f32 %v10480_v42, 0.0  ;;  %v17854_v4 = vpack.c.bf16 %v10616_v5, %v10614_v12  ;;  %v13001_v60 = vld [vmem:[%s24172_s14 + $0x410] sm:$0xff]  ;;  %v13063_v9 = vld [vmem:[%s24172_s14 + $0x600] sm:$0xff]  ;;  %v13004_v5 = vld [vmem:[%s24172_s14 + $0x428] sm:$0xff] }
 0xf32   : > { %v10399_v47 = vpop.f32.mrb[70].mxu0  ;;  %17819 = vmatprep.subr.bf16.mxu1 %v17818_v56  ;;  %v10497_v36 = vmax.f32 %v10481_v45, 0.0  ;;  %v10620_v56 = vld [vmem:[%s24172_s14 + $0x118] sm:$0xff]  ;;  %v10617_v45 = vld [vmem:[%s24172_s14 + $0x100] sm:$0xff]  ;;  %v13065_v12 = vld [vmem:[%s24172_s14 + $0x610] sm:$0xff] }
 0xf33   : > { %v10482_v44 = vadd.f32 %v10466_v46, %v10399_v47  ;;  %v10401_v14 = vpop.f32.mrb[71].mxu0  ;;  %17821 = vmatpush1.bf16.msra.mxu1 %v17820_v50  ;;  %v10613_v50 = vld [vmem:[%s24172_s14 + $0xe0] sm:$0xff]  ;;  %v10619_v47 = vld [vmem:[%s24172_s14 + $0x110] sm:$0xff] }
 0xf34   : > { %v10483_v51 = vadd.f32 %v10466_v46, %v10401_v14  ;;  %v17856_v42 = vpack.c.bf16 %v10615_v40, %v10613_v50  ;;  %v17858_v46 = vpack.c.bf16 %v10620_v56, %v10618_v27  ;;  %v10624_v14 = vld [vmem:[%s24172_s14 + $0x138] sm:$0xff]  ;;  %v18020_v56 = vpack.c.bf16 %v13065_v12, %v13063_v9  ;;  %v13083_v9 = vld [vmem:[%s24172_s14 + $0x6a0] sm:$0xff]  ;;  %v13085_v12 = vld [vmem:[%s24172_s14 + $0x6b0] sm:$0xff] }
 0xf35   : > { %v10498_v55 = vmax.f32 %v10482_v44, 0.0  ;;  %v10622_v44 = vld [vmem:[%s24172_s14 + $0x128] sm:$0xff]  ;;  %v13070_v50 = vld [vmem:[%s24172_s14 + $0x638] sm:$0xff] }
 0xf36   : > { %v10499_v32 = vmax.f32 %v10483_v51, 0.0  ;;  %v17860_v51 = vpack.c.bf16 %v10619_v47, %v10617_v45 }
 0xf37   : > { %v17824_v10 = vpack.c.bf16 %v10498_v55, %v10496_v63  ;;  %v17862_v63 = vpack.c.bf16 %v10624_v14, %v10622_v44  ;;  %v10621_v55 = vld [vmem:[%s24172_s14 + $0x120] sm:$0xff]  ;;  %v13005_v44 = vld [vmem:[%s24172_s14 + $0x430] sm:$0xff] }
 0xf38   : > { %v17822_v30 = vpack.c.bf16 %v10499_v32, %v10497_v36  ;;  %v10628_v36 = vld [vmem:[%s24172_s14 + $0x158] sm:$0xff]  ;;  %v17864_v32 = vpack.c.bf16 %v10623_v49, %v10621_v55  ;;  %v13067_v14 = vld [vmem:[%s24172_s14 + $0x620] sm:$0xff]  ;;  %v13072_v49 = vld [vmem:[%s24172_s14 + $0x648] sm:$0xff] }
 0xf39   : > { %v13010_v55 = vld [vmem:[%s24172_s14 + $0x458] sm:$0xff] }
 0xf3a   : > { %17823 = vmatprep.subr.bf16.mxu1 %v17822_v30  ;;  %v10625_v30 = vld [vmem:[%s24172_s14 + $0x140] sm:$0xff] }
 0xf3b   : > { %17825 = vmatpush1.bf16.msra.mxu1 %v17824_v10  ;;  %v17866_v10 = vpack.c.bf16 %v10628_v36, %v10626_v62  ;;  %v13074_v62 = vld [vmem:[%s24172_s14 + $0x658] sm:$0xff] }
 0xf3c   : > { %17827 = vmatprep.subr.bf16.mxu1 %v17826_v59  ;;  %v10627_v59 = vld [vmem:[%s24172_s14 + $0x150] sm:$0xff] }
 0xf3d   : > { %v17868_v18 = vpack.c.bf16 %v10627_v59, %v10625_v30  ;;  %v13007_v30 = vld [vmem:[%s24172_s14 + $0x440] sm:$0xff]  ;;  %v13009_v59 = vld [vmem:[%s24172_s14 + $0x450] sm:$0xff] }
 0xf3e   : > { %12933 = vmatmul.mubr.msk.f32.vlgmr.msra.gmra.mrb[112].mxu1 %vm1460_vm1, %v10500_v24  ;;  %v10629_v24 = vld [vmem:[%s24172_s14 + $0x160] sm:$0xff] }
 0xf3f   : > { %10578 = vmatprep.mubr.f32.mxu1 %v24243_v31  ;;  %17829 = vmatpush1.bf16.msra.mxu1 %v17828_v15  ;;  %v10598_v31 = vld [vmem:[%s24172_s14 + $0x68] sm:$0xff]  ;;  %v10631_v15 = vld [vmem:[%s24172_s14 + $0x170] sm:$0xff] }
 0xf40   : > { %17831 = vmatprep.subr.bf16.mxu1 %v17830_v33  ;;  %v17838_v2 = vpack.c.bf16 %v10600_v43, %v10598_v31  ;;  %v10634_v33 = vld [vmem:[%s24172_s14 + $0x188] sm:$0xff]  ;;  %v17872_v3 = vpack.c.bf16 %v10631_v15, %v10629_v24  ;;  %v10637_v31 = vld [vmem:[%s24172_s14 + $0x1a0] sm:$0xff]  ;;  %v10639_v43 = vld [vmem:[%s24172_s14 + $0x1b0] sm:$0xff]  ;;  %v18026_v15 = vpack.c.bf16 %v13074_v62, %v13072_v49 }
 0xf41   : > { %v17874_v28 = vpack.c.bf16 %v10636_v58, %v10634_v33  ;;  %v17880_v48 = vpack.c.bf16 %v10639_v43, %v10637_v31  ;;  %v13014_v33 = vld [vmem:[%s24172_s14 + $0x478] sm:$0xff]  ;;  %v13076_v58 = vld [vmem:[%s24172_s14 + $0x668] sm:$0xff]  ;;  %v13077_v31 = vld [vmem:[%s24172_s14 + $0x670] sm:$0xff] }
 0xf42   : > { %12934 = vmatmul.mubr.msk.f32.gmra.mrb[114].mxu1 %vm1460_vm1, %v10501_v53  ;;  %v10635_v53 = vld [vmem:[%s24172_s14 + $0x190] sm:$0xff]  ;;  %v13016_v43 = vld [vmem:[%s24172_s14 + $0x488] sm:$0xff]  ;;  %v13094_v62 = vld [vmem:[%s24172_s14 + $0x6f8] sm:$0xff] }
 0xf43   : > { %17833 = vmatpush1.bf16.msra.mxu1 %v17832_v17  ;;  %v10638_v17 = vld [vmem:[%s24172_s14 + $0x1a8] sm:$0xff]  ;;  %v17876_v16 = vpack.c.bf16 %v10635_v53, %v10633_v23  ;;  %v13011_v53 = vld [vmem:[%s24172_s14 + $0x460] sm:$0xff] }
 0xf44   : > { %17835 = vmatprep.subr.bf16.mxu1 %v17834_v38  ;;  %v10640_v38 = vld [vmem:[%s24172_s14 + $0x1b8] sm:$0xff]  ;;  %v13092_v49 = vld [vmem:[%s24172_s14 + $0x6e8] sm:$0xff] }
 0xf45   : > { %v17878_v52 = vpack.c.bf16 %v10640_v38, %v10638_v17  ;;  %v13013_v17 = vld [vmem:[%s24172_s14 + $0x470] sm:$0xff] }
 0xf47   : > { %17837 = vmatpush1.bf16.msra.mxu1 %v17836_v7  ;;  %v10642_v7 = vld [vmem:[%s24172_s14 + $0x1c8] sm:$0xff] }
 0xf48   : > { %17839 = vmatprep.subr.bf16.mxu1 %v17838_v2  ;;  %v10644_v2 = vld [vmem:[%s24172_s14 + $0x1d8] sm:$0xff] }
 0xf49   : > { %v17882_v37 = vpack.c.bf16 %v10644_v2, %v10642_v7  ;;  %v13018_v7 = vld [vmem:[%s24172_s14 + $0x498] sm:$0xff]  ;;  %v13080_v2 = vld [vmem:[%s24172_s14 + $0x688] sm:$0xff] }
 0xf4b   : > { %17841 = vmatpush1.bf16.msra.mxu1 %v17840_v29  ;;  %v10646_v29 = vld [vmem:[%s24172_s14 + $0x1e8] sm:$0xff] }
 0xf4c   : > { %17843 = vmatprep.subr.bf16.mxu1 %v17842_v0  ;;  %v10648_v0 = vld [vmem:[%s24172_s14 + $0x1f8] sm:$0xff] }
 0xf4d   : > { %v17886_v54 = vpack.c.bf16 %v10648_v0, %v10646_v29  ;;  %v13017_v29 = vld [vmem:[%s24172_s14 + $0x490] sm:$0xff]  ;;  %v17970_v0 = vpack.c.bf16 %v13018_v7, %v13016_v43  ;;  %v13036_v43 = vld [vmem:[%s24172_s14 + $0x528] sm:$0xff]  ;;  %v13038_v7 = vld [vmem:[%s24172_s14 + $0x538] sm:$0xff] }
 0xf4f   : > { %17845 = vmatpush1.bf16.msra.mxu1 %v17844_v26  ;;  %v17888_v26 = vpack.c.bf16 %v10647_v11, %v10645_v13  ;;  %v13081_v13 = vld [vmem:[%s24172_s14 + $0x690] sm:$0xff]  ;;  %v13020_v11 = vld [vmem:[%s24172_s14 + $0x4a8] sm:$0xff] }
 0xf50   : > { %17847 = vmatprep.subr.bf16.mxu1 %v17846_v39  ;;  %v13000_v39 = vld [vmem:[%s24172_s14 + $0x408] sm:$0xff] }
 0xf51   : > { %v17954_v21 = vpack.c.bf16 %v13002_v8, %v13000_v39  ;;  %v13084_v39 = vld [vmem:[%s24172_s14 + $0x6a8] sm:$0xff]  ;;  %v13086_v8 = vld [vmem:[%s24172_s14 + $0x6b8] sm:$0xff] }
 0xf53   : > { %17849 = vmatpush1.bf16.msra.mxu1 %v17848_v35  ;;  %v18018_v35 = vpack.c.bf16 %v13066_v6, %v13064_v22  ;;  %v17972_v22 = vpack.c.bf16 %v13017_v29, %v13015_v1  ;;  %v13019_v6 = vld [vmem:[%s24172_s14 + $0x4a0] sm:$0xff]  ;;  %v13037_v29 = vld [vmem:[%s24172_s14 + $0x530] sm:$0xff] }
 0xf54   : > { %17851 = vmatprep.subr.bf16.mxu1 %v17850_v19  ;;  %v12999_v19 = vld [vmem:[%s24172_s14 + $0x400] sm:$0xff] }
 0xf55   : > { %18019 = vmatprep.subr.bf16.mxu0 %v18018_v35  ;;  %v17956_v27 = vpack.c.bf16 %v13001_v60, %v12999_v19  ;;  %v13021_v35 = vld [vmem:[%s24172_s14 + $0x4b0] sm:$0xff]  ;;  %v18038_v60 = vpack.c.bf16 %v13086_v8, %v13084_v39  ;;  %v13035_v1 = vld [vmem:[%s24172_s14 + $0x520] sm:$0xff]  ;;  %v13104_v39 = vld [vmem:[%s24172_s14 + $0x748] sm:$0xff] }
 0xf56   : > { %v13106_v8 = vld [vmem:[%s24172_s14 + $0x758] sm:$0xff] }
 0xf57   : > { %17853 = vmatpush1.bf16.msra.mxu1 %v17852_v61  ;;  %v13006_v61 = vld [vmem:[%s24172_s14 + $0x438] sm:$0xff] }
 0xf58   : > { %17855 = vmatprep.subr.bf16.mxu1 %v17854_v4  ;;  %v13068_v4 = vld [vmem:[%s24172_s14 + $0x628] sm:$0xff]  ;;  %v17958_v45 = vpack.c.bf16 %v13006_v61, %v13004_v5  ;;  %v13026_v61 = vld [vmem:[%s24172_s14 + $0x4d8] sm:$0xff] }
 0xf59   : > { %v18022_v47 = vpack.c.bf16 %v13070_v50, %v13068_v4  ;;  %v13024_v5 = vld [vmem:[%s24172_s14 + $0x4c8] sm:$0xff]  ;;  %v13090_v50 = vld [vmem:[%s24172_s14 + $0x6d8] sm:$0xff] }
 0xf5a   : > { %v13088_v4 = vld [vmem:[%s24172_s14 + $0x6c8] sm:$0xff] }
 0xf5b   : > { %17857 = vmatpush1.bf16.msra.mxu1 %v17856_v42  ;;  %v13003_v42 = vld [vmem:[%s24172_s14 + $0x420] sm:$0xff] }
 0xf5c   : > { %17859 = vmatprep.subr.bf16.mxu1 %v17858_v46 }
 0xf5f   : > { %17861 = vmatpush1.bf16.msra.mxu1 %v17860_v51  ;;  %v13069_v51 = vld [vmem:[%s24172_s14 + $0x630] sm:$0xff] }
 0xf60   : > { %17863 = vmatprep.subr.bf16.mxu1 %v17862_v63  ;;  %v13008_v63 = vld [vmem:[%s24172_s14 + $0x448] sm:$0xff] }
 0xf61   : > { %v17962_v24 = vpack.c.bf16 %v13010_v55, %v13008_v63  ;;  %v13028_v63 = vld [vmem:[%s24172_s14 + $0x4e8] sm:$0xff]  ;;  %v13030_v55 = vld [vmem:[%s24172_s14 + $0x4f8] sm:$0xff] }
 0xf63   : > { %17865 = vmatpush1.bf16.msra.mxu1 %v17864_v32  ;;  %v17960_v32 = vpack.c.bf16 %v13005_v44, %v13003_v42  ;;  %v13023_v42 = vld [vmem:[%s24172_s14 + $0x4c0] sm:$0xff]  ;;  %v18042_v44 = vpack.c.bf16 %v13090_v50, %v13088_v4  ;;  %v13108_v4 = vld [vmem:[%s24172_s14 + $0x768] sm:$0xff]  ;;  %v13110_v50 = vld [vmem:[%s24172_s14 + $0x778] sm:$0xff] }
 0xf64   : > { %17867 = vmatprep.subr.bf16.mxu1 %v17866_v10  ;;  %v18024_v10 = vpack.c.bf16 %v13069_v51, %v13067_v14  ;;  %v13087_v14 = vld [vmem:[%s24172_s14 + $0x6c0] sm:$0xff]  ;;  %v13089_v51 = vld [vmem:[%s24172_s14 + $0x6d0] sm:$0xff] }
 0xf67   : > { %17869 = vmatpush1.bf16.msra.mxu1 %v17868_v18  ;;  %v13073_v18 = vld [vmem:[%s24172_s14 + $0x650] sm:$0xff] }
 0xf68   : > { %17871 = vmatprep.subr.bf16.mxu1 %v17870_v57  ;;  %v13012_v57 = vld [vmem:[%s24172_s14 + $0x468] sm:$0xff]  ;;  %v18028_v23 = vpack.c.bf16 %v13073_v18, %v13071_v34  ;;  %v17982_v34 = vpack.c.bf16 %v13030_v55, %v13028_v63  ;;  %v18046_v18 = vpack.c.bf16 %v13094_v62, %v13092_v49  ;;  %v13050_v55 = vld [vmem:[%s24172_s14 + $0x598] sm:$0xff] }
 0xf69   : > { %v17966_v38 = vpack.c.bf16 %v13014_v33, %v13012_v57  ;;  %v13091_v57 = vld [vmem:[%s24172_s14 + $0x6e0] sm:$0xff]  ;;  %v13034_v33 = vld [vmem:[%s24172_s14 + $0x518] sm:$0xff]  ;;  %v13048_v63 = vld [vmem:[%s24172_s14 + $0x588] sm:$0xff] }
 0xf6a   : > { %v13112_v49 = vld [vmem:[%s24172_s14 + $0x788] sm:$0xff]  ;;  %v13114_v62 = vld [vmem:[%s24172_s14 + $0x798] sm:$0xff] }
 0xf6b   : > { %17873 = vmatpush1.bf16.msra.mxu1 %v17872_v3  ;;  %v13078_v3 = vld [vmem:[%s24172_s14 + $0x678] sm:$0xff] }
 0xf6c   : > { %17875 = vmatprep.subr.bf16.mxu1 %v17874_v28  ;;  %v17964_v28 = vpack.c.bf16 %v13009_v59, %v13007_v30  ;;  %v13027_v30 = vld [vmem:[%s24172_s14 + $0x4e0] sm:$0xff]  ;;  %v13029_v59 = vld [vmem:[%s24172_s14 + $0x4f0] sm:$0xff] }
 0xf6f   : > { %17877 = vmatpush1.bf16.msra.mxu1 %v17876_v16  ;;  %v18030_v16 = vpack.c.bf16 %v13078_v3, %v13076_v58  ;;  %v13096_v58 = vld [vmem:[%s24172_s14 + $0x708] sm:$0xff]  ;;  %v13098_v3 = vld [vmem:[%s24172_s14 + $0x718] sm:$0xff] }
 0xf70   : > { %17879 = vmatprep.subr.bf16.mxu1 %v17878_v52  ;;  %v13075_v52 = vld [vmem:[%s24172_s14 + $0x660] sm:$0xff] }
 0xf71   : > { %v18032_v41 = vpack.c.bf16 %v13077_v31, %v13075_v52  ;;  %v13095_v52 = vld [vmem:[%s24172_s14 + $0x700] sm:$0xff]  ;;  %v13097_v31 = vld [vmem:[%s24172_s14 + $0x710] sm:$0xff] }
 0xf73   : > { %17881 = vmatpush1.bf16.msra.mxu1 %v17880_v48  ;;  %v13082_v48 = vld [vmem:[%s24172_s14 + $0x698] sm:$0xff] }
 0xf74   : > { %17883 = vmatprep.subr.bf16.mxu1 %v17882_v37  ;;  %v17968_v37 = vpack.c.bf16 %v13013_v17, %v13011_v53  ;;  %v13031_v53 = vld [vmem:[%s24172_s14 + $0x500] sm:$0xff]  ;;  %v13033_v17 = vld [vmem:[%s24172_s14 + $0x510] sm:$0xff] }
 0xf77   : > { %17885 = vmatpush1.bf16.msra.mxu1 %v17884_v25  ;;  %v18034_v25 = vpack.c.bf16 %v13082_v48, %v13080_v2  ;;  %v13100_v2 = vld [vmem:[%s24172_s14 + $0x728] sm:$0xff]  ;;  %v13102_v48 = vld [vmem:[%s24172_s14 + $0x738] sm:$0xff] }
 0xf78   : > { %17887 = vmatprep.subr.bf16.mxu1 %v17886_v54  ;;  %v13079_v54 = vld [vmem:[%s24172_s14 + $0x680] sm:$0xff] }
 0xf7b   : > { %17889 = vmatpush1.bf16.msra.mxu1 %v17888_v26  ;;  %v13022_v26 = vld [vmem:[%s24172_s14 + $0x4b8] sm:$0xff] }
 0xf7c   : > { %17955 = vmatprep.subr.bf16.mxu1 %v17954_v21  ;;  %v18036_v21 = vpack.c.bf16 %v13081_v13, %v13079_v54  ;;  %v17974_v19 = vpack.c.bf16 %v13022_v26, %v13020_v11  ;;  %v13099_v54 = vld [vmem:[%s24172_s14 + $0x720] sm:$0xff]  ;;  %v13101_v13 = vld [vmem:[%s24172_s14 + $0x730] sm:$0xff]  ;;  %v13040_v11 = vld [vmem:[%s24172_s14 + $0x548] sm:$0xff] }
 0xf7d   : > { %v13042_v26 = vld [vmem:[%s24172_s14 + $0x558] sm:$0xff] }
0x1011   : > { %v22793_v40 = vpop.f32.mrb[112].mxu1 }
0x1012   : > { %v22798_v46 = vpop.f32.mrb[113].mxu1 }
0x1013   : > { %10713 = vmatprep.mubr.f32.mxu1 %v22798_v46  ;;  %10853 = vmatprep.mubr.f32.mxu0 %v22798_v46 }
0x1014   : > { %10714 = vmatmul.mubr.f32.vlgmr.msra.gmra.mrb[116].mxu1 %v22793_v40  ;;  %10854 = vmatmul.mubr.f32.vlgmr.msra.gmra.mrb[72].mxu0 %v22793_v40 }
0x1015   : > { %17957 = vmatpush1.bf16.msra.mxu1 %v17956_v27  ;;  %18021 = vmatpush1.bf16.msra.mxu0 %v18020_v56  ;;  %v22825_v36 = vpop.f32.mrb[114].mxu1  ;;  %v17976_v27 = vpack.c.bf16 %v13021_v35, %v13019_v6  ;;  %v18040_v56 = vpack.c.bf16 %v13085_v12, %v13083_v9  ;;  %v13039_v6 = vld [vmem:[%s24172_s14 + $0x540] sm:$0xff]  ;;  %v13041_v35 = vld [vmem:[%s24172_s14 + $0x550] sm:$0xff] }
0x1016   : > { %v22833_v20 = vpop.f32.mrb[115].mxu1  ;;  %17959 = vmatprep.subr.bf16.mxu1 %v17958_v45  ;;  %18023 = vmatprep.subr.bf16.mxu0 %v18022_v47  ;;  %v13025_v45 = vld [vmem:[%s24172_s14 + $0x4d0] sm:$0xff]  ;;  %v17978_v47 = vpack.c.bf16 %v13026_v61, %v13024_v5  ;;  %v13103_v9 = vld [vmem:[%s24172_s14 + $0x740] sm:$0xff]  ;;  %v13044_v5 = vld [vmem:[%s24172_s14 + $0x568] sm:$0xff] }
0x1017   : > { %10719 = vmatprep.mubr.f32.mxu1 %v22833_v20  ;;  %10859 = vmatprep.mubr.f32.mxu0 %v22833_v20  ;;  %v13105_v12 = vld [vmem:[%s24172_s14 + $0x750] sm:$0xff]  ;;  %v13046_v61 = vld [vmem:[%s24172_s14 + $0x578] sm:$0xff] }
0x1018   : > { %10720 = vmatmul.mubr.f32.gmra.mrb[118].mxu1 %v22825_v36  ;;  %10860 = vmatmul.mubr.f32.gmra.mrb[74].mxu0 %v22825_v36 }
0x1019   : > { %17961 = vmatpush1.bf16.msra.mxu1 %v17960_v32  ;;  %18025 = vmatpush1.bf16.msra.mxu0 %v18024_v10  ;;  %v17980_v32 = vpack.c.bf16 %v13025_v45, %v13023_v42  ;;  %v18044_v10 = vpack.c.bf16 %v13089_v51, %v13087_v14  ;;  %v13043_v42 = vld [vmem:[%s24172_s14 + $0x560] sm:$0xff]  ;;  %v13045_v45 = vld [vmem:[%s24172_s14 + $0x570] sm:$0xff] }
0x101a   : > { %11001 = vmatprep.mubr.f32.mxu1 %v22798_v46  ;;  %11149 = vmatprep.mubr.f32.mxu0 %v22798_v46  ;;  %v13107_v14 = vld [vmem:[%s24172_s14 + $0x760] sm:$0xff]  ;;  %v13109_v51 = vld [vmem:[%s24172_s14 + $0x770] sm:$0xff] }
0x101b   : > { %17963 = vmatprep.subr.bf16.mxu1 %v17962_v24  ;;  %18027 = vmatprep.subr.bf16.mxu0 %v18026_v15  ;;  %v13093_v24 = vld [vmem:[%s24172_s14 + $0x6f0] sm:$0xff]  ;;  %v13032_v15 = vld [vmem:[%s24172_s14 + $0x508] sm:$0xff] }
0x101d   : > { %17965 = vmatpush1.bf16.msra.mxu1 %v17964_v28  ;;  %18029 = vmatpush1.bf16.msra.mxu0 %v18028_v23  ;;  %v17984_v28 = vpack.c.bf16 %v13029_v59, %v13027_v30  ;;  %v18048_v23 = vpack.c.bf16 %v13093_v24, %v13091_v57  ;;  %v13047_v30 = vld [vmem:[%s24172_s14 + $0x580] sm:$0xff]  ;;  %v13049_v59 = vld [vmem:[%s24172_s14 + $0x590] sm:$0xff] }
0x101e   : > { %17967 = vmatprep.subr.bf16.mxu1 %v17966_v38  ;;  %18031 = vmatprep.subr.bf16.mxu0 %v18030_v16  ;;  %v17986_v38 = vpack.c.bf16 %v13034_v33, %v13032_v15  ;;  %v18050_v16 = vpack.c.bf16 %v13098_v3, %v13096_v58  ;;  %v13111_v57 = vld [vmem:[%s24172_s14 + $0x780] sm:$0xff]  ;;  %v13113_v24 = vld [vmem:[%s24172_s14 + $0x790] sm:$0xff]  ;;  %v13052_v15 = vld [vmem:[%s24172_s14 + $0x5a8] sm:$0xff] }
0x101f   : > { %v13054_v33 = vld [vmem:[%s24172_s14 + $0x5b8] sm:$0xff]  ;;  %v13116_v58 = vld [vmem:[%s24172_s14 + $0x7a8] sm:$0xff] }
0x1020   : > { %v13118_v3 = vld [vmem:[%s24172_s14 + $0x7b8] sm:$0xff] }
0x1021   : > { %17969 = vmatpush1.bf16.msra.mxu1 %v17968_v37  ;;  %18033 = vmatpush1.bf16.msra.mxu0 %v18032_v41  ;;  %v17988_v37 = vpack.c.bf16 %v13033_v17, %v13031_v53  ;;  %v18052_v41 = vpack.c.bf16 %v13097_v31, %v13095_v52  ;;  %v13051_v53 = vld [vmem:[%s24172_s14 + $0x5a0] sm:$0xff]  ;;  %v13053_v17 = vld [vmem:[%s24172_s14 + $0x5b0] sm:$0xff] }
0x1022   : > { %17971 = vmatprep.subr.bf16.mxu1 %v17970_v0  ;;  %18035 = vmatprep.subr.bf16.mxu0 %v18034_v25  ;;  %v17990_v0 = vpack.c.bf16 %v13038_v7, %v13036_v43  ;;  %v18054_v25 = vpack.c.bf16 %v13102_v48, %v13100_v2  ;;  %v13115_v52 = vld [vmem:[%s24172_s14 + $0x7a0] sm:$0xff]  ;;  %v13117_v31 = vld [vmem:[%s24172_s14 + $0x7b0] sm:$0xff]  ;;  %v13056_v43 = vld [vmem:[%s24172_s14 + $0x5c8] sm:$0xff] }
0x1023   : > { %v13058_v7 = vld [vmem:[%s24172_s14 + $0x5d8] sm:$0xff]  ;;  %v13120_v2 = vld [vmem:[%s24172_s14 + $0x7c8] sm:$0xff] }
0x1024   : > { %v13122_v48 = vld [vmem:[%s24172_s14 + $0x7d8] sm:$0xff] }
0x1025   : > { %17973 = vmatpush1.bf16.msra.mxu1 %v17972_v22  ;;  %18037 = vmatpush1.bf16.msra.mxu0 %v18036_v21  ;;  %v17992_v22 = vpack.c.bf16 %v13037_v29, %v13035_v1  ;;  %v18056_v21 = vpack.c.bf16 %v13101_v13, %v13099_v54  ;;  %v13055_v1 = vld [vmem:[%s24172_s14 + $0x5c0] sm:$0xff]  ;;  %v13057_v29 = vld [vmem:[%s24172_s14 + $0x5d0] sm:$0xff] }
0x1026   : > { %17975 = vmatprep.subr.bf16.mxu1 %v17974_v19  ;;  %18039 = vmatprep.subr.bf16.mxu0 %v18038_v60  ;;  %v17994_v19 = vpack.c.bf16 %v13042_v26, %v13040_v11  ;;  %v18058_v60 = vpack.c.bf16 %v13106_v8, %v13104_v39  ;;  %v13119_v54 = vld [vmem:[%s24172_s14 + $0x7c0] sm:$0xff]  ;;  %v13121_v13 = vld [vmem:[%s24172_s14 + $0x7d0] sm:$0xff]  ;;  %v13060_v11 = vld [vmem:[%s24172_s14 + $0x5e8] sm:$0xff] }
0x1027   : > { %v13062_v26 = vld [vmem:[%s24172_s14 + $0x5f8] sm:$0xff]  ;;  %v13124_v39 = vld [vmem:[%s24172_s14 + $0x7e8] sm:$0xff] }
0x1028   : > { %v13126_v8 = vld [vmem:[%s24172_s14 + $0x7f8] sm:$0xff] }
0x1029   : > { %17977 = vmatpush1.bf16.msra.mxu1 %v17976_v27  ;;  %18041 = vmatpush1.bf16.msra.mxu0 %v18040_v56  ;;  %v17996_v27 = vpack.c.bf16 %v13041_v35, %v13039_v6  ;;  %v18060_v56 = vpack.c.bf16 %v13105_v12, %v13103_v9  ;;  %v13059_v6 = vld [vmem:[%s24172_s14 + $0x5e0] sm:$0xff]  ;;  %v13061_v35 = vld [vmem:[%s24172_s14 + $0x5f0] sm:$0xff] }
0x102a   : > { %17979 = vmatprep.subr.bf16.mxu1 %v17978_v47  ;;  %18043 = vmatprep.subr.bf16.mxu0 %v18042_v44  ;;  %v17998_v47 = vpack.c.bf16 %v13046_v61, %v13044_v5  ;;  %v18062_v44 = vpack.c.bf16 %v13110_v50, %v13108_v4  ;;  %v13123_v9 = vld [vmem:[%s24172_s14 + $0x7e0] sm:$0xff]  ;;  %v13125_v12 = vld [vmem:[%s24172_s14 + $0x7f0] sm:$0xff]  ;;  %v13128_v5 = vld [vmem:[%s24172_s14 + $0x808] sm:$0xff] }
0x102b   : > { %v13130_v61 = vld [vmem:[%s24172_s14 + $0x818] sm:$0xff]  ;;  %v13192_v4 = vld [vmem:[%s24172_s14 + $0xa08] sm:$0xff] }
0x102c   : > { %v13194_v50 = vld [vmem:[%s24172_s14 + $0xa18] sm:$0xff] }
0x102d   : > { %17981 = vmatpush1.bf16.msra.mxu1 %v17980_v32  ;;  %18045 = vmatpush1.bf16.msra.mxu0 %v18044_v10  ;;  %v18000_v32 = vpack.c.bf16 %v13045_v45, %v13043_v42  ;;  %v18064_v10 = vpack.c.bf16 %v13109_v51, %v13107_v14  ;;  %v18082_v42 = vpack.c.bf16 %v13130_v61, %v13128_v5  ;;  %v13191_v14 = vld [vmem:[%s24172_s14 + $0xa00] sm:$0xff]  ;;  %v13193_v51 = vld [vmem:[%s24172_s14 + $0xa10] sm:$0xff]  ;;  %v13148_v5 = vld [vmem:[%s24172_s14 + $0x8a8] sm:$0xff] }
0x102e   : > { %17983 = vmatprep.subr.bf16.mxu1 %v17982_v34  ;;  %18047 = vmatprep.subr.bf16.mxu0 %v18046_v18  ;;  %v18002_v34 = vpack.c.bf16 %v13050_v55, %v13048_v63  ;;  %v18066_v18 = vpack.c.bf16 %v13114_v62, %v13112_v49  ;;  %v18146_v45 = vpack.c.bf16 %v13194_v50, %v13192_v4  ;;  %v13132_v63 = vld [vmem:[%s24172_s14 + $0x828] sm:$0xff]  ;;  %v13134_v55 = vld [vmem:[%s24172_s14 + $0x838] sm:$0xff] }
0x102f   : > { %v13196_v49 = vld [vmem:[%s24172_s14 + $0xa28] sm:$0xff]  ;;  %v13198_v62 = vld [vmem:[%s24172_s14 + $0xa38] sm:$0xff] }
0x1030   : > { %v13150_v61 = vld [vmem:[%s24172_s14 + $0x8b8] sm:$0xff]  ;;  %v13212_v4 = vld [vmem:[%s24172_s14 + $0xaa8] sm:$0xff] }
0x1031   : > { %17985 = vmatpush1.bf16.msra.mxu1 %v17984_v28  ;;  %18049 = vmatpush1.bf16.msra.mxu0 %v18048_v23  ;;  %v18004_v28 = vpack.c.bf16 %v13049_v59, %v13047_v30  ;;  %v18068_v23 = vpack.c.bf16 %v13113_v24, %v13111_v57  ;;  %v13131_v30 = vld [vmem:[%s24172_s14 + $0x820] sm:$0xff]  ;;  %v13133_v59 = vld [vmem:[%s24172_s14 + $0x830] sm:$0xff]  ;;  %v13214_v50 = vld [vmem:[%s24172_s14 + $0xab8] sm:$0xff] }
0x1032   : > { %17987 = vmatprep.subr.bf16.mxu1 %v17986_v38  ;;  %18051 = vmatprep.subr.bf16.mxu0 %v18050_v16  ;;  %v18006_v38 = vpack.c.bf16 %v13054_v33, %v13052_v15  ;;  %v18070_v16 = vpack.c.bf16 %v13118_v3, %v13116_v58  ;;  %v13195_v57 = vld [vmem:[%s24172_s14 + $0xa20] sm:$0xff]  ;;  %v13197_v24 = vld [vmem:[%s24172_s14 + $0xa30] sm:$0xff]  ;;  %v13136_v15 = vld [vmem:[%s24172_s14 + $0x848] sm:$0xff] }
0x1033   : > { %v13138_v33 = vld [vmem:[%s24172_s14 + $0x858] sm:$0xff]  ;;  %v13200_v58 = vld [vmem:[%s24172_s14 + $0xa48] sm:$0xff] }
0x1034   : > { %v13202_v3 = vld [vmem:[%s24172_s14 + $0xa58] sm:$0xff] }
0x1035   : > { %17989 = vmatpush1.bf16.msra.mxu1 %v17988_v37  ;;  %18053 = vmatpush1.bf16.msra.mxu0 %v18052_v41  ;;  %v18008_v37 = vpack.c.bf16 %v13053_v17, %v13051_v53  ;;  %v18072_v41 = vpack.c.bf16 %v13117_v31, %v13115_v52  ;;  %v13135_v53 = vld [vmem:[%s24172_s14 + $0x840] sm:$0xff]  ;;  %v13137_v17 = vld [vmem:[%s24172_s14 + $0x850] sm:$0xff] }
0x1036   : > { %17991 = vmatprep.subr.bf16.mxu1 %v17990_v0  ;;  %18055 = vmatprep.subr.bf16.mxu0 %v18054_v25  ;;  %v18010_v0 = vpack.c.bf16 %v13058_v7, %v13056_v43  ;;  %v18074_v25 = vpack.c.bf16 %v13122_v48, %v13120_v2  ;;  %v13199_v52 = vld [vmem:[%s24172_s14 + $0xa40] sm:$0xff]  ;;  %v13201_v31 = vld [vmem:[%s24172_s14 + $0xa50] sm:$0xff]  ;;  %v13140_v43 = vld [vmem:[%s24172_s14 + $0x868] sm:$0xff] }
0x1037   : > { %v13142_v7 = vld [vmem:[%s24172_s14 + $0x878] sm:$0xff]  ;;  %v13204_v2 = vld [vmem:[%s24172_s14 + $0xa68] sm:$0xff] }
0x1038   : > { %v13206_v48 = vld [vmem:[%s24172_s14 + $0xa78] sm:$0xff] }
0x1039   : > { %17993 = vmatpush1.bf16.msra.mxu1 %v17992_v22  ;;  %18057 = vmatpush1.bf16.msra.mxu0 %v18056_v21  ;;  %v18012_v22 = vpack.c.bf16 %v13057_v29, %v13055_v1  ;;  %v18076_v21 = vpack.c.bf16 %v13121_v13, %v13119_v54  ;;  %v13139_v1 = vld [vmem:[%s24172_s14 + $0x860] sm:$0xff]  ;;  %v13141_v29 = vld [vmem:[%s24172_s14 + $0x870] sm:$0xff] }
0x103a   : > { %17995 = vmatprep.subr.bf16.mxu1 %v17994_v19  ;;  %18059 = vmatprep.subr.bf16.mxu0 %v18058_v60  ;;  %v18014_v19 = vpack.c.bf16 %v13062_v26, %v13060_v11  ;;  %v18078_v60 = vpack.c.bf16 %v13126_v8, %v13124_v39  ;;  %v13203_v54 = vld [vmem:[%s24172_s14 + $0xa60] sm:$0xff]  ;;  %v13205_v13 = vld [vmem:[%s24172_s14 + $0xa70] sm:$0xff]  ;;  %v13144_v11 = vld [vmem:[%s24172_s14 + $0x888] sm:$0xff] }
0x103b   : > { %v13146_v26 = vld [vmem:[%s24172_s14 + $0x898] sm:$0xff]  ;;  %v13208_v39 = vld [vmem:[%s24172_s14 + $0xa88] sm:$0xff] }
0x103c   : > { %v13210_v8 = vld [vmem:[%s24172_s14 + $0xa98] sm:$0xff] }
0x103d   : > { %17997 = vmatpush1.bf16.msra.mxu1 %v17996_v27  ;;  %18061 = vmatpush1.bf16.msra.mxu0 %v18060_v56  ;;  %v18016_v27 = vpack.c.bf16 %v13061_v35, %v13059_v6  ;;  %v18080_v56 = vpack.c.bf16 %v13125_v12, %v13123_v9  ;;  %v13143_v6 = vld [vmem:[%s24172_s14 + $0x880] sm:$0xff]  ;;  %v13145_v35 = vld [vmem:[%s24172_s14 + $0x890] sm:$0xff] }
0x103e   : > { %17999 = vmatprep.subr.bf16.mxu1 %v17998_v47  ;;  %18063 = vmatprep.subr.bf16.mxu0 %v18062_v44  ;;  %v13127_v47 = vld [vmem:[%s24172_s14 + $0x800] sm:$0xff]  ;;  %v13129_v44 = vld [vmem:[%s24172_s14 + $0x810] sm:$0xff] }
0x103f   : > { %v13207_v9 = vld [vmem:[%s24172_s14 + $0xa80] sm:$0xff]  ;;  %v13209_v12 = vld [vmem:[%s24172_s14 + $0xa90] sm:$0xff] }
0x1041   : > { %18001 = vmatpush1.bf16.msra.mxu1 %v18000_v32  ;;  %18065 = vmatpush1.bf16.msra.mxu0 %v18064_v10  ;;  %v18084_v32 = vpack.c.bf16 %v13129_v44, %v13127_v47  ;;  %v18148_v10 = vpack.c.bf16 %v13193_v51, %v13191_v14  ;;  %v18102_v47 = vpack.c.bf16 %v13150_v61, %v13148_v5  ;;  %v13211_v14 = vld [vmem:[%s24172_s14 + $0xaa0] sm:$0xff]  ;;  %v13213_v51 = vld [vmem:[%s24172_s14 + $0xab0] sm:$0xff]  ;;  %v13168_v5 = vld [vmem:[%s24172_s14 + $0x948] sm:$0xff] }
0x1042   : > { %18003 = vmatprep.subr.bf16.mxu1 %v18002_v34  ;;  %18067 = vmatprep.subr.bf16.mxu0 %v18066_v18  ;;  %v18086_v34 = vpack.c.bf16 %v13134_v55, %v13132_v63  ;;  %v18150_v18 = vpack.c.bf16 %v13198_v62, %v13196_v49  ;;  %v18166_v44 = vpack.c.bf16 %v13214_v50, %v13212_v4  ;;  %v13152_v63 = vld [vmem:[%s24172_s14 + $0x8c8] sm:$0xff]  ;;  %v13154_v55 = vld [vmem:[%s24172_s14 + $0x8d8] sm:$0xff] }
0x1043   : > { %v13216_v49 = vld [vmem:[%s24172_s14 + $0xac8] sm:$0xff]  ;;  %v13218_v62 = vld [vmem:[%s24172_s14 + $0xad8] sm:$0xff] }
0x1044   : > { %v13170_v61 = vld [vmem:[%s24172_s14 + $0x958] sm:$0xff]  ;;  %v13232_v4 = vld [vmem:[%s24172_s14 + $0xb48] sm:$0xff] }
0x1045   : > { %18005 = vmatpush1.bf16.msra.mxu1 %v18004_v28  ;;  %18069 = vmatpush1.bf16.msra.mxu0 %v18068_v23  ;;  %v18088_v28 = vpack.c.bf16 %v13133_v59, %v13131_v30  ;;  %v18152_v23 = vpack.c.bf16 %v13197_v24, %v13195_v57  ;;  %v13151_v30 = vld [vmem:[%s24172_s14 + $0x8c0] sm:$0xff]  ;;  %v13153_v59 = vld [vmem:[%s24172_s14 + $0x8d0] sm:$0xff]  ;;  %v13234_v50 = vld [vmem:[%s24172_s14 + $0xb58] sm:$0xff] }
0x1046   : > { %18007 = vmatprep.subr.bf16.mxu1 %v18006_v38  ;;  %18071 = vmatprep.subr.bf16.mxu0 %v18070_v16  ;;  %v18090_v38 = vpack.c.bf16 %v13138_v33, %v13136_v15  ;;  %v18154_v16 = vpack.c.bf16 %v13202_v3, %v13200_v58  ;;  %v13215_v57 = vld [vmem:[%s24172_s14 + $0xac0] sm:$0xff]  ;;  %v13217_v24 = vld [vmem:[%s24172_s14 + $0xad0] sm:$0xff]  ;;  %v13156_v15 = vld [vmem:[%s24172_s14 + $0x8e8] sm:$0xff] }
0x1047   : > { %v13158_v33 = vld [vmem:[%s24172_s14 + $0x8f8] sm:$0xff]  ;;  %v13220_v58 = vld [vmem:[%s24172_s14 + $0xae8] sm:$0xff] }
0x1048   : > { %v13222_v3 = vld [vmem:[%s24172_s14 + $0xaf8] sm:$0xff] }
0x1049   : > { %18009 = vmatpush1.bf16.msra.mxu1 %v18008_v37  ;;  %18073 = vmatpush1.bf16.msra.mxu0 %v18072_v41  ;;  %v18092_v37 = vpack.c.bf16 %v13137_v17, %v13135_v53  ;;  %v18156_v41 = vpack.c.bf16 %v13201_v31, %v13199_v52  ;;  %v13155_v53 = vld [vmem:[%s24172_s14 + $0x8e0] sm:$0xff]  ;;  %v13157_v17 = vld [vmem:[%s24172_s14 + $0x8f0] sm:$0xff] }
0x104a   : > { %18011 = vmatprep.subr.bf16.mxu1 %v18010_v0  ;;  %18075 = vmatprep.subr.bf16.mxu0 %v18074_v25  ;;  %v18094_v0 = vpack.c.bf16 %v13142_v7, %v13140_v43  ;;  %v18158_v25 = vpack.c.bf16 %v13206_v48, %v13204_v2  ;;  %v13219_v52 = vld [vmem:[%s24172_s14 + $0xae0] sm:$0xff]  ;;  %v13221_v31 = vld [vmem:[%s24172_s14 + $0xaf0] sm:$0xff]  ;;  %v13160_v43 = vld [vmem:[%s24172_s14 + $0x908] sm:$0xff] }
0x104b   : > { %v13162_v7 = vld [vmem:[%s24172_s14 + $0x918] sm:$0xff]  ;;  %v13224_v2 = vld [vmem:[%s24172_s14 + $0xb08] sm:$0xff] }
0x104c   : > { %v13226_v48 = vld [vmem:[%s24172_s14 + $0xb18] sm:$0xff] }
0x104d   : > { %18013 = vmatpush1.bf16.msra.mxu1 %v18012_v22  ;;  %18077 = vmatpush1.bf16.msra.mxu0 %v18076_v21  ;;  %v18096_v22 = vpack.c.bf16 %v13141_v29, %v13139_v1  ;;  %v18160_v21 = vpack.c.bf16 %v13205_v13, %v13203_v54  ;;  %v13159_v1 = vld [vmem:[%s24172_s14 + $0x900] sm:$0xff]  ;;  %v13161_v29 = vld [vmem:[%s24172_s14 + $0x910] sm:$0xff] }
0x104e   : > { %18015 = vmatprep.subr.bf16.mxu1 %v18014_v19  ;;  %18079 = vmatprep.subr.bf16.mxu0 %v18078_v60  ;;  %v18098_v19 = vpack.c.bf16 %v13146_v26, %v13144_v11  ;;  %v18162_v60 = vpack.c.bf16 %v13210_v8, %v13208_v39  ;;  %v13223_v54 = vld [vmem:[%s24172_s14 + $0xb00] sm:$0xff]  ;;  %v13225_v13 = vld [vmem:[%s24172_s14 + $0xb10] sm:$0xff]  ;;  %v13164_v11 = vld [vmem:[%s24172_s14 + $0x928] sm:$0xff] }
0x104f   : > { %v13166_v26 = vld [vmem:[%s24172_s14 + $0x938] sm:$0xff]  ;;  %v13228_v39 = vld [vmem:[%s24172_s14 + $0xb28] sm:$0xff] }
0x1050   : > { %v13230_v8 = vld [vmem:[%s24172_s14 + $0xb38] sm:$0xff] }
0x1051   : > { %18017 = vmatpush1.bf16.msra.mxu1 %v18016_v27  ;;  %18081 = vmatpush1.bf16.msra.mxu0 %v18080_v56  ;;  %v18100_v27 = vpack.c.bf16 %v13145_v35, %v13143_v6  ;;  %v18164_v56 = vpack.c.bf16 %v13209_v12, %v13207_v9  ;;  %v13163_v6 = vld [vmem:[%s24172_s14 + $0x920] sm:$0xff]  ;;  %v13165_v35 = vld [vmem:[%s24172_s14 + $0x930] sm:$0xff] }
0x1052   : > { %18083 = vmatprep.subr.bf16.mxu1 %v18082_v42  ;;  %18147 = vmatprep.subr.bf16.mxu0 %v18146_v45  ;;  %v13147_v42 = vld [vmem:[%s24172_s14 + $0x8a0] sm:$0xff]  ;;  %v13149_v45 = vld [vmem:[%s24172_s14 + $0x8b0] sm:$0xff] }
0x1053   : > { %v13227_v9 = vld [vmem:[%s24172_s14 + $0xb20] sm:$0xff]  ;;  %v13229_v12 = vld [vmem:[%s24172_s14 + $0xb30] sm:$0xff] }
0x1054   : > { %11002 = vmatmul.mubr.f32.vlgmr.msra.gmra.mrb[120].mxu1 %v22793_v40  ;;  %11150 = vmatmul.mubr.f32.vlgmr.msra.gmra.mrb[76].mxu0 %v22793_v40 }
0x1055   : > { %11007 = vmatprep.mubr.f32.mxu1 %v22833_v20  ;;  %11155 = vmatprep.mubr.f32.mxu0 %v22833_v20 }
0x1056   : > { %18085 = vmatpush1.bf16.msra.mxu1 %v18084_v32  ;;  %18149 = vmatpush1.bf16.msra.mxu0 %v18148_v10  ;;  %v18104_v32 = vpack.c.bf16 %v13149_v45, %v13147_v42  ;;  %v18168_v10 = vpack.c.bf16 %v13213_v51, %v13211_v14  ;;  %v13167_v42 = vld [vmem:[%s24172_s14 + $0x940] sm:$0xff]  ;;  %v13169_v45 = vld [vmem:[%s24172_s14 + $0x950] sm:$0xff] }
0x1057   : > { %18087 = vmatprep.subr.bf16.mxu1 %v18086_v34  ;;  %18151 = vmatprep.subr.bf16.mxu0 %v18150_v18  ;;  %v18106_v34 = vpack.c.bf16 %v13154_v55, %v13152_v63  ;;  %v18170_v18 = vpack.c.bf16 %v13218_v62, %v13216_v49  ;;  %v13231_v14 = vld [vmem:[%s24172_s14 + $0xb40] sm:$0xff]  ;;  %v13233_v51 = vld [vmem:[%s24172_s14 + $0xb50] sm:$0xff]  ;;  %v13172_v63 = vld [vmem:[%s24172_s14 + $0x968] sm:$0xff] }
0x1058   : > { %11008 = vmatmul.mubr.f32.gmra.mrb[122].mxu1 %v22825_v36  ;;  %11156 = vmatmul.mubr.f32.gmra.mrb[78].mxu0 %v22825_v36  ;;  %v13174_v55 = vld [vmem:[%s24172_s14 + $0x978] sm:$0xff]  ;;  %v13236_v49 = vld [vmem:[%s24172_s14 + $0xb68] sm:$0xff] }
0x1059   : > { %11297 = vmatprep.mubr.f32.mxu1 %v22798_v46  ;;  %11445 = vmatprep.mubr.f32.mxu0 %v22798_v46  ;;  %v13238_v62 = vld [vmem:[%s24172_s14 + $0xb78] sm:$0xff] }
0x105a   : > { %18089 = vmatpush1.bf16.msra.mxu1 %v18088_v28  ;;  %18153 = vmatpush1.bf16.msra.mxu0 %v18152_v23  ;;  %v18108_v28 = vpack.c.bf16 %v13153_v59, %v13151_v30  ;;  %v18172_v23 = vpack.c.bf16 %v13217_v24, %v13215_v57  ;;  %v13171_v30 = vld [vmem:[%s24172_s14 + $0x960] sm:$0xff]  ;;  %v13173_v59 = vld [vmem:[%s24172_s14 + $0x970] sm:$0xff] }
0x105b   : > { %18091 = vmatprep.subr.bf16.mxu1 %v18090_v38  ;;  %18155 = vmatprep.subr.bf16.mxu0 %v18154_v16  ;;  %v18110_v38 = vpack.c.bf16 %v13158_v33, %v13156_v15  ;;  %v18174_v16 = vpack.c.bf16 %v13222_v3, %v13220_v58  ;;  %v13235_v57 = vld [vmem:[%s24172_s14 + $0xb60] sm:$0xff]  ;;  %v13237_v24 = vld [vmem:[%s24172_s14 + $0xb70] sm:$0xff]  ;;  %v13176_v15 = vld [vmem:[%s24172_s14 + $0x988] sm:$0xff] }
0x105c   : > { %v13178_v33 = vld [vmem:[%s24172_s14 + $0x998] sm:$0xff]  ;;  %v13240_v58 = vld [vmem:[%s24172_s14 + $0xb88] sm:$0xff] }
0x105d   : > { %v13242_v3 = vld [vmem:[%s24172_s14 + $0xb98] sm:$0xff] }
0x105e   : > { %18093 = vmatpush1.bf16.msra.mxu1 %v18092_v37  ;;  %18157 = vmatpush1.bf16.msra.mxu0 %v18156_v41  ;;  %v18112_v37 = vpack.c.bf16 %v13157_v17, %v13155_v53  ;;  %v18176_v41 = vpack.c.bf16 %v13221_v31, %v13219_v52  ;;  %v13175_v53 = vld [vmem:[%s24172_s14 + $0x980] sm:$0xff]  ;;  %v13177_v17 = vld [vmem:[%s24172_s14 + $0x990] sm:$0xff] }
0x105f   : > { %18095 = vmatprep.subr.bf16.mxu1 %v18094_v0  ;;  %18159 = vmatprep.subr.bf16.mxu0 %v18158_v25  ;;  %v18114_v0 = vpack.c.bf16 %v13162_v7, %v13160_v43  ;;  %v18178_v25 = vpack.c.bf16 %v13226_v48, %v13224_v2  ;;  %v13239_v52 = vld [vmem:[%s24172_s14 + $0xb80] sm:$0xff]  ;;  %v13241_v31 = vld [vmem:[%s24172_s14 + $0xb90] sm:$0xff]  ;;  %v13180_v43 = vld [vmem:[%s24172_s14 + $0x9a8] sm:$0xff] }
0x1060   : > { %v13182_v7 = vld [vmem:[%s24172_s14 + $0x9b8] sm:$0xff]  ;;  %v13244_v2 = vld [vmem:[%s24172_s14 + $0xba8] sm:$0xff] }
0x1061   : > { %v13246_v48 = vld [vmem:[%s24172_s14 + $0xbb8] sm:$0xff] }
0x1062   : > { %18097 = vmatpush1.bf16.msra.mxu1 %v18096_v22  ;;  %18161 = vmatpush1.bf16.msra.mxu0 %v18160_v21  ;;  %v18116_v22 = vpack.c.bf16 %v13161_v29, %v13159_v1  ;;  %v18180_v21 = vpack.c.bf16 %v13225_v13, %v13223_v54  ;;  %v13179_v1 = vld [vmem:[%s24172_s14 + $0x9a0] sm:$0xff]  ;;  %v13181_v29 = vld [vmem:[%s24172_s14 + $0x9b0] sm:$0xff] }
0x1063   : > { %18099 = vmatprep.subr.bf16.mxu1 %v18098_v19  ;;  %18163 = vmatprep.subr.bf16.mxu0 %v18162_v60  ;;  %v18118_v19 = vpack.c.bf16 %v13166_v26, %v13164_v11  ;;  %v18182_v60 = vpack.c.bf16 %v13230_v8, %v13228_v39  ;;  %v13243_v54 = vld [vmem:[%s24172_s14 + $0xba0] sm:$0xff]  ;;  %v13245_v13 = vld [vmem:[%s24172_s14 + $0xbb0] sm:$0xff]  ;;  %v13184_v11 = vld [vmem:[%s24172_s14 + $0x9c8] sm:$0xff] }
0x1064   : > { %v13186_v26 = vld [vmem:[%s24172_s14 + $0x9d8] sm:$0xff]  ;;  %v13248_v39 = vld [vmem:[%s24172_s14 + $0xbc8] sm:$0xff] }
0x1065   : > { %v13250_v8 = vld [vmem:[%s24172_s14 + $0xbd8] sm:$0xff] }
0x1066   : > { %18101 = vmatpush1.bf16.msra.mxu1 %v18100_v27  ;;  %18165 = vmatpush1.bf16.msra.mxu0 %v18164_v56  ;;  %v18120_v27 = vpack.c.bf16 %v13165_v35, %v13163_v6  ;;  %v18184_v56 = vpack.c.bf16 %v13229_v12, %v13227_v9  ;;  %v13183_v6 = vld [vmem:[%s24172_s14 + $0x9c0] sm:$0xff]  ;;  %v13185_v35 = vld [vmem:[%s24172_s14 + $0x9d0] sm:$0xff] }
0x1067   : > { %18103 = vmatprep.subr.bf16.mxu1 %v18102_v47  ;;  %18167 = vmatprep.subr.bf16.mxu0 %v18166_v44  ;;  %v18122_v47 = vpack.c.bf16 %v13170_v61, %v13168_v5  ;;  %v18186_v44 = vpack.c.bf16 %v13234_v50, %v13232_v4  ;;  %v13247_v9 = vld [vmem:[%s24172_s14 + $0xbc0] sm:$0xff]  ;;  %v13249_v12 = vld [vmem:[%s24172_s14 + $0xbd0] sm:$0xff]  ;;  %v13188_v5 = vld [vmem:[%s24172_s14 + $0x9e8] sm:$0xff] }
0x1068   : > { %v13190_v61 = vld [vmem:[%s24172_s14 + $0x9f8] sm:$0xff]  ;;  %v13252_v4 = vld [vmem:[%s24172_s14 + $0xbe8] sm:$0xff] }
0x1069   : > { %v13254_v50 = vld [vmem:[%s24172_s14 + $0xbf8] sm:$0xff] }
0x106a   : > { %18105 = vmatpush1.bf16.msra.mxu1 %v18104_v32  ;;  %18169 = vmatpush1.bf16.msra.mxu0 %v18168_v10  ;;  %v18124_v32 = vpack.c.bf16 %v13169_v45, %v13167_v42  ;;  %v18188_v10 = vpack.c.bf16 %v13233_v51, %v13231_v14  ;;  %v13187_v42 = vld [vmem:[%s24172_s14 + $0x9e0] sm:$0xff]  ;;  %v13189_v45 = vld [vmem:[%s24172_s14 + $0x9f0] sm:$0xff] }
0x106b   : > { %18107 = vmatprep.subr.bf16.mxu1 %v18106_v34  ;;  %18171 = vmatprep.subr.bf16.mxu0 %v18170_v18  ;;  %v18126_v34 = vpack.c.bf16 %v13174_v55, %v13172_v63  ;;  %v18190_v18 = vpack.c.bf16 %v13238_v62, %v13236_v49  ;;  %v13251_v14 = vld [vmem:[%s24172_s14 + $0xbe0] sm:$0xff]  ;;  %v13253_v51 = vld [vmem:[%s24172_s14 + $0xbf0] sm:$0xff]  ;;  %v13256_v63 = vld [vmem:[%s24172_s14 + $0xc08] sm:$0xff] }
0x106c   : > { %v13258_v55 = vld [vmem:[%s24172_s14 + $0xc18] sm:$0xff]  ;;  %v13320_v49 = vld [vmem:[%s24172_s14 + $0xe08] sm:$0xff] }
0x106d   : > { %v13322_v62 = vld [vmem:[%s24172_s14 + $0xe18] sm:$0xff] }
0x106e   : > { %18109 = vmatpush1.bf16.msra.mxu1 %v18108_v28  ;;  %18173 = vmatpush1.bf16.msra.mxu0 %v18172_v23  ;;  %v18128_v28 = vpack.c.bf16 %v13173_v59, %v13171_v30  ;;  %v18192_v23 = vpack.c.bf16 %v13237_v24, %v13235_v57  ;;  %v18210_v30 = vpack.c.bf16 %v13258_v55, %v13256_v63  ;;  %v13319_v57 = vld [vmem:[%s24172_s14 + $0xe00] sm:$0xff]  ;;  %v13321_v24 = vld [vmem:[%s24172_s14 + $0xe10] sm:$0xff]  ;;  %v13276_v63 = vld [vmem:[%s24172_s14 + $0xca8] sm:$0xff] }
0x106f   : > { %18111 = vmatprep.subr.bf16.mxu1 %v18110_v38  ;;  %18175 = vmatprep.subr.bf16.mxu0 %v18174_v16  ;;  %v18130_v38 = vpack.c.bf16 %v13178_v33, %v13176_v15  ;;  %v18194_v16 = vpack.c.bf16 %v13242_v3, %v13240_v58  ;;  %v18274_v59 = vpack.c.bf16 %v13322_v62, %v13320_v49  ;;  %v13260_v15 = vld [vmem:[%s24172_s14 + $0xc28] sm:$0xff]  ;;  %v13262_v33 = vld [vmem:[%s24172_s14 + $0xc38] sm:$0xff] }
0x1070   : > { %v13324_v58 = vld [vmem:[%s24172_s14 + $0xe28] sm:$0xff]  ;;  %v13326_v3 = vld [vmem:[%s24172_s14 + $0xe38] sm:$0xff] }
0x1071   : > { %v13278_v55 = vld [vmem:[%s24172_s14 + $0xcb8] sm:$0xff]  ;;  %v13340_v49 = vld [vmem:[%s24172_s14 + $0xea8] sm:$0xff] }
0x1072   : > { %18113 = vmatpush1.bf16.msra.mxu1 %v18112_v37  ;;  %18177 = vmatpush1.bf16.msra.mxu0 %v18176_v41  ;;  %v18132_v37 = vpack.c.bf16 %v13177_v17, %v13175_v53  ;;  %v18196_v41 = vpack.c.bf16 %v13241_v31, %v13239_v52  ;;  %v13259_v53 = vld [vmem:[%s24172_s14 + $0xc20] sm:$0xff]  ;;  %v13261_v17 = vld [vmem:[%s24172_s14 + $0xc30] sm:$0xff]  ;;  %v13342_v62 = vld [vmem:[%s24172_s14 + $0xeb8] sm:$0xff] }
0x1073   : > { %18115 = vmatprep.subr.bf16.mxu1 %v18114_v0  ;;  %18179 = vmatprep.subr.bf16.mxu0 %v18178_v25  ;;  %v18134_v0 = vpack.c.bf16 %v13182_v7, %v13180_v43  ;;  %v18198_v25 = vpack.c.bf16 %v13246_v48, %v13244_v2  ;;  %v13323_v52 = vld [vmem:[%s24172_s14 + $0xe20] sm:$0xff]  ;;  %v13325_v31 = vld [vmem:[%s24172_s14 + $0xe30] sm:$0xff]  ;;  %v13264_v43 = vld [vmem:[%s24172_s14 + $0xc48] sm:$0xff] }
0x1074   : > { %v13266_v7 = vld [vmem:[%s24172_s14 + $0xc58] sm:$0xff]  ;;  %v13328_v2 = vld [vmem:[%s24172_s14 + $0xe48] sm:$0xff] }
0x1075   : > { %v13330_v48 = vld [vmem:[%s24172_s14 + $0xe58] sm:$0xff] }
0x1076   : > { %18117 = vmatpush1.bf16.msra.mxu1 %v18116_v22  ;;  %18181 = vmatpush1.bf16.msra.mxu0 %v18180_v21  ;;  %v18136_v22 = vpack.c.bf16 %v13181_v29, %v13179_v1  ;;  %v18200_v21 = vpack.c.bf16 %v13245_v13, %v13243_v54  ;;  %v13263_v1 = vld [vmem:[%s24172_s14 + $0xc40] sm:$0xff]  ;;  %v13265_v29 = vld [vmem:[%s24172_s14 + $0xc50] sm:$0xff] }
0x1077   : > { %18119 = vmatprep.subr.bf16.mxu1 %v18118_v19  ;;  %18183 = vmatprep.subr.bf16.mxu0 %v18182_v60  ;;  %v18138_v19 = vpack.c.bf16 %v13186_v26, %v13184_v11  ;;  %v18202_v60 = vpack.c.bf16 %v13250_v8, %v13248_v39  ;;  %v13327_v54 = vld [vmem:[%s24172_s14 + $0xe40] sm:$0xff]  ;;  %v13329_v13 = vld [vmem:[%s24172_s14 + $0xe50] sm:$0xff]  ;;  %v13268_v11 = vld [vmem:[%s24172_s14 + $0xc68] sm:$0xff] }
0x1078   : > { %v13270_v26 = vld [vmem:[%s24172_s14 + $0xc78] sm:$0xff]  ;;  %v13332_v39 = vld [vmem:[%s24172_s14 + $0xe68] sm:$0xff] }
0x1079   : > { %v13334_v8 = vld [vmem:[%s24172_s14 + $0xe78] sm:$0xff] }
0x107a   : > { %18121 = vmatpush1.bf16.msra.mxu1 %v18120_v27  ;;  %18185 = vmatpush1.bf16.msra.mxu0 %v18184_v56  ;;  %v18140_v27 = vpack.c.bf16 %v13185_v35, %v13183_v6  ;;  %v18204_v56 = vpack.c.bf16 %v13249_v12, %v13247_v9  ;;  %v13267_v6 = vld [vmem:[%s24172_s14 + $0xc60] sm:$0xff]  ;;  %v13269_v35 = vld [vmem:[%s24172_s14 + $0xc70] sm:$0xff] }
0x107b   : > { %18123 = vmatprep.subr.bf16.mxu1 %v18122_v47  ;;  %18187 = vmatprep.subr.bf16.mxu0 %v18186_v44  ;;  %v18142_v47 = vpack.c.bf16 %v13190_v61, %v13188_v5  ;;  %v18206_v44 = vpack.c.bf16 %v13254_v50, %v13252_v4  ;;  %v13331_v9 = vld [vmem:[%s24172_s14 + $0xe60] sm:$0xff]  ;;  %v13333_v12 = vld [vmem:[%s24172_s14 + $0xe70] sm:$0xff]  ;;  %v13272_v5 = vld [vmem:[%s24172_s14 + $0xc88] sm:$0xff] }
0x107c   : > { %v13274_v61 = vld [vmem:[%s24172_s14 + $0xc98] sm:$0xff]  ;;  %v13336_v4 = vld [vmem:[%s24172_s14 + $0xe88] sm:$0xff] }
0x107d   : > { %v13338_v50 = vld [vmem:[%s24172_s14 + $0xe98] sm:$0xff] }
0x107e   : > { %18125 = vmatpush1.bf16.msra.mxu1 %v18124_v32  ;;  %18189 = vmatpush1.bf16.msra.mxu0 %v18188_v10  ;;  %v18144_v32 = vpack.c.bf16 %v13189_v45, %v13187_v42  ;;  %v18208_v10 = vpack.c.bf16 %v13253_v51, %v13251_v14  ;;  %v13271_v42 = vld [vmem:[%s24172_s14 + $0xc80] sm:$0xff]  ;;  %v13273_v45 = vld [vmem:[%s24172_s14 + $0xc90] sm:$0xff] }
0x107f   : > { %18127 = vmatprep.subr.bf16.mxu1 %v18126_v34  ;;  %18191 = vmatprep.subr.bf16.mxu0 %v18190_v18  ;;  %v13255_v34 = vld [vmem:[%s24172_s14 + $0xc00] sm:$0xff]  ;;  %v13257_v18 = vld [vmem:[%s24172_s14 + $0xc10] sm:$0xff] }
0x1080   : > { %v13335_v14 = vld [vmem:[%s24172_s14 + $0xe80] sm:$0xff]  ;;  %v13337_v51 = vld [vmem:[%s24172_s14 + $0xe90] sm:$0xff] }
0x1082   : > { %18129 = vmatpush1.bf16.msra.mxu1 %v18128_v28  ;;  %18193 = vmatpush1.bf16.msra.mxu0 %v18192_v23  ;;  %v18212_v28 = vpack.c.bf16 %v13257_v18, %v13255_v34  ;;  %v18276_v23 = vpack.c.bf16 %v13321_v24, %v13319_v57  ;;  %v18230_v34 = vpack.c.bf16 %v13278_v55, %v13276_v63  ;;  %v13339_v57 = vld [vmem:[%s24172_s14 + $0xea0] sm:$0xff]  ;;  %v13341_v24 = vld [vmem:[%s24172_s14 + $0xeb0] sm:$0xff]  ;;  %v13296_v63 = vld [vmem:[%s24172_s14 + $0xd48] sm:$0xff] }
0x1083   : > { %18131 = vmatprep.subr.bf16.mxu1 %v18130_v38  ;;  %18195 = vmatprep.subr.bf16.mxu0 %v18194_v16  ;;  %v18214_v38 = vpack.c.bf16 %v13262_v33, %v13260_v15  ;;  %v18278_v16 = vpack.c.bf16 %v13326_v3, %v13324_v58  ;;  %v18294_v18 = vpack.c.bf16 %v13342_v62, %v13340_v49  ;;  %v13280_v15 = vld [vmem:[%s24172_s14 + $0xcc8] sm:$0xff]  ;;  %v13282_v33 = vld [vmem:[%s24172_s14 + $0xcd8] sm:$0xff] }
0x1084   : > { %v13344_v58 = vld [vmem:[%s24172_s14 + $0xec8] sm:$0xff]  ;;  %v13346_v3 = vld [vmem:[%s24172_s14 + $0xed8] sm:$0xff] }
0x1085   : > { %v13298_v55 = vld [vmem:[%s24172_s14 + $0xd58] sm:$0xff]  ;;  %v13360_v49 = vld [vmem:[%s24172_s14 + $0xf48] sm:$0xff] }
0x1086   : > { %18133 = vmatpush1.bf16.msra.mxu1 %v18132_v37  ;;  %18197 = vmatpush1.bf16.msra.mxu0 %v18196_v41  ;;  %v18216_v37 = vpack.c.bf16 %v13261_v17, %v13259_v53  ;;  %v18280_v41 = vpack.c.bf16 %v13325_v31, %v13323_v52  ;;  %v13279_v53 = vld [vmem:[%s24172_s14 + $0xcc0] sm:$0xff]  ;;  %v13281_v17 = vld [vmem:[%s24172_s14 + $0xcd0] sm:$0xff]  ;;  %v13362_v62 = vld [vmem:[%s24172_s14 + $0xf58] sm:$0xff] }
0x1087   : > { %18135 = vmatprep.subr.bf16.mxu1 %v18134_v0  ;;  %18199 = vmatprep.subr.bf16.mxu0 %v18198_v25  ;;  %v18218_v0 = vpack.c.bf16 %v13266_v7, %v13264_v43  ;;  %v18282_v25 = vpack.c.bf16 %v13330_v48, %v13328_v2  ;;  %v13343_v52 = vld [vmem:[%s24172_s14 + $0xec0] sm:$0xff]  ;;  %v13345_v31 = vld [vmem:[%s24172_s14 + $0xed0] sm:$0xff]  ;;  %v13284_v43 = vld [vmem:[%s24172_s14 + $0xce8] sm:$0xff] }
0x1088   : > { %v13286_v7 = vld [vmem:[%s24172_s14 + $0xcf8] sm:$0xff]  ;;  %v13348_v2 = vld [vmem:[%s24172_s14 + $0xee8] sm:$0xff] }
0x1089   : > { %v13350_v48 = vld [vmem:[%s24172_s14 + $0xef8] sm:$0xff] }
0x108a   : > { %18137 = vmatpush1.bf16.msra.mxu1 %v18136_v22  ;;  %18201 = vmatpush1.bf16.msra.mxu0 %v18200_v21  ;;  %v18220_v22 = vpack.c.bf16 %v13265_v29, %v13263_v1  ;;  %v18284_v21 = vpack.c.bf16 %v13329_v13, %v13327_v54  ;;  %v13283_v1 = vld [vmem:[%s24172_s14 + $0xce0] sm:$0xff]  ;;  %v13285_v29 = vld [vmem:[%s24172_s14 + $0xcf0] sm:$0xff] }
0x108b   : > { %18139 = vmatprep.subr.bf16.mxu1 %v18138_v19  ;;  %18203 = vmatprep.subr.bf16.mxu0 %v18202_v60  ;;  %v18222_v19 = vpack.c.bf16 %v13270_v26, %v13268_v11  ;;  %v18286_v60 = vpack.c.bf16 %v13334_v8, %v13332_v39  ;;  %v13347_v54 = vld [vmem:[%s24172_s14 + $0xee0] sm:$0xff]  ;;  %v13349_v13 = vld [vmem:[%s24172_s14 + $0xef0] sm:$0xff]  ;;  %v13288_v11 = vld [vmem:[%s24172_s14 + $0xd08] sm:$0xff] }
0x108c   : > { %v13290_v26 = vld [vmem:[%s24172_s14 + $0xd18] sm:$0xff]  ;;  %v13352_v39 = vld [vmem:[%s24172_s14 + $0xf08] sm:$0xff] }
0x108d   : > { %v13354_v8 = vld [vmem:[%s24172_s14 + $0xf18] sm:$0xff] }
0x108e   : > { %18141 = vmatpush1.bf16.msra.mxu1 %v18140_v27  ;;  %18205 = vmatpush1.bf16.msra.mxu0 %v18204_v56  ;;  %v18224_v27 = vpack.c.bf16 %v13269_v35, %v13267_v6  ;;  %v18288_v56 = vpack.c.bf16 %v13333_v12, %v13331_v9  ;;  %v13287_v6 = vld [vmem:[%s24172_s14 + $0xd00] sm:$0xff]  ;;  %v13289_v35 = vld [vmem:[%s24172_s14 + $0xd10] sm:$0xff] }
0x108f   : > { %18143 = vmatprep.subr.bf16.mxu1 %v18142_v47  ;;  %18207 = vmatprep.subr.bf16.mxu0 %v18206_v44  ;;  %v18226_v47 = vpack.c.bf16 %v13274_v61, %v13272_v5  ;;  %v18290_v44 = vpack.c.bf16 %v13338_v50, %v13336_v4  ;;  %v13351_v9 = vld [vmem:[%s24172_s14 + $0xf00] sm:$0xff]  ;;  %v13353_v12 = vld [vmem:[%s24172_s14 + $0xf10] sm:$0xff]  ;;  %v13292_v5 = vld [vmem:[%s24172_s14 + $0xd28] sm:$0xff] }
0x1090   : > { %v13294_v61 = vld [vmem:[%s24172_s14 + $0xd38] sm:$0xff]  ;;  %v13356_v4 = vld [vmem:[%s24172_s14 + $0xf28] sm:$0xff] }
0x1091   : > { %v13358_v50 = vld [vmem:[%s24172_s14 + $0xf38] sm:$0xff] }
0x1092   : > { %18145 = vmatpush1.bf16.msra.mxu1 %v18144_v32  ;;  %18209 = vmatpush1.bf16.msra.mxu0 %v18208_v10  ;;  %v18228_v32 = vpack.c.bf16 %v13273_v45, %v13271_v42  ;;  %v18292_v10 = vpack.c.bf16 %v13337_v51, %v13335_v14  ;;  %v13291_v42 = vld [vmem:[%s24172_s14 + $0xd20] sm:$0xff]  ;;  %v13293_v45 = vld [vmem:[%s24172_s14 + $0xd30] sm:$0xff] }
0x1093   : > { %18211 = vmatprep.subr.bf16.mxu1 %v18210_v30  ;;  %18275 = vmatprep.subr.bf16.mxu0 %v18274_v59  ;;  %v13275_v30 = vld [vmem:[%s24172_s14 + $0xca0] sm:$0xff]  ;;  %v13277_v59 = vld [vmem:[%s24172_s14 + $0xcb0] sm:$0xff] }
0x1094   : > { %v13355_v14 = vld [vmem:[%s24172_s14 + $0xf20] sm:$0xff]  ;;  %v13357_v51 = vld [vmem:[%s24172_s14 + $0xf30] sm:$0xff] }
0x1095   : > { %11298 = vmatmul.mubr.f32.vlgmr.msra.gmra.mrb[124].mxu1 %v22793_v40  ;;  %11446 = vmatmul.mubr.f32.vlgmr.msra.gmra.mrb[80].mxu0 %v22793_v40 }
0x1096   : > { %11303 = vmatprep.mubr.f32.mxu1 %v22833_v20  ;;  %11451 = vmatprep.mubr.f32.mxu0 %v22833_v20 }
0x1097   : > { %18213 = vmatpush1.bf16.msra.mxu1 %v18212_v28  ;;  %18277 = vmatpush1.bf16.msra.mxu0 %v18276_v23  ;;  %v18232_v28 = vpack.c.bf16 %v13277_v59, %v13275_v30  ;;  %v18296_v23 = vpack.c.bf16 %v13341_v24, %v13339_v57  ;;  %v13295_v30 = vld [vmem:[%s24172_s14 + $0xd40] sm:$0xff]  ;;  %v13297_v59 = vld [vmem:[%s24172_s14 + $0xd50] sm:$0xff] }
0x1098   : > { %18215 = vmatprep.subr.bf16.mxu1 %v18214_v38  ;;  %18279 = vmatprep.subr.bf16.mxu0 %v18278_v16  ;;  %v18234_v38 = vpack.c.bf16 %v13282_v33, %v13280_v15  ;;  %v18298_v16 = vpack.c.bf16 %v13346_v3, %v13344_v58  ;;  %v13359_v57 = vld [vmem:[%s24172_s14 + $0xf40] sm:$0xff]  ;;  %v13361_v24 = vld [vmem:[%s24172_s14 + $0xf50] sm:$0xff]  ;;  %v13300_v15 = vld [vmem:[%s24172_s14 + $0xd68] sm:$0xff] }
0x1099   : > { %11304 = vmatmul.mubr.f32.gmra.mrb[126].mxu1 %v22825_v36  ;;  %11452 = vmatmul.mubr.f32.gmra.mrb[82].mxu0 %v22825_v36  ;;  %v13302_v33 = vld [vmem:[%s24172_s14 + $0xd78] sm:$0xff]  ;;  %v13364_v58 = vld [vmem:[%s24172_s14 + $0xf68] sm:$0xff] }
0x109a   : > { %11593 = vmatprep.mubr.f32.mxu1 %v22798_v46  ;;  %11741 = vmatprep.mubr.f32.mxu0 %v22798_v46  ;;  %v13366_v3 = vld [vmem:[%s24172_s14 + $0xf78] sm:$0xff] }
0x109b   : > { %18217 = vmatpush1.bf16.msra.mxu1 %v18216_v37  ;;  %18281 = vmatpush1.bf16.msra.mxu0 %v18280_v41  ;;  %v18236_v37 = vpack.c.bf16 %v13281_v17, %v13279_v53  ;;  %v18300_v41 = vpack.c.bf16 %v13345_v31, %v13343_v52  ;;  %v13299_v53 = vld [vmem:[%s24172_s14 + $0xd60] sm:$0xff]  ;;  %v13301_v17 = vld [vmem:[%s24172_s14 + $0xd70] sm:$0xff] }
0x109c   : > { %18219 = vmatprep.subr.bf16.mxu1 %v18218_v0  ;;  %18283 = vmatprep.subr.bf16.mxu0 %v18282_v25  ;;  %v18238_v0 = vpack.c.bf16 %v13286_v7, %v13284_v43  ;;  %v18302_v25 = vpack.c.bf16 %v13350_v48, %v13348_v2  ;;  %v13363_v52 = vld [vmem:[%s24172_s14 + $0xf60] sm:$0xff]  ;;  %v13365_v31 = vld [vmem:[%s24172_s14 + $0xf70] sm:$0xff]  ;;  %v13304_v43 = vld [vmem:[%s24172_s14 + $0xd88] sm:$0xff] }
0x109d   : > { %v13306_v7 = vld [vmem:[%s24172_s14 + $0xd98] sm:$0xff]  ;;  %v13368_v2 = vld [vmem:[%s24172_s14 + $0xf88] sm:$0xff] }
0x109e   : > { %v13370_v48 = vld [vmem:[%s24172_s14 + $0xf98] sm:$0xff] }
0x109f   : > { %18221 = vmatpush1.bf16.msra.mxu1 %v18220_v22  ;;  %18285 = vmatpush1.bf16.msra.mxu0 %v18284_v21  ;;  %v18240_v22 = vpack.c.bf16 %v13285_v29, %v13283_v1  ;;  %v18304_v21 = vpack.c.bf16 %v13349_v13, %v13347_v54  ;;  %v13303_v1 = vld [vmem:[%s24172_s14 + $0xd80] sm:$0xff]  ;;  %v13305_v29 = vld [vmem:[%s24172_s14 + $0xd90] sm:$0xff] }
0x10a0   : > { %18223 = vmatprep.subr.bf16.mxu1 %v18222_v19  ;;  %18287 = vmatprep.subr.bf16.mxu0 %v18286_v60  ;;  %v18242_v19 = vpack.c.bf16 %v13290_v26, %v13288_v11  ;;  %v18306_v60 = vpack.c.bf16 %v13354_v8, %v13352_v39  ;;  %v13367_v54 = vld [vmem:[%s24172_s14 + $0xf80] sm:$0xff]  ;;  %v13369_v13 = vld [vmem:[%s24172_s14 + $0xf90] sm:$0xff]  ;;  %v13308_v11 = vld [vmem:[%s24172_s14 + $0xda8] sm:$0xff] }
0x10a1   : > { %v13310_v26 = vld [vmem:[%s24172_s14 + $0xdb8] sm:$0xff]  ;;  %v13372_v39 = vld [vmem:[%s24172_s14 + $0xfa8] sm:$0xff] }
0x10a2   : > { %v13374_v8 = vld [vmem:[%s24172_s14 + $0xfb8] sm:$0xff] }
0x10a3   : > { %18225 = vmatpush1.bf16.msra.mxu1 %v18224_v27  ;;  %18289 = vmatpush1.bf16.msra.mxu0 %v18288_v56  ;;  %v18244_v27 = vpack.c.bf16 %v13289_v35, %v13287_v6  ;;  %v18308_v56 = vpack.c.bf16 %v13353_v12, %v13351_v9  ;;  %v13307_v6 = vld [vmem:[%s24172_s14 + $0xda0] sm:$0xff]  ;;  %v13309_v35 = vld [vmem:[%s24172_s14 + $0xdb0] sm:$0xff] }
0x10a4   : > { %18227 = vmatprep.subr.bf16.mxu1 %v18226_v47  ;;  %18291 = vmatprep.subr.bf16.mxu0 %v18290_v44  ;;  %v18246_v47 = vpack.c.bf16 %v13294_v61, %v13292_v5  ;;  %v18310_v44 = vpack.c.bf16 %v13358_v50, %v13356_v4  ;;  %v13371_v9 = vld [vmem:[%s24172_s14 + $0xfa0] sm:$0xff]  ;;  %v13373_v12 = vld [vmem:[%s24172_s14 + $0xfb0] sm:$0xff]  ;;  %v13312_v5 = vld [vmem:[%s24172_s14 + $0xdc8] sm:$0xff] }
0x10a5   : > { %v13314_v61 = vld [vmem:[%s24172_s14 + $0xdd8] sm:$0xff]  ;;  %v13376_v4 = vld [vmem:[%s24172_s14 + $0xfc8] sm:$0xff] }
0x10a6   : > { %v13378_v50 = vld [vmem:[%s24172_s14 + $0xfd8] sm:$0xff] }
0x10a7   : > { %18229 = vmatpush1.bf16.msra.mxu1 %v18228_v32  ;;  %18293 = vmatpush1.bf16.msra.mxu0 %v18292_v10  ;;  %v18248_v32 = vpack.c.bf16 %v13293_v45, %v13291_v42  ;;  %v18312_v10 = vpack.c.bf16 %v13357_v51, %v13355_v14  ;;  %v13311_v42 = vld [vmem:[%s24172_s14 + $0xdc0] sm:$0xff]  ;;  %v13313_v45 = vld [vmem:[%s24172_s14 + $0xdd0] sm:$0xff] }
0x10a8   : > { %18231 = vmatprep.subr.bf16.mxu1 %v18230_v34  ;;  %18295 = vmatprep.subr.bf16.mxu0 %v18294_v18  ;;  %v18250_v34 = vpack.c.bf16 %v13298_v55, %v13296_v63  ;;  %v18314_v18 = vpack.c.bf16 %v13362_v62, %v13360_v49  ;;  %v13375_v14 = vld [vmem:[%s24172_s14 + $0xfc0] sm:$0xff]  ;;  %v13377_v51 = vld [vmem:[%s24172_s14 + $0xfd0] sm:$0xff]  ;;  %v13316_v63 = vld [vmem:[%s24172_s14 + $0xde8] sm:$0xff] }
0x10a9   : > { %v13318_v55 = vld [vmem:[%s24172_s14 + $0xdf8] sm:$0xff]  ;;  %v13380_v49 = vld [vmem:[%s24172_s14 + $0xfe8] sm:$0xff] }
0x10aa   : > { %v13382_v62 = vld [vmem:[%s24172_s14 + $0xff8] sm:$0xff] }
0x10ab   : > { %18233 = vmatpush1.bf16.msra.mxu1 %v18232_v28  ;;  %18297 = vmatpush1.bf16.msra.mxu0 %v18296_v23  ;;  %v18252_v28 = vpack.c.bf16 %v13297_v59, %v13295_v30  ;;  %v18316_v23 = vpack.c.bf16 %v13361_v24, %v13359_v57  ;;  %v13315_v30 = vld [vmem:[%s24172_s14 + $0xde0] sm:$0xff]  ;;  %v18270_v59 = vpack.c.bf16 %v13318_v55, %v13316_v63  ;;  %v13381_v24 = vld [vmem:[%s24172_s14 + $0xff0] sm:$0xff] }
0x10ac   : > { %18235 = vmatprep.subr.bf16.mxu1 %v18234_v38  ;;  %18299 = vmatprep.subr.bf16.mxu0 %v18298_v16  ;;  %v18254_v38 = vpack.c.bf16 %v13302_v33, %v13300_v15  ;;  %v18318_v16 = vpack.c.bf16 %v13366_v3, %v13364_v58  ;;  %v13379_v57 = vld [vmem:[%s24172_s14 + $0xfe0] sm:$0xff]  ;;  %v13384_v15 = vld [vmem:[%s24172_s14 + $0x1008] sm:$0xff]  ;;  %v13386_v33 = vld [vmem:[%s24172_s14 + $0x1018] sm:$0xff] }
0x10ad   : > { %v18336_v3 = vpack.c.bf16 %v13381_v24, %v13379_v57  ;;  %v13415_v57 = vld [vmem:[%s24172_s14 + $0x1100] sm:$0xff]  ;;  %v13417_v24 = vld [vmem:[%s24172_s14 + $0x1110] sm:$0xff] }
0x10af   : > { %18237 = vmatpush1.bf16.msra.mxu1 %v18236_v37  ;;  %18301 = vmatpush1.bf16.msra.mxu0 %v18300_v41  ;;  %v18256_v37 = vpack.c.bf16 %v13301_v17, %v13299_v53  ;;  %v18320_v41 = vpack.c.bf16 %v13365_v31, %v13363_v52  ;;  %v13385_v53 = vld [vmem:[%s24172_s14 + $0x1010] sm:$0xff]  ;;  %v13388_v17 = vld [vmem:[%s24172_s14 + $0x1028] sm:$0xff]  ;;  %v13387_v31 = vld [vmem:[%s24172_s14 + $0x1020] sm:$0xff] }
0x10b0   : > { %18239 = vmatprep.subr.bf16.mxu1 %v18238_v0  ;;  %18303 = vmatprep.subr.bf16.mxu0 %v18302_v25  ;;  %v18258_v0 = vpack.c.bf16 %v13306_v7, %v13304_v43  ;;  %v18322_v25 = vpack.c.bf16 %v13370_v48, %v13368_v2  ;;  %v13389_v43 = vld [vmem:[%s24172_s14 + $0x1030] sm:$0xff]  ;;  %v13392_v7 = vld [vmem:[%s24172_s14 + $0x1048] sm:$0xff]  ;;  %v13394_v2 = vld [vmem:[%s24172_s14 + $0x1058] sm:$0xff] }
0x10b1   : > { %v18344_v48 = vpack.c.bf16 %v13389_v43, %v13387_v31  ;;  %v13425_v31 = vld [vmem:[%s24172_s14 + $0x1150] sm:$0xff]  ;;  %v13428_v43 = vld [vmem:[%s24172_s14 + $0x1168] sm:$0xff] }
0x10b3   : > { %18241 = vmatpush1.bf16.msra.mxu1 %v18240_v22  ;;  %18305 = vmatpush1.bf16.msra.mxu0 %v18304_v21  ;;  %v18260_v22 = vpack.c.bf16 %v13305_v29, %v13303_v1  ;;  %v18324_v21 = vpack.c.bf16 %v13369_v13, %v13367_v54  ;;  %v13393_v1 = vld [vmem:[%s24172_s14 + $0x1050] sm:$0xff]  ;;  %v13396_v29 = vld [vmem:[%s24172_s14 + $0x1068] sm:$0xff]  ;;  %v13395_v13 = vld [vmem:[%s24172_s14 + $0x1060] sm:$0xff] }
0x10b4   : > { %18243 = vmatprep.subr.bf16.mxu1 %v18242_v19  ;;  %18307 = vmatprep.subr.bf16.mxu0 %v18306_v60  ;;  %v18262_v19 = vpack.c.bf16 %v13310_v26, %v13308_v11  ;;  %v18326_v60 = vpack.c.bf16 %v13374_v8, %v13372_v39  ;;  %v13397_v11 = vld [vmem:[%s24172_s14 + $0x1070] sm:$0xff]  ;;  %v13400_v26 = vld [vmem:[%s24172_s14 + $0x1088] sm:$0xff] }
0x10b5   : > { %v18352_v39 = vpack.c.bf16 %v13397_v11, %v13395_v13  ;;  %v13433_v13 = vld [vmem:[%s24172_s14 + $0x1190] sm:$0xff]  ;;  %v13436_v11 = vld [vmem:[%s24172_s14 + $0x11a8] sm:$0xff] }
0x10b7   : > { %18245 = vmatpush1.bf16.msra.mxu1 %v18244_v27  ;;  %18309 = vmatpush1.bf16.msra.mxu0 %v18308_v56  ;;  %v18264_v27 = vpack.c.bf16 %v13309_v35, %v13307_v6  ;;  %v18328_v56 = vpack.c.bf16 %v13373_v12, %v13371_v9  ;;  %v13404_v6 = vld [vmem:[%s24172_s14 + $0x10a8] sm:$0xff]  ;;  %v13406_v35 = vld [vmem:[%s24172_s14 + $0x10b8] sm:$0xff]  ;;  %v13403_v9 = vld [vmem:[%s24172_s14 + $0x10a0] sm:$0xff] }
0x10b8   : > { %18247 = vmatprep.subr.bf16.mxu1 %v18246_v47  ;;  %18311 = vmatprep.subr.bf16.mxu0 %v18310_v44  ;;  %v18266_v47 = vpack.c.bf16 %v13314_v61, %v13312_v5  ;;  %v18330_v44 = vpack.c.bf16 %v13378_v50, %v13376_v4  ;;  %v13405_v12 = vld [vmem:[%s24172_s14 + $0x10b0] sm:$0xff]  ;;  %v13408_v5 = vld [vmem:[%s24172_s14 + $0x10c8] sm:$0xff]  ;;  %v13410_v61 = vld [vmem:[%s24172_s14 + $0x10d8] sm:$0xff] }
0x10bb   : > { %18249 = vmatpush1.bf16.msra.mxu1 %v18248_v32  ;;  %18313 = vmatpush1.bf16.msra.mxu0 %v18312_v10  ;;  %v18268_v32 = vpack.c.bf16 %v13313_v45, %v13311_v42  ;;  %v18332_v10 = vpack.c.bf16 %v13377_v51, %v13375_v14  ;;  %v13407_v42 = vld [vmem:[%s24172_s14 + $0x10c0] sm:$0xff]  ;;  %v13409_v45 = vld [vmem:[%s24172_s14 + $0x10d0] sm:$0xff] }
0x10bc   : > { %18251 = vmatprep.subr.bf16.mxu1 %v18250_v34  ;;  %18315 = vmatprep.subr.bf16.mxu0 %v18314_v18  ;;  %v18334_v34 = vpack.c.bf16 %v13382_v62, %v13380_v49  ;;  %v13317_v18 = vld [vmem:[%s24172_s14 + $0xdf0] sm:$0xff]  ;;  %v18364_v63 = vpack.c.bf16 %v13409_v45, %v13407_v42 }
0x10bd   : > { %v18272_v58 = vpack.c.bf16 %v13317_v18, %v13315_v30  ;;  %v13416_v30 = vld [vmem:[%s24172_s14 + $0x1108] sm:$0xff]  ;;  %v13445_v42 = vld [vmem:[%s24172_s14 + $0x11f0] sm:$0xff] }
0x10bf   : > { %18253 = vmatpush1.bf16.msra.mxu1 %v18252_v28  ;;  %18317 = vmatpush1.bf16.msra.mxu0 %v18316_v23  ;;  %v18338_v28 = vpack.c.bf16 %v13386_v33, %v13384_v15  ;;  %v13383_v23 = vld [vmem:[%s24172_s14 + $0x1000] sm:$0xff]  ;;  %v13420_v15 = vld [vmem:[%s24172_s14 + $0x1128] sm:$0xff]  ;;  %v13422_v33 = vld [vmem:[%s24172_s14 + $0x1138] sm:$0xff] }
0x10c0   : > { %18255 = vmatprep.subr.bf16.mxu1 %v18254_v38  ;;  %18319 = vmatprep.subr.bf16.mxu0 %v18318_v16  ;;  %v13390_v38 = vld [vmem:[%s24172_s14 + $0x1038] sm:$0xff]  ;;  %v18340_v16 = vpack.c.bf16 %v13385_v53, %v13383_v23  ;;  %v13421_v23 = vld [vmem:[%s24172_s14 + $0x1130] sm:$0xff]  ;;  %v13424_v53 = vld [vmem:[%s24172_s14 + $0x1148] sm:$0xff] }
0x10c1   : > { %v18342_v52 = vpack.c.bf16 %v13390_v38, %v13388_v17  ;;  %v13426_v17 = vld [vmem:[%s24172_s14 + $0x1158] sm:$0xff] }
0x10c3   : > { %18257 = vmatpush1.bf16.msra.mxu1 %v18256_v37  ;;  %18321 = vmatpush1.bf16.msra.mxu0 %v18320_v41  ;;  %v18346_v37 = vpack.c.bf16 %v13394_v2, %v13392_v7  ;;  %v13391_v41 = vld [vmem:[%s24172_s14 + $0x1040] sm:$0xff]  ;;  %v13430_v7 = vld [vmem:[%s24172_s14 + $0x1178] sm:$0xff] }
0x10c4   : > { %18259 = vmatprep.subr.bf16.mxu1 %v18258_v0  ;;  %18323 = vmatprep.subr.bf16.mxu0 %v18322_v25  ;;  %v13398_v0 = vld [vmem:[%s24172_s14 + $0x1078] sm:$0xff]  ;;  %v18348_v25 = vpack.c.bf16 %v13393_v1, %v13391_v41  ;;  %v13429_v41 = vld [vmem:[%s24172_s14 + $0x1170] sm:$0xff]  ;;  %v13432_v1 = vld [vmem:[%s24172_s14 + $0x1188] sm:$0xff] }
0x10c5   : > { %v18350_v54 = vpack.c.bf16 %v13398_v0, %v13396_v29  ;;  %v13434_v29 = vld [vmem:[%s24172_s14 + $0x1198] sm:$0xff] }
0x10c7   : > { %18261 = vmatpush1.bf16.msra.mxu1 %v18260_v22  ;;  %18325 = vmatpush1.bf16.msra.mxu0 %v18324_v21  ;;  %v13399_v22 = vld [vmem:[%s24172_s14 + $0x1080] sm:$0xff]  ;;  %v13401_v21 = vld [vmem:[%s24172_s14 + $0x1090] sm:$0xff] }
0x10c8   : > { %18263 = vmatprep.subr.bf16.mxu1 %v18262_v19  ;;  %18327 = vmatprep.subr.bf16.mxu0 %v18326_v60  ;;  %v18356_v19 = vpack.c.bf16 %v13401_v21, %v13399_v22  ;;  %v18358_v60 = vpack.c.bf16 %v13406_v35, %v13404_v6  ;;  %v13437_v22 = vld [vmem:[%s24172_s14 + $0x11b0] sm:$0xff]  ;;  %v13440_v21 = vld [vmem:[%s24172_s14 + $0x11c8] sm:$0xff]  ;;  %v13442_v6 = vld [vmem:[%s24172_s14 + $0x11d8] sm:$0xff] }
0x10cb   : > { %18265 = vmatpush1.bf16.msra.mxu1 %v18264_v27  ;;  %18329 = vmatpush1.bf16.msra.mxu0 %v18328_v56  ;;  %v18360_v27 = vpack.c.bf16 %v13405_v12, %v13403_v9  ;;  %v18362_v56 = vpack.c.bf16 %v13410_v61, %v13408_v5  ;;  %v13441_v9 = vld [vmem:[%s24172_s14 + $0x11d0] sm:$0xff]  ;;  %v13444_v12 = vld [vmem:[%s24172_s14 + $0x11e8] sm:$0xff]  ;;  %v13446_v5 = vld [vmem:[%s24172_s14 + $0x11f8] sm:$0xff] }
0x10cc   : > { %18267 = vmatprep.subr.bf16.mxu1 %v18266_v47  ;;  %18331 = vmatprep.subr.bf16.mxu0 %v18330_v44  ;;  %v13412_v47 = vld [vmem:[%s24172_s14 + $0x10e8] sm:$0xff]  ;;  %v13414_v44 = vld [vmem:[%s24172_s14 + $0x10f8] sm:$0xff] }
0x10cd   : > { %v18366_v62 = vpack.c.bf16 %v13414_v44, %v13412_v47 }
0x10cf   : > { %18269 = vmatpush1.bf16.msra.mxu1 %v18268_v32  ;;  %18333 = vmatpush1.bf16.msra.mxu0 %v18332_v10  ;;  %v13411_v32 = vld [vmem:[%s24172_s14 + $0x10e0] sm:$0xff]  ;;  %v13413_v10 = vld [vmem:[%s24172_s14 + $0x10f0] sm:$0xff] }
0x10d0   : > { %18271 = vmatprep.subr.bf16.mxu1 %v18270_v59  ;;  %18335 = vmatprep.subr.bf16.mxu0 %v18334_v34  ;;  %v13418_v59 = vld [vmem:[%s24172_s14 + $0x1118] sm:$0xff]  ;;  %v18368_v34 = vpack.c.bf16 %v13413_v10, %v13411_v32 }
0x10d1   : > { %v18370_v18 = vpack.c.bf16 %v13418_v59, %v13416_v30 }
0x10d3   : > { %18273 = vmatpush1.bf16.msra.mxu1 %v18272_v58  ;;  %18337 = vmatpush1.bf16.msra.mxu0 %v18336_v3  ;;  %v18372_v58 = vpack.c.bf16 %v13417_v24, %v13415_v57  ;;  %v18374_v3 = vpack.c.bf16 %v13422_v33, %v13420_v15 }
0x10d4   : > { %18339 = vmatprep.subr.bf16.mxu1 %v18338_v28  ;;  %v13419_v28 = vld [vmem:[%s24172_s14 + $0x1120] sm:$0xff] }
0x10d5   : > { %v18376_v38 = vpack.c.bf16 %v13421_v23, %v13419_v28 }
0x10d6   : > { %11594 = vmatmul.mubr.f32.vlgmr.msra.gmra.mrb[128].mxu1 %v22793_v40  ;;  %11742 = vmatmul.mubr.f32.vlgmr.msra.gmra.mrb[84].mxu0 %v22793_v40 }
0x10d7   : > { %11599 = vmatprep.mubr.f32.mxu1 %v22833_v20  ;;  %11747 = vmatprep.mubr.f32.mxu0 %v22833_v20 }
0x10d8   : > { %18341 = vmatpush1.bf16.msra.mxu1 %v18340_v16  ;;  %v18378_v16 = vpack.c.bf16 %v13426_v17, %v13424_v53 }
0x10d9   : > { %18343 = vmatprep.subr.bf16.mxu1 %v18342_v52  ;;  %v13423_v52 = vld [vmem:[%s24172_s14 + $0x1140] sm:$0xff] }
0x10da   : > { %11600 = vmatmul.mubr.f32.gmra.mrb[130].mxu1 %v22825_v36  ;;  %11748 = vmatmul.mubr.f32.gmra.mrb[86].mxu0 %v22825_v36  ;;  %v18380_v2 = vpack.c.bf16 %v13425_v31, %v13423_v52 }
0x10db   : > { %11889 = vmatprep.mubr.f32.mxu1 %v22798_v46  ;;  %v13402_v46 = vld [vmem:[%s24172_s14 + $0x1098] sm:$0xff] }
0x10dc   : > { %18345 = vmatpush1.bf16.msra.mxu1 %v18344_v48  ;;  %v18354_v8 = vpack.c.bf16 %v13402_v46, %v13400_v26  ;;  %v18382_v48 = vpack.c.bf16 %v13430_v7, %v13428_v43  ;;  %v13438_v26 = vld [vmem:[%s24172_s14 + $0x11b8] sm:$0xff] }
0x10dd   : > { %18347 = vmatprep.subr.bf16.mxu1 %v18346_v37  ;;  %v13427_v37 = vld [vmem:[%s24172_s14 + $0x1160] sm:$0xff] }
0x10de   : > { %v18384_v0 = vpack.c.bf16 %v13429_v41, %v13427_v37 }
0x10e0   : > { %18349 = vmatpush1.bf16.msra.mxu1 %v18348_v25  ;;  %v18386_v25 = vpack.c.bf16 %v13434_v29, %v13432_v1 }
0x10e1   : > { %18351 = vmatprep.subr.bf16.mxu1 %v18350_v54  ;;  %v13431_v54 = vld [vmem:[%s24172_s14 + $0x1180] sm:$0xff] }
0x10e2   : > { %v18388_v46 = vpack.c.bf16 %v13433_v13, %v13431_v54 }
0x10e4   : > { %18353 = vmatpush1.bf16.msra.mxu1 %v18352_v39  ;;  %v18390_v39 = vpack.c.bf16 %v13438_v26, %v13436_v11 }
0x10e5   : > { %18355 = vmatprep.subr.bf16.mxu1 %v18354_v8  ;;  %v13435_v8 = vld [vmem:[%s24172_s14 + $0x11a0] sm:$0xff] }
0x10e6   : > { %v18392_v35 = vpack.c.bf16 %v13437_v22, %v13435_v8  ;;  %v11908_v22 = vlaneseq }
0x10e7   : > { %v24028_v4 = vpop.f32.mrb[72].mxu0 }
0x10e8   : > { %18357 = vmatpush1.bf16.msra.mxu1 %v18356_v19  ;;  %v24030_v50 = vpop.f32.mrb[73].mxu0  ;;  %v18394_v19 = vpack.c.bf16 %v13442_v6, %v13440_v21  ;;  %v11909_v21 = vshrl.u32 %v11908_v22, 7  ;;  %vm11936_vm2 = vcmp.lt.s32.totalorder %v11908_v22, 256 }
0x10e9   : > { %18359 = vmatprep.subr.bf16.mxu1 %v18358_v60  ;;  %v13439_v60 = vld [vmem:[%s24172_s14 + $0x11c0] sm:$0xff] }
0x10ea   : > { %v18396_v61 = vpack.c.bf16 %v13441_v9, %v13439_v60  ;;  %v11906_v60 = vpop.permute.xlu0 %11905 }
0x10eb   : > { %v10721_v14 = vpop.f32.mrb[118].mxu1  ;;  %v10861_v51 = vpop.f32.mrb[74].mxu0 }
0x10ec   : > { %18361 = vmatpush1.bf16.msra.mxu1 %v18360_v27  ;;  %v10722_v55 = vpop.f32.mrb[119].mxu1  ;;  %v10862_v49 = vpop.f32.mrb[75].mxu0  ;;  %v18398_v27 = vpack.c.bf16 %v13446_v5, %v13444_v12  ;;  %v10866_v14 = vrot.slane %v24028_v4, 1 }
0x10ed   : > { %18363 = vmatprep.subr.bf16.mxu1 %v18362_v56  ;;  %v13443_v56 = vld [vmem:[%s24172_s14 + $0x11e0] sm:$0xff]  ;;  %v10867_v49 = vrot.slane %v24030_v50, 1 }
0x10ee   : > { %v18400_v45 = vpack.c.bf16 %v13445_v42, %v13443_v56 }
0x10f0   : > { %18365 = vmatpush1.bf16.msra.mxu1 %v18364_v63 }
0x10f1   : > { %18367 = vmatprep.subr.bf16.mxu1 %v18366_v62 }
0x10f4   : > { %18369 = vmatpush1.bf16.msra.mxu1 %v18368_v34 }
0x10f5   : > { %18371 = vmatprep.subr.bf16.mxu1 %v18370_v18 }
0x10f8   : > { %18373 = vmatpush1.bf16.msra.mxu1 %v18372_v58 }
0x10f9   : > { %18375 = vmatprep.subr.bf16.mxu1 %v18374_v3 }
0x10fc   : > { %18377 = vmatpush1.bf16.msra.mxu1 %v18376_v38 }
0x10fd   : > { %18379 = vmatprep.subr.bf16.mxu1 %v18378_v16 }
0x1100   : > { %18381 = vmatpush1.bf16.msra.mxu1 %v18380_v2 }
0x1101   : > { %18383 = vmatprep.subr.bf16.mxu1 %v18382_v48 }
0x1104   : > { %18385 = vmatpush1.bf16.msra.mxu1 %v18384_v0 }
0x1105   : > { %18387 = vmatprep.subr.bf16.mxu1 %v18386_v25 }
0x1108   : > { %18389 = vmatpush1.bf16.msra.mxu1 %v18388_v46 }
0x1109   : > { %18391 = vmatprep.subr.bf16.mxu1 %v18390_v39 }
0x110c   : > { %18393 = vmatpush1.bf16.msra.mxu1 %v18392_v35  ;;  %v11910_v35 = vsub.s32 0, %v11909_v21 }
0x110d   : > { %18395 = vmatprep.subr.bf16.mxu1 %v18394_v19 }
0x110e   : > { %v11911_v12 = vrot.slane %v11906_v60, %v11910_v35 }
0x1110   : > { %18397 = vmatpush1.bf16.msra.mxu1 %v18396_v61 }
0x1111   : > { %18399 = vmatprep.subr.bf16.mxu1 %v18398_v27 }
0x1114   : > { %18401 = vmatpush1.bf16.msra.mxu1 %v18400_v45  ;;  %v18863_v45 = vmov 1966171168  }
0x1117   : > { %11890 = vmatmul.mubr.f32.vlgmr.msra.gmra.mrb[132].mxu1 %v22793_v40 }
0x1118   : > { %11893 = vmatprep.mubr.f32.mxu1 %v22833_v20 }
0x111b   : > { %11894 = vmatmul.mubr.f32.gmra.mrb[116].mxu1 %v22825_v36 }
0x1127   : > { %v11003_v47 = vpop.f32.mrb[120].mxu1  ;;  %v11151_v44 = vpop.f32.mrb[76].mxu0 }
0x1128   : > { %v11014_v51 = vrot.slane %v11003_v47, 2  ;;  %v11005_v63 = vpop.f32.mrb[121].mxu1  ;;  %v11153_v55 = vpop.f32.mrb[77].mxu0  ;;  %v11162_v10 = vrot.slane %v11151_v44, 3  ;;  %v11920_v47 = vunpack.c.l.s4 %v18863_v45 }
0x1129   : > { %v11015_v62 = vrot.slane %v11005_v63, 2  ;;  %v11163_v59 = vrot.slane %v11153_v55, 3 }
0x112a   : > { %v18402_v32 = vadd.f32 %v11014_v51, %v10866_v14  ;;  %v11921_v44 = vunpack.c.0.s8 %v11920_v47 }
0x112b   : > { %v18409_v30 = vadd.f32 %v11015_v62, %v10867_v49  ;;  %v11009_v34 = vpop.f32.mrb[122].mxu1  ;;  %v11157_v40 = vpop.f32.mrb[78].mxu0 }
0x112c   : > { %v18403_v18 = vadd.f32 %v18402_v32, %v11162_v10  ;;  %v11010_v20 = vpop.f32.mrb[123].mxu1  ;;  %v11158_v57 = vpop.f32.mrb[79].mxu0  ;;  %v11924_v51 = vsub.s32 %v11921_v44, %v11909_v21 }
0x112d   : > { %v18410_v36 = vadd.f32 %v18409_v30, %v11163_v59 }
0x1168   : > { %v11299_v24 = vpop.f32.mrb[124].mxu1  ;;  %v11447_v15 = vpop.f32.mrb[80].mxu0 }
0x1169   : > { %v11310_v33 = vrot.slane %v11299_v24, 4  ;;  %v11301_v4 = vpop.f32.mrb[125].mxu1  ;;  %v11449_v58 = vpop.f32.mrb[81].mxu0  ;;  %v11458_v23 = vrot.slane %v11447_v15, 5 }
0x116a   : > { %v11311_v3 = vrot.slane %v11301_v4, 4  ;;  %v11459_v53 = vrot.slane %v11449_v58, 5 }
0x116b   : > { %v18404_v28 = vadd.f32 %v18403_v18, %v11310_v33 }
0x116c   : > { %v18411_v50 = vadd.f32 %v18410_v36, %v11311_v3  ;;  %v11305_v17 = vpop.f32.mrb[126].mxu1  ;;  %v11453_v38 = vpop.f32.mrb[82].mxu0 }
0x116d   : > { %v18405_v16 = vadd.f32 %v18404_v28, %v11458_v23  ;;  %v11306_v52 = vpop.f32.mrb[127].mxu1  ;;  %v11454_v31 = vpop.f32.mrb[83].mxu0 }
0x116e   : > { %v18412_v43 = vadd.f32 %v18411_v50, %v11459_v53 }
0x11a9   : > { %v11595_v7 = vpop.f32.mrb[128].mxu1  ;;  %v11743_v2 = vpop.f32.mrb[84].mxu0 }
0x11aa   : > { %v11606_v48 = vrot.slane %v11595_v7, 6  ;;  %v11597_v37 = vpop.f32.mrb[129].mxu1  ;;  %v11745_v41 = vpop.f32.mrb[85].mxu0  ;;  %v11754_v0 = vrot.slane %v11743_v2, 7 }
0x11ab   : > { %v11607_v1 = vrot.slane %v11597_v37, 6  ;;  %v11755_v54 = vrot.slane %v11745_v41, 7 }
0x11ac   : > { %v18406_v29 = vadd.f32 %v18405_v16, %v11606_v48 }
0x11ad   : > { %v18413_v25 = vadd.f32 %v18412_v43, %v11607_v1  ;;  %v11601_v13 = vpop.f32.mrb[130].mxu1  ;;  %v11749_v11 = vpop.f32.mrb[86].mxu0 }
0x11ae   : > { %v11602_v26 = vpop.f32.mrb[131].mxu1  ;;  %v11750_v46 = vpop.f32.mrb[87].mxu0  ;;  %v18407_v39 = vadd.f32 %v18406_v29, %v11754_v0 }
0x11af   : > { %v18414_v8 = vadd.f32 %v18413_v25, %v11755_v54 }
0x11ea   : > { %v11891_v6 = vpop.f32.mrb[132].mxu1 }
0x11eb   : > { %v11892_v19 = vpop.f32.mrb[133].mxu1 }
0x11ee   : > { %v11895_v9 = vpop.f32.mrb[116].mxu1 }
0x11ef   : > { %v18408_v5 = vadd.f32 %v18407_v39, %v11895_v9  ;;  %v11897_v61 = vpop.f32.mrb[117].mxu1 }
0x11f0   : > { %v18415_v27 = vadd.f32 %v18414_v8, %v11897_v61 }
0x11f1   : > { %v11912_v56 = vadd.f32 %v18408_v5, %v11911_v12 }
0x11f2   : > { %v11913_v42 = vadd.f32 %v18415_v27, %v11911_v12 }
0x11f3   : > { %18752 = vtanh.f32 %v11912_v56 }
0x11f4   : > { %18754 = vtanh.f32 %v11913_v42 }
0x11fd   : > { %v18753_v14 = vpop.eup %18752 }
0x11fe   : > { %v18755_v63 = vpop.eup %18754 }
0x11ff   : > { %v11918_v55 = vcombine.low %v18753_v14, %v18755_v63 }
0x1201   : > { %v11925_v49 = vrot.slane %v11918_v55, %v11924_v51 }
0x1203   : > { %v11932_v62 = vrot.slane %v11925_v49, %v11924_v51 }
0x1205   : > { %11938 = vst.msk [vmem:[%s646_s26] sm:$0x3] %vm11936_vm2, %v11932_v62 }
0x1206 PF: > { %s24246_s27 = sld [smem:[#allocation10_spill]] }
0x120c   : > { %s33_s20 = sadd.s32 1, %s24246_s27  }
0x120d   : > { %p30_p5 = scmp.ge.s32.totalorder %s33_s20, 4  }
0x120f   :  { %32 = sbr.rel (!%p30_p5) target bundleno = 9 (0x9), region = 189 }
0x1216   :  { %11958 = vsyncpa [#allocation4], 1 }
0x1217   :  { %11960 = vsyncpa [#allocation4 + $0x1], 1 }
0x1218   :  { %11961 = vsyncpa [#allocation6], 1 }

</bundles_post_ra>
